<compile_context>
chip_gen: v7x
topology: tpu7x:2x2x1
jax: 0.10.0
libtpu: 0.0.40
codegen_flags: <defaults>
</compile_context>

<pallas_src>
import functools

import jax
import jax.numpy as jnp
from jax.experimental import pallas as pl
from jax.experimental.pallas import tpu as pltpu


_VMEM_LIMIT = 32 * 1024 * 1024     # safe on v5e/v6e/v7x; blocks below are far smaller


def _round_up(x, m):
    return (x + m - 1) // m * m


def _im2col_nhwc(x, k, stride, pad):
    """x: [B, H, W, C] channels-last -> patches [B, Ho*Wo, k*k*C].
    Feature order is (kh, kw, c) with c minor, matching a weight transposed to
    (kh, kw, Cin, Cout) and reshaped to (k*k*Cin, Cout)."""
    B, H, W, C = x.shape
    xp = jnp.pad(x, ((0, 0), (pad, pad), (pad, pad), (0, 0)))
    Hp, Wp = H + 2 * pad, W + 2 * pad
    Ho = (Hp - k) // stride + 1
    Wo = (Wp - k) // stride + 1
    taps = []
    for i in range(k):
        for j in range(k):
            taps.append(xp[:, i:i + stride * (Ho - 1) + 1:stride,
                              j:j + stride * (Wo - 1) + 1:stride, :])
    p = jnp.stack(taps, axis=3)                    # [B, Ho, Wo, k*k, C]
    return p.reshape(B, Ho * Wo, k * k * C), Ho, Wo


def _pick_batch_tile(B, hw_pad, k_dim):
    """Pack samples into the matmul M dim: target ~512 rows per grid step and cap
    the bf16 patch block at ~8 MiB (double-buffered by the pipeline)."""
    bt = min(B, max(1, 512 // hw_pad), max(1, (8 << 20) // (hw_pad * k_dim * 2)))
    while B % bt:
        bt -= 1
    return bt


# ------------- kernel 1: Conv2d(bias=False) + InstanceNorm2d + LeakyReLU(0.2) -------------
def _conv_in_lrelu_kernel(p_ref, w_ref, o_ref, *, bt, hw_pad, hw_real):
    # p_ref: (bt*hw_pad, K) bf16   w_ref: (K, cn) bf16   o_ref: (bt*hw_pad, cn) bf16
    y = jnp.dot(p_ref[...], w_ref[...], preferred_element_type=jnp.float32)
    cn = y.shape[-1]
    y3 = y.reshape(bt, hw_pad, cn)                 # hw_pad % 8 == 0 -> tile-aligned split
    # One-pass InstanceNorm stats in f32 (zero-padded rows do not affect the sums).
    inv_n = 1.0 / float(hw_real)
    s1 = jnp.sum(y3, axis=1, keepdims=True)
    s2 = jnp.sum(y3 * y3, axis=1, keepdims=True)
    mean = s1 * inv_n
    var = jnp.maximum(s2 * inv_n - mean * mean, 0.0)          # biased variance
    yn = (y3 - mean) * jax.lax.rsqrt(var + 1e-5)
    yn = jnp.where(yn > 0, yn, 0.2 * yn)                      # LeakyReLU(0.2)
    o_ref[...] = yn.reshape(bt * hw_pad, cn).astype(o_ref.dtype)


def conv_in_lrelu(x, w, *, stride=2, pad=1, cout_tile=256):
    """Fused Conv2d(k=4, s=2, p=1, bias=False) + InstanceNorm2d + LeakyReLU(0.2).

    x: [B, H, W, C_act] channels-last (C_act >= w's Cin; extra channels are zeros).
    w: [Cout, Cin, k, k] (PyTorch layout).
    Returns [B, Ho, Wo, Cout_pad] channels-last bf16, Cout_pad = round_up(Cout, 128);
    channels >= Cout are exact zeros.
    """
    B, H, W, C_act = x.shape
    Cout, Cin, k, _ = w.shape

    # Weight -> (k*k*C_act, Cout_pad) bf16, rows ordered (kh, kw, c)-minor.
    wt = jnp.transpose(w, (2, 3, 1, 0))                       # (k, k, Cin, Cout)
    if C_act > Cin:
        wt = jnp.pad(wt, ((0, 0), (0, 0), (0, C_act - Cin), (0, 0)))
    Cout_pad = _round_up(Cout, 128)
    if Cout_pad > Cout:
        wt = jnp.pad(wt, ((0, 0), (0, 0), (0, 0), (0, Cout_pad - Cout)))
    K = k * k * C_act
    wmat = wt.reshape(K, Cout_pad).astype(jnp.bfloat16)

    # bf16 channels-last im2col; K is a multiple of 128 (lane-dense).
    p, Ho, Wo = _im2col_nhwc(x.astype(jnp.bfloat16), k, stride, pad)
    HW = Ho * Wo
    HW_pad = _round_up(HW, 8)                                 # sublane-aligned rows/sample
    if HW_pad > HW:
        p = jnp.pad(p, ((0, 0), (0, HW_pad - HW), (0, 0)))
    bt = _pick_batch_tile(B, HW_pad, K)
    mb = bt * HW_pad
    p2 = p.reshape(B * HW_pad, K)                             # samples packed into M

    cn = Cout_pad if Cout_pad <= cout_tile else cout_tile
    if Cout_pad % cn:
        cn = 128
    grid = (B // bt, Cout_pad // cn)

    out = pl.pallas_call(
        functools.partial(_conv_in_lrelu_kernel, bt=bt, hw_pad=HW_pad, hw_real=HW),
        out_shape=jax.ShapeDtypeStruct((B * HW_pad, Cout_pad), jnp.bfloat16),
        grid_spec=pltpu.PrefetchScalarGridSpec(
            num_scalar_prefetch=0,
            grid=grid,
            in_specs=[pl.BlockSpec((mb, K), lambda i, j: (i, 0)),
                      pl.BlockSpec((K, cn), lambda i, j: (0, j))],
            out_specs=pl.BlockSpec((mb, cn), lambda i, j: (i, j))),
        compiler_params=pltpu.CompilerParams(
            dimension_semantics=("parallel", "parallel"),
            vmem_limit_bytes=_VMEM_LIMIT),
    )(p2, wmat)

    out = out.reshape(B, HW_pad, Cout_pad)[:, :HW, :]
    return out.reshape(B, Ho, Wo, Cout_pad)


# ------------- kernel 2: final Conv2d(512->1, k=4, p=1, bias) + AdaptiveAvgPool2d(1) -------------
def _final_kernel(p_ref, w_ref, b_ref, o_ref):
    # p_ref: (B, K) bf16   w_ref: (K, 128) bf16   b_ref: (1,) f32 SMEM   o_ref: (B, 128) f32
    y = jnp.dot(p_ref[...], w_ref[...], preferred_element_type=jnp.float32)
    o_ref[...] = y + b_ref[0]


def final_layer(x, w, b):
    """x: [B, Hs, Ws, C_act] channels-last bf16; w: [1, Cin, k, k]; b: [1] -> [B]."""
    B, Hs, Ws, C_act = x.shape
    _, Cin, k, _ = w.shape
    p, Ho, Wo = _im2col_nhwc(x, k, stride=1, pad=1)           # [B, HW, K]
    HW = Ho * Wo
    K = k * k * C_act
    # Fold AdaptiveAvgPool2d(1) into one pooled patch row per sample (f32 sum).
    p_pooled = (jnp.sum(p.astype(jnp.float32), axis=1) * (1.0 / HW)).astype(jnp.bfloat16)

    wt = jnp.transpose(w, (2, 3, 1, 0))                       # (k, k, Cin, 1)
    if C_act > Cin:
        wt = jnp.pad(wt, ((0, 0), (0, 0), (0, C_act - Cin), (0, 0)))
    N = 128                                                   # lane-dense output
    wmat = jnp.pad(wt.reshape(K, 1), ((0, 0), (0, N - 1))).astype(jnp.bfloat16)

    out = pl.pallas_call(
        _final_kernel,
        out_shape=jax.ShapeDtypeStruct((B, N), jnp.float32),
        grid_spec=pltpu.PrefetchScalarGridSpec(
            num_scalar_prefetch=0,
            grid=(1,),
            in_specs=[pl.BlockSpec((B, K), lambda i: (0, 0)),
                      pl.BlockSpec((K, N), lambda i: (0, 0)),
                      pl.BlockSpec(memory_space=pltpu.MemorySpace.SMEM)],
            out_specs=pl.BlockSpec((B, N), lambda i: (0, 0))),
        compiler_params=pltpu.CompilerParams(
            dimension_semantics=("arbitrary",),
            vmem_limit_bytes=_VMEM_LIMIT),
    )(p_pooled, wmat, b.astype(jnp.float32))
    return out[:, 0]


def discriminator_forward(x, conv_weights, final_w, final_b):
    """DiscriminatorWGANGP.forward: 4x (Conv s2 + InstanceNorm + LeakyReLU(0.2)),
    then Conv(512->1, k=4, p=1) + AdaptiveAvgPool2d(1), flattened to [B].
    x is NCHW (PyTorch layout)."""
    # NCHW -> channels-last once; zero-pad input channels to a multiple of 8.
    x = jnp.transpose(x, (0, 2, 3, 1))
    C = x.shape[-1]
    Cp = _round_up(C, 8)
    if Cp > C:
        x = jnp.pad(x, ((0, 0), (0, 0), (0, 0), (0, Cp - C)))
    out = x
    for w in conv_weights:
        out = conv_in_lrelu(out, w, stride=2, pad=1)
    return final_layer(out, final_w, final_b)


if __name__ == "__main__":
    # smallest spatial size compatible with 4 stride-2 convs + the final k=4 conv
    B, Cin, H, W = 2, 4, 32, 32
    features = [64, 128, 256, 512]

    key = jax.random.PRNGKey(0)
    keys = jax.random.split(key, len(features) + 3)

    x = jax.random.normal(keys[0], (B, Cin, H, W), jnp.float32)

    conv_weights = []
    cin = Cin
    for i, f in enumerate(features):
        fan_in = cin * 4 * 4
        w = jax.random.normal(keys[i + 1], (f, cin, 4, 4), jnp.float32) * (fan_in ** -0.5)
        conv_weights.append(w)
        cin = f

    final_w = jax.random.normal(keys[-2], (1, features[-1], 4, 4), jnp.float32) * 0.01
    final_b = jax.random.normal(keys[-1], (1,), jnp.float32) * 0.01

    fwd = jax.jit(discriminator_forward)
    out = jax.block_until_ready(fwd(x, conv_weights, final_w, final_b))
    assert out.shape == (B,) and out.dtype == jnp.float32
    print("KERNEL_OK")
</pallas_src>

<mosaic_0001>
module attributes {stable_mosaic.version = 11 : i64} {
  func.func @_conv_in_lrelu_kernel(%arg0: i32, %arg1: i32, %arg2: memref<512x128xbf16, #tpu.memory_space<vmem>>, %arg3: memref<128x128xbf16, #tpu.memory_space<vmem>>, %arg4: memref<512x128xbf16, #tpu.memory_space<vmem>>) attributes {dimension_semantics = [#tpu.dimension_semantics<parallel>, #tpu.dimension_semantics<parallel>], iteration_bounds = array<i64: 1, 1>, scalar_prefetch = 0 : i64, scratch_operands = 0 : i64, tpu.core_type = #tpu.core_type<tc>, window_params = [{transform_indices = @transform_0, window_bounds = array<i64: 512, 128>}, {transform_indices = @transform_1, window_bounds = array<i64: 128, 128>}, {transform_indices = @transform_2, window_bounds = array<i64: 512, 128>}]} {
    %c0 = arith.constant 0 : index
    %c0_0 = arith.constant 0 : index
    %0 = vector.load %arg2[%c0, %c0_0] : memref<512x128xbf16, #tpu.memory_space<vmem>>, vector<512x128xbf16>
    %c0_1 = arith.constant 0 : index
    %c0_2 = arith.constant 0 : index
    %1 = vector.load %arg3[%c0_1, %c0_2] : memref<128x128xbf16, #tpu.memory_space<vmem>>, vector<128x128xbf16>
    %cst = arith.constant dense<0.000000e+00> : vector<512x128xf32>
    %2 = tpu.matmul %0, %1, %cst {dimension_numbers = #tpu.dot_dimension_numbers<[1], [0], [0], [1], [0, 0, 1, 1], [], []>} : vector<512x128xbf16>, vector<128x128xbf16>, vector<512x128xf32> -> vector<512x128xf32>
    %3 = vector.shape_cast %2 : vector<512x128xf32> to vector<2x256x128xf32>
    %cst_3 = arith.constant dense<0.000000e+00> : vector<2x128xf32>
    %4 = vector.multi_reduction <add>, %3, %cst_3 [1] : vector<2x256x128xf32> to vector<2x128xf32>
    %5 = vector.shape_cast %4 : vector<2x128xf32> to vector<2x1x128xf32>
    %6 = arith.mulf %3, %3 : vector<2x256x128xf32>
    %cst_4 = arith.constant dense<0.000000e+00> : vector<2x128xf32>
    %7 = vector.multi_reduction <add>, %6, %cst_4 [1] : vector<2x256x128xf32> to vector<2x128xf32>
    %8 = vector.shape_cast %7 : vector<2x128xf32> to vector<2x1x128xf32>
    %cst_5 = arith.constant 3.906250e-03 : f32
    %9 = vector.broadcast %cst_5 : f32 to vector<2x1x128xf32>
    %10 = arith.mulf %5, %9 : vector<2x1x128xf32>
    %cst_6 = arith.constant 3.906250e-03 : f32
    %11 = vector.broadcast %cst_6 : f32 to vector<2x1x128xf32>
    %12 = arith.mulf %8, %11 : vector<2x1x128xf32>
    %13 = arith.mulf %10, %10 : vector<2x1x128xf32>
    %14 = arith.subf %12, %13 : vector<2x1x128xf32>
    %cst_7 = arith.constant 0.000000e+00 : f32
    %15 = vector.broadcast %cst_7 : f32 to vector<2x1x128xf32>
    %16 = arith.maximumf %14, %15 : vector<2x1x128xf32>
    %17 = vector.broadcast %10 : vector<2x1x128xf32> to vector<2x256x128xf32>
    %18 = arith.subf %3, %17 : vector<2x256x128xf32>
    %cst_8 = arith.constant 9.99999974E-6 : f32
    %19 = vector.broadcast %cst_8 : f32 to vector<2x1x128xf32>
    %20 = arith.addf %16, %19 : vector<2x1x128xf32>
    %21 = math.rsqrt %20 : vector<2x1x128xf32>
    %22 = vector.broadcast %21 : vector<2x1x128xf32> to vector<2x256x128xf32>
    %23 = arith.mulf %18, %22 : vector<2x256x128xf32>
    %cst_9 = arith.constant 0.000000e+00 : f32
    %24 = vector.broadcast %cst_9 : f32 to vector<2x256x128xf32>
    %25 = arith.cmpf ogt, %23, %24 : vector<2x256x128xf32>
    %cst_10 = arith.constant 2.000000e-01 : f32
    %26 = vector.broadcast %cst_10 : f32 to vector<2x256x128xf32>
    %27 = arith.mulf %26, %23 : vector<2x256x128xf32>
    %28 = arith.select %25, %23, %27 : vector<2x256x128xi1>, vector<2x256x128xf32>
    %29 = vector.shape_cast %28 : vector<2x256x128xf32> to vector<512x128xf32>
    %30 = arith.truncf %29 : vector<512x128xf32> to vector<512x128xbf16>
    %c0_11 = arith.constant 0 : index
    %c0_12 = arith.constant 0 : index
    %31 = vector.load %arg4[%c0_11, %c0_12] : memref<512x128xbf16, #tpu.memory_space<vmem>>, vector<512x128xbf16>
    tpu.vector_store %arg4[%c0_11, %c0_12], %30 {strides = array<i32>} : memref<512x128xbf16, #tpu.memory_space<vmem>>, vector<512x128xbf16>,
    return
  }
  func.func @transform_0(%arg0: i32, %arg1: i32) -> (i32, i32) {
    %c0_i32 = arith.constant 0 : i32
    %c0_i32_0 = arith.constant 0 : i32
    return %arg0, %c0_i32 : i32, i32
  }
  func.func @transform_1(%arg0: i32, %arg1: i32) -> (i32, i32) {
    %c0_i32 = arith.constant 0 : i32
    %c0_i32_0 = arith.constant 0 : i32
    return %c0_i32, %arg1 : i32, i32
  }
  func.func @transform_2(%arg0: i32, %arg1: i32) -> (i32, i32) {
    %c0_i32 = arith.constant 0 : i32
    return %arg0, %arg1 : i32, i32
  }
}

module attributes {stable_mosaic.version = 11 : i64} {
  func.func @_conv_in_lrelu_kernel(%arg0: i32, %arg1: i32, %arg2: memref<128x2048xbf16, #tpu.memory_space<vmem>>, %arg3: memref<2048x128xbf16, #tpu.memory_space<vmem>>, %arg4: memref<128x128xbf16, #tpu.memory_space<vmem>>) attributes {dimension_semantics = [#tpu.dimension_semantics<parallel>, #tpu.dimension_semantics<parallel>], iteration_bounds = array<i64: 1, 1>, scalar_prefetch = 0 : i64, scratch_operands = 0 : i64, tpu.core_type = #tpu.core_type<tc>, window_params = [{transform_indices = @transform_0, window_bounds = array<i64: 128, 2048>}, {transform_indices = @transform_1, window_bounds = array<i64: 2048, 128>}, {transform_indices = @transform_2, window_bounds = array<i64: 128, 128>}]} {
    %c0 = arith.constant 0 : index
    %c0_0 = arith.constant 0 : index
    %0 = vector.load %arg2[%c0, %c0_0] : memref<128x2048xbf16, #tpu.memory_space<vmem>>, vector<128x2048xbf16>
    %c0_1 = arith.constant 0 : index
    %c0_2 = arith.constant 0 : index
    %1 = vector.load %arg3[%c0_1, %c0_2] : memref<2048x128xbf16, #tpu.memory_space<vmem>>, vector<2048x128xbf16>
    %cst = arith.constant dense<0.000000e+00> : vector<128x128xf32>
    %2 = tpu.matmul %0, %1, %cst {dimension_numbers = #tpu.dot_dimension_numbers<[1], [0], [0], [1], [0, 0, 1, 1], [], []>} : vector<128x2048xbf16>, vector<2048x128xbf16>, vector<128x128xf32> -> vector<128x128xf32>
    %3 = vector.shape_cast %2 : vector<128x128xf32> to vector<2x64x128xf32>
    %cst_3 = arith.constant dense<0.000000e+00> : vector<2x128xf32>
    %4 = vector.multi_reduction <add>, %3, %cst_3 [1] : vector<2x64x128xf32> to vector<2x128xf32>
    %5 = vector.shape_cast %4 : vector<2x128xf32> to vector<2x1x128xf32>
    %6 = arith.mulf %3, %3 : vector<2x64x128xf32>
    %cst_4 = arith.constant dense<0.000000e+00> : vector<2x128xf32>
    %7 = vector.multi_reduction <add>, %6, %cst_4 [1] : vector<2x64x128xf32> to vector<2x128xf32>
    %8 = vector.shape_cast %7 : vector<2x128xf32> to vector<2x1x128xf32>
    %cst_5 = arith.constant 1.562500e-02 : f32
    %9 = vector.broadcast %cst_5 : f32 to vector<2x1x128xf32>
    %10 = arith.mulf %5, %9 : vector<2x1x128xf32>
    %cst_6 = arith.constant 1.562500e-02 : f32
    %11 = vector.broadcast %cst_6 : f32 to vector<2x1x128xf32>
    %12 = arith.mulf %8, %11 : vector<2x1x128xf32>
    %13 = arith.mulf %10, %10 : vector<2x1x128xf32>
    %14 = arith.subf %12, %13 : vector<2x1x128xf32>
    %cst_7 = arith.constant 0.000000e+00 : f32
    %15 = vector.broadcast %cst_7 : f32 to vector<2x1x128xf32>
    %16 = arith.maximumf %14, %15 : vector<2x1x128xf32>
    %17 = vector.broadcast %10 : vector<2x1x128xf32> to vector<2x64x128xf32>
    %18 = arith.subf %3, %17 : vector<2x64x128xf32>
    %cst_8 = arith.constant 9.99999974E-6 : f32
    %19 = vector.broadcast %cst_8 : f32 to vector<2x1x128xf32>
    %20 = arith.addf %16, %19 : vector<2x1x128xf32>
    %21 = math.rsqrt %20 : vector<2x1x128xf32>
    %22 = vector.broadcast %21 : vector<2x1x128xf32> to vector<2x64x128xf32>
    %23 = arith.mulf %18, %22 : vector<2x64x128xf32>
    %cst_9 = arith.constant 0.000000e+00 : f32
    %24 = vector.broadcast %cst_9 : f32 to vector<2x64x128xf32>
    %25 = arith.cmpf ogt, %23, %24 : vector<2x64x128xf32>
    %cst_10 = arith.constant 2.000000e-01 : f32
    %26 = vector.broadcast %cst_10 : f32 to vector<2x64x128xf32>
    %27 = arith.mulf %26, %23 : vector<2x64x128xf32>
    %28 = arith.select %25, %23, %27 : vector<2x64x128xi1>, vector<2x64x128xf32>
    %29 = vector.shape_cast %28 : vector<2x64x128xf32> to vector<128x128xf32>
    %30 = arith.truncf %29 : vector<128x128xf32> to vector<128x128xbf16>
    %c0_11 = arith.constant 0 : index
    %c0_12 = arith.constant 0 : index
    %31 = vector.load %arg4[%c0_11, %c0_12] : memref<128x128xbf16, #tpu.memory_space<vmem>>, vector<128x128xbf16>
    tpu.vector_store %arg4[%c0_11, %c0_12], %30 {strides = array<i32>} : memref<128x128xbf16, #tpu.memory_space<vmem>>, vector<128x128xbf16>,
    return
  }
  func.func @transform_0(%arg0: i32, %arg1: i32) -> (i32, i32) {
    %c0_i32 = arith.constant 0 : i32
    %c0_i32_0 = arith.constant 0 : i32
    return %arg0, %c0_i32 : i32, i32
  }
  func.func @transform_1(%arg0: i32, %arg1: i32) -> (i32, i32) {
    %c0_i32 = arith.constant 0 : i32
    %c0_i32_0 = arith.constant 0 : i32
    return %c0_i32, %arg1 : i32, i32
  }
  func.func @transform_2(%arg0: i32, %arg1: i32) -> (i32, i32) {
    %c0_i32 = arith.constant 0 : i32
    return %arg0, %arg1 : i32, i32
  }
}

module attributes {stable_mosaic.version = 11 : i64} {
  func.func @_conv_in_lrelu_kernel(%arg0: i32, %arg1: i32, %arg2: memref<32x2048xbf16, #tpu.memory_space<vmem>>, %arg3: memref<2048x256xbf16, #tpu.memory_space<vmem>>, %arg4: memref<32x256xbf16, #tpu.memory_space<vmem>>) attributes {dimension_semantics = [#tpu.dimension_semantics<parallel>, #tpu.dimension_semantics<parallel>], iteration_bounds = array<i64: 1, 1>, scalar_prefetch = 0 : i64, scratch_operands = 0 : i64, tpu.core_type = #tpu.core_type<tc>, window_params = [{transform_indices = @transform_0, window_bounds = array<i64: 32, 2048>}, {transform_indices = @transform_1, window_bounds = array<i64: 2048, 256>}, {transform_indices = @transform_2, window_bounds = array<i64: 32, 256>}]} {
    %c0 = arith.constant 0 : index
    %c0_0 = arith.constant 0 : index
    %0 = vector.load %arg2[%c0, %c0_0] : memref<32x2048xbf16, #tpu.memory_space<vmem>>, vector<32x2048xbf16>
    %c0_1 = arith.constant 0 : index
    %c0_2 = arith.constant 0 : index
    %1 = vector.load %arg3[%c0_1, %c0_2] : memref<2048x256xbf16, #tpu.memory_space<vmem>>, vector<2048x256xbf16>
    %cst = arith.constant dense<0.000000e+00> : vector<32x256xf32>
    %2 = tpu.matmul %0, %1, %cst {dimension_numbers = #tpu.dot_dimension_numbers<[1], [0], [0], [1], [0, 0, 1, 1], [], []>} : vector<32x2048xbf16>, vector<2048x256xbf16>, vector<32x256xf32> -> vector<32x256xf32>
    %3 = vector.shape_cast %2 : vector<32x256xf32> to vector<2x16x256xf32>
    %cst_3 = arith.constant dense<0.000000e+00> : vector<2x256xf32>
    %4 = vector.multi_reduction <add>, %3, %cst_3 [1] : vector<2x16x256xf32> to vector<2x256xf32>
    %5 = vector.shape_cast %4 : vector<2x256xf32> to vector<2x1x256xf32>
    %6 = arith.mulf %3, %3 : vector<2x16x256xf32>
    %cst_4 = arith.constant dense<0.000000e+00> : vector<2x256xf32>
    %7 = vector.multi_reduction <add>, %6, %cst_4 [1] : vector<2x16x256xf32> to vector<2x256xf32>
    %8 = vector.shape_cast %7 : vector<2x256xf32> to vector<2x1x256xf32>
    %cst_5 = arith.constant 6.250000e-02 : f32
    %9 = vector.broadcast %cst_5 : f32 to vector<2x1x256xf32>
    %10 = arith.mulf %5, %9 : vector<2x1x256xf32>
    %cst_6 = arith.constant 6.250000e-02 : f32
    %11 = vector.broadcast %cst_6 : f32 to vector<2x1x256xf32>
    %12 = arith.mulf %8, %11 : vector<2x1x256xf32>
    %13 = arith.mulf %10, %10 : vector<2x1x256xf32>
    %14 = arith.subf %12, %13 : vector<2x1x256xf32>
    %cst_7 = arith.constant 0.000000e+00 : f32
    %15 = vector.broadcast %cst_7 : f32 to vector<2x1x256xf32>
    %16 = arith.maximumf %14, %15 : vector<2x1x256xf32>
    %17 = vector.broadcast %10 : vector<2x1x256xf32> to vector<2x16x256xf32>
    %18 = arith.subf %3, %17 : vector<2x16x256xf32>
    %cst_8 = arith.constant 9.99999974E-6 : f32
    %19 = vector.broadcast %cst_8 : f32 to vector<2x1x256xf32>
    %20 = arith.addf %16, %19 : vector<2x1x256xf32>
    %21 = math.rsqrt %20 : vector<2x1x256xf32>
    %22 = vector.broadcast %21 : vector<2x1x256xf32> to vector<2x16x256xf32>
    %23 = arith.mulf %18, %22 : vector<2x16x256xf32>
    %cst_9 = arith.constant 0.000000e+00 : f32
    %24 = vector.broadcast %cst_9 : f32 to vector<2x16x256xf32>
    %25 = arith.cmpf ogt, %23, %24 : vector<2x16x256xf32>
    %cst_10 = arith.constant 2.000000e-01 : f32
    %26 = vector.broadcast %cst_10 : f32 to vector<2x16x256xf32>
    %27 = arith.mulf %26, %23 : vector<2x16x256xf32>
    %28 = arith.select %25, %23, %27 : vector<2x16x256xi1>, vector<2x16x256xf32>
    %29 = vector.shape_cast %28 : vector<2x16x256xf32> to vector<32x256xf32>
    %30 = arith.truncf %29 : vector<32x256xf32> to vector<32x256xbf16>
    %c0_11 = arith.constant 0 : index
    %c0_12 = arith.constant 0 : index
    %31 = vector.load %arg4[%c0_11, %c0_12] : memref<32x256xbf16, #tpu.memory_space<vmem>>, vector<32x256xbf16>
    tpu.vector_store %arg4[%c0_11, %c0_12], %30 {strides = array<i32>} : memref<32x256xbf16, #tpu.memory_space<vmem>>, vector<32x256xbf16>,
    return
  }
  func.func @transform_0(%arg0: i32, %arg1: i32) -> (i32, i32) {
    %c0_i32 = arith.constant 0 : i32
    %c0_i32_0 = arith.constant 0 : i32
    return %arg0, %c0_i32 : i32, i32
  }
  func.func @transform_1(%arg0: i32, %arg1: i32) -> (i32, i32) {
    %c0_i32 = arith.constant 0 : i32
    %c0_i32_0 = arith.constant 0 : i32
    return %c0_i32, %arg1 : i32, i32
  }
  func.func @transform_2(%arg0: i32, %arg1: i32) -> (i32, i32) {
    %c0_i32 = arith.constant 0 : i32
    return %arg0, %arg1 : i32, i32
  }
}

module attributes {stable_mosaic.version = 11 : i64} {
  func.func @_conv_in_lrelu_kernel(%arg0: i32, %arg1: i32, %arg2: memref<16x4096xbf16, #tpu.memory_space<vmem>>, %arg3: memref<4096x256xbf16, #tpu.memory_space<vmem>>, %arg4: memref<16x256xbf16, #tpu.memory_space<vmem>>) attributes {dimension_semantics = [#tpu.dimension_semantics<parallel>, #tpu.dimension_semantics<parallel>], iteration_bounds = array<i64: 1, 2>, scalar_prefetch = 0 : i64, scratch_operands = 0 : i64, tpu.core_type = #tpu.core_type<tc>, window_params = [{transform_indices = @transform_0, window_bounds = array<i64: 16, 4096>}, {transform_indices = @transform_1, window_bounds = array<i64: 4096, 256>}, {transform_indices = @transform_2, window_bounds = array<i64: 16, 256>}]} {
    %c0 = arith.constant 0 : index
    %c0_0 = arith.constant 0 : index
    %0 = vector.load %arg2[%c0, %c0_0] : memref<16x4096xbf16, #tpu.memory_space<vmem>>, vector<16x4096xbf16>
    %c0_1 = arith.constant 0 : index
    %c0_2 = arith.constant 0 : index
    %1 = vector.load %arg3[%c0_1, %c0_2] : memref<4096x256xbf16, #tpu.memory_space<vmem>>, vector<4096x256xbf16>
    %cst = arith.constant dense<0.000000e+00> : vector<16x256xf32>
    %2 = tpu.matmul %0, %1, %cst {dimension_numbers = #tpu.dot_dimension_numbers<[1], [0], [0], [1], [0, 0, 1, 1], [], []>} : vector<16x4096xbf16>, vector<4096x256xbf16>, vector<16x256xf32> -> vector<16x256xf32>
    %3 = vector.shape_cast %2 : vector<16x256xf32> to vector<2x8x256xf32>
    %cst_3 = arith.constant dense<0.000000e+00> : vector<2x256xf32>
    %4 = vector.multi_reduction <add>, %3, %cst_3 [1] : vector<2x8x256xf32> to vector<2x256xf32>
    %5 = vector.shape_cast %4 : vector<2x256xf32> to vector<2x1x256xf32>
    %6 = arith.mulf %3, %3 : vector<2x8x256xf32>
    %cst_4 = arith.constant dense<0.000000e+00> : vector<2x256xf32>
    %7 = vector.multi_reduction <add>, %6, %cst_4 [1] : vector<2x8x256xf32> to vector<2x256xf32>
    %8 = vector.shape_cast %7 : vector<2x256xf32> to vector<2x1x256xf32>
    %cst_5 = arith.constant 2.500000e-01 : f32
    %9 = vector.broadcast %cst_5 : f32 to vector<2x1x256xf32>
    %10 = arith.mulf %5, %9 : vector<2x1x256xf32>
    %cst_6 = arith.constant 2.500000e-01 : f32
    %11 = vector.broadcast %cst_6 : f32 to vector<2x1x256xf32>
    %12 = arith.mulf %8, %11 : vector<2x1x256xf32>
    %13 = arith.mulf %10, %10 : vector<2x1x256xf32>
    %14 = arith.subf %12, %13 : vector<2x1x256xf32>
    %cst_7 = arith.constant 0.000000e+00 : f32
    %15 = vector.broadcast %cst_7 : f32 to vector<2x1x256xf32>
    %16 = arith.maximumf %14, %15 : vector<2x1x256xf32>
    %17 = vector.broadcast %10 : vector<2x1x256xf32> to vector<2x8x256xf32>
    %18 = arith.subf %3, %17 : vector<2x8x256xf32>
    %cst_8 = arith.constant 9.99999974E-6 : f32
    %19 = vector.broadcast %cst_8 : f32 to vector<2x1x256xf32>
    %20 = arith.addf %16, %19 : vector<2x1x256xf32>
    %21 = math.rsqrt %20 : vector<2x1x256xf32>
    %22 = vector.broadcast %21 : vector<2x1x256xf32> to vector<2x8x256xf32>
    %23 = arith.mulf %18, %22 : vector<2x8x256xf32>
    %cst_9 = arith.constant 0.000000e+00 : f32
    %24 = vector.broadcast %cst_9 : f32 to vector<2x8x256xf32>
    %25 = arith.cmpf ogt, %23, %24 : vector<2x8x256xf32>
    %cst_10 = arith.constant 2.000000e-01 : f32
    %26 = vector.broadcast %cst_10 : f32 to vector<2x8x256xf32>
    %27 = arith.mulf %26, %23 : vector<2x8x256xf32>
    %28 = arith.select %25, %23, %27 : vector<2x8x256xi1>, vector<2x8x256xf32>
    %29 = vector.shape_cast %28 : vector<2x8x256xf32> to vector<16x256xf32>
    %30 = arith.truncf %29 : vector<16x256xf32> to vector<16x256xbf16>
    %c0_11 = arith.constant 0 : index
    %c0_12 = arith.constant 0 : index
    %31 = vector.load %arg4[%c0_11, %c0_12] : memref<16x256xbf16, #tpu.memory_space<vmem>>, vector<16x256xbf16>
    tpu.vector_store %arg4[%c0_11, %c0_12], %30 {strides = array<i32>} : memref<16x256xbf16, #tpu.memory_space<vmem>>, vector<16x256xbf16>,
    return
  }
  func.func @transform_0(%arg0: i32, %arg1: i32) -> (i32, i32) {
    %c0_i32 = arith.constant 0 : i32
    %c0_i32_0 = arith.constant 0 : i32
    return %arg0, %c0_i32 : i32, i32
  }
  func.func @transform_1(%arg0: i32, %arg1: i32) -> (i32, i32) {
    %c0_i32 = arith.constant 0 : i32
    %c0_i32_0 = arith.constant 0 : i32
    return %c0_i32, %arg1 : i32, i32
  }
  func.func @transform_2(%arg0: i32, %arg1: i32) -> (i32, i32) {
    %c0_i32 = arith.constant 0 : i32
    return %arg0, %arg1 : i32, i32
  }
}

module attributes {stable_mosaic.version = 11 : i64} {
  func.func @_final_kernel(%arg0: i32, %arg1: memref<2x8192xbf16, #tpu.memory_space<vmem>>, %arg2: memref<8192x128xbf16, #tpu.memory_space<vmem>>, %arg3: memref<1xf32, #tpu.memory_space<smem>>, %arg4: memref<2x128xf32, #tpu.memory_space<vmem>>) attributes {dimension_semantics = [#tpu.dimension_semantics<arbitrary>], iteration_bounds = array<i64: 1>, scalar_prefetch = 0 : i64, scratch_operands = 0 : i64, tpu.core_type = #tpu.core_type<tc>, window_params = [{pipeline_mode = #tpu.pipeline_mode<synchronous>, transform_indices = @transform_0, window_bounds = array<i64: 2, 8192>}, {pipeline_mode = #tpu.pipeline_mode<synchronous>, transform_indices = @transform_1, window_bounds = array<i64: 8192, 128>}, {transform_indices = @transform_2, window_bounds = array<i64: 1>}, {pipeline_mode = #tpu.pipeline_mode<synchronous>, transform_indices = @transform_3, window_bounds = array<i64: 2, 128>}]} {
    %c0 = arith.constant 0 : index
    %c0_0 = arith.constant 0 : index
    %0 = vector.load %arg1[%c0, %c0_0] : memref<2x8192xbf16, #tpu.memory_space<vmem>>, vector<2x8192xbf16>
    %c0_1 = arith.constant 0 : index
    %c0_2 = arith.constant 0 : index
    %1 = vector.load %arg2[%c0_1, %c0_2] : memref<8192x128xbf16, #tpu.memory_space<vmem>>, vector<8192x128xbf16>
    %cst = arith.constant dense<0.000000e+00> : vector<2x128xf32>
    %2 = tpu.matmul %0, %1, %cst {dimension_numbers = #tpu.dot_dimension_numbers<[1], [0], [0], [1], [0, 0, 1, 1], [], []>} : vector<2x8192xbf16>, vector<8192x128xbf16>, vector<2x128xf32> -> vector<2x128xf32>
    %c0_3 = arith.constant 0 : index
    %3 = memref.load %arg3[%c0_3] : memref<1xf32, #tpu.memory_space<smem>>
    %4 = vector.broadcast %3 : f32 to vector<2x128xf32>
    %5 = arith.addf %2, %4 : vector<2x128xf32>
    %c0_4 = arith.constant 0 : index
    %c0_5 = arith.constant 0 : index
    %6 = vector.load %arg4[%c0_4, %c0_5] : memref<2x128xf32, #tpu.memory_space<vmem>>, vector<2x128xf32>
    tpu.vector_store %arg4[%c0_4, %c0_5], %5 {strides = array<i32>} : memref<2x128xf32, #tpu.memory_space<vmem>>, vector<2x128xf32>,
    return
  }
  func.func @transform_0(%arg0: i32) -> (i32, i32) {
    %c0_i32 = arith.constant 0 : i32
    %c0_i32_0 = arith.constant 0 : i32
    %c0_i32_1 = arith.constant 0 : i32
    return %c0_i32, %c0_i32_0 : i32, i32
  }
  func.func @transform_1(%arg0: i32) -> (i32, i32) {
    %c0_i32 = arith.constant 0 : i32
    %c0_i32_0 = arith.constant 0 : i32
    %c0_i32_1 = arith.constant 0 : i32
    return %c0_i32, %c0_i32_0 : i32, i32
  }
  func.func @transform_2(%arg0: i32) -> i32 {
    %c0_i32 = arith.constant 0 : i32
    %c0_i32_0 = arith.constant 0 : i32
    return %c0_i32 : i32
  }
  func.func @transform_3(%arg0: i32) -> (i32, i32) {
    %c0_i32 = arith.constant 0 : i32
    %c0_i32_0 = arith.constant 0 : i32
    %c0_i32_1 = arith.constant 0 : i32
    return %c0_i32, %c0_i32_0 : i32, i32
  }
}

</mosaic_0001>

<bundles_post_ra>
// kernel: discriminator_forward.5
= control target key start
LH: loop header
LB: loop body
LE: loop exit
PB: predicated region body
PF: predicated region fallthrough
CT: control target
= control target key end

     0   :  { %s3403_s1 = inlined_call_operand.vmem [shape: bf16[128,128], index: 1, kind: input, shape index: {}]   ;;  %s3404_s0 = inlined_call_operand.vmem [shape: bf16[512,128], index: 0, kind: input, shape index: {}]   ;;  %s3405_s2 = inlined_call_operand.vmem [shape: bf16[512,128], index: 2, kind: output, shape index: {}]  }
   0x1   :  { %v1986_v0 = vld [vmem:[%s3403_s1] sm:$0xff]   ;;  %v1987_v1 = vld [vmem:[%s3403_s1 + $0x8] sm:$0xff]   ;;  %v1988_v2 = vld [vmem:[%s3403_s1 + $0x10] sm:$0xff]  }
   0x2   :  { %1890 = vmatprep.subr.bf16.mxu0 %v1986_v0  ;;  %1970 = vmatprep.subr.bf16.mxu1 %v1986_v0  ;;  %v1989_v3 = vld [vmem:[%s3403_s1 + $0x18] sm:$0xff]   ;;  %v1994_v4 = vld [vmem:[%s3404_s0] sm:$0xff]   ;;  %v1991_v7 = vld [vmem:[%s3403_s1 + $0x28] sm:$0xff]  }
   0x3   :  { %1891 = vmatpush3.bf16.msra.mxu0 %v1986_v0  ;;  %1978 = vmatpush3.bf16.msra.mxu1 %v1986_v0  ;;  %v1995_v5 = vld [vmem:[%s3404_s0 + $0x80] sm:$0xff]   ;;  %v1992_v8 = vld [vmem:[%s3403_s1 + $0x30] sm:$0xff]   ;;  %v1993_v9 = vld [vmem:[%s3403_s1 + $0x38] sm:$0xff]  }
   0x4   :  { %1892 = vmatprep.subr.bf16.mxu0 %v1987_v1  ;;  %1971 = vmatprep.subr.bf16.mxu1 %v1987_v1  ;;  %v1990_v6 = vld [vmem:[%s3403_s1 + $0x20] sm:$0xff]   ;;  %v1996_v10 = vld [vmem:[%s3404_s0 + $0x8] sm:$0xff]   ;;  %v1998_v12 = vld [vmem:[%s3404_s0 + $0x10] sm:$0xff]  }
   0x5   :  { %1906 = vmatprep.mubr.bf16.mxu0 %v1994_v4  ;;  %1938 = vmatprep.mubr.bf16.mxu1 %v1995_v5  ;;  %v1997_v11 = vld [vmem:[%s3404_s0 + $0x88] sm:$0xff]   ;;  %v1999_v13 = vld [vmem:[%s3404_s0 + $0x90] sm:$0xff]   ;;  %v2000_v14 = vld [vmem:[%s3404_s0 + $0x18] sm:$0xff]  }
   0x6   :  { %v2001_v15 = vld [vmem:[%s3404_s0 + $0x98] sm:$0xff]   ;;  %v2002_v16 = vld [vmem:[%s3404_s0 + $0x20] sm:$0xff]   ;;  %v2004_v18 = vld [vmem:[%s3404_s0 + $0x28] sm:$0xff]  }
   0x7   :  { %1893 = vmatpush3.bf16.msra.mxu0 %v1987_v1  ;;  %1979 = vmatpush3.bf16.msra.mxu1 %v1987_v1  ;;  %v2003_v17 = vld [vmem:[%s3404_s0 + $0xa0] sm:$0xff]   ;;  %v2005_v19 = vld [vmem:[%s3404_s0 + $0xa8] sm:$0xff]   ;;  %v2006_v20 = vld [vmem:[%s3404_s0 + $0x30] sm:$0xff]  }
   0x8   :  { %1894 = vmatprep.subr.bf16.mxu0 %v1988_v2  ;;  %1972 = vmatprep.subr.bf16.mxu1 %v1988_v2  ;;  %v2007_v21 = vld [vmem:[%s3404_s0 + $0xb0] sm:$0xff]   ;;  %v2008_v22 = vld [vmem:[%s3404_s0 + $0x38] sm:$0xff]   ;;  %v2010_v24 = vld [vmem:[%s3404_s0 + $0x40] sm:$0xff]  }
   0x9   :  { %v2009_v23 = vld [vmem:[%s3404_s0 + $0xb8] sm:$0xff]   ;;  %v2011_v25 = vld [vmem:[%s3404_s0 + $0xc0] sm:$0xff]   ;;  %v2012_v26 = vld [vmem:[%s3404_s0 + $0x48] sm:$0xff]  }
   0xa   :  { %v2013_v27 = vld [vmem:[%s3404_s0 + $0xc8] sm:$0xff]   ;;  %v2014_v28 = vld [vmem:[%s3404_s0 + $0x50] sm:$0xff]   ;;  %v2016_v30 = vld [vmem:[%s3404_s0 + $0x58] sm:$0xff]  }
   0xb   :  { %1895 = vmatpush3.bf16.msra.mxu0 %v1988_v2  ;;  %1980 = vmatpush3.bf16.msra.mxu1 %v1988_v2  ;;  %v2015_v29 = vld [vmem:[%s3404_s0 + $0xd0] sm:$0xff]   ;;  %v2017_v31 = vld [vmem:[%s3404_s0 + $0xd8] sm:$0xff]   ;;  %v2018_v32 = vld [vmem:[%s3404_s0 + $0x60] sm:$0xff]  }
   0xc   :  { %1896 = vmatprep.subr.bf16.mxu0 %v1989_v3  ;;  %1973 = vmatprep.subr.bf16.mxu1 %v1989_v3  ;;  %v2019_v33 = vld [vmem:[%s3404_s0 + $0xe0] sm:$0xff]   ;;  %v2020_v34 = vld [vmem:[%s3404_s0 + $0x68] sm:$0xff]   ;;  %v2022_v36 = vld [vmem:[%s3404_s0 + $0x70] sm:$0xff]  }
   0xd   :  { %v2021_v35 = vld [vmem:[%s3404_s0 + $0xe8] sm:$0xff]   ;;  %v2023_v37 = vld [vmem:[%s3404_s0 + $0xf0] sm:$0xff]   ;;  %v2024_v38 = vld [vmem:[%s3404_s0 + $0x78] sm:$0xff]  }
   0xe   :  { %v2025_v39 = vld [vmem:[%s3404_s0 + $0xf8] sm:$0xff]  }
   0xf   :  { %1897 = vmatpush3.bf16.msra.mxu0 %v1989_v3  ;;  %1981 = vmatpush3.bf16.msra.mxu1 %v1989_v3 }
  0x10   :  { %1898 = vmatprep.subr.bf16.mxu0 %v1990_v6  ;;  %1974 = vmatprep.subr.bf16.mxu1 %v1990_v6 }
  0x13   :  { %1899 = vmatpush3.bf16.msra.mxu0 %v1990_v6  ;;  %1982 = vmatpush3.bf16.msra.mxu1 %v1990_v6 }
  0x14   :  { %1900 = vmatprep.subr.bf16.mxu0 %v1991_v7  ;;  %1975 = vmatprep.subr.bf16.mxu1 %v1991_v7 }
  0x17   :  { %1901 = vmatpush3.bf16.msra.mxu0 %v1991_v7  ;;  %1983 = vmatpush3.bf16.msra.mxu1 %v1991_v7 }
  0x18   :  { %1902 = vmatprep.subr.bf16.mxu0 %v1992_v8  ;;  %1976 = vmatprep.subr.bf16.mxu1 %v1992_v8 }
  0x1b   :  { %1903 = vmatpush3.bf16.msra.mxu0 %v1992_v8  ;;  %1984 = vmatpush3.bf16.msra.mxu1 %v1992_v8 }
  0x1c   :  { %1904 = vmatprep.subr.bf16.mxu0 %v1993_v9  ;;  %1977 = vmatprep.subr.bf16.mxu1 %v1993_v9 }
  0x1f   :  { %1905 = vmatpush3.bf16.msra.mxu0 %v1993_v9  ;;  %1985 = vmatpush3.bf16.msra.mxu1 %v1993_v9 }
  0x22   :  { %1907 = vmatmul.mubr.bf16.vlgmr.msra.gmra.mrb[0].mxu0 %v1996_v10  ;;  %1939 = vmatmul.mubr.bf16.vlgmr.msra.gmra.mrb[0].mxu1 %v1997_v11 }
  0x23   :  { %1910 = vmatprep.mubr.bf16.mxu0 %v1998_v12  ;;  %1942 = vmatprep.mubr.bf16.mxu1 %v1999_v13 }
  0x2a   :  { %1911 = vmatmul.mubr.bf16.gmra.mrb[4].mxu0 %v2000_v14  ;;  %1943 = vmatmul.mubr.bf16.gmra.mrb[4].mxu1 %v2001_v15 }
  0x2b   :  { %1914 = vmatprep.mubr.bf16.mxu0 %v2002_v16  ;;  %1946 = vmatprep.mubr.bf16.mxu1 %v2003_v17 }
  0x32   :  { %1915 = vmatmul.mubr.bf16.gmra.mrb[8].mxu0 %v2004_v18  ;;  %1947 = vmatmul.mubr.bf16.gmra.mrb[8].mxu1 %v2005_v19 }
  0x33   :  { %1918 = vmatprep.mubr.bf16.mxu0 %v2006_v20  ;;  %1950 = vmatprep.mubr.bf16.mxu1 %v2007_v21 }
  0x3a   :  { %1919 = vmatmul.mubr.bf16.gmra.mrb[12].mxu0 %v2008_v22  ;;  %1951 = vmatmul.mubr.bf16.gmra.mrb[12].mxu1 %v2009_v23 }
  0x3b   :  { %1922 = vmatprep.mubr.bf16.mxu0 %v2010_v24  ;;  %1954 = vmatprep.mubr.bf16.mxu1 %v2011_v25 }
  0x42   :  { %1923 = vmatmul.mubr.bf16.gmra.mrb[16].mxu0 %v2012_v26  ;;  %1955 = vmatmul.mubr.bf16.gmra.mrb[16].mxu1 %v2013_v27 }
  0x43   :  { %1926 = vmatprep.mubr.bf16.mxu0 %v2014_v28  ;;  %1958 = vmatprep.mubr.bf16.mxu1 %v2015_v29 }
  0x4a   :  { %1927 = vmatmul.mubr.bf16.gmra.mrb[20].mxu0 %v2016_v30  ;;  %1959 = vmatmul.mubr.bf16.gmra.mrb[20].mxu1 %v2017_v31 }
  0x4b   :  { %1930 = vmatprep.mubr.bf16.mxu0 %v2018_v32  ;;  %1962 = vmatprep.mubr.bf16.mxu1 %v2019_v33 }
  0x52   :  { %1931 = vmatmul.mubr.bf16.gmra.mrb[24].mxu0 %v2020_v34  ;;  %1963 = vmatmul.mubr.bf16.gmra.mrb[24].mxu1 %v2021_v35 }
  0x53   :  { %1934 = vmatprep.mubr.bf16.mxu0 %v2022_v36  ;;  %1966 = vmatprep.mubr.bf16.mxu1 %v2023_v37 }
  0x5a   :  { %1935 = vmatmul.mubr.bf16.gmra.mrb[28].mxu0 %v2024_v38  ;;  %1967 = vmatmul.mubr.bf16.gmra.mrb[28].mxu1 %v2025_v39 }
  0xf5   :  { %v2165_v40 = vpop.f32.mrb[0].mxu0  ;;  %v2167_v41 = vpop.f32.mrb[0].mxu1 }
  0xf6   :  { %v2169_v42 = vpop.f32.mrb[1].mxu0  ;;  %v2171_v43 = vpop.f32.mrb[1].mxu1  ;;  %v697_v54 = vmul.f32 %v2165_v40, %v2165_v40  ;;  %v729_v55 = vmul.f32 %v2167_v41, %v2167_v41 }
  0xf7   :  { %v2173_v44 = vpop.f32.mrb[2].mxu0  ;;  %v2175_v45 = vpop.f32.mrb[2].mxu1  ;;  %v695_v46 = vmul.f32 %v2169_v42, %v2169_v42  ;;  %v727_v47 = vmul.f32 %v2171_v43, %v2171_v43 }
  0xf8   :  { %3464 = vst [vmem:[#allocation2_spill] sm:$0xff] %v2175_v45  ;;  %v2181_v48 = vpop.f32.mrb[3].mxu0  ;;  %v2183_v49 = vpop.f32.mrb[3].mxu1  ;;  %v698_v60 = vmul.f32 %v2173_v44, %v2173_v44  ;;  %v730_v3 = vmul.f32 %v2175_v45, %v2175_v45 }
  0xf9   :  { %v621_v50 = vadd.f32 %v2181_v48, %v2169_v42  ;;  %v696_v51 = vmul.f32 %v2181_v48, %v2181_v48  ;;  %v658_v52 = vadd.f32 %v2183_v49, %v2171_v43  ;;  %v728_v53 = vmul.f32 %v2183_v49, %v2183_v49 }
  0xfb   :  { %v622_v56 = vadd.f32 %v2165_v40, %v621_v50  ;;  %v759_v57 = vadd.f32 %v696_v51, %v695_v46  ;;  %v659_v58 = vadd.f32 %v2167_v41, %v658_v52  ;;  %v796_v59 = vadd.f32 %v728_v53, %v727_v47 }
  0xfd   :  { %v760_v61 = vadd.f32 %v759_v57, %v697_v54  ;;  %v797_v62 = vadd.f32 %v796_v59, %v729_v55  ;;  %v2201_v63 = vpop.f32.mrb[4].mxu0  ;;  %v2203_v0 = vpop.f32.mrb[4].mxu1  ;;  %v623_v1 = vadd.f32 %v2173_v44, %v622_v56  ;;  %v660_v2 = vadd.f32 %v2175_v45, %v659_v58 }
  0xfe   :  { %3465 = vst [vmem:[#allocation3_spill] sm:$0xff] %v2203_v0  ;;  %v2209_v4 = vpop.f32.mrb[5].mxu0  ;;  %v2211_v5 = vpop.f32.mrb[5].mxu1  ;;  %v701_v22 = vmul.f32 %v2201_v63, %v2201_v63  ;;  %v733_v26 = vmul.f32 %v2203_v0, %v2203_v0 }
  0xff   :  { %3466 = vst [vmem:[#allocation4_spill] sm:$0xff] %v2211_v5  ;;  %v624_v6 = vadd.f32 %v623_v1, %v2209_v4  ;;  %v699_v7 = vmul.f32 %v2209_v4, %v2209_v4  ;;  %v761_v8 = vadd.f32 %v760_v61, %v698_v60  ;;  %v661_v9 = vadd.f32 %v660_v2, %v2211_v5  ;;  %v2217_v10 = vpop.f32.mrb[6].mxu0  ;;  %v2219_v11 = vpop.f32.mrb[6].mxu1 }
 0x100   :  { %3467 = vst [vmem:[#allocation5_spill] sm:$0xff] %v2219_v11  ;;  %v731_v12 = vmul.f32 %v2211_v5, %v2211_v5  ;;  %v798_v13 = vadd.f32 %v797_v62, %v730_v3  ;;  %v2223_v14 = vpop.f32.mrb[7].mxu0  ;;  %v2225_v15 = vpop.f32.mrb[7].mxu1  ;;  %v702_v28 = vmul.f32 %v2217_v10, %v2217_v10  ;;  %v734_v34 = vmul.f32 %v2219_v11, %v2219_v11 }
 0x101   :  { %3468 = vst [vmem:[#allocation6_spill] sm:$0xff] %v2225_v15  ;;  %v762_v16 = vadd.f32 %v761_v8, %v699_v7  ;;  %v625_v17 = vadd.f32 %v624_v6, %v2223_v14  ;;  %v700_v18 = vmul.f32 %v2223_v14, %v2223_v14  ;;  %v662_v19 = vadd.f32 %v661_v9, %v2225_v15 }
 0x102   :  { %v799_v20 = vadd.f32 %v798_v13, %v731_v12  ;;  %v732_v21 = vmul.f32 %v2225_v15, %v2225_v15 }
 0x103   :  { %v626_v23 = vadd.f32 %v2201_v63, %v625_v17  ;;  %v763_v24 = vadd.f32 %v762_v16, %v700_v18  ;;  %v663_v25 = vadd.f32 %v2203_v0, %v662_v19 }
 0x104   :  { %v800_v27 = vadd.f32 %v799_v20, %v732_v21 }
 0x105   :  { %v764_v29 = vadd.f32 %v763_v24, %v701_v22  ;;  %v2241_v30 = vpop.f32.mrb[8].mxu0  ;;  %v2243_v31 = vpop.f32.mrb[8].mxu1  ;;  %v627_v32 = vadd.f32 %v2217_v10, %v626_v23  ;;  %v664_v33 = vadd.f32 %v2219_v11, %v663_v25 }
 0x106   :  { %3469 = vst [vmem:[#allocation7_spill] sm:$0xff] %v2243_v31  ;;  %v801_v35 = vadd.f32 %v800_v27, %v733_v26  ;;  %v2249_v36 = vpop.f32.mrb[9].mxu0  ;;  %v2251_v37 = vpop.f32.mrb[9].mxu1  ;;  %v705_v62 = vmul.f32 %v2241_v30, %v2241_v30  ;;  %v737_v6 = vmul.f32 %v2243_v31, %v2243_v31 }
 0x107   :  { %3470 = vst [vmem:[#allocation8_spill] sm:$0xff] %v2251_v37  ;;  %v628_v38 = vadd.f32 %v627_v32, %v2249_v36  ;;  %v703_v39 = vmul.f32 %v2249_v36, %v2249_v36  ;;  %v765_v46 = vadd.f32 %v764_v29, %v702_v28  ;;  %v665_v47 = vadd.f32 %v664_v33, %v2251_v37  ;;  %v2257_v50 = vpop.f32.mrb[10].mxu0  ;;  %v2259_v51 = vpop.f32.mrb[10].mxu1 }
 0x108   :  { %3471 = vst [vmem:[#allocation9_spill] sm:$0xff] %v2259_v51  ;;  %v735_v52 = vmul.f32 %v2251_v37, %v2251_v37  ;;  %v802_v53 = vadd.f32 %v801_v35, %v734_v34  ;;  %v2263_v54 = vpop.f32.mrb[11].mxu0  ;;  %v2265_v55 = vpop.f32.mrb[11].mxu1  ;;  %v706_v8 = vmul.f32 %v2257_v50, %v2257_v50  ;;  %v738_v18 = vmul.f32 %v2259_v51, %v2259_v51 }
 0x109   :  { %3472 = vst [vmem:[#allocation10_spill] sm:$0xff] %v2265_v55  ;;  %v766_v56 = vadd.f32 %v765_v46, %v703_v39  ;;  %v629_v57 = vadd.f32 %v628_v38, %v2263_v54  ;;  %v704_v58 = vmul.f32 %v2263_v54, %v2263_v54  ;;  %v666_v59 = vadd.f32 %v665_v47, %v2265_v55 }
 0x10a   :  { %v803_v60 = vadd.f32 %v802_v53, %v735_v52  ;;  %v736_v61 = vmul.f32 %v2265_v55, %v2265_v55 }
 0x10b   :  { %v630_v1 = vadd.f32 %v2241_v30, %v629_v57  ;;  %v767_v2 = vadd.f32 %v766_v56, %v704_v58  ;;  %v667_v3 = vadd.f32 %v2243_v31, %v666_v59 }
 0x10c   :  { %v804_v7 = vadd.f32 %v803_v60, %v736_v61 }
 0x10d   :  { %v768_v9 = vadd.f32 %v767_v2, %v705_v62  ;;  %v2281_v12 = vpop.f32.mrb[12].mxu0  ;;  %v2283_v13 = vpop.f32.mrb[12].mxu1  ;;  %v631_v16 = vadd.f32 %v2257_v50, %v630_v1  ;;  %v668_v17 = vadd.f32 %v2259_v51, %v667_v3 }
 0x10e   :  { %3473 = vst [vmem:[#allocation11_spill] sm:$0xff] %v2283_v13  ;;  %v805_v19 = vadd.f32 %v804_v7, %v737_v6  ;;  %v2289_v20 = vpop.f32.mrb[13].mxu0  ;;  %v2291_v21 = vpop.f32.mrb[13].mxu1  ;;  %v709_v52 = vmul.f32 %v2281_v12, %v2281_v12  ;;  %v741_v58 = vmul.f32 %v2283_v13, %v2283_v13 }
 0x10f   :  { %3474 = vst [vmem:[#allocation12_spill] sm:$0xff] %v2291_v21  ;;  %v632_v22 = vadd.f32 %v631_v16, %v2289_v20  ;;  %v707_v23 = vmul.f32 %v2289_v20, %v2289_v20  ;;  %v769_v24 = vadd.f32 %v768_v9, %v706_v8  ;;  %v669_v25 = vadd.f32 %v668_v17, %v2291_v21  ;;  %v2297_v26 = vpop.f32.mrb[14].mxu0  ;;  %v2299_v27 = vpop.f32.mrb[14].mxu1 }
 0x110   :  { %3475 = vst [vmem:[#allocation13_spill] sm:$0xff] %v2299_v27  ;;  %v739_v28 = vmul.f32 %v2291_v21, %v2291_v21  ;;  %v806_v29 = vadd.f32 %v805_v19, %v738_v18  ;;  %v2303_v32 = vpop.f32.mrb[15].mxu0  ;;  %v2305_v33 = vpop.f32.mrb[15].mxu1  ;;  %v710_v60 = vmul.f32 %v2297_v26, %v2297_v26  ;;  %v742_v6 = vmul.f32 %v2299_v27, %v2299_v27 }
 0x111   :  { %3476 = vst [vmem:[#allocation14_spill] sm:$0xff] %v2305_v33  ;;  %v770_v34 = vadd.f32 %v769_v24, %v707_v23  ;;  %v633_v35 = vadd.f32 %v632_v22, %v2303_v32  ;;  %v708_v38 = vmul.f32 %v2303_v32, %v2303_v32  ;;  %v670_v39 = vadd.f32 %v669_v25, %v2305_v33 }
 0x112   :  { %v807_v46 = vadd.f32 %v806_v29, %v739_v28  ;;  %v740_v47 = vmul.f32 %v2305_v33, %v2305_v33 }
 0x113   :  { %v634_v53 = vadd.f32 %v2281_v12, %v633_v35  ;;  %v771_v56 = vadd.f32 %v770_v34, %v708_v38  ;;  %v671_v57 = vadd.f32 %v2283_v13, %v670_v39 }
 0x114   :  { %v808_v59 = vadd.f32 %v807_v46, %v740_v47 }
 0x115   :  { %v772_v61 = vadd.f32 %v771_v56, %v709_v52  ;;  %v2321_v62 = vpop.f32.mrb[16].mxu0  ;;  %v2323_v1 = vpop.f32.mrb[16].mxu1  ;;  %v635_v2 = vadd.f32 %v2297_v26, %v634_v53  ;;  %v672_v3 = vadd.f32 %v2299_v27, %v671_v57 }
 0x116   :  { %3477 = vst [vmem:[#allocation15_spill] sm:$0xff] %v2323_v1  ;;  %v809_v7 = vadd.f32 %v808_v59, %v741_v58  ;;  %v2329_v8 = vpop.f32.mrb[17].mxu0  ;;  %v2331_v9 = vpop.f32.mrb[17].mxu1  ;;  %v713_v52 = vmul.f32 %v2321_v62, %v2321_v62  ;;  %v745_v58 = vmul.f32 %v2323_v1, %v2323_v1 }
 0x117   :  { %3478 = vst [vmem:[#allocation16_spill] sm:$0xff] %v2331_v9  ;;  %v636_v16 = vadd.f32 %v635_v2, %v2329_v8  ;;  %v711_v17 = vmul.f32 %v2329_v8, %v2329_v8  ;;  %v773_v18 = vadd.f32 %v772_v61, %v710_v60  ;;  %v673_v19 = vadd.f32 %v672_v3, %v2331_v9  ;;  %v2337_v22 = vpop.f32.mrb[18].mxu0  ;;  %v2339_v23 = vpop.f32.mrb[18].mxu1 }
 0x118   :  { %3479 = vst [vmem:[#allocation17_spill] sm:$0xff] %v2339_v23  ;;  %v743_v24 = vmul.f32 %v2331_v9, %v2331_v9  ;;  %v810_v25 = vadd.f32 %v809_v7, %v742_v6  ;;  %v2343_v28 = vpop.f32.mrb[19].mxu0  ;;  %v2345_v29 = vpop.f32.mrb[19].mxu1  ;;  %v714_v60 = vmul.f32 %v2337_v22, %v2337_v22 }
 0x119   :  { %3480 = vst [vmem:[#allocation18_spill] sm:$0xff] %v2345_v29  ;;  %v774_v34 = vadd.f32 %v773_v18, %v711_v17  ;;  %v637_v35 = vadd.f32 %v636_v16, %v2343_v28  ;;  %v712_v38 = vmul.f32 %v2343_v28, %v2343_v28  ;;  %v674_v39 = vadd.f32 %v673_v19, %v2345_v29 }
 0x11a   :  { %v811_v46 = vadd.f32 %v810_v25, %v743_v24  ;;  %v744_v47 = vmul.f32 %v2345_v29, %v2345_v29  ;;  %v746_v16 = vmul.f32 %v2339_v23, %v2339_v23 }
 0x11b   :  { %v638_v53 = vadd.f32 %v2321_v62, %v637_v35  ;;  %v775_v56 = vadd.f32 %v774_v34, %v712_v38  ;;  %v675_v57 = vadd.f32 %v2323_v1, %v674_v39 }
 0x11c   :  { %v812_v59 = vadd.f32 %v811_v46, %v744_v47 }
 0x11d   :  { %v776_v61 = vadd.f32 %v775_v56, %v713_v52  ;;  %v2361_v2 = vpop.f32.mrb[20].mxu0  ;;  %v2363_v3 = vpop.f32.mrb[20].mxu1  ;;  %v639_v6 = vadd.f32 %v2337_v22, %v638_v53  ;;  %v676_v7 = vadd.f32 %v2339_v23, %v675_v57 }
 0x11e   :  { %3481 = vst [vmem:[#allocation19_spill] sm:$0xff] %v2363_v3  ;;  %v813_v17 = vadd.f32 %v812_v59, %v745_v58  ;;  %v2369_v18 = vpop.f32.mrb[21].mxu0  ;;  %v2371_v19 = vpop.f32.mrb[21].mxu1 }
 0x11f   :  { %3482 = vst [vmem:[#allocation20_spill] sm:$0xff] %v2371_v19  ;;  %v640_v24 = vadd.f32 %v639_v6, %v2369_v18  ;;  %v715_v25 = vmul.f32 %v2369_v18, %v2369_v18  ;;  %v777_v34 = vadd.f32 %v776_v61, %v714_v60  ;;  %v677_v35 = vadd.f32 %v676_v7, %v2371_v19  ;;  %v2377_v38 = vpop.f32.mrb[22].mxu0  ;;  %v2379_v39 = vpop.f32.mrb[22].mxu1 }
 0x120   :  { %3483 = vst [vmem:[#allocation21_spill] sm:$0xff] %v2379_v39  ;;  %v747_v46 = vmul.f32 %v2371_v19, %v2371_v19  ;;  %v814_v47 = vadd.f32 %v813_v17, %v746_v16  ;;  %v2383_v52 = vpop.f32.mrb[23].mxu0  ;;  %v2385_v53 = vpop.f32.mrb[23].mxu1  ;;  %v717_v6 = vmul.f32 %v2361_v2, %v2361_v2 }
 0x121   :  { %3484 = vst [vmem:[#allocation22_spill] sm:$0xff] %v2385_v53  ;;  %v778_v56 = vadd.f32 %v777_v34, %v715_v25  ;;  %v641_v57 = vadd.f32 %v640_v24, %v2383_v52  ;;  %v716_v58 = vmul.f32 %v2383_v52, %v2383_v52  ;;  %v678_v59 = vadd.f32 %v677_v35, %v2385_v53 }
 0x122   :  { %v815_v60 = vadd.f32 %v814_v47, %v747_v46  ;;  %v748_v61 = vmul.f32 %v2385_v53, %v2385_v53  ;;  %v749_v24 = vmul.f32 %v2363_v3, %v2363_v3  ;;  %v718_v34 = vmul.f32 %v2377_v38, %v2377_v38 }
 0x123   :  { %v642_v7 = vadd.f32 %v2361_v2, %v641_v57  ;;  %v779_v16 = vadd.f32 %v778_v56, %v716_v58  ;;  %v679_v17 = vadd.f32 %v2363_v3, %v678_v59  ;;  %v750_v56 = vmul.f32 %v2379_v39, %v2379_v39 }
 0x124   :  { %v816_v25 = vadd.f32 %v815_v60, %v748_v61 }
 0x125   :  { %v780_v35 = vadd.f32 %v779_v16, %v717_v6  ;;  %v2401_v46 = vpop.f32.mrb[24].mxu0  ;;  %v2403_v47 = vpop.f32.mrb[24].mxu1  ;;  %v643_v53 = vadd.f32 %v2377_v38, %v642_v7  ;;  %v680_v19 = vadd.f32 %v2379_v39, %v679_v17 }
 0x126   :  { %3485 = vst [vmem:[#allocation23_spill] sm:$0xff] %v2403_v47  ;;  %v817_v57 = vadd.f32 %v816_v25, %v749_v24  ;;  %v2409_v58 = vpop.f32.mrb[25].mxu0  ;;  %v2411_v59 = vpop.f32.mrb[25].mxu1 }
 0x127   :  { %3486 = vst [vmem:[#allocation24_spill] sm:$0xff] %v2411_v59  ;;  %v644_v60 = vadd.f32 %v643_v53, %v2409_v58  ;;  %v719_v61 = vmul.f32 %v2409_v58, %v2409_v58  ;;  %v781_v6 = vadd.f32 %v780_v35, %v718_v34  ;;  %v681_v16 = vadd.f32 %v680_v19, %v2411_v59  ;;  %v2417_v3 = vpop.f32.mrb[26].mxu0  ;;  %v2419_v7 = vpop.f32.mrb[26].mxu1 }
 0x128   :  { %3487 = vst [vmem:[#allocation25_spill] sm:$0xff] %v2419_v7  ;;  %v751_v17 = vmul.f32 %v2411_v59, %v2411_v59  ;;  %v818_v24 = vadd.f32 %v817_v57, %v750_v56  ;;  %v2423_v25 = vpop.f32.mrb[27].mxu0  ;;  %v2425_v39 = vpop.f32.mrb[27].mxu1  ;;  %v721_v59 = vmul.f32 %v2401_v46, %v2401_v46 }
 0x129   :  { %3488 = vst [vmem:[#allocation26_spill] sm:$0xff] %v2425_v39  ;;  %v782_v23 = vadd.f32 %v781_v6, %v719_v61  ;;  %v645_v53 = vadd.f32 %v644_v60, %v2423_v25  ;;  %v720_v34 = vmul.f32 %v2423_v25, %v2423_v25  ;;  %v682_v19 = vadd.f32 %v681_v16, %v2425_v39 }
 0x12a   :  { %v819_v35 = vadd.f32 %v818_v24, %v751_v17  ;;  %v752_v1 = vmul.f32 %v2425_v39, %v2425_v39  ;;  %v753_v60 = vmul.f32 %v2403_v47, %v2403_v47  ;;  %v722_v6 = vmul.f32 %v2417_v3, %v2417_v3 }
 0x12b   :  { %v646_v56 = vadd.f32 %v2401_v46, %v645_v53  ;;  %v783_v57 = vadd.f32 %v782_v23, %v720_v34  ;;  %v683_v29 = vadd.f32 %v2403_v47, %v682_v19  ;;  %v754_v23 = vmul.f32 %v2419_v7, %v2419_v7 }
 0x12c   :  { %v820_v61 = vadd.f32 %v819_v35, %v752_v1 }
 0x12d   :  { %v784_v16 = vadd.f32 %v783_v57, %v721_v59  ;;  %v2441_v17 = vpop.f32.mrb[28].mxu0  ;;  %v2443_v24 = vpop.f32.mrb[28].mxu1  ;;  %v647_v39 = vadd.f32 %v2417_v3, %v646_v56  ;;  %v684_v9 = vadd.f32 %v2419_v7, %v683_v29 }
 0x12e   :  { %3489 = vst [vmem:[#allocation27_spill] sm:$0xff] %v2443_v24  ;;  %v821_v53 = vadd.f32 %v820_v61, %v753_v60  ;;  %v2449_v34 = vpop.f32.mrb[29].mxu0  ;;  %v2451_v19 = vpop.f32.mrb[29].mxu1 }
 0x12f   :  { %3490 = vst [vmem:[#allocation28_spill] sm:$0xff] %v2451_v19  ;;  %v648_v1 = vadd.f32 %v647_v39, %v2449_v34  ;;  %v723_v59 = vmul.f32 %v2449_v34, %v2449_v34  ;;  %v785_v35 = vadd.f32 %v784_v16, %v722_v6  ;;  %v685_v57 = vadd.f32 %v684_v9, %v2451_v19  ;;  %v2457_v47 = vpop.f32.mrb[30].mxu0  ;;  %v2459_v56 = vpop.f32.mrb[30].mxu1 }
 0x130   :  { %3491 = vst [vmem:[#allocation29_spill] sm:$0xff] %v2459_v56  ;;  %v755_v29 = vmul.f32 %v2451_v19, %v2451_v19  ;;  %v822_v60 = vadd.f32 %v821_v53, %v754_v23  ;;  %v2463_v61 = vpop.f32.mrb[31].mxu0  ;;  %v2465_v7 = vpop.f32.mrb[31].mxu1  ;;  %v725_v19 = vmul.f32 %v2441_v17, %v2441_v17 }
 0x131   :  { %3492 = vst [vmem:[#allocation30_spill] sm:$0xff] %v2465_v7  ;;  %v786_v27 = vadd.f32 %v785_v35, %v723_v59  ;;  %v649_v39 = vadd.f32 %v648_v1, %v2463_v61  ;;  %v724_v6 = vmul.f32 %v2463_v61, %v2463_v61  ;;  %v686_v9 = vadd.f32 %v685_v57, %v2465_v7 }
 0x132   :  { %v823_v16 = vadd.f32 %v822_v60, %v755_v29  ;;  %v756_v13 = vmul.f32 %v2465_v7, %v2465_v7  ;;  %v757_v1 = vmul.f32 %v2443_v24, %v2443_v24  ;;  %v726_v35 = vmul.f32 %v2457_v47, %v2457_v47 }
 0x133   :  { %v650_v23 = vadd.f32 %v2441_v17, %v649_v39  ;;  %v787_v53 = vadd.f32 %v786_v27, %v724_v6  ;;  %v687_v33 = vadd.f32 %v2443_v24, %v686_v9  ;;  %v758_v7 = vmul.f32 %v2459_v56, %v2459_v56 }
 0x134   :  { %v824_v59 = vadd.f32 %v823_v16, %v756_v13 }
 0x135   :  { %v651_v57 = vadd.f32 %v2457_v47, %v650_v23  ;;  %v788_v29 = vadd.f32 %v787_v53, %v725_v19  ;;  %v688_v60 = vadd.f32 %v2459_v56, %v687_v33 }
 0x136   :  { %v825_v21 = vadd.f32 %v824_v59, %v757_v1 }
 0x137   :  { %v652_v39 = vrot.slane %v651_v57, 4  ;;  %v789_v27 = vadd.f32 %v788_v29, %v726_v35  ;;  %v689_v6 = vrot.slane %v688_v60, 4 }
 0x138   :  { %v826_v9 = vadd.f32 %v825_v21, %v758_v7 }
 0x139   :  { %v653_v51 = vadd.f32 %v652_v39, %v651_v57  ;;  %v790_v31 = vrot.slane %v789_v27, 4  ;;  %v690_v24 = vadd.f32 %v689_v6, %v688_v60 }
 0x13a   :  { %v827_v13 = vrot.slane %v826_v9, 4 }
 0x13b   :  { %v654_v16 = vrot.slane %v653_v51, 2  ;;  %v791_v55 = vadd.f32 %v790_v31, %v789_v27  ;;  %v691_v37 = vrot.slane %v690_v24, 2 }
 0x13c   :  { %v828_v11 = vadd.f32 %v827_v13, %v826_v9 }
 0x13d   :  { %v655_v23 = vadd.f32 %v654_v16, %v653_v51  ;;  %v792_v19 = vrot.slane %v791_v55, 2  ;;  %v692_v53 = vadd.f32 %v691_v37, %v690_v24 }
 0x13e   :  { %v829_v33 = vrot.slane %v828_v11, 2 }
 0x13f   :  { %v656_v0 = vrot.slane %v655_v23, 1  ;;  %v793_v15 = vadd.f32 %v792_v19, %v791_v55  ;;  %v693_v56 = vrot.slane %v692_v53, 1 }
 0x140   :  { %v830_v1 = vadd.f32 %v829_v33, %v828_v11 }
 0x141   :  { %v657_v59 = vadd.f32 %v656_v0, %v655_v23  ;;  %v794_v35 = vrot.slane %v793_v15, 1  ;;  %v694_v29 = vadd.f32 %v693_v56, %v692_v53 }
 0x142   :  { %v831_v21 = vrot.slane %v830_v1, 1 }
 0x143   :  { %v795_v7 = vadd.f32 %v794_v35, %v793_v15  ;;  %v2485_v57 = vmul.f32 0.00390625, %v657_v59  ;;  %v2487_v39 = vmul.f32 0.00390625, %v694_v29 }
 0x144   :  { %v832_v60 = vadd.f32 %v831_v21, %v830_v1 }
 0x145   :  { %v835_v31 = vmul.f32 0.00390625, %v795_v7  ;;  %v837_v51 = vmul.f32 %v2485_v57, %v2485_v57  ;;  %v838_v7 = vmul.f32 %v2487_v39, %v2487_v39  ;;  %v3520_v9 = vsub.f32 %v2169_v42, %v2485_v57 }
 0x146   :  { %v836_v21 = vmul.f32 0.00390625, %v832_v60  ;;  %v3521_v27 = vsub.f32 %v2181_v48, %v2485_v57  ;;  %v3522_v24 = vsub.f32 %v2165_v40, %v2485_v57  ;;  %v3524_v42 = vsub.f32 %v2209_v4, %v2485_v57 }
 0x147   :  { %v839_v56 = vsub.f32 %v835_v31, %v837_v51  ;;  %v3525_v48 = vsub.f32 %v2223_v14, %v2485_v57  ;;  %v3526_v40 = vsub.f32 %v2201_v63, %v2485_v57  ;;  %v3528_v4 = vsub.f32 %v2249_v36, %v2485_v57 }
 0x148   :  { %v840_v60 = vsub.f32 %v836_v21, %v838_v7  ;;  %v3529_v14 = vsub.f32 %v2263_v54, %v2485_v57  ;;  %v3530_v63 = vsub.f32 %v2241_v30, %v2485_v57  ;;  %v3532_v36 = vsub.f32 %v2289_v20, %v2485_v57 }
 0x149   :  { %v841_v53 = vmax.f32 %v839_v56, 0.0  ;;  %v3533_v54 = vsub.f32 %v2303_v32, %v2485_v57  ;;  %v3534_v30 = vsub.f32 %v2281_v12, %v2485_v57  ;;  %v3536_v20 = vsub.f32 %v2329_v8, %v2485_v57 }
 0x14a   :  { %v3537_v32 = vsub.f32 %v2343_v28, %v2485_v57  ;;  %v3538_v12 = vsub.f32 %v2321_v62, %v2485_v57  ;;  %v3540_v8 = vsub.f32 %v2369_v18, %v2485_v57  ;;  %v3541_v28 = vsub.f32 %v2383_v52, %v2485_v57 }
 0x14b   :  { %v907_v59 = vadd.f32 1e-05, %v841_v53  ;;  %v3542_v62 = vsub.f32 %v2361_v2, %v2485_v57  ;;  %v3544_v18 = vsub.f32 %v2409_v58, %v2485_v57  ;;  %v3545_v52 = vsub.f32 %v2423_v25, %v2485_v57 }
 0x14c   :  { %v3546_v2 = vsub.f32 %v2401_v46, %v2485_v57  ;;  %v3548_v58 = vsub.f32 %v2449_v34, %v2485_v57  ;;  %v3549_v25 = vsub.f32 %v2463_v61, %v2485_v57  ;;  %v3550_v46 = vsub.f32 %v2441_v17, %v2485_v57 }
 0x14d   :  { %2026 = vrsqrt.f32 %v907_v59  ;;  %v842_v59 = vmax.f32 %v840_v60, 0.0  ;;  %v3552_v61 = vsub.f32 %v2171_v43, %v2487_v39  ;;  %v3554_v43 = vsub.f32 %v2183_v49, %v2487_v39 }
 0x14f   :  { %v908_v51 = vadd.f32 1e-05, %v842_v59  ;;  %v3523_v59 = vsub.f32 %v2173_v44, %v2485_v57  ;;  %v3527_v44 = vsub.f32 %v2217_v10, %v2485_v57  ;;  %v3531_v10 = vsub.f32 %v2257_v50, %v2485_v57 }
 0x150   :  { %v3535_v50 = vsub.f32 %v2297_v26, %v2485_v57  ;;  %v3539_v26 = vsub.f32 %v2337_v22, %v2485_v57  ;;  %v3543_v22 = vsub.f32 %v2377_v38, %v2485_v57  ;;  %v3547_v38 = vsub.f32 %v2417_v3, %v2485_v57 }
 0x151   :  { %2028 = vrsqrt.f32 %v908_v51  ;;  %v3551_v3 = vsub.f32 %v2457_v47, %v2485_v57 }
 0x157   :  { %v2027_v7 = vpop.eup %2026 }
 0x158   :  { %v2624_v0 = vmul.f32 %v2027_v7, %v3520_v9  ;;  %v2629_v6 = vmul.f32 %v2027_v7, %v3521_v27  ;;  %v2634_v55 = vmul.f32 %v2027_v7, %v3522_v24  ;;  %v2639_v29 = vmul.f32 %v2027_v7, %v3523_v59 }
 0x159   :  { %v2644_v9 = vmul.f32 %v2027_v7, %v3524_v42  ;;  %v2649_v27 = vmul.f32 %v2027_v7, %v3525_v48  ;;  %v2654_v24 = vmul.f32 %v2027_v7, %v3526_v40  ;;  %v2659_v51 = vmul.f32 %v2027_v7, %v3527_v44 }
 0x15a   :  { %v2664_v59 = vmul.f32 %v2027_v7, %v3528_v4  ;;  %v2669_v42 = vmul.f32 %v2027_v7, %v3529_v14  ;;  %v2674_v48 = vmul.f32 %v2027_v7, %v3530_v63  ;;  %v2679_v40 = vmul.f32 %v2027_v7, %v3531_v10 }
 0x15b   :  { %v2684_v44 = vmul.f32 %v2027_v7, %v3532_v36  ;;  %v2689_v4 = vmul.f32 %v2027_v7, %v3533_v54  ;;  %v2694_v14 = vmul.f32 %v2027_v7, %v3534_v30  ;;  %v2699_v63 = vmul.f32 %v2027_v7, %v3535_v50 }
 0x15c   :  { %v2704_v10 = vmul.f32 %v2027_v7, %v3536_v20  ;;  %v2709_v36 = vmul.f32 %v2027_v7, %v3537_v32  ;;  %v2714_v54 = vmul.f32 %v2027_v7, %v3538_v12  ;;  %v2719_v30 = vmul.f32 %v2027_v7, %v3539_v26 }
 0x15d   :  { %v2724_v50 = vmul.f32 %v2027_v7, %v3540_v8  ;;  %v2729_v20 = vmul.f32 %v2027_v7, %v3541_v28  ;;  %v2734_v32 = vmul.f32 %v2027_v7, %v3542_v62  ;;  %v2739_v12 = vmul.f32 %v2027_v7, %v3543_v22 }
 0x15e   :  { %v2744_v26 = vmul.f32 %v2027_v7, %v3544_v18  ;;  %v2749_v8 = vmul.f32 %v2027_v7, %v3545_v52  ;;  %v2754_v28 = vmul.f32 %v2027_v7, %v3546_v2  ;;  %v2759_v62 = vmul.f32 %v2027_v7, %v3547_v38  ;;  %v2781_v38 = vpop.eup %2028 }
 0x15f   :  { %v2764_v22 = vmul.f32 %v2027_v7, %v3548_v58  ;;  %v2769_v18 = vmul.f32 %v2027_v7, %v3549_v25  ;;  %v2774_v52 = vmul.f32 %v2027_v7, %v3550_v46  ;;  %v2779_v2 = vmul.f32 %v2027_v7, %v3551_v3 }
 0x160   :  { %vm975_vm0 = vcmp.gt.f32.partialorder %v2624_v0, 0.0  ;;  %vm976_vm1 = vcmp.gt.f32.partialorder %v2629_v6, 0.0  ;;  %vm977_vm2 = vcmp.gt.f32.partialorder %v2634_v55, 0.0  ;;  %vm978_vm3 = vcmp.gt.f32.partialorder %v2639_v29, 0.0 }
 0x161   :  { %vm979_vm4 = vcmp.gt.f32.partialorder %v2644_v9, 0.0  ;;  %vm980_vm5 = vcmp.gt.f32.partialorder %v2649_v27, 0.0  ;;  %vm981_vm6 = vcmp.gt.f32.partialorder %v2654_v24, 0.0  ;;  %vm982_vm7 = vcmp.gt.f32.partialorder %v2659_v51, 0.0 }
 0x162   :  { %vm983_vm8 = vcmp.gt.f32.partialorder %v2664_v59, 0.0  ;;  %vm984_vm9 = vcmp.gt.f32.partialorder %v2669_v42, 0.0  ;;  %vm985_vm10 = vcmp.gt.f32.partialorder %v2674_v48, 0.0  ;;  %v1039_v47 = vmul.f32 0.2, %v2624_v0 }
 0x163   :  { %v1040_v17 = vmul.f32 0.2, %v2629_v6  ;;  %v1041_v34 = vmul.f32 0.2, %v2634_v55  ;;  %v2804_v57 = vmul.f32 %v2781_v38, %v3552_v61  ;;  %v1042_v7 = vmul.f32 0.2, %v2639_v29 }
 0x164   :  { %v1043_v58 = vmul.f32 0.2, %v2644_v9  ;;  %v1044_v25 = vmul.f32 0.2, %v2649_v27  ;;  %v2817_v46 = vmul.f32 %v2781_v38, %v3554_v43  ;;  %vm996_vm13 = vcmp.gt.f32.partialorder %v2729_v20, 0.0 }
 0x165   :  { %3553 = vst [vmem:[#allocation31_spill] sm:$0xff] %v2804_v57  ;;  %v1045_v3 = vmul.f32 0.2, %v2654_v24  ;;  %v1046_v61 = vmul.f32 0.2, %v2659_v51  ;;  %v2829_v49 = vsel %vm975_vm0, %v2624_v0, %v1039_v47  ;;  %vm1000_vm12 = vcmp.gt.f32.partialorder %v2749_v8, 0.0 }
 0x166   :  { %3555 = vst [vmem:[#allocation32_spill] sm:$0xff] %v2817_v46  ;;  %v1047_v57 = vmul.f32 0.2, %v2664_v59  ;;  %v1048_v43 = vmul.f32 0.2, %v2669_v42  ;;  %v2841_v35 = vsel %vm976_vm1, %v2629_v6, %v1040_v17  ;;  %vm1002_vm11 = vcmp.gt.f32.partialorder %v2759_v62, 0.0 }
 0x167   :  { %v1049_v46 = vmul.f32 0.2, %v2674_v48  ;;  %v1050_v60 = vmul.f32 0.2, %v2679_v40  ;;  %vm1003_vm14 = vcmp.gt.f32.partialorder %v2764_v22, 0.0  ;;  %vm1004_vm15 = vcmp.gt.f32.partialorder %v2769_v18, 0.0 }
 0x168   :  { %v1051_v0 = vmul.f32 0.2, %v2684_v44  ;;  %v1052_v47 = vmul.f32 0.2, %v2689_v4  ;;  %v1053_v56 = vmul.f32 0.2, %v2694_v14  ;;  %v1105_v37 = vsel %vm977_vm2, %v2634_v55, %v1041_v34 }
 0x169   :  { %vm1005_vm1 = vcmp.gt.f32.partialorder %v2774_v52, 0.0  ;;  %vm1006_vm0 = vcmp.gt.f32.partialorder %v2779_v2, 0.0  ;;  %v1054_v6 = vmul.f32 0.2, %v2699_v63  ;;  %v1055_v17 = vmul.f32 0.2, %v2704_v10 }
 0x16a   :  { %v1056_v11 = vmul.f32 0.2, %v2709_v36  ;;  %v1106_v15 = vsel %vm978_vm3, %v2639_v29, %v1042_v7  ;;  %v1057_v31 = vmul.f32 0.2, %v2714_v54  ;;  %v1058_v1 = vmul.f32 0.2, %v2719_v30 }
 0x16b   :  { %v1059_v55 = vmul.f32 0.2, %v2724_v50  ;;  %v1107_v34 = vsel %vm979_vm4, %v2644_v9, %v1043_v58  ;;  %v1060_v21 = vmul.f32 0.2, %v2729_v20  ;;  %v1061_v13 = vmul.f32 0.2, %v2734_v32 }
 0x16c   :  { %v1062_v16 = vmul.f32 0.2, %v2739_v12  ;;  %v1108_v29 = vsel %vm980_vm5, %v2649_v27, %v1044_v25  ;;  %v1063_v7 = vmul.f32 0.2, %v2744_v26  ;;  %v1064_v23 = vmul.f32 0.2, %v2749_v8 }
 0x16d   :  { %v1065_v19 = vmul.f32 0.2, %v2754_v28  ;;  %v1109_v9 = vsel %vm981_vm6, %v2654_v24, %v1045_v3  ;;  %v1066_v58 = vmul.f32 0.2, %v2759_v62  ;;  %v1067_v33 = vmul.f32 0.2, %v2764_v22 }
 0x16e   :  { %v1068_v53 = vmul.f32 0.2, %v2769_v18  ;;  %v1110_v27 = vsel %vm982_vm7, %v2659_v51, %v1046_v61  ;;  %v1069_v25 = vmul.f32 0.2, %v2774_v52  ;;  %v1070_v5 = vmul.f32 0.2, %v2779_v2 }
 0x16f   :  { %v1111_v45 = vsel %vm983_vm8, %v2664_v59, %v1047_v57  ;;  %v1112_v24 = vsel %vm984_vm9, %v2669_v42, %v1048_v43  ;;  %v1113_v3 = vsel %vm985_vm10, %v2674_v48, %v1049_v46  ;;  %vm3556_vm2 = vcmp.gt.f32.partialorder %v2679_v40, 0.0  ;;  %v3575_v46 = vld [vmem:[#allocation6_spill] sm:$0xff] }
 0x170   :  { %v1114_v51 = vsel %vm3556_vm2, %v2679_v40, %v1050_v60  ;;  %vm3557_vm3 = vcmp.gt.f32.partialorder %v2684_v44, 0.0  ;;  %vm3558_vm4 = vcmp.gt.f32.partialorder %v2689_v4, 0.0  ;;  %vm3559_vm5 = vcmp.gt.f32.partialorder %v2694_v14, 0.0 }
 0x171   :  { %v1115_v61 = vsel %vm3557_vm3, %v2684_v44, %v1051_v0  ;;  %v1116_v59 = vsel %vm3558_vm4, %v2689_v4, %v1052_v47  ;;  %v1117_v42 = vsel %vm3559_vm5, %v2694_v14, %v1053_v56  ;;  %vm3560_vm6 = vcmp.gt.f32.partialorder %v2699_v63, 0.0  ;;  %v3577_v0 = vld [vmem:[#allocation3_spill] sm:$0xff] }
 0x172   :  { %v1118_v48 = vsel %vm3560_vm6, %v2699_v63, %v1054_v6  ;;  %vm3561_vm7 = vcmp.gt.f32.partialorder %v2704_v10, 0.0  ;;  %vm3562_vm8 = vcmp.gt.f32.partialorder %v2709_v36, 0.0  ;;  %vm3563_vm9 = vcmp.gt.f32.partialorder %v2714_v54, 0.0 }
 0x173   :  { %v1119_v60 = vsel %vm3561_vm7, %v2704_v10, %v1055_v17  ;;  %v1120_v40 = vsel %vm3562_vm8, %v2709_v36, %v1056_v11  ;;  %v1121_v44 = vsel %vm3563_vm9, %v2714_v54, %v1057_v31  ;;  %vm3564_vm10 = vcmp.gt.f32.partialorder %v2719_v30, 0.0  ;;  %v3579_v17 = vld [vmem:[#allocation5_spill] sm:$0xff] }
 0x174   :  { %v1122_v56 = vsel %vm3564_vm10, %v2719_v30, %v1058_v1  ;;  %vm3565_vm2 = vcmp.gt.f32.partialorder %v2724_v50, 0.0  ;;  %v1124_v14 = vsel %vm996_vm13, %v2729_v20, %v1060_v21  ;;  %vm3566_vm3 = vcmp.gt.f32.partialorder %v2734_v32, 0.0 }
 0x175   :  { %v1123_v4 = vsel %vm3565_vm2, %v2724_v50, %v1059_v55  ;;  %v1125_v11 = vsel %vm3566_vm3, %v2734_v32, %v1061_v13  ;;  %vm3567_vm4 = vcmp.gt.f32.partialorder %v2739_v12, 0.0  ;;  %vm3568_vm5 = vcmp.gt.f32.partialorder %v2744_v26, 0.0 }
 0x176   :  { %v1126_v31 = vsel %vm3567_vm4, %v2739_v12, %v1062_v16  ;;  %v1127_v1 = vsel %vm3568_vm5, %v2744_v26, %v1063_v7  ;;  %v1128_v63 = vsel %vm1000_vm12, %v2749_v8, %v1064_v23  ;;  %vm3569_vm6 = vcmp.gt.f32.partialorder %v2754_v28, 0.0 }
 0x177   :  { %v1129_v21 = vsel %vm3569_vm6, %v2754_v28, %v1065_v19  ;;  %v1130_v13 = vsel %vm1002_vm11, %v2759_v62, %v1066_v58  ;;  %v1131_v16 = vsel %vm1003_vm14, %v2764_v22, %v1067_v33  ;;  %v1132_v10 = vsel %vm1004_vm15, %v2769_v18, %v1068_v53  ;;  %v3571_v22 = vld [vmem:[#allocation2_spill] sm:$0xff] }
 0x178   :  { %v1133_v23 = vsel %vm1005_vm1, %v2774_v52, %v1069_v25  ;;  %v1134_v19 = vsel %vm1006_vm0, %v2779_v2, %v1070_v5  ;;  %v1662_v36 = vpack.c.bf16 %v2841_v35, %v2829_v49  ;;  %v1667_v54 = vpack.c.bf16 %v1106_v15, %v1105_v37  ;;  %v3583_v58 = vld [vmem:[#allocation10_spill] sm:$0xff] }
 0x179   :  { %v1672_v30 = vpack.c.bf16 %v1108_v29, %v1107_v34  ;;  %v1677_v50 = vpack.c.bf16 %v1110_v27, %v1109_v9  ;;  %v1682_v20 = vpack.c.bf16 %v1112_v24, %v1111_v45  ;;  %v1687_v33 = vpack.c.bf16 %v1114_v51, %v1113_v3  ;;  %v3581_v29 = vld [vmem:[#allocation8_spill] sm:$0xff]  ;;  %v3585_v24 = vld [vmem:[#allocation7_spill] sm:$0xff] }
 0x17a   :  { %1663 = vst [vmem:[%s3405_s2] sm:$0xff] %v1662_v36   ;;  %1819 = vst [vmem:[%s3405_s2 + $0x8] sm:$0xff] %v1667_v54   ;;  %v1692_v53 = vpack.c.bf16 %v1116_v59, %v1115_v61  ;;  %v1697_v32 = vpack.c.bf16 %v1118_v48, %v1117_v42  ;;  %v1702_v12 = vpack.c.bf16 %v1120_v40, %v1119_v60  ;;  %v3587_v61 = vld [vmem:[#allocation9_spill] sm:$0xff]  ;;  %v3589_v48 = vld [vmem:[#allocation12_spill] sm:$0xff] }
 0x17b   :  { %v1707_v5 = vpack.c.bf16 %v1122_v56, %v1121_v44  ;;  %1820 = vst [vmem:[%s3405_s2 + $0x10] sm:$0xff] %v1672_v30   ;;  %1821 = vst [vmem:[%s3405_s2 + $0x18] sm:$0xff] %v1677_v50   ;;  %v1712_v45 = vpack.c.bf16 %v1124_v14, %v1123_v4  ;;  %v1717_v37 = vpack.c.bf16 %v1126_v31, %v1125_v11  ;;  %v3591_v44 = vld [vmem:[#allocation14_spill] sm:$0xff]  ;;  %v3593_v14 = vld [vmem:[#allocation11_spill] sm:$0xff] }
 0x17c   :  { %1822 = vst [vmem:[%s3405_s2 + $0x20] sm:$0xff] %v1682_v20   ;;  %1823 = vst [vmem:[%s3405_s2 + $0x28] sm:$0xff] %v1687_v33   ;;  %v1722_v15 = vpack.c.bf16 %v1128_v63, %v1127_v1  ;;  %v1727_v35 = vpack.c.bf16 %v1130_v13, %v1129_v21  ;;  %v1732_v26 = vpack.c.bf16 %v1132_v10, %v1131_v16  ;;  %v3595_v1 = vld [vmem:[#allocation13_spill] sm:$0xff]  ;;  %v3597_v13 = vld [vmem:[#allocation16_spill] sm:$0xff] }
 0x17d   :  { %1824 = vst [vmem:[%s3405_s2 + $0x30] sm:$0xff] %v1692_v53   ;;  %1825 = vst [vmem:[%s3405_s2 + $0x38] sm:$0xff] %v1697_v32   ;;  %v1737_v8 = vpack.c.bf16 %v1134_v19, %v1133_v23  ;;  %v3570_v28 = vsub.f32 %v2167_v41, %v2487_v39  ;;  %v3572_v18 = vsub.f32 %v3571_v22, %v2487_v39  ;;  %v3573_v41 = vld [vmem:[#allocation4_spill] sm:$0xff]  ;;  %v3599_v23 = vld [vmem:[#allocation18_spill] sm:$0xff] }
 0x17e   :  { %1826 = vst [vmem:[%s3405_s2 + $0x40] sm:$0xff] %v1702_v12   ;;  %1827 = vst [vmem:[%s3405_s2 + $0x48] sm:$0xff] %v1707_v5   ;;  %v3574_v2 = vsub.f32 %v3573_v41, %v2487_v39  ;;  %v3576_v49 = vsub.f32 %v3575_v46, %v2487_v39  ;;  %v3578_v47 = vsub.f32 %v3577_v0, %v2487_v39  ;;  %v3601_v54 = vld [vmem:[#allocation15_spill] sm:$0xff]  ;;  %v3603_v20 = vld [vmem:[#allocation17_spill] sm:$0xff] }
 0x17f   :  { %v2995_v62 = vmul.f32 %v2781_v38, %v3570_v28  ;;  %v3001_v52 = vmul.f32 %v2781_v38, %v3572_v18  ;;  %1828 = vst [vmem:[%s3405_s2 + $0x50] sm:$0xff] %v1712_v45   ;;  %1829 = vst [vmem:[%s3405_s2 + $0x58] sm:$0xff] %v1717_v37   ;;  %v3580_v55 = vsub.f32 %v3579_v17, %v2487_v39  ;;  %v3605_v32 = vld [vmem:[#allocation20_spill] sm:$0xff]  ;;  %v3607_v45 = vld [vmem:[#allocation22_spill] sm:$0xff] }
 0x180   :  { %1830 = vst [vmem:[%s3405_s2 + $0x60] sm:$0xff] %v1722_v15   ;;  %1831 = vst [vmem:[%s3405_s2 + $0x68] sm:$0xff] %v1727_v35   ;;  %v3019_v57 = vmul.f32 %v2781_v38, %v3574_v2  ;;  %v3025_v43 = vmul.f32 %v2781_v38, %v3576_v49  ;;  %v3031_v6 = vmul.f32 %v2781_v38, %v3578_v47  ;;  %v3609_v35 = vld [vmem:[#allocation19_spill] sm:$0xff]  ;;  %v3611_v28 = vld [vmem:[#allocation21_spill] sm:$0xff] }
 0x181   :  { %v3037_v34 = vmul.f32 %v2781_v38, %v3580_v55  ;;  %1832 = vst [vmem:[%s3405_s2 + $0x70] sm:$0xff] %v1732_v26   ;;  %1833 = vst [vmem:[%s3405_s2 + $0x78] sm:$0xff] %v1737_v8   ;;  %v3582_v7 = vsub.f32 %v3581_v29, %v2487_v39  ;;  %v3584_v27 = vsub.f32 %v3583_v58, %v2487_v39  ;;  %v3613_v41 = vld [vmem:[#allocation24_spill] sm:$0xff]  ;;  %v3615_v49 = vld [vmem:[#allocation26_spill] sm:$0xff]  ;;  %vm1009_vm13 = vcmp.gt.f32.partialorder %v2995_v62, 0.0 }
 0x182   :  { %v3586_v3 = vsub.f32 %v3585_v24, %v2487_v39  ;;  %v3588_v59 = vsub.f32 %v3587_v61, %v2487_v39  ;;  %v3590_v60 = vsub.f32 %v3589_v48, %v2487_v39  ;;  %v3592_v56 = vsub.f32 %v3591_v44, %v2487_v39  ;;  %v3617_v17 = vld [vmem:[#allocation23_spill] sm:$0xff]  ;;  %v3621_v24 = vld [vmem:[#allocation28_spill] sm:$0xff] }
 0x183   :  { %v3049_v9 = vmul.f32 %v2781_v38, %v3582_v7  ;;  %v3055_v25 = vmul.f32 %v2781_v38, %v3584_v27  ;;  %v3594_v11 = vsub.f32 %v3593_v14, %v2487_v39  ;;  %v3596_v63 = vsub.f32 %v3595_v1, %v2487_v39  ;;  %v3619_v7 = vld [vmem:[#allocation25_spill] sm:$0xff]  ;;  %v3625_v44 = vld [vmem:[#allocation27_spill] sm:$0xff] }
 0x184   :  { %v3061_v51 = vmul.f32 %v2781_v38, %v3586_v3  ;;  %v3067_v42 = vmul.f32 %v2781_v38, %v3588_v59  ;;  %v3073_v40 = vmul.f32 %v2781_v38, %v3590_v60  ;;  %v3079_v4 = vmul.f32 %v2781_v38, %v3592_v56  ;;  %v3623_v59 = vld [vmem:[#allocation30_spill] sm:$0xff] }
 0x185   :  { %v3085_v31 = vmul.f32 %v2781_v38, %v3594_v11  ;;  %v3091_v21 = vmul.f32 %v2781_v38, %v3596_v63  ;;  %v3598_v16 = vsub.f32 %v3597_v13, %v2487_v39  ;;  %v3600_v19 = vsub.f32 %v3599_v23, %v2487_v39  ;;  %v3627_v11 = vld [vmem:[#allocation29_spill] sm:$0xff]  ;;  %v3629_v13 = vld [vmem:[#allocation31_spill] sm:$0xff] }
 0x186   :  { %v3602_v30 = vsub.f32 %v3601_v54, %v2487_v39  ;;  %v3604_v33 = vsub.f32 %v3603_v20, %v2487_v39  ;;  %v3606_v12 = vsub.f32 %v3605_v32, %v2487_v39  ;;  %v3608_v37 = vsub.f32 %v3607_v45, %v2487_v39 }
 0x187   :  { %v3097_v10 = vmul.f32 %v2781_v38, %v3598_v16  ;;  %v3103_v36 = vmul.f32 %v2781_v38, %v3600_v19  ;;  %v3610_v26 = vsub.f32 %v3609_v35, %v2487_v39  ;;  %v3612_v22 = vsub.f32 %v3611_v28, %v2487_v39  ;;  %v3630_v16 = vld [vmem:[#allocation32_spill] sm:$0xff] }
 0x188   :  { %v3109_v50 = vmul.f32 %v2781_v38, %v3602_v30  ;;  %v3115_v53 = vmul.f32 %v2781_v38, %v3604_v33  ;;  %v3121_v5 = vmul.f32 %v2781_v38, %v3606_v12  ;;  %v3127_v15 = vmul.f32 %v2781_v38, %v3608_v37 }
 0x189   :  { %v3133_v8 = vmul.f32 %v2781_v38, %v3610_v26  ;;  %v3139_v18 = vmul.f32 %v2781_v38, %v3612_v22  ;;  %v3614_v2 = vsub.f32 %v3613_v41, %v2487_v39  ;;  %v3616_v0 = vsub.f32 %v3615_v49, %v2487_v39 }
 0x18a   :  { %v3618_v55 = vsub.f32 %v3617_v17, %v2487_v39  ;;  %v3620_v58 = vsub.f32 %v3619_v7, %v2487_v39  ;;  %v3622_v3 = vsub.f32 %v3621_v24, %v2487_v39  ;;  %v3624_v48 = vsub.f32 %v3623_v59, %v2487_v39 }
 0x18b   :  { %v3145_v46 = vmul.f32 %v2781_v38, %v3614_v2  ;;  %v3151_v47 = vmul.f32 %v2781_v38, %v3616_v0  ;;  %v3626_v56 = vsub.f32 %v3625_v44, %v2487_v39  ;;  %v3628_v1 = vsub.f32 %v3627_v11, %v2487_v39 }
 0x18c   :  { %v3157_v29 = vmul.f32 %v2781_v38, %v3618_v55  ;;  %v3163_v27 = vmul.f32 %v2781_v38, %v3620_v58  ;;  %v3169_v61 = vmul.f32 %v2781_v38, %v3622_v3  ;;  %v3175_v60 = vmul.f32 %v2781_v38, %v3624_v48 }
 0x18d   :  { %v3181_v14 = vmul.f32 %v2781_v38, %v3626_v56  ;;  %v3187_v63 = vmul.f32 %v2781_v38, %v3628_v1  ;;  %vm1007_vm11 = vcmp.gt.f32.partialorder %v3629_v13, 0.0  ;;  %vm1008_vm12 = vcmp.gt.f32.partialorder %v3630_v16, 0.0 }
 0x18e   :  { %vm1010_vm14 = vcmp.gt.f32.partialorder %v3001_v52, 0.0  ;;  %vm1011_vm15 = vcmp.gt.f32.partialorder %v3019_v57, 0.0  ;;  %vm1012_vm0 = vcmp.gt.f32.partialorder %v3025_v43, 0.0  ;;  %vm1013_vm1 = vcmp.gt.f32.partialorder %v3031_v6, 0.0 }
 0x18f   :  { %vm1014_vm7 = vcmp.gt.f32.partialorder %v3037_v34, 0.0  ;;  %vm1015_vm8 = vcmp.gt.f32.partialorder %v3049_v9, 0.0  ;;  %v1071_v39 = vmul.f32 0.2, %v3629_v13  ;;  %v1072_v38 = vmul.f32 0.2, %v3630_v16 }
 0x190   :  { %v1073_v23 = vmul.f32 0.2, %v2995_v62  ;;  %vm1022_vm6 = vcmp.gt.f32.partialorder %v3091_v21, 0.0  ;;  %vm1023_vm9 = vcmp.gt.f32.partialorder %v3097_v10, 0.0  ;;  %v1074_v19 = vmul.f32 0.2, %v3001_v52 }
 0x191   :  { %v1075_v54 = vmul.f32 0.2, %v3019_v57  ;;  %v1076_v30 = vmul.f32 0.2, %v3025_v43  ;;  %vm1028_vm5 = vcmp.gt.f32.partialorder %v3127_v15, 0.0  ;;  %v3223_v12 = vsel %vm1007_vm11, %v3629_v13, %v1071_v39 }
 0x192   :  { %v1077_v20 = vmul.f32 0.2, %v3031_v6  ;;  %v1078_v33 = vmul.f32 0.2, %v3037_v34  ;;  %v1079_v32 = vmul.f32 0.2, %v3049_v9  ;;  %v3235_v26 = vsel %vm1008_vm12, %v3630_v16, %v1072_v38 }
 0x193   :  { %vm1032_vm2 = vcmp.gt.f32.partialorder %v3151_v47, 0.0  ;;  %v1080_v45 = vmul.f32 0.2, %v3055_v25  ;;  %v1081_v37 = vmul.f32 0.2, %v3061_v51  ;;  %vm1034_vm10 = vcmp.gt.f32.partialorder %v3163_v27, 0.0 }
 0x194   :  { %v1082_v35 = vmul.f32 0.2, %v3067_v42  ;;  %vm1035_vm4 = vcmp.gt.f32.partialorder %v3169_v61, 0.0  ;;  %vm1036_vm3 = vcmp.gt.f32.partialorder %v3175_v60, 0.0  ;;  %v1083_v28 = vmul.f32 0.2, %v3073_v40 }
 0x195   :  { %v1084_v22 = vmul.f32 0.2, %v3079_v4  ;;  %v1085_v41 = vmul.f32 0.2, %v3085_v31  ;;  %v1137_v2 = vsel %vm1009_vm13, %v2995_v62, %v1073_v23  ;;  %vm1037_vm12 = vcmp.gt.f32.partialorder %v3181_v14, 0.0 }
 0x196   :  { %vm1038_vm11 = vcmp.gt.f32.partialorder %v3187_v63, 0.0  ;;  %v1086_v49 = vmul.f32 0.2, %v3091_v21  ;;  %v1087_v0 = vmul.f32 0.2, %v3097_v10  ;;  %v1138_v55 = vsel %vm1010_vm14, %v3001_v52, %v1074_v19 }
 0x197   :  { %v1088_v17 = vmul.f32 0.2, %v3103_v36  ;;  %v1089_v7 = vmul.f32 0.2, %v3109_v50  ;;  %v1090_v58 = vmul.f32 0.2, %v3115_v53  ;;  %v1139_v24 = vsel %vm1011_vm15, %v3019_v57, %v1075_v54 }
 0x198   :  { %v1091_v62 = vmul.f32 0.2, %v3121_v5  ;;  %v1092_v3 = vmul.f32 0.2, %v3127_v15  ;;  %v1093_v59 = vmul.f32 0.2, %v3133_v8  ;;  %v1140_v52 = vsel %vm1012_vm0, %v3025_v43, %v1076_v30 }
 0x199   :  { %v1094_v48 = vmul.f32 0.2, %v3139_v18  ;;  %v1095_v44 = vmul.f32 0.2, %v3145_v46  ;;  %v1096_v56 = vmul.f32 0.2, %v3151_v47  ;;  %v1141_v57 = vsel %vm1013_vm1, %v3031_v6, %v1077_v20 }
 0x19a   :  { %v1097_v11 = vmul.f32 0.2, %v3157_v29  ;;  %v1098_v1 = vmul.f32 0.2, %v3163_v27  ;;  %v1099_v13 = vmul.f32 0.2, %v3169_v61  ;;  %v1142_v43 = vsel %vm1014_vm7, %v3037_v34, %v1078_v33 }
 0x19b   :  { %v1100_v16 = vmul.f32 0.2, %v3175_v60  ;;  %v1101_v39 = vmul.f32 0.2, %v3181_v14  ;;  %v1102_v38 = vmul.f32 0.2, %v3187_v63  ;;  %v1143_v23 = vsel %vm1015_vm8, %v3049_v9, %v1079_v32 }
 0x19c   :  { %vm3631_vm13 = vcmp.gt.f32.partialorder %v3055_v25, 0.0  ;;  %vm3632_vm14 = vcmp.gt.f32.partialorder %v3061_v51, 0.0  ;;  %vm3633_vm15 = vcmp.gt.f32.partialorder %v3067_v42, 0.0  ;;  %vm3634_vm0 = vcmp.gt.f32.partialorder %v3073_v40, 0.0 }
 0x19d   :  { %v1144_v6 = vsel %vm3631_vm13, %v3055_v25, %v1080_v45  ;;  %v1145_v19 = vsel %vm3632_vm14, %v3061_v51, %v1081_v37  ;;  %v1146_v34 = vsel %vm3633_vm15, %v3067_v42, %v1082_v35  ;;  %v1147_v54 = vsel %vm3634_vm0, %v3073_v40, %v1083_v28 }
 0x19e   :  { %vm3635_vm1 = vcmp.gt.f32.partialorder %v3079_v4, 0.0  ;;  %vm3636_vm7 = vcmp.gt.f32.partialorder %v3085_v31, 0.0  ;;  %v1150_v51 = vsel %vm1022_vm6, %v3091_v21, %v1086_v49  ;;  %v1151_v42 = vsel %vm1023_vm9, %v3097_v10, %v1087_v0 }
 0x19f   :  { %v1148_v9 = vsel %vm3635_vm1, %v3079_v4, %v1084_v22  ;;  %v1149_v25 = vsel %vm3636_vm7, %v3085_v31, %v1085_v41  ;;  %vm3637_vm8 = vcmp.gt.f32.partialorder %v3103_v36, 0.0  ;;  %vm3638_vm13 = vcmp.gt.f32.partialorder %v3109_v50, 0.0 }
 0x1a0   :  { %v1152_v40 = vsel %vm3637_vm8, %v3103_v36, %v1088_v17  ;;  %v1153_v4 = vsel %vm3638_vm13, %v3109_v50, %v1089_v7  ;;  %vm3639_vm14 = vcmp.gt.f32.partialorder %v3115_v53, 0.0  ;;  %vm3640_vm15 = vcmp.gt.f32.partialorder %v3121_v5, 0.0 }
 0x1a1   :  { %v1154_v31 = vsel %vm3639_vm14, %v3115_v53, %v1090_v58  ;;  %v1155_v21 = vsel %vm3640_vm15, %v3121_v5, %v1091_v62  ;;  %v1156_v10 = vsel %vm1028_vm5, %v3127_v15, %v1092_v3  ;;  %vm3641_vm9 = vcmp.gt.f32.partialorder %v3133_v8, 0.0 }
 0x1a2   :  { %v1157_v36 = vsel %vm3641_vm9, %v3133_v8, %v1093_v59  ;;  %vm3642_vm6 = vcmp.gt.f32.partialorder %v3139_v18, 0.0  ;;  %vm3643_vm0 = vcmp.gt.f32.partialorder %v3145_v46, 0.0  ;;  %v1160_v5 = vsel %vm1032_vm2, %v3151_v47, %v1096_v56 }
 0x1a3   :  { %v1158_v50 = vsel %vm3642_vm6, %v3139_v18, %v1094_v48  ;;  %v1159_v53 = vsel %vm3643_vm0, %v3145_v46, %v1095_v44  ;;  %vm3644_vm1 = vcmp.gt.f32.partialorder %v3157_v29, 0.0  ;;  %v1162_v8 = vsel %vm1034_vm10, %v3163_v27, %v1098_v1 }
 0x1a4   :  { %v1161_v15 = vsel %vm3644_vm1, %v3157_v29, %v1097_v11  ;;  %v1163_v18 = vsel %vm1035_vm4, %v3169_v61, %v1099_v13  ;;  %v1164_v46 = vsel %vm1036_vm3, %v3175_v60, %v1100_v16  ;;  %v1165_v47 = vsel %vm1037_vm12, %v3181_v14, %v1101_v39 }
 0x1a5   :  { %v1166_v29 = vsel %vm1038_vm11, %v3187_v63, %v1102_v38  ;;  %v1742_v30 = vpack.c.bf16 %v3235_v26, %v3223_v12  ;;  %v1747_v27 = vpack.c.bf16 %v1138_v55, %v1137_v2  ;;  %v1752_v20 = vpack.c.bf16 %v1140_v52, %v1139_v24 }
 0x1a6   :  { %v1757_v33 = vpack.c.bf16 %v1142_v43, %v1141_v57  ;;  %v1762_v32 = vpack.c.bf16 %v1144_v6, %v1143_v23  ;;  %v1767_v61 = vpack.c.bf16 %v1146_v34, %v1145_v19  ;;  %v1772_v60 = vpack.c.bf16 %v1148_v9, %v1147_v54 }
 0x1a7   :  { %1834 = vst [vmem:[%s3405_s2 + $0x80] sm:$0xff] %v1742_v30   ;;  %1835 = vst [vmem:[%s3405_s2 + $0x88] sm:$0xff] %v1747_v27   ;;  %v1777_v14 = vpack.c.bf16 %v1150_v51, %v1149_v25  ;;  %v1782_v45 = vpack.c.bf16 %v1152_v40, %v1151_v42  ;;  %v1787_v63 = vpack.c.bf16 %v1154_v31, %v1153_v4 }
 0x1a8   :  { %1836 = vst [vmem:[%s3405_s2 + $0x90] sm:$0xff] %v1752_v20   ;;  %1837 = vst [vmem:[%s3405_s2 + $0x98] sm:$0xff] %v1757_v33   ;;  %v1792_v12 = vpack.c.bf16 %v1156_v10, %v1155_v21  ;;  %v1797_v37 = vpack.c.bf16 %v1158_v50, %v1157_v36  ;;  %v1802_v35 = vpack.c.bf16 %v1160_v5, %v1159_v53 }
 0x1a9   :  { %1838 = vst [vmem:[%s3405_s2 + $0xa0] sm:$0xff] %v1762_v32   ;;  %1839 = vst [vmem:[%s3405_s2 + $0xa8] sm:$0xff] %v1767_v61   ;;  %v1807_v26 = vpack.c.bf16 %v1162_v8, %v1161_v15  ;;  %v1812_v28 = vpack.c.bf16 %v1164_v46, %v1163_v18  ;;  %v1817_v22 = vpack.c.bf16 %v1166_v29, %v1165_v47 }
 0x1aa   :  { %1840 = vst [vmem:[%s3405_s2 + $0xb0] sm:$0xff] %v1772_v60   ;;  %1841 = vst [vmem:[%s3405_s2 + $0xb8] sm:$0xff] %v1777_v14  }
 0x1ab   :  { %1842 = vst [vmem:[%s3405_s2 + $0xc0] sm:$0xff] %v1782_v45   ;;  %1843 = vst [vmem:[%s3405_s2 + $0xc8] sm:$0xff] %v1787_v63  }
 0x1ac   :  { %1844 = vst [vmem:[%s3405_s2 + $0xd0] sm:$0xff] %v1792_v12   ;;  %1845 = vst [vmem:[%s3405_s2 + $0xd8] sm:$0xff] %v1797_v37  }
 0x1ad   :  { %1846 = vst [vmem:[%s3405_s2 + $0xe0] sm:$0xff] %v1802_v35   ;;  %1847 = vst [vmem:[%s3405_s2 + $0xe8] sm:$0xff] %v1807_v26  }
 0x1ae   :  { %1848 = vst [vmem:[%s3405_s2 + $0xf0] sm:$0xff] %v1812_v28   ;;  %1849 = vst [vmem:[%s3405_s2 + $0xf8] sm:$0xff] %v1817_v22  }

// kernel: discriminator_forward.6
= control target key start
LH: loop header
LB: loop body
LE: loop exit
PB: predicated region body
PF: predicated region fallthrough
CT: control target
= control target key end

     0   :  { %s4880_s1 = inlined_call_operand.vmem [shape: bf16[2048,128], index: 1, kind: input, shape index: {}]   ;;  %s4881_s0 = inlined_call_operand.vmem [shape: bf16[128,2048], index: 0, kind: input, shape index: {}]   ;;  %s4882_s2 = inlined_call_operand.vmem [shape: bf16[128,128], index: 2, kind: output, shape index: {}]  }
   0x1   :  { %v3673_v0 = vld [vmem:[%s4880_s1 + $0x40] sm:$0xff]   ;;  %v3677_v4 = vld [vmem:[%s4880_s1 + $0x48] sm:$0xff]   ;;  %v3681_v8 = vld [vmem:[%s4880_s1 + $0x50] sm:$0xff]  }
   0x2   :  { %v3674_v1 = vld [vmem:[%s4880_s1 + $0xc0] sm:$0xff]   ;;  %3161 = vmatprep.subr.bf16.mxu0 %v3673_v0  ;;  %v3678_v5 = vld [vmem:[%s4880_s1 + $0xc8] sm:$0xff]   ;;  %v3682_v9 = vld [vmem:[%s4880_s1 + $0xd0] sm:$0xff]  }
   0x3   :  { %v3675_v2 = vld [vmem:[%s4880_s1] sm:$0xff]   ;;  %3225 = vmatprep.subr.bf16.mxu1 %v3674_v1  ;;  %v3679_v6 = vld [vmem:[%s4880_s1 + $0x8] sm:$0xff]   ;;  %v3683_v10 = vld [vmem:[%s4880_s1 + $0x10] sm:$0xff]  }
   0x4   :  { %v3676_v3 = vld [vmem:[%s4880_s1 + $0x80] sm:$0xff]   ;;  %3162 = vmatpush3.bf16.msra.mxu0 %v3675_v2  ;;  %v3680_v7 = vld [vmem:[%s4880_s1 + $0x88] sm:$0xff]   ;;  %v3684_v11 = vld [vmem:[%s4880_s1 + $0x90] sm:$0xff]  }
   0x5   :  { %3226 = vmatpush3.bf16.msra.mxu1 %v3676_v3  ;;  %3163 = vmatprep.subr.bf16.mxu0 %v3677_v4  ;;  %v3685_v12 = vld [vmem:[%s4880_s1 + $0x58] sm:$0xff]   ;;  %v3689_v16 = vld [vmem:[%s4880_s1 + $0x60] sm:$0xff]   ;;  %v3693_v20 = vld [vmem:[%s4880_s1 + $0x68] sm:$0xff]  }
   0x6   :  { %3227 = vmatprep.subr.bf16.mxu1 %v3678_v5  ;;  %v3686_v13 = vld [vmem:[%s4880_s1 + $0xd8] sm:$0xff]   ;;  %v3690_v17 = vld [vmem:[%s4880_s1 + $0xe0] sm:$0xff]   ;;  %v3694_v21 = vld [vmem:[%s4880_s1 + $0xe8] sm:$0xff]  }
   0x7   :  { %v3687_v14 = vld [vmem:[%s4880_s1 + $0x18] sm:$0xff]   ;;  %v3691_v18 = vld [vmem:[%s4880_s1 + $0x20] sm:$0xff]   ;;  %v3695_v22 = vld [vmem:[%s4880_s1 + $0x28] sm:$0xff]  }
   0x8   :  { %3164 = vmatpush3.bf16.msra.mxu0 %v3679_v6  ;;  %v3688_v15 = vld [vmem:[%s4880_s1 + $0x98] sm:$0xff]   ;;  %v3692_v19 = vld [vmem:[%s4880_s1 + $0xa0] sm:$0xff]   ;;  %v3696_v23 = vld [vmem:[%s4880_s1 + $0xa8] sm:$0xff]  }
   0x9   :  { %3228 = vmatpush3.bf16.msra.mxu1 %v3680_v7  ;;  %3165 = vmatprep.subr.bf16.mxu0 %v3681_v8  ;;  %v3697_v24 = vld [vmem:[%s4880_s1 + $0x70] sm:$0xff]   ;;  %v3701_v28 = vld [vmem:[%s4880_s1 + $0x78] sm:$0xff]   ;;  %v12_v32 = vld [vmem:[%s4881_s0] sm:$0xff] }
   0xa   :  { %3229 = vmatprep.subr.bf16.mxu1 %v3682_v9  ;;  %v3698_v25 = vld [vmem:[%s4880_s1 + $0xf0] sm:$0xff]   ;;  %v3702_v29 = vld [vmem:[%s4880_s1 + $0xf8] sm:$0xff]   ;;  %v20_v33 = vld [vmem:[%s4881_s0 + $0x40] sm:$0xff] }
   0xb   :  { %v3699_v26 = vld [vmem:[%s4880_s1 + $0x30] sm:$0xff]   ;;  %v3703_v30 = vld [vmem:[%s4880_s1 + $0x38] sm:$0xff]   ;;  %v13_v34 = vld [vmem:[%s4881_s0 + $0x8] sm:$0xff]  ;;  %v2826_v35 = vcombine.low %v12_v32, %v20_v33  ;;  %v2827_v36 = vcombine.high %v12_v32, %v20_v33 }
   0xc   :  { %3166 = vmatpush3.bf16.msra.mxu0 %v3683_v10  ;;  %v3700_v27 = vld [vmem:[%s4880_s1 + $0xb0] sm:$0xff]   ;;  %v3704_v31 = vld [vmem:[%s4880_s1 + $0xb8] sm:$0xff]   ;;  %v21_v37 = vld [vmem:[%s4881_s0 + $0x48] sm:$0xff] }
   0xd   :  { %3230 = vmatpush3.bf16.msra.mxu1 %v3684_v11  ;;  %3167 = vmatprep.subr.bf16.mxu0 %v3685_v12  ;;  %v2828_v38 = vcombine.low %v13_v34, %v21_v37  ;;  %v2829_v39 = vcombine.high %v13_v34, %v21_v37  ;;  %v3705_v40 = vld [vmem:[%s4880_s1 + $0x140] sm:$0xff]   ;;  %v29_v47 = vld [vmem:[%s4881_s0 + $0x88] sm:$0xff]  ;;  %v3713_v62 = vld [vmem:[%s4880_s1 + $0x150] sm:$0xff]  }
   0xe   :  { %3231 = vmatprep.subr.bf16.mxu1 %v3686_v13  ;;  %1836 = vmatprep.mubr.bf16.mxu0 %v2827_v36  ;;  %v3706_v41 = vld [vmem:[%s4880_s1 + $0x100] sm:$0xff]   ;;  %v37_v48 = vld [vmem:[%s4881_s0 + $0xc8] sm:$0xff]  ;;  %v3714_v63 = vld [vmem:[%s4880_s1 + $0x110] sm:$0xff]  }
   0xf   :  { %1933 = vmatprep.mubr.bf16.mxu1 %v2829_v39  ;;  %v3707_v42 = vld [vmem:[%s4880_s1 + $0x1c0] sm:$0xff]   ;;  %v2845_v49 = vcombine.high %v29_v47, %v37_v48  ;;  %v3709_v50 = vld [vmem:[%s4880_s1 + $0x148] sm:$0xff]   ;;  %v2844_v53 = vcombine.low %v29_v47, %v37_v48  ;;  %v3715_v0 = vld [vmem:[%s4880_s1 + $0x1d0] sm:$0xff]  }
  0x10   :  { %3168 = vmatpush3.bf16.msra.mxu0 %v3687_v14  ;;  %v3708_v43 = vld [vmem:[%s4880_s1 + $0x180] sm:$0xff]   ;;  %v3710_v52 = vld [vmem:[%s4880_s1 + $0x108] sm:$0xff]   ;;  %v3716_v1 = vld [vmem:[%s4880_s1 + $0x190] sm:$0xff]  }
  0x11   :  { %3232 = vmatpush3.bf16.msra.mxu1 %v3688_v15  ;;  %3169 = vmatprep.subr.bf16.mxu0 %v3689_v16  ;;  %v28_v44 = vld [vmem:[%s4881_s0 + $0x80] sm:$0xff]  ;;  %v3711_v54 = vld [vmem:[%s4880_s1 + $0x1c8] sm:$0xff]   ;;  %v3717_v10 = vld [vmem:[%s4880_s1 + $0x158] sm:$0xff]  }
  0x12   :  { %3233 = vmatprep.subr.bf16.mxu1 %v3690_v17  ;;  %v36_v45 = vld [vmem:[%s4881_s0 + $0xc0] sm:$0xff]  ;;  %v3712_v55 = vld [vmem:[%s4880_s1 + $0x188] sm:$0xff]   ;;  %v3718_v11 = vld [vmem:[%s4880_s1 + $0x118] sm:$0xff]  }
  0x13   :  { %v2843_v46 = vcombine.high %v28_v44, %v36_v45  ;;  %v2842_v51 = vcombine.low %v28_v44, %v36_v45  ;;  %v44_v56 = vld [vmem:[%s4881_s0 + $0x100] sm:$0xff]  ;;  %v45_v58 = vld [vmem:[%s4881_s0 + $0x108] sm:$0xff]  ;;  %v3719_v12 = vld [vmem:[%s4880_s1 + $0x1d8] sm:$0xff]  }
  0x14   :  { %3170 = vmatpush3.bf16.msra.mxu0 %v3691_v18  ;;  %v52_v57 = vld [vmem:[%s4881_s0 + $0x140] sm:$0xff]  ;;  %v53_v59 = vld [vmem:[%s4881_s0 + $0x148] sm:$0xff]  ;;  %v3720_v13 = vld [vmem:[%s4880_s1 + $0x198] sm:$0xff]  }
  0x15   :  { %3234 = vmatpush3.bf16.msra.mxu1 %v3692_v19  ;;  %3171 = vmatprep.subr.bf16.mxu0 %v3693_v20  ;;  %v2859_v60 = vcombine.high %v44_v56, %v52_v57  ;;  %v2861_v61 = vcombine.high %v45_v58, %v53_v59  ;;  %v2858_v2 = vcombine.low %v44_v56, %v52_v57  ;;  %v60_v3 = vld [vmem:[%s4881_s0 + $0x180] sm:$0xff]  ;;  %v61_v5 = vld [vmem:[%s4881_s0 + $0x188] sm:$0xff]  ;;  %v3730_v39 = vld [vmem:[%s4880_s1 + $0x130] sm:$0xff]  }
  0x16   :  { %3235 = vmatprep.subr.bf16.mxu1 %v3694_v21  ;;  %v68_v4 = vld [vmem:[%s4881_s0 + $0x1c0] sm:$0xff]  ;;  %v2860_v6 = vcombine.low %v45_v58, %v53_v59  ;;  %v69_v8 = vld [vmem:[%s4881_s0 + $0x1c8] sm:$0xff]  ;;  %v3734_v48 = vld [vmem:[%s4880_s1 + $0x138] sm:$0xff]  }
  0x17   :  { %v2875_v7 = vcombine.high %v60_v3, %v68_v4  ;;  %v2877_v9 = vcombine.high %v61_v5, %v69_v8  ;;  %v76_v14 = vld [vmem:[%s4881_s0 + $0x200] sm:$0xff]  ;;  %v77_v16 = vld [vmem:[%s4881_s0 + $0x208] sm:$0xff]  ;;  %v2874_v19 = vcombine.low %v60_v3, %v68_v4  ;;  %v2876_v21 = vcombine.low %v61_v5, %v69_v8  ;;  %v23_v3 = vld [vmem:[%s4881_s0 + $0x58] sm:$0xff] }
  0x18   :  { %3172 = vmatpush3.bf16.msra.mxu0 %v3695_v22  ;;  %v84_v15 = vld [vmem:[%s4881_s0 + $0x240] sm:$0xff]  ;;  %v85_v17 = vld [vmem:[%s4881_s0 + $0x248] sm:$0xff]  ;;  %v30_v8 = vld [vmem:[%s4881_s0 + $0x90] sm:$0xff] }
  0x19   :  { %3236 = vmatpush3.bf16.msra.mxu1 %v3696_v23  ;;  %3173 = vmatprep.subr.bf16.mxu0 %v3697_v24  ;;  %v3721_v18 = vld [vmem:[%s4880_s1 + $0x160] sm:$0xff]   ;;  %v2891_v22 = vcombine.high %v76_v14, %v84_v15  ;;  %v2893_v24 = vcombine.high %v77_v16, %v85_v17  ;;  %v3727_v32 = vld [vmem:[%s4880_s1 + $0x1e8] sm:$0xff]   ;;  %v2890_v34 = vcombine.low %v76_v14, %v84_v15 }
  0x1a   :  { %3237 = vmatprep.subr.bf16.mxu1 %v3698_v25  ;;  %v3722_v20 = vld [vmem:[%s4880_s1 + $0x120] sm:$0xff]   ;;  %v3728_v33 = vld [vmem:[%s4880_s1 + $0x1a8] sm:$0xff]  }
  0x1b   :  { %v3723_v23 = vld [vmem:[%s4880_s1 + $0x1e0] sm:$0xff]   ;;  %v109_v44 = vld [vmem:[%s4881_s0 + $0x308] sm:$0xff] }
  0x1c   :  { %3174 = vmatpush3.bf16.msra.mxu0 %v3699_v26  ;;  %v3724_v25 = vld [vmem:[%s4880_s1 + $0x1a0] sm:$0xff]   ;;  %v117_v45 = vld [vmem:[%s4881_s0 + $0x348] sm:$0xff] }
  0x1d   :  { %3238 = vmatpush3.bf16.msra.mxu1 %v3700_v27  ;;  %3175 = vmatprep.subr.bf16.mxu0 %v3701_v28  ;;  %v92_v26 = vld [vmem:[%s4881_s0 + $0x280] sm:$0xff]  ;;  %v3725_v28 = vld [vmem:[%s4880_s1 + $0x168] sm:$0xff]  }
  0x1e   :  { %3239 = vmatprep.subr.bf16.mxu1 %v3702_v29  ;;  %v100_v27 = vld [vmem:[%s4881_s0 + $0x2c0] sm:$0xff]  ;;  %v93_v29 = vld [vmem:[%s4881_s0 + $0x288] sm:$0xff] }
  0x1f   :  { %v2907_v36 = vcombine.high %v92_v26, %v100_v27  ;;  %v2906_v47 = vcombine.low %v92_v26, %v100_v27  ;;  %v3737_v56 = vld [vmem:[%s4880_s1 + $0x240] sm:$0xff]   ;;  %v125_v57 = vld [vmem:[%s4881_s0 + $0x388] sm:$0xff]  ;;  %v3745_v26 = vld [vmem:[%s4880_s1 + $0x250] sm:$0xff]  }
  0x20   :  { %3176 = vmatpush3.bf16.msra.mxu0 %v3703_v30  ;;  %v101_v30 = vld [vmem:[%s4881_s0 + $0x2c8] sm:$0xff]  ;;  %v3739_v58 = vld [vmem:[%s4880_s1 + $0x2c0] sm:$0xff]   ;;  %v3747_v27 = vld [vmem:[%s4880_s1 + $0x2d0] sm:$0xff]  }
  0x21   :  { %3240 = vmatpush3.bf16.msra.mxu1 %v3704_v31  ;;  %3289 = vmatprep.subr.bf16.mxu0 %v3705_v40  ;;  %v3726_v31 = vld [vmem:[%s4880_s1 + $0x128] sm:$0xff]   ;;  %v2909_v37 = vcombine.high %v93_v29, %v101_v30  ;;  %v3731_v40 = vld [vmem:[%s4880_s1 + $0x1f0] sm:$0xff]   ;;  %v3740_v15 = vld [vmem:[%s4880_s1 + $0x280] sm:$0xff]  }
  0x22   :  { %3353 = vmatprep.subr.bf16.mxu1 %v3707_v42  ;;  %v116_v42 = vld [vmem:[%s4881_s0 + $0x340] sm:$0xff]  ;;  %v133_v59 = vld [vmem:[%s4881_s0 + $0x3c8] sm:$0xff] }
  0x23   :  { %1837 = vmatmul.mubr.bf16.vlgmr.msra.gmra.mrb[0].mxu0 %v2826_v35  ;;  %v2892_v35 = vcombine.low %v77_v16, %v85_v17  ;;  %v2940_v5 = vcombine.low %v125_v57, %v133_v59  ;;  %v3741_v17 = vld [vmem:[%s4880_s1 + $0x248] sm:$0xff]  }
  0x24   :  { %1934 = vmatmul.mubr.bf16.vlgmr.msra.gmra.mrb[0].mxu1 %v2828_v38  ;;  %3290 = vmatpush3.bf16.msra.mxu0 %v3706_v41  ;;  %v3729_v38 = vld [vmem:[%s4880_s1 + $0x170] sm:$0xff]   ;;  %v108_v41 = vld [vmem:[%s4881_s0 + $0x300] sm:$0xff] }
  0x25   :  { %3354 = vmatpush3.bf16.msra.mxu1 %v3708_v43  ;;  %1844 = vmatprep.mubr.bf16.mxu0 %v2843_v46  ;;  %v3732_v43 = vld [vmem:[%s4880_s1 + $0x1b0] sm:$0xff]   ;;  %v3733_v46 = vld [vmem:[%s4880_s1 + $0x178] sm:$0xff]  }
  0x26   :  { %1941 = vmatprep.mubr.bf16.mxu1 %v2845_v49  ;;  %3291 = vmatprep.subr.bf16.mxu0 %v3709_v50  ;;  %v2908_v49 = vcombine.low %v93_v29, %v101_v30  ;;  %v2923_v50 = vcombine.high %v108_v41, %v116_v42 }
  0x27   :  { %3355 = vmatprep.subr.bf16.mxu1 %v3711_v54  ;;  %v124_v54 = vld [vmem:[%s4881_s0 + $0x380] sm:$0xff] }
  0x28   :  { %3292 = vmatpush3.bf16.msra.mxu0 %v3710_v52  ;;  %v2925_v52 = vcombine.high %v109_v44, %v117_v45 }
  0x29   :  { %3356 = vmatpush3.bf16.msra.mxu1 %v3712_v55  ;;  %3293 = vmatprep.subr.bf16.mxu0 %v3713_v62  ;;  %v132_v55 = vld [vmem:[%s4881_s0 + $0x3c0] sm:$0xff] }
  0x2a   :  { %3357 = vmatprep.subr.bf16.mxu1 %v3715_v0  ;;  %v2939_v62 = vcombine.high %v124_v54, %v132_v55  ;;  %v14_v0 = vld [vmem:[%s4881_s0 + $0x10] sm:$0xff]  ;;  %v2938_v4 = vcombine.low %v124_v54, %v132_v55  ;;  %v79_v54 = vld [vmem:[%s4881_s0 + $0x218] sm:$0xff] }
  0x2b   :  { %1845 = vmatmul.mubr.bf16.gmra.mrb[4].mxu0 %v2842_v51  ;;  %v3735_v51 = vld [vmem:[%s4880_s1 + $0x1f8] sm:$0xff]  }
  0x2c   :  { %1942 = vmatmul.mubr.bf16.gmra.mrb[4].mxu1 %v2844_v53  ;;  %1852 = vmatprep.mubr.bf16.mxu0 %v2859_v60  ;;  %v3736_v53 = vld [vmem:[%s4880_s1 + $0x1b8] sm:$0xff]   ;;  %v2922_v60 = vcombine.low %v108_v41, %v116_v42  ;;  %v3753_v42 = vld [vmem:[%s4880_s1 + $0x260] sm:$0xff]  }
  0x2d   :  { %1949 = vmatprep.mubr.bf16.mxu1 %v2861_v61  ;;  %3294 = vmatpush3.bf16.msra.mxu0 %v3714_v63  ;;  %v2924_v61 = vcombine.low %v109_v44, %v117_v45  ;;  %v2941_v63 = vcombine.high %v125_v57, %v133_v59  ;;  %v3752_v41 = vld [vmem:[%s4880_s1 + $0x298] sm:$0xff]   ;;  %v3755_v44 = vld [vmem:[%s4880_s1 + $0x2e0] sm:$0xff]   ;;  %v3760_v57 = vld [vmem:[%s4880_s1 + $0x2a8] sm:$0xff]  }
  0x2e   :  { %3358 = vmatpush3.bf16.msra.mxu1 %v3716_v1  ;;  %3295 = vmatprep.subr.bf16.mxu0 %v3717_v10  ;;  %v22_v1 = vld [vmem:[%s4881_s0 + $0x50] sm:$0xff]  ;;  %v87_v55 = vld [vmem:[%s4881_s0 + $0x258] sm:$0xff] }
  0x2f   :  { %3359 = vmatprep.subr.bf16.mxu1 %v3719_v12  ;;  %v2830_v10 = vcombine.low %v14_v0, %v22_v1  ;;  %v31_v12 = vld [vmem:[%s4881_s0 + $0x98] sm:$0xff] }
  0x31   :  { %3296 = vmatpush3.bf16.msra.mxu0 %v3718_v11  ;;  %v3738_v11 = vld [vmem:[%s4880_s1 + $0x200] sm:$0xff]  }
  0x32   :  { %3360 = vmatpush3.bf16.msra.mxu1 %v3720_v13  ;;  %3297 = vmatprep.subr.bf16.mxu0 %v3721_v18  ;;  %v39_v13 = vld [vmem:[%s4881_s0 + $0xd8] sm:$0xff] }
  0x33   :  { %1853 = vmatmul.mubr.bf16.gmra.mrb[8].mxu0 %v2858_v2  ;;  %3361 = vmatprep.subr.bf16.mxu1 %v3723_v23  ;;  %v15_v2 = vld [vmem:[%s4881_s0 + $0x18] sm:$0xff]  ;;  %v2849_v18 = vcombine.high %v31_v12, %v39_v13  ;;  %v54_v23 = vld [vmem:[%s4881_s0 + $0x150] sm:$0xff]  ;;  %v2848_v29 = vcombine.low %v31_v12, %v39_v13  ;;  %v3771_v12 = vld [vmem:[%s4880_s1 + $0x3c0] sm:$0xff]   ;;  %v2896_v13 = vcombine.low %v79_v54, %v87_v55 }
  0x34   :  { %1950 = vmatmul.mubr.bf16.gmra.mrb[8].mxu1 %v2860_v6  ;;  %1860 = vmatprep.mubr.bf16.mxu0 %v2875_v7  ;;  %v2831_v6 = vcombine.high %v14_v0, %v22_v1  ;;  %v2833_v7 = vcombine.high %v15_v2, %v23_v3  ;;  %v2832_v14 = vcombine.low %v15_v2, %v23_v3  ;;  %v3762_v0 = vld [vmem:[%s4880_s1 + $0x230] sm:$0xff]   ;;  %v3765_v2 = vld [vmem:[%s4880_s1 + $0x278] sm:$0xff]  }
  0x35   :  { %1957 = vmatprep.mubr.bf16.mxu1 %v2877_v9  ;;  %3298 = vmatpush3.bf16.msra.mxu0 %v3722_v20  ;;  %v38_v9 = vld [vmem:[%s4881_s0 + $0xd0] sm:$0xff]  ;;  %v3743_v20 = vld [vmem:[%s4880_s1 + $0x2c8] sm:$0xff]  }
  0x36   :  { %3362 = vmatpush3.bf16.msra.mxu1 %v3724_v25  ;;  %3299 = vmatprep.subr.bf16.mxu0 %v3725_v28  ;;  %v2847_v16 = vcombine.high %v30_v8, %v38_v9  ;;  %v55_v25 = vld [vmem:[%s4881_s0 + $0x158] sm:$0xff]  ;;  %v2846_v28 = vcombine.low %v30_v8, %v38_v9  ;;  %v3764_v1 = vld [vmem:[%s4880_s1 + $0x2b0] sm:$0xff]  }
  0x37   :  { %3363 = vmatprep.subr.bf16.mxu1 %v3727_v32  ;;  %v3746_v32 = vld [vmem:[%s4880_s1 + $0x210] sm:$0xff]   ;;  %v3766_v8 = vld [vmem:[%s4880_s1 + $0x238] sm:$0xff]  }
  0x38   :  { %v94_v3 = vld [vmem:[%s4881_s0 + $0x290] sm:$0xff]  ;;  %v3768_v9 = vld [vmem:[%s4880_s1 + $0x2b8] sm:$0xff]  }
  0x39   :  { %3300 = vmatpush3.bf16.msra.mxu0 %v3726_v31 }
  0x3a   :  { %3364 = vmatpush3.bf16.msra.mxu1 %v3728_v33  ;;  %3301 = vmatprep.subr.bf16.mxu0 %v3729_v38  ;;  %v3748_v33 = vld [vmem:[%s4880_s1 + $0x290] sm:$0xff]   ;;  %v63_v38 = vld [vmem:[%s4881_s0 + $0x198] sm:$0xff] }
  0x3b   :  { %1861 = vmatmul.mubr.bf16.gmra.mrb[12].mxu0 %v2874_v19  ;;  %3365 = vmatprep.subr.bf16.mxu1 %v3731_v40  ;;  %v3742_v19 = vld [vmem:[%s4880_s1 + $0x208] sm:$0xff]   ;;  %v3750_v40 = vld [vmem:[%s4880_s1 + $0x218] sm:$0xff]  }
  0x3c   :  { %1958 = vmatmul.mubr.bf16.gmra.mrb[12].mxu1 %v2876_v21  ;;  %1868 = vmatprep.mubr.bf16.mxu0 %v2891_v22  ;;  %v3744_v21 = vld [vmem:[%s4880_s1 + $0x288] sm:$0xff]   ;;  %v46_v22 = vld [vmem:[%s4881_s0 + $0x110] sm:$0xff] }
  0x3d   :  { %1965 = vmatprep.mubr.bf16.mxu1 %v2893_v24  ;;  %3302 = vmatpush3.bf16.msra.mxu0 %v3730_v39  ;;  %v47_v24 = vld [vmem:[%s4881_s0 + $0x118] sm:$0xff]  ;;  %v2863_v30 = vcombine.high %v46_v22, %v54_v23 }
  0x3e   :  { %3366 = vmatpush3.bf16.msra.mxu1 %v3732_v43  ;;  %3303 = vmatprep.subr.bf16.mxu0 %v3733_v46  ;;  %v2865_v31 = vcombine.high %v47_v24, %v55_v25  ;;  %v71_v39 = vld [vmem:[%s4881_s0 + $0x1d8] sm:$0xff]  ;;  %v2862_v43 = vcombine.low %v46_v22, %v54_v23  ;;  %v2864_v45 = vcombine.low %v47_v24, %v55_v25  ;;  %v126_v24 = vld [vmem:[%s4881_s0 + $0x390] sm:$0xff] }
  0x3f   :  { %3367 = vmatprep.subr.bf16.mxu1 %v3735_v51  ;;  %v78_v51 = vld [vmem:[%s4881_s0 + $0x210] sm:$0xff] }
  0x40   :  { %v134_v25 = vld [vmem:[%s4881_s0 + $0x3d0] sm:$0xff] }
  0x41   :  { %3304 = vmatpush3.bf16.msra.mxu0 %v3734_v48  ;;  %v2881_v48 = vcombine.high %v63_v38, %v71_v39 }
  0x42   :  { %3368 = vmatpush3.bf16.msra.mxu1 %v3736_v53  ;;  %3417 = vmatprep.subr.bf16.mxu0 %v3737_v56  ;;  %v86_v53 = vld [vmem:[%s4881_s0 + $0x250] sm:$0xff]  ;;  %v3758_v56 = vld [vmem:[%s4880_s1 + $0x228] sm:$0xff]  }
  0x43   :  { %1869 = vmatmul.mubr.bf16.gmra.mrb[16].mxu0 %v2890_v34  ;;  %3481 = vmatprep.subr.bf16.mxu1 %v3739_v58  ;;  %v3749_v34 = vld [vmem:[%s4880_s1 + $0x258] sm:$0xff]   ;;  %v3761_v58 = vld [vmem:[%s4880_s1 + $0x270] sm:$0xff]  }
  0x44   :  { %1966 = vmatmul.mubr.bf16.gmra.mrb[16].mxu1 %v2892_v35  ;;  %1876 = vmatprep.mubr.bf16.mxu0 %v2907_v36  ;;  %v62_v35 = vld [vmem:[%s4881_s0 + $0x190] sm:$0xff] }
  0x45   :  { %1973 = vmatprep.mubr.bf16.mxu1 %v2909_v37  ;;  %v70_v36 = vld [vmem:[%s4881_s0 + $0x1d0] sm:$0xff]  ;;  %v3751_v37 = vld [vmem:[%s4880_s1 + $0x2d8] sm:$0xff]  }
  0x46   :  { %v2879_v46 = vcombine.high %v62_v35, %v70_v36  ;;  %v2878_v59 = vcombine.low %v62_v35, %v70_v36  ;;  %v25_v35 = vld [vmem:[%s4881_s0 + $0x68] sm:$0xff]  ;;  %v2942_v36 = vcombine.low %v126_v24, %v134_v25 }
  0x4b   :  { %1877 = vmatmul.mubr.bf16.gmra.mrb[20].mxu0 %v2906_v47  ;;  %v3754_v47 = vld [vmem:[%s4880_s1 + $0x220] sm:$0xff]  }
  0x4c   :  { %1974 = vmatmul.mubr.bf16.gmra.mrb[20].mxu1 %v2908_v49  ;;  %1884 = vmatprep.mubr.bf16.mxu0 %v2923_v50  ;;  %v3756_v49 = vld [vmem:[%s4880_s1 + $0x2a0] sm:$0xff]   ;;  %v3757_v50 = vld [vmem:[%s4880_s1 + $0x268] sm:$0xff]  }
  0x4d   :  { %1981 = vmatprep.mubr.bf16.mxu1 %v2925_v52  ;;  %v3759_v52 = vld [vmem:[%s4880_s1 + $0x2e8] sm:$0xff]  }
  0x53   :  { %1885 = vmatmul.mubr.bf16.gmra.mrb[24].mxu0 %v2922_v60  ;;  %v3763_v60 = vld [vmem:[%s4880_s1 + $0x2f0] sm:$0xff]  }
  0x54   :  { %1982 = vmatmul.mubr.bf16.gmra.mrb[24].mxu1 %v2924_v61  ;;  %1892 = vmatprep.mubr.bf16.mxu0 %v2939_v62  ;;  %v2880_v61 = vcombine.low %v63_v38, %v71_v39  ;;  %v2895_v62 = vcombine.high %v78_v51, %v86_v53 }
  0x55   :  { %1989 = vmatprep.mubr.bf16.mxu1 %v2941_v63  ;;  %v2897_v63 = vcombine.high %v79_v54, %v87_v55  ;;  %v48_v54 = vld [vmem:[%s4881_s0 + $0x120] sm:$0xff] }
  0x56   :  { %v56_v55 = vld [vmem:[%s4881_s0 + $0x160] sm:$0xff] }
  0x5b   :  { %1893 = vmatmul.mubr.bf16.gmra.mrb[28].mxu0 %v2938_v4  ;;  %v102_v4 = vld [vmem:[%s4881_s0 + $0x2d0] sm:$0xff] }
  0x5c   :  { %1990 = vmatmul.mubr.bf16.gmra.mrb[28].mxu1 %v2940_v5  ;;  %2030 = vmatprep.mubr.bf16.mxu0 %v2831_v6  ;;  %v3767_v5 = vld [vmem:[%s4880_s1 + $0x2f8] sm:$0xff]  }
  0x5d   :  { %2127 = vmatprep.mubr.bf16.mxu1 %v2833_v7  ;;  %v95_v6 = vld [vmem:[%s4881_s0 + $0x298] sm:$0xff] }
  0x5e   :  { %v103_v7 = vld [vmem:[%s4881_s0 + $0x2d8] sm:$0xff] }
  0x63   :  { %2031 = vmatmul.mubr.bf16.vlgmr.msra.gmra.mrb[32].mxu0 %v2830_v10  ;;  %v3769_v10 = vld [vmem:[%s4880_s1 + $0x340] sm:$0xff]  }
  0x64   :  { %2128 = vmatmul.mubr.bf16.vlgmr.msra.gmra.mrb[32].mxu1 %v2832_v14  ;;  %3418 = vmatpush3.bf16.msra.mxu0 %v3738_v11  ;;  %v2894_v11 = vcombine.low %v78_v51, %v86_v53  ;;  %v2911_v14 = vcombine.high %v94_v3, %v102_v4  ;;  %v3775_v51 = vld [vmem:[%s4880_s1 + $0x3c8] sm:$0xff]  }
  0x65   :  { %3482 = vmatpush3.bf16.msra.mxu1 %v3740_v15  ;;  %2038 = vmatprep.mubr.bf16.mxu0 %v2847_v16  ;;  %v2913_v15 = vcombine.high %v95_v6, %v103_v7  ;;  %v110_v16 = vld [vmem:[%s4881_s0 + $0x310] sm:$0xff]  ;;  %v3776_v53 = vld [vmem:[%s4880_s1 + $0x388] sm:$0xff]  }
  0x66   :  { %2135 = vmatprep.mubr.bf16.mxu1 %v2849_v18  ;;  %3419 = vmatprep.subr.bf16.mxu0 %v3741_v17  ;;  %v118_v17 = vld [vmem:[%s4881_s0 + $0x350] sm:$0xff]  ;;  %v111_v18 = vld [vmem:[%s4881_s0 + $0x318] sm:$0xff] }
  0x67   :  { %3483 = vmatprep.subr.bf16.mxu1 %v3743_v20  ;;  %v2910_v20 = vcombine.low %v94_v3, %v102_v4  ;;  %v2927_v22 = vcombine.high %v110_v16, %v118_v17  ;;  %v3783_v3 = vld [vmem:[%s4880_s1 + $0x3d8] sm:$0xff]   ;;  %v64_v4 = vld [vmem:[%s4881_s0 + $0x1a0] sm:$0xff] }
  0x68   :  { %3420 = vmatpush3.bf16.msra.mxu0 %v3742_v19  ;;  %v119_v19 = vld [vmem:[%s4881_s0 + $0x358] sm:$0xff] }
  0x69   :  { %3484 = vmatpush3.bf16.msra.mxu1 %v3744_v21  ;;  %3421 = vmatprep.subr.bf16.mxu0 %v3745_v26  ;;  %v2912_v21 = vcombine.low %v95_v6, %v103_v7  ;;  %v2929_v23 = vcombine.high %v111_v18, %v119_v19  ;;  %v127_v26 = vld [vmem:[%s4881_s0 + $0x398] sm:$0xff]  ;;  %v65_v6 = vld [vmem:[%s4881_s0 + $0x1a8] sm:$0xff] }
  0x6a   :  { %3485 = vmatprep.subr.bf16.mxu1 %v3747_v27  ;;  %v135_v27 = vld [vmem:[%s4881_s0 + $0x3d8] sm:$0xff] }
  0x6b   :  { %2039 = vmatmul.mubr.bf16.gmra.mrb[36].mxu0 %v2846_v28  ;;  %v2926_v28 = vcombine.low %v110_v16, %v118_v17  ;;  %v3782_v7 = vld [vmem:[%s4880_s1 + $0x318] sm:$0xff]   ;;  %v3786_v16 = vld [vmem:[%s4880_s1 + $0x320] sm:$0xff]  }
  0x6c   :  { %2136 = vmatmul.mubr.bf16.gmra.mrb[36].mxu1 %v2848_v29  ;;  %2046 = vmatprep.mubr.bf16.mxu0 %v2863_v30  ;;  %v2928_v29 = vcombine.low %v111_v18, %v119_v19  ;;  %v2943_v30 = vcombine.high %v126_v24, %v134_v25  ;;  %v3788_v17 = vld [vmem:[%s4880_s1 + $0x3a0] sm:$0xff]   ;;  %v3789_v18 = vld [vmem:[%s4880_s1 + $0x368] sm:$0xff]  }
  0x6d   :  { %2143 = vmatprep.mubr.bf16.mxu1 %v2865_v31  ;;  %3422 = vmatpush3.bf16.msra.mxu0 %v3746_v32  ;;  %v2945_v31 = vcombine.high %v127_v26, %v135_v27  ;;  %v16_v32 = vld [vmem:[%s4881_s0 + $0x20] sm:$0xff]  ;;  %v3791_v19 = vld [vmem:[%s4880_s1 + $0x3e8] sm:$0xff]  }
  0x6e   :  { %3486 = vmatpush3.bf16.msra.mxu1 %v3748_v33  ;;  %3423 = vmatprep.subr.bf16.mxu0 %v3749_v34  ;;  %v24_v33 = vld [vmem:[%s4881_s0 + $0x60] sm:$0xff]  ;;  %v17_v34 = vld [vmem:[%s4881_s0 + $0x28] sm:$0xff] }
  0x6f   :  { %3487 = vmatprep.subr.bf16.mxu1 %v3751_v37  ;;  %v2944_v37 = vcombine.low %v127_v26, %v135_v27  ;;  %v2835_v38 = vcombine.high %v16_v32, %v24_v33  ;;  %v2837_v39 = vcombine.high %v17_v34, %v25_v35  ;;  %v89_v24 = vld [vmem:[%s4881_s0 + $0x268] sm:$0xff]  ;;  %v3793_v26 = vld [vmem:[%s4880_s1 + $0x370] sm:$0xff]  }
  0x70   :  { %v3792_v25 = vld [vmem:[%s4880_s1 + $0x3a8] sm:$0xff]  }
  0x71   :  { %3424 = vmatpush3.bf16.msra.mxu0 %v3750_v40  ;;  %v32_v40 = vld [vmem:[%s4881_s0 + $0xa0] sm:$0xff] }
  0x72   :  { %3488 = vmatpush3.bf16.msra.mxu1 %v3752_v41  ;;  %3425 = vmatprep.subr.bf16.mxu0 %v3753_v42  ;;  %v40_v41 = vld [vmem:[%s4881_s0 + $0xe0] sm:$0xff]  ;;  %v2834_v42 = vcombine.low %v16_v32, %v24_v33  ;;  %v3794_v32 = vld [vmem:[%s4880_s1 + $0x330] sm:$0xff]  }
  0x73   :  { %2047 = vmatmul.mubr.bf16.gmra.mrb[40].mxu0 %v2862_v43  ;;  %3489 = vmatprep.subr.bf16.mxu1 %v3755_v44  ;;  %v33_v43 = vld [vmem:[%s4881_s0 + $0xa8] sm:$0xff]  ;;  %v3796_v33 = vld [vmem:[%s4880_s1 + $0x3b0] sm:$0xff]  }
  0x74   :  { %2144 = vmatmul.mubr.bf16.gmra.mrb[40].mxu1 %v2864_v45  ;;  %2054 = vmatprep.mubr.bf16.mxu0 %v2879_v46  ;;  %v41_v44 = vld [vmem:[%s4881_s0 + $0xe8] sm:$0xff]  ;;  %v2836_v45 = vcombine.low %v17_v34, %v25_v35  ;;  %v3770_v46 = vld [vmem:[%s4880_s1 + $0x300] sm:$0xff]   ;;  %v3797_v34 = vld [vmem:[%s4880_s1 + $0x378] sm:$0xff]  }
  0x75   :  { %2151 = vmatprep.mubr.bf16.mxu1 %v2881_v48  ;;  %3426 = vmatpush3.bf16.msra.mxu0 %v3754_v47  ;;  %v3772_v47 = vld [vmem:[%s4880_s1 + $0x380] sm:$0xff]   ;;  %v2851_v48 = vcombine.high %v32_v40, %v40_v41  ;;  %v3799_v35 = vld [vmem:[%s4880_s1 + $0x3f8] sm:$0xff]  }
  0x76   :  { %3490 = vmatpush3.bf16.msra.mxu1 %v3756_v49  ;;  %3427 = vmatprep.subr.bf16.mxu0 %v3757_v50  ;;  %v2853_v49 = vcombine.high %v33_v43, %v41_v44  ;;  %v3773_v50 = vld [vmem:[%s4880_s1 + $0x348] sm:$0xff]  }
  0x77   :  { %3491 = vmatprep.subr.bf16.mxu1 %v3759_v52  ;;  %v3774_v52 = vld [vmem:[%s4880_s1 + $0x308] sm:$0xff]  }
  0x79   :  { %3428 = vmatpush3.bf16.msra.mxu0 %v3758_v56  ;;  %v3777_v56 = vld [vmem:[%s4880_s1 + $0x350] sm:$0xff]  }
  0x7a   :  { %3492 = vmatpush3.bf16.msra.mxu1 %v3760_v57  ;;  %3429 = vmatprep.subr.bf16.mxu0 %v3761_v58  ;;  %v49_v57 = vld [vmem:[%s4881_s0 + $0x128] sm:$0xff] }
  0x7b   :  { %2055 = vmatmul.mubr.bf16.gmra.mrb[44].mxu0 %v2878_v59  ;;  %3493 = vmatprep.subr.bf16.mxu1 %v3763_v60  ;;  %v57_v58 = vld [vmem:[%s4881_s0 + $0x168] sm:$0xff]  ;;  %v3779_v59 = vld [vmem:[%s4880_s1 + $0x3d0] sm:$0xff]   ;;  %v2850_v60 = vcombine.low %v32_v40, %v40_v41  ;;  %v3800_v41 = vld [vmem:[%s4880_s1 + $0x3b8] sm:$0xff]  }
  0x7c   :  { %2152 = vmatmul.mubr.bf16.gmra.mrb[44].mxu1 %v2880_v61  ;;  %2062 = vmatprep.mubr.bf16.mxu0 %v2895_v62  ;;  %v2852_v61 = vcombine.low %v33_v43, %v41_v44  ;;  %v2867_v62 = vcombine.high %v48_v54, %v56_v55  ;;  %v105_v40 = vld [vmem:[%s4881_s0 + $0x2e8] sm:$0xff] }
  0x7d   :  { %2159 = vmatprep.mubr.bf16.mxu1 %v2897_v63  ;;  %3430 = vmatpush3.bf16.msra.mxu0 %v3762_v0  ;;  %v2869_v63 = vcombine.high %v49_v57, %v57_v58  ;;  %v3778_v0 = vld [vmem:[%s4880_s1 + $0x310] sm:$0xff]  }
  0x7e   :  { %3494 = vmatpush3.bf16.msra.mxu1 %v3764_v1  ;;  %3431 = vmatprep.subr.bf16.mxu0 %v3765_v2  ;;  %v3780_v1 = vld [vmem:[%s4880_s1 + $0x390] sm:$0xff]   ;;  %v3781_v2 = vld [vmem:[%s4880_s1 + $0x358] sm:$0xff]  }
  0x7f   :  { %3495 = vmatprep.subr.bf16.mxu1 %v3767_v5  ;;  %v72_v5 = vld [vmem:[%s4881_s0 + $0x1e0] sm:$0xff] }
  0x80   :  { %v2882_v27 = vcombine.low %v64_v4, %v72_v5 }
  0x81   :  { %3432 = vmatpush3.bf16.msra.mxu0 %v3766_v8  ;;  %v73_v8 = vld [vmem:[%s4881_s0 + $0x1e8] sm:$0xff] }
  0x82   :  { %3496 = vmatpush3.bf16.msra.mxu1 %v3768_v9  ;;  %3545 = vmatprep.subr.bf16.mxu0 %v3769_v10  ;;  %v3784_v9 = vld [vmem:[%s4880_s1 + $0x398] sm:$0xff]   ;;  %v3785_v10 = vld [vmem:[%s4880_s1 + $0x360] sm:$0xff]  }
  0x83   :  { %2063 = vmatmul.mubr.bf16.gmra.mrb[48].mxu0 %v2894_v11  ;;  %3609 = vmatprep.subr.bf16.mxu1 %v3771_v12  ;;  %v2866_v11 = vcombine.low %v48_v54, %v56_v55  ;;  %v3787_v12 = vld [vmem:[%s4880_s1 + $0x3e0] sm:$0xff]  }
  0x84   :  { %2160 = vmatmul.mubr.bf16.gmra.mrb[48].mxu1 %v2896_v13  ;;  %2070 = vmatprep.mubr.bf16.mxu0 %v2911_v14  ;;  %v2868_v13 = vcombine.low %v49_v57, %v57_v58  ;;  %v2883_v14 = vcombine.high %v64_v4, %v72_v5  ;;  %v128_v54 = vld [vmem:[%s4881_s0 + $0x3a0] sm:$0xff]  ;;  %v137_v57 = vld [vmem:[%s4881_s0 + $0x3e8] sm:$0xff] }
  0x85   :  { %2167 = vmatprep.mubr.bf16.mxu1 %v2913_v15  ;;  %v2885_v15 = vcombine.high %v65_v6, %v73_v8  ;;  %v136_v55 = vld [vmem:[%s4881_s0 + $0x3e0] sm:$0xff] }
  0x8b   :  { %2071 = vmatmul.mubr.bf16.gmra.mrb[52].mxu0 %v2910_v20  ;;  %v80_v20 = vld [vmem:[%s4881_s0 + $0x220] sm:$0xff] }
  0x8c   :  { %2168 = vmatmul.mubr.bf16.gmra.mrb[52].mxu1 %v2912_v21  ;;  %2078 = vmatprep.mubr.bf16.mxu0 %v2927_v22  ;;  %v88_v21 = vld [vmem:[%s4881_s0 + $0x260] sm:$0xff]  ;;  %v81_v22 = vld [vmem:[%s4881_s0 + $0x228] sm:$0xff] }
  0x8d   :  { %2175 = vmatprep.mubr.bf16.mxu1 %v2929_v23  ;;  %v3790_v23 = vld [vmem:[%s4880_s1 + $0x328] sm:$0xff]   ;;  %v2900_v43 = vcombine.low %v81_v22, %v89_v24 }
  0x93   :  { %2079 = vmatmul.mubr.bf16.gmra.mrb[56].mxu0 %v2926_v28  ;;  %v3795_v28 = vld [vmem:[%s4880_s1 + $0x3f0] sm:$0xff]  }
  0x94   :  { %2176 = vmatmul.mubr.bf16.gmra.mrb[56].mxu1 %v2928_v29  ;;  %2086 = vmatprep.mubr.bf16.mxu0 %v2943_v30  ;;  %v2884_v29 = vcombine.low %v65_v6, %v73_v8  ;;  %v2899_v30 = vcombine.high %v80_v20, %v88_v21  ;;  %v34_v6 = vld [vmem:[%s4881_s0 + $0xb0] sm:$0xff]  ;;  %v35_v8 = vld [vmem:[%s4881_s0 + $0xb8] sm:$0xff] }
  0x95   :  { %2183 = vmatprep.mubr.bf16.mxu1 %v2945_v31  ;;  %v2901_v31 = vcombine.high %v81_v22, %v89_v24  ;;  %v66_v22 = vld [vmem:[%s4881_s0 + $0x1b0] sm:$0xff]  ;;  %v67_v24 = vld [vmem:[%s4881_s0 + $0x1b8] sm:$0xff] }
  0x9b   :  { %2087 = vmatmul.mubr.bf16.gmra.mrb[60].mxu0 %v2942_v36  ;;  %v96_v36 = vld [vmem:[%s4881_s0 + $0x2a0] sm:$0xff] }
  0x9c   :  { %2184 = vmatmul.mubr.bf16.gmra.mrb[60].mxu1 %v2944_v37  ;;  %2224 = vmatprep.mubr.bf16.mxu0 %v2835_v38  ;;  %v104_v37 = vld [vmem:[%s4881_s0 + $0x2e0] sm:$0xff]  ;;  %v3798_v38 = vld [vmem:[%s4880_s1 + $0x338] sm:$0xff]  }
  0x9d   :  { %2321 = vmatprep.mubr.bf16.mxu1 %v2837_v39  ;;  %v97_v39 = vld [vmem:[%s4881_s0 + $0x2a8] sm:$0xff]  ;;  %v2915_v44 = vcombine.high %v96_v36, %v104_v37 }
  0xa3   :  { %2225 = vmatmul.mubr.bf16.vlgmr.msra.gmra.mrb[64].mxu0 %v2834_v42  ;;  %v2898_v42 = vcombine.low %v80_v20, %v88_v21 }
  0xa4   :  { %2322 = vmatmul.mubr.bf16.vlgmr.msra.gmra.mrb[64].mxu1 %v2836_v45  ;;  %3546 = vmatpush3.bf16.msra.mxu0 %v3770_v46  ;;  %v2917_v45 = vcombine.high %v97_v39, %v105_v40  ;;  %v112_v46 = vld [vmem:[%s4881_s0 + $0x320] sm:$0xff] }
  0xa5   :  { %3610 = vmatpush3.bf16.msra.mxu1 %v3772_v47  ;;  %2232 = vmatprep.mubr.bf16.mxu0 %v2851_v48  ;;  %v120_v47 = vld [vmem:[%s4881_s0 + $0x360] sm:$0xff]  ;;  %v113_v48 = vld [vmem:[%s4881_s0 + $0x328] sm:$0xff] }
  0xa6   :  { %2329 = vmatprep.mubr.bf16.mxu1 %v2853_v49  ;;  %3547 = vmatprep.subr.bf16.mxu0 %v3773_v50  ;;  %v121_v49 = vld [vmem:[%s4881_s0 + $0x368] sm:$0xff]  ;;  %v2914_v50 = vcombine.low %v96_v36, %v104_v37  ;;  %v2930_v58 = vcombine.low %v112_v46, %v120_v47 }
  0xa7   :  { %3611 = vmatprep.subr.bf16.mxu1 %v3775_v51  ;;  %v2916_v51 = vcombine.low %v97_v39, %v105_v40 }
  0xa8   :  { %3548 = vmatpush3.bf16.msra.mxu0 %v3774_v52  ;;  %v2931_v52 = vcombine.high %v112_v46, %v120_v47 }
  0xa9   :  { %3612 = vmatpush3.bf16.msra.mxu1 %v3776_v53  ;;  %3549 = vmatprep.subr.bf16.mxu0 %v3777_v56  ;;  %v2933_v53 = vcombine.high %v113_v48, %v121_v49  ;;  %v129_v56 = vld [vmem:[%s4881_s0 + $0x3a8] sm:$0xff] }
  0xaa   :  { %3613 = vmatprep.subr.bf16.mxu1 %v3779_v59  ;;  %v2932_v59 = vcombine.low %v113_v48, %v121_v49 }
  0xab   :  { %2233 = vmatmul.mubr.bf16.gmra.mrb[68].mxu0 %v2850_v60  ;;  %v2947_v60 = vcombine.high %v128_v54, %v136_v55 }
  0xac   :  { %2330 = vmatmul.mubr.bf16.gmra.mrb[68].mxu1 %v2852_v61  ;;  %2240 = vmatprep.mubr.bf16.mxu0 %v2867_v62  ;;  %v2949_v61 = vcombine.high %v129_v56, %v137_v57  ;;  %v18_v62 = vld [vmem:[%s4881_s0 + $0x30] sm:$0xff] }
  0xad   :  { %2337 = vmatprep.mubr.bf16.mxu1 %v2869_v63  ;;  %3550 = vmatpush3.bf16.msra.mxu0 %v3778_v0  ;;  %v26_v63 = vld [vmem:[%s4881_s0 + $0x70] sm:$0xff]  ;;  %v19_v0 = vld [vmem:[%s4881_s0 + $0x38] sm:$0xff] }
  0xae   :  { %3614 = vmatpush3.bf16.msra.mxu1 %v3780_v1  ;;  %3551 = vmatprep.subr.bf16.mxu0 %v3781_v2  ;;  %v27_v1 = vld [vmem:[%s4881_s0 + $0x78] sm:$0xff]  ;;  %v2946_v2 = vcombine.low %v128_v54, %v136_v55  ;;  %v2839_v4 = vcombine.high %v18_v62, %v26_v63 }
  0xaf   :  { %3615 = vmatprep.subr.bf16.mxu1 %v3783_v3  ;;  %v2948_v3 = vcombine.low %v129_v56, %v137_v57  ;;  %v2841_v5 = vcombine.high %v19_v0, %v27_v1  ;;  %v99_v55 = vld [vmem:[%s4881_s0 + $0x2b8] sm:$0xff] }
  0xb0   :  { %v107_v56 = vld [vmem:[%s4881_s0 + $0x2f8] sm:$0xff] }
  0xb1   :  { %3552 = vmatpush3.bf16.msra.mxu0 %v3782_v7  ;;  %v42_v7 = vld [vmem:[%s4881_s0 + $0xf0] sm:$0xff] }
  0xb2   :  { %3616 = vmatpush3.bf16.msra.mxu1 %v3784_v9  ;;  %3553 = vmatprep.subr.bf16.mxu0 %v3785_v10  ;;  %v43_v9 = vld [vmem:[%s4881_s0 + $0xf8] sm:$0xff]  ;;  %v2838_v10 = vcombine.low %v18_v62, %v26_v63 }
  0xb3   :  { %2241 = vmatmul.mubr.bf16.gmra.mrb[72].mxu0 %v2866_v11  ;;  %3617 = vmatprep.subr.bf16.mxu1 %v3787_v12  ;;  %v2840_v11 = vcombine.low %v19_v0, %v27_v1  ;;  %v2855_v12 = vcombine.high %v34_v6, %v42_v7 }
  0xb4   :  { %2338 = vmatmul.mubr.bf16.gmra.mrb[72].mxu1 %v2868_v13  ;;  %2248 = vmatprep.mubr.bf16.mxu0 %v2883_v14  ;;  %v2857_v13 = vcombine.high %v35_v8, %v43_v9  ;;  %v50_v14 = vld [vmem:[%s4881_s0 + $0x130] sm:$0xff] }
  0xb5   :  { %2345 = vmatprep.mubr.bf16.mxu1 %v2885_v15  ;;  %3554 = vmatpush3.bf16.msra.mxu0 %v3786_v16  ;;  %v58_v15 = vld [vmem:[%s4881_s0 + $0x170] sm:$0xff]  ;;  %v51_v16 = vld [vmem:[%s4881_s0 + $0x138] sm:$0xff] }
  0xb6   :  { %3618 = vmatpush3.bf16.msra.mxu1 %v3788_v17  ;;  %3555 = vmatprep.subr.bf16.mxu0 %v3789_v18  ;;  %v59_v17 = vld [vmem:[%s4881_s0 + $0x178] sm:$0xff]  ;;  %v2854_v18 = vcombine.low %v34_v6, %v42_v7  ;;  %v2871_v20 = vcombine.high %v50_v14, %v58_v15 }
  0xb7   :  { %3619 = vmatprep.subr.bf16.mxu1 %v3791_v19  ;;  %v2856_v19 = vcombine.low %v35_v8, %v43_v9  ;;  %v2873_v21 = vcombine.high %v51_v16, %v59_v17 }
  0xb9   :  { %3556 = vmatpush3.bf16.msra.mxu0 %v3790_v23  ;;  %v74_v23 = vld [vmem:[%s4881_s0 + $0x1f0] sm:$0xff] }
  0xba   :  { %3620 = vmatpush3.bf16.msra.mxu1 %v3792_v25  ;;  %3557 = vmatprep.subr.bf16.mxu0 %v3793_v26  ;;  %v75_v25 = vld [vmem:[%s4881_s0 + $0x1f8] sm:$0xff]  ;;  %v2870_v26 = vcombine.low %v50_v14, %v58_v15  ;;  %v2886_v37 = vcombine.low %v66_v22, %v74_v23 }
  0xbb   :  { %2249 = vmatmul.mubr.bf16.gmra.mrb[76].mxu0 %v2882_v27  ;;  %3621 = vmatprep.subr.bf16.mxu1 %v3795_v28  ;;  %v2872_v27 = vcombine.low %v51_v16, %v59_v17  ;;  %v2887_v28 = vcombine.high %v66_v22, %v74_v23  ;;  %v123_v14 = vld [vmem:[%s4881_s0 + $0x378] sm:$0xff] }
  0xbc   :  { %2346 = vmatmul.mubr.bf16.gmra.mrb[76].mxu1 %v2884_v29  ;;  %2256 = vmatprep.mubr.bf16.mxu0 %v2899_v30  ;;  %v2889_v29 = vcombine.high %v67_v24, %v75_v25  ;;  %v82_v30 = vld [vmem:[%s4881_s0 + $0x230] sm:$0xff] }
  0xbd   :  { %2353 = vmatprep.mubr.bf16.mxu1 %v2901_v31  ;;  %3558 = vmatpush3.bf16.msra.mxu0 %v3794_v32  ;;  %v90_v31 = vld [vmem:[%s4881_s0 + $0x270] sm:$0xff] }
  0xbe   :  { %3622 = vmatpush3.bf16.msra.mxu1 %v3796_v33  ;;  %3559 = vmatprep.subr.bf16.mxu0 %v3797_v34  ;;  %v83_v33 = vld [vmem:[%s4881_s0 + $0x238] sm:$0xff] }
  0xbf   :  { %3623 = vmatprep.subr.bf16.mxu1 %v3799_v35  ;;  %v91_v34 = vld [vmem:[%s4881_s0 + $0x278] sm:$0xff] }
  0xc0   :  { %v2905_v46 = vcombine.high %v83_v33, %v91_v34  ;;  %v2904_v63 = vcombine.low %v83_v33, %v91_v34  ;;  %v138_v33 = vld [vmem:[%s4881_s0 + $0x3f0] sm:$0xff] }
  0xc1   :  { %3560 = vmatpush3.bf16.msra.mxu0 %v3798_v38 }
  0xc2   :  { %3624 = vmatpush3.bf16.msra.mxu1 %v3800_v41  ;;  %v2888_v41 = vcombine.low %v67_v24, %v75_v25 }
  0xc3   :  { %2257 = vmatmul.mubr.bf16.gmra.mrb[80].mxu0 %v2898_v42  ;;  %v2903_v42 = vcombine.high %v82_v30, %v90_v31 }
  0xc4   :  { %2354 = vmatmul.mubr.bf16.gmra.mrb[80].mxu1 %v2900_v43  ;;  %2264 = vmatprep.mubr.bf16.mxu0 %v2915_v44 }
  0xc5   :  { %2361 = vmatprep.mubr.bf16.mxu1 %v2917_v45 }
  0xcb   :  { %2265 = vmatmul.mubr.bf16.gmra.mrb[84].mxu0 %v2914_v50 }
  0xcc   :  { %2362 = vmatmul.mubr.bf16.gmra.mrb[84].mxu1 %v2916_v51  ;;  %2272 = vmatprep.mubr.bf16.mxu0 %v2931_v52  ;;  %v98_v52 = vld [vmem:[%s4881_s0 + $0x2b0] sm:$0xff] }
  0xcd   :  { %2369 = vmatprep.mubr.bf16.mxu1 %v2933_v53  ;;  %v106_v53 = vld [vmem:[%s4881_s0 + $0x2f0] sm:$0xff] }
  0xce   :  { %v2919_v0 = vcombine.high %v98_v52, %v106_v53  ;;  %v2918_v17 = vcombine.low %v98_v52, %v106_v53 }
  0xd3   :  { %2273 = vmatmul.mubr.bf16.gmra.mrb[88].mxu0 %v2930_v58 }
  0xd4   :  { %2370 = vmatmul.mubr.bf16.gmra.mrb[88].mxu1 %v2932_v59  ;;  %2280 = vmatprep.mubr.bf16.mxu0 %v2947_v60  ;;  %v2902_v59 = vcombine.low %v82_v30, %v90_v31 }
  0xd5   :  { %2377 = vmatprep.mubr.bf16.mxu1 %v2949_v61 }
  0xdb   :  { %2281 = vmatmul.mubr.bf16.gmra.mrb[92].mxu0 %v2946_v2 }
  0xdc   :  { %2378 = vmatmul.mubr.bf16.gmra.mrb[92].mxu1 %v2948_v3  ;;  %2418 = vmatprep.mubr.bf16.mxu0 %v2839_v4  ;;  %v2921_v4 = vcombine.high %v99_v55, %v107_v56 }
  0xdd   :  { %2515 = vmatprep.mubr.bf16.mxu1 %v2841_v5 }
  0xe3   :  { %2419 = vmatmul.mubr.bf16.vlgmr.msra.gmra.mrb[96].mxu0 %v2838_v10  ;;  %v114_v10 = vld [vmem:[%s4881_s0 + $0x330] sm:$0xff] }
  0xe4   :  { %2516 = vmatmul.mubr.bf16.vlgmr.msra.gmra.mrb[96].mxu1 %v2840_v11  ;;  %2426 = vmatprep.mubr.bf16.mxu0 %v2855_v12  ;;  %v122_v11 = vld [vmem:[%s4881_s0 + $0x370] sm:$0xff] }
  0xe5   :  { %2523 = vmatprep.mubr.bf16.mxu1 %v2857_v13  ;;  %v115_v13 = vld [vmem:[%s4881_s0 + $0x338] sm:$0xff]  ;;  %v2935_v22 = vcombine.high %v114_v10, %v122_v11 }
  0xeb   :  { %2427 = vmatmul.mubr.bf16.gmra.mrb[100].mxu0 %v2854_v18 }
  0xec   :  { %2524 = vmatmul.mubr.bf16.gmra.mrb[100].mxu1 %v2856_v19  ;;  %2434 = vmatprep.mubr.bf16.mxu0 %v2871_v20 }
  0xed   :  { %2531 = vmatprep.mubr.bf16.mxu1 %v2873_v21  ;;  %v2920_v21 = vcombine.low %v99_v55, %v107_v56 }
  0xf3   :  { %2435 = vmatmul.mubr.bf16.gmra.mrb[104].mxu0 %v2870_v26  ;;  %v2937_v26 = vcombine.high %v115_v13, %v123_v14 }
  0xf4   :  { %2532 = vmatmul.mubr.bf16.gmra.mrb[104].mxu1 %v2872_v27  ;;  %2442 = vmatprep.mubr.bf16.mxu0 %v2887_v28 }
  0xf5   :  { %2539 = vmatprep.mubr.bf16.mxu1 %v2889_v29 }
  0xf6   :  { %v3177_v32 = vpop.f32.mrb[0].mxu0 }
  0xf7   :  { %v3241_v35 = vpop.f32.mrb[0].mxu1  ;;  %v3178_v36 = vpop.f32.mrb[1].mxu0 }
  0xf8   :  { %v3179_v38 = vadd.f32 %v3178_v36, %v3177_v32  ;;  %v3242_v39 = vpop.f32.mrb[1].mxu1  ;;  %v3180_v40 = vpop.f32.mrb[2].mxu0  ;;  %v130_v32 = vld [vmem:[%s4881_s0 + $0x3b0] sm:$0xff]  ;;  %v139_v36 = vld [vmem:[%s4881_s0 + $0x3f8] sm:$0xff] }
  0xf9   :  { %v3243_v43 = vadd.f32 %v3242_v39, %v3241_v35  ;;  %v3244_v44 = vpop.f32.mrb[2].mxu1  ;;  %v3181_v45 = vpop.f32.mrb[3].mxu0  ;;  %v131_v35 = vld [vmem:[%s4881_s0 + $0x3b8] sm:$0xff]  ;;  %v2934_v39 = vcombine.low %v114_v10, %v122_v11 }
  0xfa   :  { %v3182_v47 = vadd.f32 %v3181_v45, %v3180_v40  ;;  %v3245_v48 = vpop.f32.mrb[3].mxu1 }
  0xfb   :  { %v4552_v49 = vadd.f32 %v3243_v43, %v3179_v38  ;;  %v3246_v50 = vadd.f32 %v3245_v48, %v3244_v44  ;;  %2443 = vmatmul.mubr.bf16.gmra.mrb[108].mxu0 %v2886_v37  ;;  %v2936_v43 = vcombine.low %v115_v13, %v123_v14  ;;  %v2951_v44 = vcombine.high %v130_v32, %v138_v33 }
  0xfc   :  { %2540 = vmatmul.mubr.bf16.gmra.mrb[108].mxu1 %v2888_v41  ;;  %2450 = vmatprep.mubr.bf16.mxu0 %v2903_v42  ;;  %v2953_v48 = vcombine.high %v131_v35, %v139_v36 }
  0xfd   :  { %v4554_v51 = vadd.f32 %v3246_v50, %v3182_v47  ;;  %2547 = vmatprep.mubr.bf16.mxu1 %v2905_v46 }
  0xfe   :  { %v3183_v54 = vpop.f32.mrb[4].mxu0 }
  0xff   :  { %v3247_v57 = vpop.f32.mrb[4].mxu1  ;;  %v3184_v58 = vpop.f32.mrb[5].mxu0 }
 0x100   :  { %v3185_v60 = vadd.f32 %v3184_v58, %v3183_v54  ;;  %v3248_v61 = vpop.f32.mrb[5].mxu1  ;;  %v3186_v62 = vpop.f32.mrb[6].mxu0 }
 0x101   :  { %v3249_v1 = vadd.f32 %v3248_v61, %v3247_v57  ;;  %v3250_v2 = vpop.f32.mrb[6].mxu1  ;;  %v3187_v3 = vpop.f32.mrb[7].mxu0 }
 0x102   :  { %v3188_v5 = vadd.f32 %v3187_v3, %v3186_v62  ;;  %v3251_v6 = vpop.f32.mrb[7].mxu1 }
 0x103   :  { %v4568_v7 = vadd.f32 %v3249_v1, %v3185_v60  ;;  %v3252_v8 = vadd.f32 %v3251_v6, %v3250_v2  ;;  %2451 = vmatmul.mubr.bf16.gmra.mrb[112].mxu0 %v2902_v59  ;;  %v2950_v59 = vcombine.low %v130_v32, %v138_v33 }
 0x104   :  { %2548 = vmatmul.mubr.bf16.gmra.mrb[112].mxu1 %v2904_v63  ;;  %2458 = vmatprep.mubr.bf16.mxu0 %v2919_v0  ;;  %v2952_v63 = vcombine.low %v131_v35, %v139_v36 }
 0x105   :  { %v4570_v9 = vadd.f32 %v3252_v8, %v3188_v5  ;;  %2555 = vmatprep.mubr.bf16.mxu1 %v2921_v4 }
 0x106   :  { %v3189_v12 = vpop.f32.mrb[8].mxu0 }
 0x107   :  { %v3253_v15 = vpop.f32.mrb[8].mxu1  ;;  %v3190_v16 = vpop.f32.mrb[9].mxu0 }
 0x108   :  { %v3191_v18 = vadd.f32 %v3190_v16, %v3189_v12  ;;  %v3254_v19 = vpop.f32.mrb[9].mxu1  ;;  %v3192_v20 = vpop.f32.mrb[10].mxu0 }
 0x109   :  { %v3255_v23 = vadd.f32 %v3254_v19, %v3253_v15  ;;  %v3256_v24 = vpop.f32.mrb[10].mxu1  ;;  %v3193_v25 = vpop.f32.mrb[11].mxu0 }
 0x10a   :  { %v3194_v27 = vadd.f32 %v3193_v25, %v3192_v20  ;;  %v3257_v28 = vpop.f32.mrb[11].mxu1 }
 0x10b   :  { %v4584_v29 = vadd.f32 %v3255_v23, %v3191_v18  ;;  %v3258_v30 = vadd.f32 %v3257_v28, %v3256_v24  ;;  %2459 = vmatmul.mubr.bf16.gmra.mrb[116].mxu0 %v2918_v17 }
 0x10c   :  { %2556 = vmatmul.mubr.bf16.gmra.mrb[116].mxu1 %v2920_v21  ;;  %2466 = vmatprep.mubr.bf16.mxu0 %v2935_v22 }
 0x10d   :  { %v4586_v31 = vadd.f32 %v3258_v30, %v3194_v27  ;;  %2563 = vmatprep.mubr.bf16.mxu1 %v2937_v26 }
 0x10e   :  { %v3195_v34 = vpop.f32.mrb[12].mxu0 }
 0x10f   :  { %v3259_v37 = vpop.f32.mrb[12].mxu1  ;;  %v3196_v38 = vpop.f32.mrb[13].mxu0 }
 0x110   :  { %v3197_v40 = vadd.f32 %v3196_v38, %v3195_v34  ;;  %v3260_v41 = vpop.f32.mrb[13].mxu1  ;;  %v3198_v42 = vpop.f32.mrb[14].mxu0 }
 0x111   :  { %v3261_v45 = vadd.f32 %v3260_v41, %v3259_v37  ;;  %v3262_v46 = vpop.f32.mrb[14].mxu1  ;;  %v3199_v47 = vpop.f32.mrb[15].mxu0 }
 0x112   :  { %v3200_v50 = vadd.f32 %v3199_v47, %v3198_v42  ;;  %v3263_v52 = vpop.f32.mrb[15].mxu1 }
 0x113   :  { %v4600_v53 = vadd.f32 %v3261_v45, %v3197_v40  ;;  %v3264_v54 = vadd.f32 %v3263_v52, %v3262_v46  ;;  %2467 = vmatmul.mubr.bf16.gmra.mrb[120].mxu0 %v2934_v39 }
 0x114   :  { %2564 = vmatmul.mubr.bf16.gmra.mrb[120].mxu1 %v2936_v43  ;;  %2474 = vmatprep.mubr.bf16.mxu0 %v2951_v44 }
 0x115   :  { %v4602_v55 = vadd.f32 %v3264_v54, %v3200_v50  ;;  %2571 = vmatprep.mubr.bf16.mxu1 %v2953_v48 }
 0x116   :  { %v3201_v56 = vpop.f32.mrb[16].mxu0 }
 0x117   :  { %v3265_v57 = vpop.f32.mrb[16].mxu1  ;;  %v3202_v58 = vpop.f32.mrb[17].mxu0 }
 0x118   :  { %v3203_v60 = vadd.f32 %v3202_v58, %v3201_v56  ;;  %v3266_v61 = vpop.f32.mrb[17].mxu1  ;;  %v3204_v62 = vpop.f32.mrb[18].mxu0 }
 0x119   :  { %v3267_v0 = vadd.f32 %v3266_v61, %v3265_v57  ;;  %v3268_v1 = vpop.f32.mrb[18].mxu1  ;;  %v3205_v2 = vpop.f32.mrb[19].mxu0 }
 0x11a   :  { %v3206_v3 = vadd.f32 %v3205_v2, %v3204_v62  ;;  %v3269_v4 = vpop.f32.mrb[19].mxu1 }
 0x11b   :  { %v4604_v5 = vadd.f32 %v3267_v0, %v3203_v60  ;;  %v3270_v6 = vadd.f32 %v3269_v4, %v3268_v1  ;;  %2475 = vmatmul.mubr.bf16.gmra.mrb[124].mxu0 %v2950_v59 }
 0x11c   :  { %2572 = vmatmul.mubr.bf16.gmra.mrb[124].mxu1 %v2952_v63 }
 0x11d   :  { %v4606_v8 = vadd.f32 %v3270_v6, %v3206_v3 }
 0x11e   :  { %v3207_v10 = vpop.f32.mrb[20].mxu0 }
 0x11f   :  { %v3271_v11 = vpop.f32.mrb[20].mxu1  ;;  %v3208_v12 = vpop.f32.mrb[21].mxu0 }
 0x120   :  { %v3209_v13 = vadd.f32 %v3208_v12, %v3207_v10  ;;  %v3272_v14 = vpop.f32.mrb[21].mxu1  ;;  %v3210_v15 = vpop.f32.mrb[22].mxu0 }
 0x121   :  { %v3273_v16 = vadd.f32 %v3272_v14, %v3271_v11  ;;  %v3274_v17 = vpop.f32.mrb[22].mxu1  ;;  %v3211_v18 = vpop.f32.mrb[23].mxu0 }
 0x122   :  { %v3212_v19 = vadd.f32 %v3211_v18, %v3210_v15  ;;  %v3275_v20 = vpop.f32.mrb[23].mxu1 }
 0x123   :  { %v4608_v21 = vadd.f32 %v3273_v16, %v3209_v13  ;;  %v3276_v22 = vadd.f32 %v3275_v20, %v3274_v17 }
 0x125   :  { %v4610_v23 = vadd.f32 %v3276_v22, %v3212_v19 }
 0x126   :  { %v3213_v24 = vpop.f32.mrb[24].mxu0 }
 0x127   :  { %v3277_v25 = vpop.f32.mrb[24].mxu1  ;;  %v3214_v26 = vpop.f32.mrb[25].mxu0 }
 0x128   :  { %v3215_v27 = vadd.f32 %v3214_v26, %v3213_v24  ;;  %v3278_v28 = vpop.f32.mrb[25].mxu1  ;;  %v3216_v30 = vpop.f32.mrb[26].mxu0 }
 0x129   :  { %v3279_v32 = vadd.f32 %v3278_v28, %v3277_v25  ;;  %v3280_v33 = vpop.f32.mrb[26].mxu1  ;;  %v3217_v34 = vpop.f32.mrb[27].mxu0 }
 0x12a   :  { %v3218_v35 = vadd.f32 %v3217_v34, %v3216_v30  ;;  %v3281_v36 = vpop.f32.mrb[27].mxu1 }
 0x12b   :  { %v4612_v37 = vadd.f32 %v3279_v32, %v3215_v27  ;;  %v3282_v38 = vadd.f32 %v3281_v36, %v3280_v33 }
 0x12d   :  { %v4614_v39 = vadd.f32 %v3282_v38, %v3218_v35 }
 0x12e   :  { %v3219_v40 = vpop.f32.mrb[28].mxu0 }
 0x12f   :  { %v3283_v41 = vpop.f32.mrb[28].mxu1  ;;  %v3220_v42 = vpop.f32.mrb[29].mxu0 }
 0x130   :  { %v3221_v43 = vadd.f32 %v3220_v42, %v3219_v40  ;;  %v3284_v44 = vpop.f32.mrb[29].mxu1  ;;  %v3222_v45 = vpop.f32.mrb[30].mxu0 }
 0x131   :  { %v3285_v46 = vadd.f32 %v3284_v44, %v3283_v41  ;;  %v3286_v47 = vpop.f32.mrb[30].mxu1  ;;  %v3223_v48 = vpop.f32.mrb[31].mxu0 }
 0x132   :  { %v3224_v50 = vadd.f32 %v3223_v48, %v3222_v45  ;;  %v3287_v52 = vpop.f32.mrb[31].mxu1 }
 0x133   :  { %v4616_v54 = vadd.f32 %v3285_v46, %v3221_v43  ;;  %v3288_v56 = vadd.f32 %v3287_v52, %v3286_v47 }
 0x135   :  { %v4618_v57 = vadd.f32 %v3288_v56, %v3224_v50 }
 0x136   :  { %v3305_v58 = vpop.f32.mrb[32].mxu0 }
 0x137   :  { %v3369_v59 = vpop.f32.mrb[32].mxu1  ;;  %v3306_v60 = vpop.f32.mrb[33].mxu0 }
 0x138   :  { %v3307_v61 = vadd.f32 %v3306_v60, %v3305_v58  ;;  %v3370_v62 = vpop.f32.mrb[33].mxu1  ;;  %v3308_v63 = vpop.f32.mrb[34].mxu0 }
 0x139   :  { %v3371_v0 = vadd.f32 %v3370_v62, %v3369_v59  ;;  %v3372_v1 = vpop.f32.mrb[34].mxu1  ;;  %v3309_v2 = vpop.f32.mrb[35].mxu0 }
 0x13a   :  { %v2033_v3 = vadd.f32 %v3307_v61, %v4552_v49  ;;  %v3310_v4 = vadd.f32 %v3309_v2, %v3308_v63  ;;  %v3373_v6 = vpop.f32.mrb[35].mxu1 }
 0x13b   :  { %v3374_v10 = vadd.f32 %v3373_v6, %v3372_v1 }
 0x13c   :  { %v4621_v11 = vadd.f32 %v3371_v0, %v2033_v3  ;;  %v2036_v12 = vadd.f32 %v3310_v4, %v4554_v51 }
 0x13e   :  { %v4624_v13 = vadd.f32 %v3374_v10, %v2036_v12  ;;  %v3311_v14 = vpop.f32.mrb[36].mxu0 }
 0x13f   :  { %v3375_v15 = vpop.f32.mrb[36].mxu1  ;;  %v3312_v16 = vpop.f32.mrb[37].mxu0 }
 0x140   :  { %v3313_v17 = vadd.f32 %v3312_v16, %v3311_v14  ;;  %v3376_v18 = vpop.f32.mrb[37].mxu1  ;;  %v3314_v19 = vpop.f32.mrb[38].mxu0 }
 0x141   :  { %v3377_v20 = vadd.f32 %v3376_v18, %v3375_v15  ;;  %v3378_v22 = vpop.f32.mrb[38].mxu1  ;;  %v3315_v24 = vpop.f32.mrb[39].mxu0 }
 0x142   :  { %v2041_v49 = vadd.f32 %v3313_v17, %v4568_v7  ;;  %v3316_v25 = vadd.f32 %v3315_v24, %v3314_v19  ;;  %v3379_v26 = vpop.f32.mrb[39].mxu1 }
 0x143   :  { %v3380_v27 = vadd.f32 %v3379_v26, %v3378_v22 }
 0x144   :  { %v4627_v28 = vadd.f32 %v3377_v20, %v2041_v49  ;;  %v2044_v51 = vadd.f32 %v3316_v25, %v4570_v9 }
 0x146   :  { %v4630_v30 = vadd.f32 %v3380_v27, %v2044_v51  ;;  %v3317_v32 = vpop.f32.mrb[40].mxu0 }
 0x147   :  { %v3381_v33 = vpop.f32.mrb[40].mxu1  ;;  %v3318_v34 = vpop.f32.mrb[41].mxu0 }
 0x148   :  { %v3319_v35 = vadd.f32 %v3318_v34, %v3317_v32  ;;  %v3382_v36 = vpop.f32.mrb[41].mxu1  ;;  %v3320_v38 = vpop.f32.mrb[42].mxu0 }
 0x149   :  { %v3383_v40 = vadd.f32 %v3382_v36, %v3381_v33  ;;  %v3384_v41 = vpop.f32.mrb[42].mxu1  ;;  %v3321_v42 = vpop.f32.mrb[43].mxu0 }
 0x14a   :  { %v2049_v7 = vadd.f32 %v3319_v35, %v4584_v29  ;;  %v3322_v43 = vadd.f32 %v3321_v42, %v3320_v38  ;;  %v3385_v44 = vpop.f32.mrb[43].mxu1 }
 0x14b   :  { %v3386_v45 = vadd.f32 %v3385_v44, %v3384_v41 }
 0x14c   :  { %v4633_v46 = vadd.f32 %v3383_v40, %v2049_v7  ;;  %v2052_v9 = vadd.f32 %v3322_v43, %v4586_v31 }
 0x14e   :  { %v4636_v47 = vadd.f32 %v3386_v45, %v2052_v9  ;;  %v3323_v48 = vpop.f32.mrb[44].mxu0 }
 0x14f   :  { %v3387_v50 = vpop.f32.mrb[44].mxu1  ;;  %v3324_v52 = vpop.f32.mrb[45].mxu0 }
 0x150   :  { %v3325_v56 = vadd.f32 %v3324_v52, %v3323_v48  ;;  %v3388_v58 = vpop.f32.mrb[45].mxu1  ;;  %v3326_v59 = vpop.f32.mrb[46].mxu0 }
 0x151   :  { %v3389_v60 = vadd.f32 %v3388_v58, %v3387_v50  ;;  %v3390_v61 = vpop.f32.mrb[46].mxu1  ;;  %v3327_v62 = vpop.f32.mrb[47].mxu0 }
 0x152   :  { %v2057_v29 = vadd.f32 %v3325_v56, %v4600_v53  ;;  %v3328_v63 = vadd.f32 %v3327_v62, %v3326_v59  ;;  %v3391_v0 = vpop.f32.mrb[47].mxu1 }
 0x153   :  { %v3392_v1 = vadd.f32 %v3391_v0, %v3390_v61 }
 0x154   :  { %v4639_v2 = vadd.f32 %v3389_v60, %v2057_v29  ;;  %v2060_v31 = vadd.f32 %v3328_v63, %v4602_v55 }
 0x156   :  { %v4642_v3 = vadd.f32 %v3392_v1, %v2060_v31  ;;  %v3329_v4 = vpop.f32.mrb[48].mxu0 }
 0x157   :  { %v3393_v6 = vpop.f32.mrb[48].mxu1  ;;  %v3330_v10 = vpop.f32.mrb[49].mxu0 }
 0x158   :  { %v3331_v12 = vadd.f32 %v3330_v10, %v3329_v4  ;;  %v3394_v14 = vpop.f32.mrb[49].mxu1  ;;  %v3332_v15 = vpop.f32.mrb[50].mxu0 }
 0x159   :  { %v3395_v16 = vadd.f32 %v3394_v14, %v3393_v6  ;;  %v3396_v17 = vpop.f32.mrb[50].mxu1  ;;  %v3333_v18 = vpop.f32.mrb[51].mxu0 }
 0x15a   :  { %v2065_v53 = vadd.f32 %v3331_v12, %v4604_v5  ;;  %v3334_v19 = vadd.f32 %v3333_v18, %v3332_v15  ;;  %v3397_v20 = vpop.f32.mrb[51].mxu1 }
 0x15b   :  { %v3398_v22 = vadd.f32 %v3397_v20, %v3396_v17 }
 0x15c   :  { %v4645_v24 = vadd.f32 %v3395_v16, %v2065_v53  ;;  %v2068_v55 = vadd.f32 %v3334_v19, %v4606_v8 }
 0x15e   :  { %v4648_v49 = vadd.f32 %v3398_v22, %v2068_v55  ;;  %v3335_v25 = vpop.f32.mrb[52].mxu0 }
 0x15f   :  { %v3399_v26 = vpop.f32.mrb[52].mxu1  ;;  %v3336_v27 = vpop.f32.mrb[53].mxu0 }
 0x160   :  { %v3337_v51 = vadd.f32 %v3336_v27, %v3335_v25  ;;  %v3400_v32 = vpop.f32.mrb[53].mxu1  ;;  %v3338_v33 = vpop.f32.mrb[54].mxu0 }
 0x161   :  { %v3401_v34 = vadd.f32 %v3400_v32, %v3399_v26  ;;  %v3402_v35 = vpop.f32.mrb[54].mxu1  ;;  %v3339_v36 = vpop.f32.mrb[55].mxu0 }
 0x162   :  { %v2073_v5 = vadd.f32 %v3337_v51, %v4608_v21  ;;  %v3340_v38 = vadd.f32 %v3339_v36, %v3338_v33  ;;  %v3403_v40 = vpop.f32.mrb[55].mxu1 }
 0x163   :  { %v3404_v41 = vadd.f32 %v3403_v40, %v3402_v35 }
 0x164   :  { %v4651_v42 = vadd.f32 %v3401_v34, %v2073_v5  ;;  %v2076_v8 = vadd.f32 %v3340_v38, %v4610_v23 }
 0x166   :  { %v4654_v7 = vadd.f32 %v3404_v41, %v2076_v8  ;;  %v3341_v43 = vpop.f32.mrb[56].mxu0 }
 0x167   :  { %v3405_v44 = vpop.f32.mrb[56].mxu1  ;;  %v3342_v45 = vpop.f32.mrb[57].mxu0 }
 0x168   :  { %v3343_v9 = vadd.f32 %v3342_v45, %v3341_v43  ;;  %v3406_v48 = vpop.f32.mrb[57].mxu1  ;;  %v3344_v50 = vpop.f32.mrb[58].mxu0 }
 0x169   :  { %v3407_v52 = vadd.f32 %v3406_v48, %v3405_v44  ;;  %v3408_v56 = vpop.f32.mrb[58].mxu1  ;;  %v3345_v58 = vpop.f32.mrb[59].mxu0 }
 0x16a   :  { %v2081_v21 = vadd.f32 %v3343_v9, %v4612_v37  ;;  %v3346_v59 = vadd.f32 %v3345_v58, %v3344_v50  ;;  %v3409_v60 = vpop.f32.mrb[59].mxu1 }
 0x16b   :  { %v3410_v61 = vadd.f32 %v3409_v60, %v3408_v56 }
 0x16c   :  { %v4657_v62 = vadd.f32 %v3407_v52, %v2081_v21  ;;  %v2084_v23 = vadd.f32 %v3346_v59, %v4614_v39 }
 0x16e   :  { %v4660_v29 = vadd.f32 %v3410_v61, %v2084_v23  ;;  %v3347_v63 = vpop.f32.mrb[60].mxu0 }
 0x16f   :  { %v3411_v0 = vpop.f32.mrb[60].mxu1  ;;  %v3348_v1 = vpop.f32.mrb[61].mxu0 }
 0x170   :  { %v3349_v31 = vadd.f32 %v3348_v1, %v3347_v63  ;;  %v3412_v4 = vpop.f32.mrb[61].mxu1  ;;  %v3350_v6 = vpop.f32.mrb[62].mxu0 }
 0x171   :  { %v3413_v10 = vadd.f32 %v3412_v4, %v3411_v0  ;;  %v3414_v12 = vpop.f32.mrb[62].mxu1  ;;  %v3351_v14 = vpop.f32.mrb[63].mxu0 }
 0x172   :  { %v2089_v37 = vadd.f32 %v3349_v31, %v4616_v54  ;;  %v3352_v15 = vadd.f32 %v3351_v14, %v3350_v6  ;;  %v3415_v16 = vpop.f32.mrb[63].mxu1 }
 0x173   :  { %v3416_v17 = vadd.f32 %v3415_v16, %v3414_v12 }
 0x174   :  { %v4663_v18 = vadd.f32 %v3413_v10, %v2089_v37  ;;  %v2092_v39 = vadd.f32 %v3352_v15, %v4618_v57 }
 0x176   :  { %v4666_v53 = vadd.f32 %v3416_v17, %v2092_v39  ;;  %v3433_v19 = vpop.f32.mrb[64].mxu0 }
 0x177   :  { %v3497_v20 = vpop.f32.mrb[64].mxu1  ;;  %v3434_v22 = vpop.f32.mrb[65].mxu0 }
 0x178   :  { %v3435_v55 = vadd.f32 %v3434_v22, %v3433_v19  ;;  %v3498_v25 = vpop.f32.mrb[65].mxu1  ;;  %v3436_v26 = vpop.f32.mrb[66].mxu0 }
 0x179   :  { %v3499_v27 = vadd.f32 %v3498_v25, %v3497_v20  ;;  %v3500_v51 = vpop.f32.mrb[66].mxu1  ;;  %v3437_v32 = vpop.f32.mrb[67].mxu0 }
 0x17a   :  { %v2227_v54 = vadd.f32 %v3435_v55, %v4621_v11  ;;  %v3438_v33 = vadd.f32 %v3437_v32, %v3436_v26  ;;  %v3501_v34 = vpop.f32.mrb[67].mxu1 }
 0x17b   :  { %v3502_v35 = vadd.f32 %v3501_v34, %v3500_v51 }
 0x17c   :  { %v4669_v36 = vadd.f32 %v3499_v27, %v2227_v54  ;;  %v2230_v57 = vadd.f32 %v3438_v33, %v4624_v13 }
 0x17e   :  { %v4672_v5 = vadd.f32 %v3502_v35, %v2230_v57  ;;  %v3439_v38 = vpop.f32.mrb[68].mxu0 }
 0x17f   :  { %v3503_v40 = vpop.f32.mrb[68].mxu1  ;;  %v3440_v41 = vpop.f32.mrb[69].mxu0 }
 0x180   :  { %v3441_v8 = vadd.f32 %v3440_v41, %v3439_v38  ;;  %v3504_v43 = vpop.f32.mrb[69].mxu1  ;;  %v3442_v44 = vpop.f32.mrb[70].mxu0 }
 0x181   :  { %v3505_v45 = vadd.f32 %v3504_v43, %v3503_v40  ;;  %v3506_v9 = vpop.f32.mrb[70].mxu1  ;;  %v3443_v48 = vpop.f32.mrb[71].mxu0 }
 0x182   :  { %v2235_v11 = vadd.f32 %v3441_v8, %v4627_v28  ;;  %v3444_v50 = vadd.f32 %v3443_v48, %v3442_v44  ;;  %v3507_v52 = vpop.f32.mrb[71].mxu1 }
 0x183   :  { %v3508_v56 = vadd.f32 %v3507_v52, %v3506_v9 }
 0x184   :  { %v4675_v58 = vadd.f32 %v3505_v45, %v2235_v11  ;;  %v2238_v13 = vadd.f32 %v3444_v50, %v4630_v30 }
 0x186   :  { %v4678_v21 = vadd.f32 %v3508_v56, %v2238_v13  ;;  %v3445_v59 = vpop.f32.mrb[72].mxu0 }
 0x187   :  { %v3509_v60 = vpop.f32.mrb[72].mxu1  ;;  %v3446_v61 = vpop.f32.mrb[73].mxu0 }
 0x188   :  { %v3447_v23 = vadd.f32 %v3446_v61, %v3445_v59  ;;  %v3510_v63 = vpop.f32.mrb[73].mxu1  ;;  %v3448_v0 = vpop.f32.mrb[74].mxu0 }
 0x189   :  { %v3511_v1 = vadd.f32 %v3510_v63, %v3509_v60  ;;  %v3512_v31 = vpop.f32.mrb[74].mxu1  ;;  %v3449_v4 = vpop.f32.mrb[75].mxu0 }
 0x18a   :  { %v2243_v28 = vadd.f32 %v3447_v23, %v4633_v46  ;;  %v3450_v6 = vadd.f32 %v3449_v4, %v3448_v0  ;;  %v3513_v10 = vpop.f32.mrb[75].mxu1 }
 0x18b   :  { %v3514_v12 = vadd.f32 %v3513_v10, %v3512_v31 }
 0x18c   :  { %v4681_v14 = vadd.f32 %v3511_v1, %v2243_v28  ;;  %v2246_v30 = vadd.f32 %v3450_v6, %v4636_v47 }
 0x18e   :  { %v4684_v37 = vadd.f32 %v3514_v12, %v2246_v30  ;;  %v3451_v15 = vpop.f32.mrb[76].mxu0 }
 0x18f   :  { %v3515_v16 = vpop.f32.mrb[76].mxu1  ;;  %v3452_v17 = vpop.f32.mrb[77].mxu0 }
 0x190   :  { %v3453_v39 = vadd.f32 %v3452_v17, %v3451_v15  ;;  %v3516_v19 = vpop.f32.mrb[77].mxu1  ;;  %v3454_v20 = vpop.f32.mrb[78].mxu0 }
 0x191   :  { %v3517_v22 = vadd.f32 %v3516_v19, %v3515_v16  ;;  %v3518_v55 = vpop.f32.mrb[78].mxu1  ;;  %v3455_v25 = vpop.f32.mrb[79].mxu0 }
 0x192   :  { %v2251_v46 = vadd.f32 %v3453_v39, %v4639_v2  ;;  %v3456_v26 = vadd.f32 %v3455_v25, %v3454_v20  ;;  %v3519_v27 = vpop.f32.mrb[79].mxu1 }
 0x193   :  { %v3520_v51 = vadd.f32 %v3519_v27, %v3518_v55 }
 0x194   :  { %v4687_v32 = vadd.f32 %v3517_v22, %v2251_v46  ;;  %v2254_v47 = vadd.f32 %v3456_v26, %v4642_v3 }
 0x196   :  { %v4690_v54 = vadd.f32 %v3520_v51, %v2254_v47  ;;  %v3457_v33 = vpop.f32.mrb[80].mxu0 }
 0x197   :  { %v3521_v34 = vpop.f32.mrb[80].mxu1  ;;  %v3458_v35 = vpop.f32.mrb[81].mxu0 }
 0x198   :  { %v3459_v57 = vadd.f32 %v3458_v35, %v3457_v33  ;;  %v3522_v38 = vpop.f32.mrb[81].mxu1  ;;  %v3460_v40 = vpop.f32.mrb[82].mxu0 }
 0x199   :  { %v3523_v41 = vadd.f32 %v3522_v38, %v3521_v34  ;;  %v3524_v8 = vpop.f32.mrb[82].mxu1  ;;  %v3461_v43 = vpop.f32.mrb[83].mxu0 }
 0x19a   :  { %v2259_v2 = vadd.f32 %v3459_v57, %v4645_v24  ;;  %v3462_v44 = vadd.f32 %v3461_v43, %v3460_v40  ;;  %v3525_v45 = vpop.f32.mrb[83].mxu1 }
 0x19b   :  { %v3526_v9 = vadd.f32 %v3525_v45, %v3524_v8 }
 0x19c   :  { %v4693_v48 = vadd.f32 %v3523_v41, %v2259_v2  ;;  %v2262_v3 = vadd.f32 %v3462_v44, %v4648_v49 }
 0x19e   :  { %v4696_v11 = vadd.f32 %v3526_v9, %v2262_v3  ;;  %v3463_v50 = vpop.f32.mrb[84].mxu0 }
 0x19f   :  { %v3527_v52 = vpop.f32.mrb[84].mxu1  ;;  %v3464_v56 = vpop.f32.mrb[85].mxu0 }
 0x1a0   :  { %v3465_v13 = vadd.f32 %v3464_v56, %v3463_v50  ;;  %v3528_v59 = vpop.f32.mrb[85].mxu1  ;;  %v3466_v60 = vpop.f32.mrb[86].mxu0 }
 0x1a1   :  { %v3529_v61 = vadd.f32 %v3528_v59, %v3527_v52  ;;  %v3530_v23 = vpop.f32.mrb[86].mxu1  ;;  %v3467_v63 = vpop.f32.mrb[87].mxu0 }
 0x1a2   :  { %v2267_v24 = vadd.f32 %v3465_v13, %v4651_v42  ;;  %v3468_v0 = vadd.f32 %v3467_v63, %v3466_v60  ;;  %v3531_v1 = vpop.f32.mrb[87].mxu1 }
 0x1a3   :  { %v3532_v31 = vadd.f32 %v3531_v1, %v3530_v23 }
 0x1a4   :  { %v4699_v4 = vadd.f32 %v3529_v61, %v2267_v24  ;;  %v2270_v49 = vadd.f32 %v3468_v0, %v4654_v7 }
 0x1a6   :  { %v4702_v28 = vadd.f32 %v3532_v31, %v2270_v49  ;;  %v3469_v6 = vpop.f32.mrb[88].mxu0 }
 0x1a7   :  { %v3533_v10 = vpop.f32.mrb[88].mxu1  ;;  %v3470_v12 = vpop.f32.mrb[89].mxu0 }
 0x1a8   :  { %v3471_v30 = vadd.f32 %v3470_v12, %v3469_v6  ;;  %v3534_v15 = vpop.f32.mrb[89].mxu1  ;;  %v3472_v16 = vpop.f32.mrb[90].mxu0 }
 0x1a9   :  { %v3535_v17 = vadd.f32 %v3534_v15, %v3533_v10  ;;  %v3536_v39 = vpop.f32.mrb[90].mxu1  ;;  %v3473_v19 = vpop.f32.mrb[91].mxu0 }
 0x1aa   :  { %v2275_v42 = vadd.f32 %v3471_v30, %v4657_v62  ;;  %v3474_v20 = vadd.f32 %v3473_v19, %v3472_v16  ;;  %v3537_v22 = vpop.f32.mrb[91].mxu1 }
 0x1ab   :  { %v3538_v55 = vadd.f32 %v3537_v22, %v3536_v39 }
 0x1ac   :  { %v4705_v25 = vadd.f32 %v3535_v17, %v2275_v42  ;;  %v2278_v7 = vadd.f32 %v3474_v20, %v4660_v29 }
 0x1ae   :  { %v4708_v46 = vadd.f32 %v3538_v55, %v2278_v7  ;;  %v3475_v26 = vpop.f32.mrb[92].mxu0 }
 0x1af   :  { %v3539_v27 = vpop.f32.mrb[92].mxu1  ;;  %v3476_v51 = vpop.f32.mrb[93].mxu0 }
 0x1b0   :  { %v3477_v47 = vadd.f32 %v3476_v51, %v3475_v26  ;;  %v3540_v33 = vpop.f32.mrb[93].mxu1  ;;  %v3478_v34 = vpop.f32.mrb[94].mxu0 }
 0x1b1   :  { %v3541_v35 = vadd.f32 %v3540_v33, %v3539_v27  ;;  %v3542_v57 = vpop.f32.mrb[94].mxu1  ;;  %v3479_v38 = vpop.f32.mrb[95].mxu0 }
 0x1b2   :  { %v2283_v62 = vadd.f32 %v3477_v47, %v4663_v18  ;;  %v3480_v40 = vadd.f32 %v3479_v38, %v3478_v34  ;;  %v3543_v41 = vpop.f32.mrb[95].mxu1 }
 0x1b3   :  { %v3544_v8 = vadd.f32 %v3543_v41, %v3542_v57 }
 0x1b4   :  { %v4711_v43 = vadd.f32 %v3541_v35, %v2283_v62  ;;  %v2286_v29 = vadd.f32 %v3480_v40, %v4666_v53 }
 0x1b6   :  { %v4714_v2 = vadd.f32 %v3544_v8, %v2286_v29  ;;  %v3561_v44 = vpop.f32.mrb[96].mxu0 }
 0x1b7   :  { %v3625_v45 = vpop.f32.mrb[96].mxu1  ;;  %v3562_v9 = vpop.f32.mrb[97].mxu0 }
 0x1b8   :  { %v3563_v3 = vadd.f32 %v3562_v9, %v3561_v44  ;;  %v3626_v50 = vpop.f32.mrb[97].mxu1  ;;  %v3564_v52 = vpop.f32.mrb[98].mxu0 }
 0x1b9   :  { %v3627_v56 = vadd.f32 %v3626_v50, %v3625_v45  ;;  %v3628_v13 = vpop.f32.mrb[98].mxu1  ;;  %v3565_v59 = vpop.f32.mrb[99].mxu0 }
 0x1ba   :  { %v2421_v18 = vadd.f32 %v3563_v3, %v4669_v36  ;;  %v3566_v60 = vadd.f32 %v3565_v59, %v3564_v52  ;;  %v3629_v61 = vpop.f32.mrb[99].mxu1 }
 0x1bb   :  { %v3630_v23 = vadd.f32 %v3629_v61, %v3628_v13 }
 0x1bc   :  { %v4717_v63 = vadd.f32 %v3627_v56, %v2421_v18  ;;  %v2424_v53 = vadd.f32 %v3566_v60, %v4672_v5 }
 0x1be   :  { %v4720_v24 = vadd.f32 %v3630_v23, %v2424_v53  ;;  %v3567_v0 = vpop.f32.mrb[100].mxu0  ;;  %v2606_v49 = vmul.f32 %v4717_v63, %v4717_v63 }
 0x1bf   :  { %v3631_v1 = vpop.f32.mrb[100].mxu1  ;;  %v3568_v31 = vpop.f32.mrb[101].mxu0 }
 0x1c0   :  { %v2580_v6 = vadd.f32 %v4720_v24, %v4717_v63  ;;  %v2607_v36 = vmul.f32 %v4720_v24, %v4720_v24  ;;  %v3569_v10 = vadd.f32 %v3568_v31, %v3567_v0  ;;  %v3632_v12 = vpop.f32.mrb[101].mxu1  ;;  %v3570_v30 = vpop.f32.mrb[102].mxu0 }
 0x1c1   :  { %v3633_v15 = vadd.f32 %v3632_v12, %v3631_v1  ;;  %v3634_v16 = vpop.f32.mrb[102].mxu1  ;;  %v3571_v5 = vpop.f32.mrb[103].mxu0 }
 0x1c2   :  { %v2622_v17 = vadd.f32 %v2607_v36, %v2606_v49  ;;  %v2429_v39 = vadd.f32 %v3569_v10, %v4675_v58  ;;  %v3572_v19 = vadd.f32 %v3571_v5, %v3570_v30  ;;  %v3635_v42 = vpop.f32.mrb[103].mxu1 }
 0x1c3   :  { %v3636_v20 = vadd.f32 %v3635_v42, %v3634_v16 }
 0x1c4   :  { %v4729_v22 = vadd.f32 %v3633_v15, %v2429_v39  ;;  %v2432_v55 = vadd.f32 %v3572_v19, %v4678_v21 }
 0x1c6   :  { %v2581_v7 = vadd.f32 %v2580_v6, %v4729_v22  ;;  %v2608_v26 = vmul.f32 %v4729_v22, %v4729_v22  ;;  %v4735_v27 = vadd.f32 %v3636_v20, %v2432_v55  ;;  %v3573_v51 = vpop.f32.mrb[104].mxu0 }
 0x1c7   :  { %v3637_v47 = vpop.f32.mrb[104].mxu1  ;;  %v3574_v33 = vpop.f32.mrb[105].mxu0 }
 0x1c8   :  { %v2623_v34 = vadd.f32 %v2622_v17, %v2608_v26  ;;  %v2582_v58 = vadd.f32 %v2581_v7, %v4735_v27  ;;  %v2609_v35 = vmul.f32 %v4735_v27, %v4735_v27  ;;  %v3575_v57 = vadd.f32 %v3574_v33, %v3573_v51  ;;  %v3638_v38 = vpop.f32.mrb[105].mxu1  ;;  %v3576_v62 = vpop.f32.mrb[106].mxu0 }
 0x1c9   :  { %v3639_v21 = vadd.f32 %v3638_v38, %v3637_v47  ;;  %v3640_v40 = vpop.f32.mrb[106].mxu1  ;;  %v3577_v41 = vpop.f32.mrb[107].mxu0 }
 0x1ca   :  { %v2624_v8 = vadd.f32 %v2623_v34, %v2609_v35  ;;  %v2437_v29 = vadd.f32 %v3575_v57, %v4681_v14  ;;  %v3578_v44 = vadd.f32 %v3577_v41, %v3576_v62  ;;  %v3641_v45 = vpop.f32.mrb[107].mxu1 }
 0x1cb   :  { %v3642_v9 = vadd.f32 %v3641_v45, %v3640_v40 }
 0x1cc   :  { %v4741_v3 = vadd.f32 %v3639_v21, %v2437_v29  ;;  %v2440_v50 = vadd.f32 %v3578_v44, %v4684_v37 }
 0x1ce   :  { %v2583_v52 = vadd.f32 %v2582_v58, %v4741_v3  ;;  %v2610_v56 = vmul.f32 %v4741_v3, %v4741_v3  ;;  %v4747_v13 = vadd.f32 %v3642_v9, %v2440_v50  ;;  %v3579_v59 = vpop.f32.mrb[108].mxu0 }
 0x1cf   :  { %v3643_v18 = vpop.f32.mrb[108].mxu1  ;;  %v3580_v60 = vpop.f32.mrb[109].mxu0 }
 0x1d0   :  { %v2625_v61 = vadd.f32 %v2624_v8, %v2610_v56  ;;  %v2584_v14 = vadd.f32 %v2583_v52, %v4747_v13  ;;  %v2611_v23 = vmul.f32 %v4747_v13, %v4747_v13  ;;  %v3581_v53 = vadd.f32 %v3580_v60, %v3579_v59  ;;  %v3644_v0 = vpop.f32.mrb[109].mxu1  ;;  %v3582_v1 = vpop.f32.mrb[110].mxu0 }
 0x1d1   :  { %v3645_v37 = vadd.f32 %v3644_v0, %v3643_v18  ;;  %v3646_v31 = vpop.f32.mrb[110].mxu1  ;;  %v3583_v49 = vpop.f32.mrb[111].mxu0 }
 0x1d2   :  { %v2626_v6 = vadd.f32 %v2625_v61, %v2611_v23  ;;  %v2445_v36 = vadd.f32 %v3581_v53, %v4687_v32  ;;  %v3584_v10 = vadd.f32 %v3583_v49, %v3582_v1  ;;  %v3647_v12 = vpop.f32.mrb[111].mxu1 }
 0x1d3   :  { %v3648_v30 = vadd.f32 %v3647_v12, %v3646_v31 }
 0x1d4   :  { %v4753_v15 = vadd.f32 %v3645_v37, %v2445_v36  ;;  %v2448_v16 = vadd.f32 %v3584_v10, %v4690_v54 }
 0x1d6   :  { %v2585_v5 = vadd.f32 %v2584_v14, %v4753_v15  ;;  %v2612_v17 = vmul.f32 %v4753_v15, %v4753_v15  ;;  %v4759_v39 = vadd.f32 %v3648_v30, %v2448_v16  ;;  %v3585_v19 = vpop.f32.mrb[112].mxu0 }
 0x1d7   :  { %v3649_v42 = vpop.f32.mrb[112].mxu1  ;;  %v3586_v20 = vpop.f32.mrb[113].mxu0 }
 0x1d8   :  { %v2627_v55 = vadd.f32 %v2626_v6, %v2612_v17  ;;  %v2586_v32 = vadd.f32 %v2585_v5, %v4759_v39  ;;  %v2613_v7 = vmul.f32 %v4759_v39, %v4759_v39  ;;  %v3587_v26 = vadd.f32 %v3586_v20, %v3585_v19  ;;  %v3650_v51 = vpop.f32.mrb[113].mxu1  ;;  %v3588_v47 = vpop.f32.mrb[114].mxu0 }
 0x1d9   :  { %v3651_v54 = vadd.f32 %v3650_v51, %v3649_v42  ;;  %v3652_v33 = vpop.f32.mrb[114].mxu1  ;;  %v3589_v34 = vpop.f32.mrb[115].mxu0 }
 0x1da   :  { %v2587_v58 = vrot.slane %v2586_v32, 4  ;;  %v2628_v35 = vadd.f32 %v2627_v55, %v2613_v7  ;;  %v2453_v57 = vadd.f32 %v3587_v26, %v4693_v48  ;;  %v3590_v38 = vadd.f32 %v3589_v34, %v3588_v47  ;;  %v3653_v62 = vpop.f32.mrb[115].mxu1 }
 0x1db   :  { %v3654_v21 = vadd.f32 %v3653_v62, %v3652_v33 }
 0x1dc   :  { %v2588_v40 = vadd.f32 %v2587_v58, %v2586_v32  ;;  %v2629_v41 = vrot.slane %v2628_v35, 4  ;;  %v4765_v8 = vadd.f32 %v3651_v54, %v2453_v57  ;;  %v2456_v29 = vadd.f32 %v3590_v38, %v4696_v11 }
 0x1de   :  { %v2589_v44 = vrot.slane %v2588_v40, 2  ;;  %v2630_v45 = vadd.f32 %v2629_v41, %v2628_v35  ;;  %v4768_v9 = vadd.f32 %v3654_v21, %v2456_v29  ;;  %v3591_v50 = vpop.f32.mrb[116].mxu0  ;;  %v2614_v52 = vmul.f32 %v4765_v8, %v4765_v8 }
 0x1df   :  { %v3655_v56 = vpop.f32.mrb[116].mxu1  ;;  %v3592_v59 = vpop.f32.mrb[117].mxu0 }
 0x1e0   :  { %v2590_v48 = vadd.f32 %v2589_v44, %v2588_v40  ;;  %v2631_v18 = vrot.slane %v2630_v45, 2  ;;  %v2593_v60 = vadd.f32 %v4768_v9, %v4765_v8  ;;  %v2615_v61 = vmul.f32 %v4768_v9, %v4768_v9  ;;  %v3656_v14 = vpop.f32.mrb[117].mxu1  ;;  %v3594_v11 = vpop.f32.mrb[118].mxu0 }
 0x1e1   :  { %v3593_v23 = vadd.f32 %v3592_v59, %v3591_v50  ;;  %v3657_v53 = vadd.f32 %v3656_v14, %v3655_v56  ;;  %v3658_v0 = vpop.f32.mrb[118].mxu1  ;;  %v3595_v1 = vpop.f32.mrb[119].mxu0 }
 0x1e2   :  { %v2591_v37 = vrot.slane %v2590_v48, 1  ;;  %v2632_v31 = vadd.f32 %v2631_v18, %v2630_v45  ;;  %v2635_v49 = vadd.f32 %v2615_v61, %v2614_v52  ;;  %v3596_v6 = vadd.f32 %v3595_v1, %v3594_v11  ;;  %v3659_v36 = vpop.f32.mrb[119].mxu1 }
 0x1e3   :  { %v2461_v10 = vadd.f32 %v3593_v23, %v4699_v4  ;;  %v3660_v12 = vadd.f32 %v3659_v36, %v3658_v0 }
 0x1e4   :  { %v2592_v30 = vadd.f32 %v2591_v37, %v2590_v48  ;;  %v2633_v16 = vrot.slane %v2632_v31, 1  ;;  %v2464_v5 = vadd.f32 %v3596_v6, %v4702_v28 }
 0x1e5   :  { %v4778_v17 = vadd.f32 %v3657_v53, %v2461_v10 }
 0x1e6   :  { %v2634_v19 = vadd.f32 %v2633_v16, %v2632_v31  ;;  %v4780_v42 = vmul.f32 0.015625, %v2592_v30  ;;  %v4782_v20 = vadd.f32 %v3660_v12, %v2464_v5  ;;  %v3597_v55 = vpop.f32.mrb[120].mxu0 }
 0x1e7   :  { %v2594_v32 = vadd.f32 %v2593_v60, %v4778_v17  ;;  %v2616_v7 = vmul.f32 %v4778_v17, %v4778_v17  ;;  %v3661_v26 = vpop.f32.mrb[120].mxu1  ;;  %v3598_v4 = vpop.f32.mrb[121].mxu0 }
 0x1e8   :  { %v2650_v51 = vmul.f32 0.015625, %v2634_v19  ;;  %v2652_v47 = vmul.f32 %v4780_v42, %v4780_v42  ;;  %v2658_v28 = vsub.f32 %v4717_v63, %v4780_v42  ;;  %v2659_v54 = vsub.f32 %v4720_v24, %v4780_v42  ;;  %v3662_v33 = vpop.f32.mrb[121].mxu1  ;;  %v3600_v34 = vpop.f32.mrb[122].mxu0 }
 0x1e9   :  { %v2660_v58 = vsub.f32 %v4729_v22, %v4780_v42  ;;  %v2661_v35 = vsub.f32 %v4735_v27, %v4780_v42  ;;  %v2662_v57 = vsub.f32 %v4741_v3, %v4780_v42  ;;  %v2663_v38 = vsub.f32 %v4747_v13, %v4780_v42  ;;  %v3664_v62 = vpop.f32.mrb[122].mxu1  ;;  %v3601_v21 = vpop.f32.mrb[123].mxu0 }
 0x1ea   :  { %v2654_v63 = vsub.f32 %v2650_v51, %v2652_v47  ;;  %v2664_v24 = vsub.f32 %v4753_v15, %v4780_v42  ;;  %v2665_v40 = vsub.f32 %v4759_v39, %v4780_v42  ;;  %v2636_v41 = vadd.f32 %v2635_v49, %v2616_v7  ;;  %v3665_v22 = vpop.f32.mrb[123].mxu1 }
 0x1eb   :  { %v2595_v29 = vadd.f32 %v2594_v32, %v4782_v20  ;;  %v2617_v27 = vmul.f32 %v4782_v20, %v4782_v20  ;;  %v3599_v3 = vadd.f32 %v3598_v4, %v3597_v55  ;;  %v3663_v44 = vadd.f32 %v3662_v33, %v3661_v26 }
 0x1ec   :  { %v2656_v45 = vmax.f32 %v2654_v63, 0.0  ;;  %v3602_v13 = vadd.f32 %v3601_v21, %v3600_v34  ;;  %v3666_v50 = vadd.f32 %v3665_v22, %v3664_v62 }
 0x1ed   :  { %v2637_v52 = vadd.f32 %v2636_v41, %v2617_v27  ;;  %v2469_v56 = vadd.f32 %v3599_v3, %v4705_v25 }
 0x1ee   :  { %v2674_v59 = vadd.f32 1e-05, %v2656_v45  ;;  %v2472_v15 = vadd.f32 %v3602_v13, %v4708_v46  ;;  %v3603_v48 = vpop.f32.mrb[124].mxu0 }
 0x1ef   :  { %v4810_v39 = vadd.f32 %v3663_v44, %v2469_v56  ;;  %v3667_v18 = vpop.f32.mrb[124].mxu1  ;;  %v3604_v60 = vpop.f32.mrb[125].mxu0 }
 0x1f0   :  { %3801 = vrsqrt.f32 %v2674_v59  ;;  %v4812_v61 = vadd.f32 %v3666_v50, %v2472_v15  ;;  %v3605_v14 = vadd.f32 %v3604_v60, %v3603_v48  ;;  %v3668_v11 = vpop.f32.mrb[125].mxu1  ;;  %v3606_v23 = vpop.f32.mrb[126].mxu0 }
 0x1f1   :  { %v2596_v53 = vadd.f32 %v2595_v29, %v4810_v39  ;;  %v2618_v0 = vmul.f32 %v4810_v39, %v4810_v39  ;;  %v3669_v25 = vadd.f32 %v3668_v11, %v3667_v18  ;;  %v3670_v1 = vpop.f32.mrb[126].mxu1  ;;  %v3607_v37 = vpop.f32.mrb[127].mxu0 }
 0x1f2   :  { %v2619_v46 = vmul.f32 %v4812_v61, %v4812_v61  ;;  %v2477_v31 = vadd.f32 %v3605_v14, %v4711_v43  ;;  %v3608_v49 = vadd.f32 %v3607_v37, %v3606_v23  ;;  %v3671_v6 = vpop.f32.mrb[127].mxu1 }
 0x1f3   :  { %v2638_v36 = vadd.f32 %v2637_v52, %v2618_v0  ;;  %v2597_v10 = vadd.f32 %v2596_v53, %v4812_v61  ;;  %v3672_v12 = vadd.f32 %v3671_v6, %v3670_v1 }
 0x1f4   :  { %v4821_v30 = vadd.f32 %v3669_v25, %v2477_v31  ;;  %v2480_v16 = vadd.f32 %v3608_v49, %v4714_v2 }
 0x1f5   :  { %v2639_v5 = vadd.f32 %v2638_v36, %v2619_v46 }
 0x1f6   :  { %v2598_v19 = vadd.f32 %v2597_v10, %v4821_v30  ;;  %v2620_v42 = vmul.f32 %v4821_v30, %v4821_v30  ;;  %v4827_v55 = vadd.f32 %v3672_v12, %v2480_v16 }
 0x1f8   :  { %v2640_v32 = vadd.f32 %v2639_v5, %v2620_v42  ;;  %v2599_v43 = vadd.f32 %v2598_v19, %v4827_v55  ;;  %v2621_v7 = vmul.f32 %v4827_v55, %v4827_v55 }
 0x1fa   :  { %v3802_v26 = vpop.eup %3801  ;;  %v2600_v4 = vrot.slane %v2599_v43, 4  ;;  %v2641_v51 = vadd.f32 %v2640_v32, %v2621_v7 }
 0x1fb   :  { %v2678_v47 = vmul.f32 %v3802_v26, %v2658_v28  ;;  %v2679_v33 = vmul.f32 %v3802_v26, %v2659_v54  ;;  %v2680_v2 = vmul.f32 %v3802_v26, %v2660_v58  ;;  %v2681_v34 = vmul.f32 %v3802_v26, %v2661_v35 }
 0x1fc   :  { %v2682_v62 = vmul.f32 %v3802_v26, %v2662_v57  ;;  %v2683_v21 = vmul.f32 %v3802_v26, %v2663_v38  ;;  %v2684_v63 = vmul.f32 %v3802_v26, %v2664_v24  ;;  %v2685_v41 = vmul.f32 %v3802_v26, %v2665_v40 }
 0x1fd   :  { %vm2694_vm0 = vcmp.gt.f32.partialorder %v2678_v47, 0.0  ;;  %vm2695_vm1 = vcmp.gt.f32.partialorder %v2679_v33, 0.0  ;;  %vm2696_vm2 = vcmp.gt.f32.partialorder %v2680_v2, 0.0  ;;  %vm2697_vm3 = vcmp.gt.f32.partialorder %v2681_v34, 0.0 }
 0x1fe   :  { %vm2698_vm4 = vcmp.gt.f32.partialorder %v2682_v62, 0.0  ;;  %vm2699_vm5 = vcmp.gt.f32.partialorder %v2683_v21, 0.0  ;;  %vm2700_vm6 = vcmp.gt.f32.partialorder %v2684_v63, 0.0  ;;  %vm2701_vm7 = vcmp.gt.f32.partialorder %v2685_v41, 0.0 }
 0x1ff   :  { %v2710_v22 = vmul.f32 0.2, %v2678_v47  ;;  %v2711_v29 = vmul.f32 0.2, %v2679_v33  ;;  %v2712_v27 = vmul.f32 0.2, %v2680_v2  ;;  %v2601_v58 = vadd.f32 %v2600_v4, %v2599_v43 }
 0x200   :  { %v2713_v3 = vmul.f32 0.2, %v2681_v34  ;;  %v2714_v28 = vmul.f32 0.2, %v2682_v62  ;;  %v2715_v54 = vmul.f32 0.2, %v2683_v21 }
 0x201   :  { %v2716_v35 = vmul.f32 0.2, %v2684_v63  ;;  %v2717_v57 = vmul.f32 0.2, %v2685_v41  ;;  %v2726_v38 = vsel %vm2694_vm0, %v2678_v47, %v2710_v22  ;;  %v2727_v24 = vsel %vm2695_vm1, %v2679_v33, %v2711_v29 }
 0x202   :  { %v2728_v40 = vsel %vm2696_vm2, %v2680_v2, %v2712_v27  ;;  %v2729_v44 = vsel %vm2697_vm3, %v2681_v34, %v2713_v3  ;;  %v2730_v45 = vsel %vm2698_vm4, %v2682_v62, %v2714_v28  ;;  %v2731_v13 = vsel %vm2699_vm5, %v2683_v21, %v2715_v54 }
 0x203   :  { %v2732_v50 = vsel %vm2700_vm6, %v2684_v63, %v2716_v35  ;;  %v2733_v52 = vsel %vm2701_vm7, %v2685_v41, %v2717_v57  ;;  %v3117_v56 = vpack.c.bf16 %v2727_v24, %v2726_v38  ;;  %v3122_v59 = vpack.c.bf16 %v2729_v44, %v2728_v40 }
 0x204   :  { %v3127_v15 = vpack.c.bf16 %v2731_v13, %v2730_v45  ;;  %v3132_v48 = vpack.c.bf16 %v2733_v52, %v2732_v50  ;;  %v2602_v18 = vrot.slane %v2601_v58, 2  ;;  %v2642_v60 = vrot.slane %v2641_v51, 4 }
 0x205   :  { %3118 = vst [vmem:[%s4882_s2] sm:$0xff] %v3117_v56   ;;  %3154 = vst [vmem:[%s4882_s2 + $0x8] sm:$0xff] %v3122_v59  }
 0x206   :  { %3155 = vst [vmem:[%s4882_s2 + $0x10] sm:$0xff] %v3127_v15   ;;  %3156 = vst [vmem:[%s4882_s2 + $0x18] sm:$0xff] %v3132_v48   ;;  %v2603_v14 = vadd.f32 %v2602_v18, %v2601_v58  ;;  %v2643_v11 = vadd.f32 %v2642_v60, %v2641_v51 }
 0x208   :  { %v2604_v23 = vrot.slane %v2603_v14, 1  ;;  %v2644_v53 = vrot.slane %v2643_v11, 2 }
 0x20a   :  { %v2605_v0 = vadd.f32 %v2604_v23, %v2603_v14  ;;  %v2645_v25 = vadd.f32 %v2644_v53, %v2643_v11 }
 0x20c   :  { %v2646_v1 = vrot.slane %v2645_v25, 1  ;;  %v2649_v37 = vmul.f32 0.015625, %v2605_v0 }
 0x20e   :  { %v2647_v46 = vadd.f32 %v2646_v1, %v2645_v25  ;;  %v2653_v31 = vmul.f32 %v2649_v37, %v2649_v37  ;;  %v2666_v49 = vsub.f32 %v4765_v8, %v2649_v37  ;;  %v2667_v6 = vsub.f32 %v4768_v9, %v2649_v37 }
 0x20f   :  { %v2668_v36 = vsub.f32 %v4778_v17, %v2649_v37  ;;  %v2669_v10 = vsub.f32 %v4782_v20, %v2649_v37  ;;  %v2670_v12 = vsub.f32 %v4810_v39, %v2649_v37  ;;  %v2671_v16 = vsub.f32 %v4812_v61, %v2649_v37 }
 0x210   :  { %v2651_v5 = vmul.f32 0.015625, %v2647_v46  ;;  %v2672_v19 = vsub.f32 %v4821_v30, %v2649_v37  ;;  %v2673_v42 = vsub.f32 %v4827_v55, %v2649_v37 }
 0x212   :  { %v2655_v32 = vsub.f32 %v2651_v5, %v2653_v31 }
 0x214   :  { %v2657_v43 = vmax.f32 %v2655_v32, 0.0 }
 0x216   :  { %v2675_v7 = vadd.f32 1e-05, %v2657_v43 }
 0x218   :  { %3803 = vrsqrt.f32 %v2675_v7 }
 0x222   :  { %v3804_v8 = vpop.eup %3803 }
 0x223   :  { %v2686_v26 = vmul.f32 %v3804_v8, %v2666_v49  ;;  %v2687_v9 = vmul.f32 %v3804_v8, %v2667_v6  ;;  %v2688_v4 = vmul.f32 %v3804_v8, %v2668_v36  ;;  %v2689_v17 = vmul.f32 %v3804_v8, %v2669_v10 }
 0x224   :  { %v2690_v51 = vmul.f32 %v3804_v8, %v2670_v12  ;;  %v2691_v20 = vmul.f32 %v3804_v8, %v2671_v16  ;;  %v2692_v47 = vmul.f32 %v3804_v8, %v2672_v19  ;;  %v2693_v39 = vmul.f32 %v3804_v8, %v2673_v42 }
 0x225   :  { %vm2702_vm8 = vcmp.gt.f32.partialorder %v2686_v26, 0.0  ;;  %vm2703_vm9 = vcmp.gt.f32.partialorder %v2687_v9, 0.0  ;;  %vm2704_vm10 = vcmp.gt.f32.partialorder %v2688_v4, 0.0  ;;  %vm2705_vm11 = vcmp.gt.f32.partialorder %v2689_v17, 0.0 }
 0x226   :  { %vm2706_vm12 = vcmp.gt.f32.partialorder %v2690_v51, 0.0  ;;  %vm2707_vm13 = vcmp.gt.f32.partialorder %v2691_v20, 0.0  ;;  %vm2708_vm14 = vcmp.gt.f32.partialorder %v2692_v47, 0.0  ;;  %vm2709_vm15 = vcmp.gt.f32.partialorder %v2693_v39, 0.0 }
 0x227   :  { %v2718_v61 = vmul.f32 0.2, %v2686_v26  ;;  %v2719_v30 = vmul.f32 0.2, %v2687_v9  ;;  %v2720_v55 = vmul.f32 0.2, %v2688_v4 }
 0x228   :  { %v2721_v33 = vmul.f32 0.2, %v2689_v17  ;;  %v2722_v2 = vmul.f32 0.2, %v2690_v51  ;;  %v2723_v34 = vmul.f32 0.2, %v2691_v20 }
 0x229   :  { %v2724_v62 = vmul.f32 0.2, %v2692_v47  ;;  %v2725_v21 = vmul.f32 0.2, %v2693_v39  ;;  %v2734_v63 = vsel %vm2702_vm8, %v2686_v26, %v2718_v61  ;;  %v2735_v41 = vsel %vm2703_vm9, %v2687_v9, %v2719_v30 }
 0x22a   :  { %v2736_v22 = vsel %vm2704_vm10, %v2688_v4, %v2720_v55  ;;  %v2737_v29 = vsel %vm2705_vm11, %v2689_v17, %v2721_v33  ;;  %v2738_v27 = vsel %vm2706_vm12, %v2690_v51, %v2722_v2  ;;  %v2739_v3 = vsel %vm2707_vm13, %v2691_v20, %v2723_v34 }
 0x22b   :  { %v2740_v28 = vsel %vm2708_vm14, %v2692_v47, %v2724_v62  ;;  %v2741_v54 = vsel %vm2709_vm15, %v2693_v39, %v2725_v21  ;;  %v3137_v58 = vpack.c.bf16 %v2735_v41, %v2734_v63  ;;  %v3142_v35 = vpack.c.bf16 %v2737_v29, %v2736_v22 }
 0x22c   :  { %v3147_v57 = vpack.c.bf16 %v2739_v3, %v2738_v27  ;;  %v3152_v38 = vpack.c.bf16 %v2741_v54, %v2740_v28 }
 0x22d   :  { %3157 = vst [vmem:[%s4882_s2 + $0x20] sm:$0xff] %v3137_v58   ;;  %3158 = vst [vmem:[%s4882_s2 + $0x28] sm:$0xff] %v3142_v35  }
 0x22e   :  { %3159 = vst [vmem:[%s4882_s2 + $0x30] sm:$0xff] %v3147_v57   ;;  %3160 = vst [vmem:[%s4882_s2 + $0x38] sm:$0xff] %v3152_v38  }

// kernel: discriminator_forward.7
= control target key start
LH: loop header
LB: loop body
LE: loop exit
PB: predicated region body
PF: predicated region fallthrough
CT: control target
= control target key end

     0   :  { %s4058_s1 = inlined_call_operand.vmem [shape: bf16[2048,256], index: 1, kind: input, shape index: {}]   ;;  %s4059_s0 = inlined_call_operand.vmem [shape: bf16[32,2048], index: 0, kind: input, shape index: {}]   ;;  %s4060_s2 = inlined_call_operand.vmem [shape: bf16[32,256], index: 2, kind: output, shape index: {}]  }
   0x1   :  { %v2679_v0 = vld [vmem:[%s4058_s1 + $0x4] ss:$8 sps:$4 sm:$0xff]   ;;  %v2683_v2 = vld [vmem:[%s4058_s1] ss:$8 sps:$4 sm:$0xff]   ;;  %v2685_v4 = vld [vmem:[%s4058_s1 + $0x14] ss:$8 sps:$4 sm:$0xff]  }
   0x2   :  { %v2681_v1 = vld [vmem:[%s4058_s1 + $0x404] ss:$8 sps:$4 sm:$0xff]   ;;  %1739 = vmatprep.subr.bf16.mxu1 %v2679_v0  ;;  %v2684_v3 = vld [vmem:[%s4058_s1 + $0x400] ss:$8 sps:$4 sm:$0xff]   ;;  %v2687_v5 = vld [vmem:[%s4058_s1 + $0x414] ss:$8 sps:$4 sm:$0xff]  }
   0x3   :  { %1951 = vmatprep.subr.bf16.mxu0 %v2681_v1  ;;  %1740 = vmatpush1.bf16.msra.mxu1 %v2683_v2  ;;  %v2689_v6 = vld [vmem:[%s4058_s1 + $0x10] ss:$8 sps:$4 sm:$0xff]   ;;  %v2691_v8 = vld [vmem:[%s4058_s1 + $0x24] ss:$8 sps:$4 sm:$0xff]   ;;  %v2695_v10 = vld [vmem:[%s4058_s1 + $0x20] ss:$8 sps:$4 sm:$0xff]  }
   0x4   :  { %1952 = vmatpush1.bf16.msra.mxu0 %v2684_v3  ;;  %1741 = vmatprep.subr.bf16.mxu1 %v2685_v4  ;;  %v2690_v7 = vld [vmem:[%s4058_s1 + $0x410] ss:$8 sps:$4 sm:$0xff]   ;;  %v2693_v9 = vld [vmem:[%s4058_s1 + $0x424] ss:$8 sps:$4 sm:$0xff]   ;;  %v2696_v11 = vld [vmem:[%s4058_s1 + $0x420] ss:$8 sps:$4 sm:$0xff]  }
   0x5   :  { %1953 = vmatprep.subr.bf16.mxu0 %v2687_v5  ;;  %v2697_v12 = vld [vmem:[%s4058_s1 + $0x34] ss:$8 sps:$4 sm:$0xff]   ;;  %v2701_v14 = vld [vmem:[%s4058_s1 + $0x30] ss:$8 sps:$4 sm:$0xff]   ;;  %v2703_v16 = vld [vmem:[%s4058_s1 + $0x44] ss:$8 sps:$4 sm:$0xff]  }
   0x6   :  { %v2699_v13 = vld [vmem:[%s4058_s1 + $0x434] ss:$8 sps:$4 sm:$0xff]   ;;  %v2702_v15 = vld [vmem:[%s4058_s1 + $0x430] ss:$8 sps:$4 sm:$0xff]   ;;  %v2705_v17 = vld [vmem:[%s4058_s1 + $0x444] ss:$8 sps:$4 sm:$0xff]  }
   0x7   :  { %1742 = vmatpush1.bf16.msra.mxu1 %v2689_v6  ;;  %v2707_v18 = vld [vmem:[%s4058_s1 + $0x40] ss:$8 sps:$4 sm:$0xff]   ;;  %v2709_v20 = vld [vmem:[%s4058_s1 + $0x54] ss:$8 sps:$4 sm:$0xff]   ;;  %v2713_v22 = vld [vmem:[%s4058_s1 + $0x50] ss:$8 sps:$4 sm:$0xff]  }
   0x8   :  { %1954 = vmatpush1.bf16.msra.mxu0 %v2690_v7  ;;  %1743 = vmatprep.subr.bf16.mxu1 %v2691_v8  ;;  %v2708_v19 = vld [vmem:[%s4058_s1 + $0x440] ss:$8 sps:$4 sm:$0xff]   ;;  %v2711_v21 = vld [vmem:[%s4058_s1 + $0x454] ss:$8 sps:$4 sm:$0xff]   ;;  %v2714_v23 = vld [vmem:[%s4058_s1 + $0x450] ss:$8 sps:$4 sm:$0xff]  }
   0x9   :  { %1955 = vmatprep.subr.bf16.mxu0 %v2693_v9  ;;  %v2715_v24 = vld [vmem:[%s4058_s1 + $0x64] ss:$8 sps:$4 sm:$0xff]   ;;  %v2719_v26 = vld [vmem:[%s4058_s1 + $0x60] ss:$8 sps:$4 sm:$0xff]   ;;  %v2721_v28 = vld [vmem:[%s4058_s1 + $0x74] ss:$8 sps:$4 sm:$0xff]  }
   0xa   :  { %v2717_v25 = vld [vmem:[%s4058_s1 + $0x464] ss:$8 sps:$4 sm:$0xff]   ;;  %v2720_v27 = vld [vmem:[%s4058_s1 + $0x460] ss:$8 sps:$4 sm:$0xff]   ;;  %v2723_v29 = vld [vmem:[%s4058_s1 + $0x474] ss:$8 sps:$4 sm:$0xff]  }
   0xb   :  { %1744 = vmatpush1.bf16.msra.mxu1 %v2695_v10  ;;  %v2725_v30 = vld [vmem:[%s4058_s1 + $0x70] ss:$8 sps:$4 sm:$0xff]   ;;  %v2727_v32 = vld [vmem:[%s4058_s1 + $0x84] ss:$8 sps:$4 sm:$0xff]   ;;  %v2731_v34 = vld [vmem:[%s4058_s1 + $0x80] ss:$8 sps:$4 sm:$0xff]  }
   0xc   :  { %1956 = vmatpush1.bf16.msra.mxu0 %v2696_v11  ;;  %1745 = vmatprep.subr.bf16.mxu1 %v2697_v12  ;;  %v2726_v31 = vld [vmem:[%s4058_s1 + $0x470] ss:$8 sps:$4 sm:$0xff]   ;;  %v2729_v33 = vld [vmem:[%s4058_s1 + $0x484] ss:$8 sps:$4 sm:$0xff]   ;;  %v2732_v35 = vld [vmem:[%s4058_s1 + $0x480] ss:$8 sps:$4 sm:$0xff]  }
   0xd   :  { %1957 = vmatprep.subr.bf16.mxu0 %v2699_v13  ;;  %v2733_v36 = vld [vmem:[%s4058_s1 + $0x94] ss:$8 sps:$4 sm:$0xff]   ;;  %v2737_v38 = vld [vmem:[%s4058_s1 + $0x90] ss:$8 sps:$4 sm:$0xff]   ;;  %v2739_v40 = vld [vmem:[%s4058_s1 + $0xa4] ss:$8 sps:$4 sm:$0xff]  }
   0xe   :  { %v2735_v37 = vld [vmem:[%s4058_s1 + $0x494] ss:$8 sps:$4 sm:$0xff]   ;;  %v2738_v39 = vld [vmem:[%s4058_s1 + $0x490] ss:$8 sps:$4 sm:$0xff]   ;;  %v2741_v41 = vld [vmem:[%s4058_s1 + $0x4a4] ss:$8 sps:$4 sm:$0xff]  }
   0xf   :  { %1746 = vmatpush1.bf16.msra.mxu1 %v2701_v14  ;;  %v2743_v42 = vld [vmem:[%s4058_s1 + $0xa0] ss:$8 sps:$4 sm:$0xff]   ;;  %v2745_v44 = vld [vmem:[%s4058_s1 + $0xb4] ss:$8 sps:$4 sm:$0xff]   ;;  %v2749_v46 = vld [vmem:[%s4058_s1 + $0xb0] ss:$8 sps:$4 sm:$0xff]  }
  0x10   :  { %1958 = vmatpush1.bf16.msra.mxu0 %v2702_v15  ;;  %1747 = vmatprep.subr.bf16.mxu1 %v2703_v16  ;;  %v2744_v43 = vld [vmem:[%s4058_s1 + $0x4a0] ss:$8 sps:$4 sm:$0xff]   ;;  %v2747_v45 = vld [vmem:[%s4058_s1 + $0x4b4] ss:$8 sps:$4 sm:$0xff]   ;;  %v2750_v47 = vld [vmem:[%s4058_s1 + $0x4b0] ss:$8 sps:$4 sm:$0xff]  }
  0x11   :  { %1959 = vmatprep.subr.bf16.mxu0 %v2705_v17  ;;  %v11_v48 = vld [vmem:[%s4059_s0] sm:$0xff]  ;;  %v2757_v58 = vld [vmem:[%s4058_s1 + $0xd4] ss:$8 sps:$4 sm:$0xff]   ;;  %v2761_v60 = vld [vmem:[%s4058_s1 + $0xd0] ss:$8 sps:$4 sm:$0xff]  }
  0x12   :  { %v19_v49 = vld [vmem:[%s4059_s0 + $0x40] sm:$0xff]  ;;  %v2759_v59 = vld [vmem:[%s4058_s1 + $0x4d4] ss:$8 sps:$4 sm:$0xff]   ;;  %v2762_v61 = vld [vmem:[%s4058_s1 + $0x4d0] ss:$8 sps:$4 sm:$0xff]  }
  0x13   :  { %1748 = vmatpush1.bf16.msra.mxu1 %v2707_v18  ;;  %v2751_v50 = vld [vmem:[%s4058_s1 + $0xc4] ss:$8 sps:$4 sm:$0xff]   ;;  %v2328_v52 = vcombine.high %v11_v48, %v19_v49  ;;  %v2755_v56 = vld [vmem:[%s4058_s1 + $0xc0] ss:$8 sps:$4 sm:$0xff]   ;;  %v2769_v2 = vld [vmem:[%s4058_s1 + $0xf4] ss:$8 sps:$4 sm:$0xff]   ;;  %v2327_v8 = vcombine.low %v11_v48, %v19_v49 }
  0x14   :  { %1960 = vmatpush1.bf16.msra.mxu0 %v2708_v19  ;;  %1749 = vmatprep.subr.bf16.mxu1 %v2709_v20  ;;  %v2753_v51 = vld [vmem:[%s4058_s1 + $0x4c4] ss:$8 sps:$4 sm:$0xff]   ;;  %v2756_v57 = vld [vmem:[%s4058_s1 + $0x4c0] ss:$8 sps:$4 sm:$0xff]   ;;  %v2771_v3 = vld [vmem:[%s4058_s1 + $0x4f4] ss:$8 sps:$4 sm:$0xff]  }
  0x15   :  { %1961 = vmatprep.subr.bf16.mxu0 %v2711_v21  ;;  %v15_v53 = vld [vmem:[%s4059_s0 + $0x20] sm:$0xff]  ;;  %1771 = vmatprep.mubr.bf16.mxu1 %v2328_v52  ;;  %v2773_v4 = vld [vmem:[%s4058_s1 + $0xf0] ss:$8 sps:$4 sm:$0xff]   ;;  %v2783_v12 = vld [vmem:[%s4058_s1 + $0x114] ss:$8 sps:$4 sm:$0xff]  }
  0x16   :  { %v23_v54 = vld [vmem:[%s4059_s0 + $0x60] sm:$0xff]  ;;  %v2774_v5 = vld [vmem:[%s4058_s1 + $0x4f0] ss:$8 sps:$4 sm:$0xff]   ;;  %v2786_v13 = vld [vmem:[%s4058_s1 + $0x514] ss:$8 sps:$4 sm:$0xff]  }
  0x17   :  { %1750 = vmatpush1.bf16.msra.mxu1 %v2713_v22  ;;  %v2336_v55 = vcombine.high %v15_v53, %v23_v54  ;;  %v2763_v62 = vld [vmem:[%s4058_s1 + $0xe4] ss:$8 sps:$4 sm:$0xff]   ;;  %v2767_v0 = vld [vmem:[%s4058_s1 + $0xe0] ss:$8 sps:$4 sm:$0xff]   ;;  %v2335_v10 = vcombine.low %v15_v53, %v23_v54  ;;  %v2781_v14 = vld [vmem:[%s4058_s1 + $0x110] ss:$8 sps:$4 sm:$0xff]  }
  0x18   :  { %1962 = vmatpush1.bf16.msra.mxu0 %v2714_v23  ;;  %1751 = vmatprep.subr.bf16.mxu1 %v2715_v24  ;;  %v2765_v63 = vld [vmem:[%s4058_s1 + $0x4e4] ss:$8 sps:$4 sm:$0xff]   ;;  %v2768_v1 = vld [vmem:[%s4058_s1 + $0x4e0] ss:$8 sps:$4 sm:$0xff]   ;;  %v2784_v15 = vld [vmem:[%s4058_s1 + $0x510] ss:$8 sps:$4 sm:$0xff]  }
  0x19   :  { %1963 = vmatprep.subr.bf16.mxu0 %v2717_v25  ;;  %1983 = vmatprep.mubr.bf16.mxu0 %v2336_v55  ;;  %v2777_v6 = vld [vmem:[%s4058_s1 + $0x104] ss:$8 sps:$4 sm:$0xff]   ;;  %v2775_v9 = vld [vmem:[%s4058_s1 + $0x100] ss:$8 sps:$4 sm:$0xff]   ;;  %v2795_v20 = vld [vmem:[%s4058_s1 + $0x134] ss:$8 sps:$4 sm:$0xff]  }
  0x1a   :  { %v2780_v7 = vld [vmem:[%s4058_s1 + $0x504] ss:$8 sps:$4 sm:$0xff]   ;;  %v2778_v11 = vld [vmem:[%s4058_s1 + $0x500] ss:$8 sps:$4 sm:$0xff]   ;;  %v2798_v21 = vld [vmem:[%s4058_s1 + $0x534] ss:$8 sps:$4 sm:$0xff]  }
  0x1b   :  { %1752 = vmatpush1.bf16.msra.mxu1 %v2719_v26  ;;  %v2789_v16 = vld [vmem:[%s4058_s1 + $0x124] ss:$8 sps:$4 sm:$0xff]   ;;  %v2787_v18 = vld [vmem:[%s4058_s1 + $0x120] ss:$8 sps:$4 sm:$0xff]   ;;  %v2793_v22 = vld [vmem:[%s4058_s1 + $0x130] ss:$8 sps:$4 sm:$0xff]  }
  0x1c   :  { %1964 = vmatpush1.bf16.msra.mxu0 %v2720_v27  ;;  %1753 = vmatprep.subr.bf16.mxu1 %v2721_v28  ;;  %v2792_v17 = vld [vmem:[%s4058_s1 + $0x524] ss:$8 sps:$4 sm:$0xff]   ;;  %v2790_v19 = vld [vmem:[%s4058_s1 + $0x520] ss:$8 sps:$4 sm:$0xff]   ;;  %v2796_v23 = vld [vmem:[%s4058_s1 + $0x530] ss:$8 sps:$4 sm:$0xff]  }
  0x1d   :  { %1965 = vmatprep.subr.bf16.mxu0 %v2723_v29  ;;  %v2801_v24 = vld [vmem:[%s4058_s1 + $0x144] ss:$8 sps:$4 sm:$0xff]   ;;  %v2799_v26 = vld [vmem:[%s4058_s1 + $0x140] ss:$8 sps:$4 sm:$0xff]   ;;  %v2807_v28 = vld [vmem:[%s4058_s1 + $0x154] ss:$8 sps:$4 sm:$0xff]  }
  0x1e   :  { %v2804_v25 = vld [vmem:[%s4058_s1 + $0x544] ss:$8 sps:$4 sm:$0xff]   ;;  %v2802_v27 = vld [vmem:[%s4058_s1 + $0x540] ss:$8 sps:$4 sm:$0xff]   ;;  %v2810_v29 = vld [vmem:[%s4058_s1 + $0x554] ss:$8 sps:$4 sm:$0xff]  }
  0x1f   :  { %1754 = vmatpush1.bf16.msra.mxu1 %v2725_v30  ;;  %v27_v30 = vld [vmem:[%s4059_s0 + $0x80] sm:$0xff]  ;;  %v3407_v49 = vld [vmem:[%s4059_s0 + $0x28] sm:$0xff]  ;;  %v2820_v52 = vld [vmem:[%s4058_s1 + $0x570] ss:$8 sps:$4 sm:$0xff]  }
  0x20   :  { %1966 = vmatpush1.bf16.msra.mxu0 %v2726_v31  ;;  %1755 = vmatprep.subr.bf16.mxu1 %v2727_v32  ;;  %v35_v31 = vld [vmem:[%s4059_s0 + $0xc0] sm:$0xff]  ;;  %v2805_v32 = vld [vmem:[%s4058_s1 + $0x150] ss:$8 sps:$4 sm:$0xff]  }
  0x21   :  { %1967 = vmatprep.subr.bf16.mxu0 %v2729_v33  ;;  %v2344_v33 = vcombine.high %v27_v30, %v35_v31  ;;  %v2825_v54 = vld [vmem:[%s4058_s1 + $0x184] ss:$8 sps:$4 sm:$0xff]  }
  0x22   :  { %v2828_v55 = vld [vmem:[%s4058_s1 + $0x584] ss:$8 sps:$4 sm:$0xff]  }
  0x23   :  { %1756 = vmatpush1.bf16.msra.mxu1 %v2731_v34  ;;  %v2808_v34 = vld [vmem:[%s4058_s1 + $0x550] ss:$8 sps:$4 sm:$0xff]  }
  0x24   :  { %1968 = vmatpush1.bf16.msra.mxu0 %v2732_v35  ;;  %1757 = vmatprep.subr.bf16.mxu1 %v2733_v36  ;;  %v31_v35 = vld [vmem:[%s4059_s0 + $0xa0] sm:$0xff] }
  0x25   :  { %1969 = vmatprep.subr.bf16.mxu0 %v2735_v37  ;;  %v39_v36 = vld [vmem:[%s4059_s0 + $0xe0] sm:$0xff]  ;;  %v2343_v37 = vcombine.low %v27_v30, %v35_v31  ;;  %v2879_v30 = vld [vmem:[%s4058_s1 + $0x214] ss:$8 sps:$4 sm:$0xff]  }
  0x26   :  { %v2882_v31 = vld [vmem:[%s4058_s1 + $0x614] ss:$8 sps:$4 sm:$0xff]  }
  0x27   :  { %1758 = vmatpush1.bf16.msra.mxu1 %v2737_v38  ;;  %v2813_v38 = vld [vmem:[%s4058_s1 + $0x164] ss:$8 sps:$4 sm:$0xff]  }
  0x28   :  { %1970 = vmatpush1.bf16.msra.mxu0 %v2738_v39  ;;  %1759 = vmatprep.subr.bf16.mxu1 %v2739_v40  ;;  %v2352_v39 = vcombine.high %v31_v35, %v39_v36  ;;  %v2351_v40 = vcombine.low %v31_v35, %v39_v36  ;;  %v2877_v36 = vld [vmem:[%s4058_s1 + $0x210] ss:$8 sps:$4 sm:$0xff]  }
  0x29   :  { %1971 = vmatprep.subr.bf16.mxu0 %v2741_v41  ;;  %v2816_v41 = vld [vmem:[%s4058_s1 + $0x564] ss:$8 sps:$4 sm:$0xff]  }
  0x2b   :  { %1760 = vmatpush1.bf16.msra.mxu1 %v2743_v42  ;;  %v2811_v42 = vld [vmem:[%s4058_s1 + $0x160] ss:$8 sps:$4 sm:$0xff]  }
  0x2c   :  { %1972 = vmatpush1.bf16.msra.mxu0 %v2744_v43  ;;  %1761 = vmatprep.subr.bf16.mxu1 %v2745_v44  ;;  %v2814_v43 = vld [vmem:[%s4058_s1 + $0x560] ss:$8 sps:$4 sm:$0xff]  }
  0x2d   :  { %1973 = vmatprep.subr.bf16.mxu0 %v2747_v45  ;;  %v3389_v44 = vld [vmem:[%s4059_s0 + $0x8] sm:$0xff] }
  0x2e   :  { %v3394_v45 = vld [vmem:[%s4059_s0 + $0x48] sm:$0xff] }
  0x2f   :  { %1762 = vmatpush1.bf16.msra.mxu1 %v2749_v46  ;;  %v2819_v46 = vld [vmem:[%s4058_s1 + $0x174] ss:$8 sps:$4 sm:$0xff]   ;;  %v2330_v48 = vcombine.high %v3389_v44, %v3394_v45 }
  0x30   :  { %1974 = vmatpush1.bf16.msra.mxu0 %v2750_v47  ;;  %1763 = vmatprep.subr.bf16.mxu1 %v2751_v50  ;;  %v2822_v47 = vld [vmem:[%s4058_s1 + $0x574] ss:$8 sps:$4 sm:$0xff]   ;;  %v3412_v50 = vld [vmem:[%s4059_s0 + $0x68] sm:$0xff] }
  0x31   :  { %1975 = vmatprep.subr.bf16.mxu0 %v2753_v51  ;;  %v2817_v51 = vld [vmem:[%s4058_s1 + $0x170] ss:$8 sps:$4 sm:$0xff]   ;;  %v2338_v53 = vcombine.high %v3407_v49, %v3412_v50 }
  0x33   :  { %1764 = vmatpush1.bf16.msra.mxu1 %v2755_v56  ;;  %v2823_v56 = vld [vmem:[%s4058_s1 + $0x180] ss:$8 sps:$4 sm:$0xff]  }
  0x34   :  { %1976 = vmatpush1.bf16.msra.mxu0 %v2756_v57  ;;  %1765 = vmatprep.subr.bf16.mxu1 %v2757_v58  ;;  %v2826_v57 = vld [vmem:[%s4058_s1 + $0x580] ss:$8 sps:$4 sm:$0xff]   ;;  %v2831_v58 = vld [vmem:[%s4058_s1 + $0x194] ss:$8 sps:$4 sm:$0xff]  }
  0x35   :  { %1977 = vmatprep.subr.bf16.mxu0 %v2759_v59  ;;  %v2834_v59 = vld [vmem:[%s4058_s1 + $0x594] ss:$8 sps:$4 sm:$0xff]  }
  0x37   :  { %1766 = vmatpush1.bf16.msra.mxu1 %v2761_v60  ;;  %v2829_v60 = vld [vmem:[%s4058_s1 + $0x190] ss:$8 sps:$4 sm:$0xff]  }
  0x38   :  { %1978 = vmatpush1.bf16.msra.mxu0 %v2762_v61  ;;  %1767 = vmatprep.subr.bf16.mxu1 %v2763_v62  ;;  %v2832_v61 = vld [vmem:[%s4058_s1 + $0x590] ss:$8 sps:$4 sm:$0xff]   ;;  %v2837_v62 = vld [vmem:[%s4058_s1 + $0x1a4] ss:$8 sps:$4 sm:$0xff]  }
  0x39   :  { %1979 = vmatprep.subr.bf16.mxu0 %v2765_v63  ;;  %v2840_v63 = vld [vmem:[%s4058_s1 + $0x5a4] ss:$8 sps:$4 sm:$0xff]  }
  0x3b   :  { %1768 = vmatpush1.bf16.msra.mxu1 %v2767_v0  ;;  %v2835_v0 = vld [vmem:[%s4058_s1 + $0x1a0] ss:$8 sps:$4 sm:$0xff]  }
  0x3c   :  { %1980 = vmatpush1.bf16.msra.mxu0 %v2768_v1  ;;  %1769 = vmatprep.subr.bf16.mxu1 %v2769_v2  ;;  %v2838_v1 = vld [vmem:[%s4058_s1 + $0x5a0] ss:$8 sps:$4 sm:$0xff]   ;;  %v2843_v2 = vld [vmem:[%s4058_s1 + $0x1b4] ss:$8 sps:$4 sm:$0xff]  }
  0x3d   :  { %1981 = vmatprep.subr.bf16.mxu0 %v2771_v3  ;;  %v2846_v3 = vld [vmem:[%s4058_s1 + $0x5b4] ss:$8 sps:$4 sm:$0xff]  }
  0x3f   :  { %1770 = vmatpush1.bf16.msra.mxu1 %v2773_v4  ;;  %v2841_v4 = vld [vmem:[%s4058_s1 + $0x1b0] ss:$8 sps:$4 sm:$0xff]  }
  0x40   :  { %1982 = vmatpush1.bf16.msra.mxu0 %v2774_v5  ;;  %1792 = vmatprep.subr.bf16.mxu1 %v2777_v6  ;;  %v2844_v5 = vld [vmem:[%s4058_s1 + $0x5b0] ss:$8 sps:$4 sm:$0xff]   ;;  %v2849_v6 = vld [vmem:[%s4058_s1 + $0x1c4] ss:$8 sps:$4 sm:$0xff]  }
  0x41   :  { %2004 = vmatprep.subr.bf16.mxu0 %v2780_v7  ;;  %v2852_v7 = vld [vmem:[%s4058_s1 + $0x5c4] ss:$8 sps:$4 sm:$0xff]  }
  0x42   :  { %1772 = vmatmul.mubr.bf16.vlgmr.msra.gmra.mrb[0].mxu1 %v2327_v8  ;;  %v2847_v8 = vld [vmem:[%s4058_s1 + $0x1c0] ss:$8 sps:$4 sm:$0xff]  }
  0x43   :  { %1984 = vmatmul.mubr.bf16.vlgmr.msra.gmra.mrb[0].mxu0 %v2335_v10  ;;  %1793 = vmatpush1.bf16.msra.mxu1 %v2775_v9  ;;  %v2850_v9 = vld [vmem:[%s4058_s1 + $0x5c0] ss:$8 sps:$4 sm:$0xff]   ;;  %v2855_v10 = vld [vmem:[%s4058_s1 + $0x1d4] ss:$8 sps:$4 sm:$0xff]  }
  0x44   :  { %2005 = vmatpush1.bf16.msra.mxu0 %v2778_v11  ;;  %1794 = vmatprep.subr.bf16.mxu1 %v2783_v12  ;;  %v2858_v11 = vld [vmem:[%s4058_s1 + $0x5d4] ss:$8 sps:$4 sm:$0xff]   ;;  %v2853_v12 = vld [vmem:[%s4058_s1 + $0x1d0] ss:$8 sps:$4 sm:$0xff]  }
  0x45   :  { %2006 = vmatprep.subr.bf16.mxu0 %v2786_v13  ;;  %1781 = vmatprep.mubr.bf16.mxu1 %v2344_v33  ;;  %v2856_v13 = vld [vmem:[%s4058_s1 + $0x5d0] ss:$8 sps:$4 sm:$0xff]   ;;  %v40_v33 = vld [vmem:[%s4059_s0 + $0xe8] sm:$0xff] }
  0x46   :  { %1993 = vmatprep.mubr.bf16.mxu0 %v2352_v39  ;;  %v2888_v39 = vld [vmem:[%s4058_s1 + $0x624] ss:$8 sps:$4 sm:$0xff]  }
  0x47   :  { %1795 = vmatpush1.bf16.msra.mxu1 %v2781_v14  ;;  %v2861_v14 = vld [vmem:[%s4058_s1 + $0x1e4] ss:$8 sps:$4 sm:$0xff]  }
  0x48   :  { %2007 = vmatpush1.bf16.msra.mxu0 %v2784_v15  ;;  %1796 = vmatprep.subr.bf16.mxu1 %v2789_v16  ;;  %v2864_v15 = vld [vmem:[%s4058_s1 + $0x5e4] ss:$8 sps:$4 sm:$0xff]   ;;  %v2859_v16 = vld [vmem:[%s4058_s1 + $0x1e0] ss:$8 sps:$4 sm:$0xff]  }
  0x49   :  { %2008 = vmatprep.subr.bf16.mxu0 %v2792_v17  ;;  %v2862_v17 = vld [vmem:[%s4058_s1 + $0x5e0] ss:$8 sps:$4 sm:$0xff]  }
  0x4a   :  { %1782 = vmatmul.mubr.bf16.gmra.mrb[4].mxu1 %v2343_v37  ;;  %v2880_v37 = vld [vmem:[%s4058_s1 + $0x610] ss:$8 sps:$4 sm:$0xff]  }
  0x4b   :  { %1797 = vmatpush1.bf16.msra.mxu1 %v2787_v18  ;;  %1994 = vmatmul.mubr.bf16.gmra.mrb[4].mxu0 %v2351_v40  ;;  %v2867_v18 = vld [vmem:[%s4058_s1 + $0x1f4] ss:$8 sps:$4 sm:$0xff]   ;;  %v2883_v40 = vld [vmem:[%s4058_s1 + $0x220] ss:$8 sps:$4 sm:$0xff]  }
  0x4c   :  { %2009 = vmatpush1.bf16.msra.mxu0 %v2790_v19  ;;  %1798 = vmatprep.subr.bf16.mxu1 %v2795_v20  ;;  %v2870_v19 = vld [vmem:[%s4058_s1 + $0x5f4] ss:$8 sps:$4 sm:$0xff]   ;;  %v2865_v20 = vld [vmem:[%s4058_s1 + $0x1f0] ss:$8 sps:$4 sm:$0xff]  }
  0x4d   :  { %2010 = vmatprep.subr.bf16.mxu0 %v2798_v21  ;;  %1824 = vmatprep.mubr.bf16.mxu1 %v2330_v48  ;;  %v2868_v21 = vld [vmem:[%s4058_s1 + $0x5f0] ss:$8 sps:$4 sm:$0xff]   ;;  %v2891_v48 = vld [vmem:[%s4058_s1 + $0x234] ss:$8 sps:$4 sm:$0xff]  }
  0x4e   :  { %2036 = vmatprep.mubr.bf16.mxu0 %v2338_v53  ;;  %v2892_v53 = vld [vmem:[%s4058_s1 + $0x630] ss:$8 sps:$4 sm:$0xff]  }
  0x4f   :  { %1799 = vmatpush1.bf16.msra.mxu1 %v2793_v22  ;;  %v2873_v22 = vld [vmem:[%s4058_s1 + $0x204] ss:$8 sps:$4 sm:$0xff]  }
  0x50   :  { %2011 = vmatpush1.bf16.msra.mxu0 %v2796_v23  ;;  %1800 = vmatprep.subr.bf16.mxu1 %v2801_v24  ;;  %v2876_v23 = vld [vmem:[%s4058_s1 + $0x604] ss:$8 sps:$4 sm:$0xff]   ;;  %v2871_v24 = vld [vmem:[%s4058_s1 + $0x200] ss:$8 sps:$4 sm:$0xff]  }
  0x51   :  { %2012 = vmatprep.subr.bf16.mxu0 %v2804_v25  ;;  %v2874_v25 = vld [vmem:[%s4058_s1 + $0x600] ss:$8 sps:$4 sm:$0xff]  }
  0x53   :  { %1801 = vmatpush1.bf16.msra.mxu1 %v2799_v26  ;;  %v28_v26 = vld [vmem:[%s4059_s0 + $0x88] sm:$0xff] }
  0x54   :  { %2013 = vmatpush1.bf16.msra.mxu0 %v2802_v27  ;;  %1802 = vmatprep.subr.bf16.mxu1 %v2807_v28  ;;  %v2329_v27 = vcombine.low %v3389_v44, %v3394_v45  ;;  %v2337_v28 = vcombine.low %v3407_v49, %v3412_v50  ;;  %v3578_v45 = vld [vmem:[%s4059_s0 + $0x50] sm:$0xff] }
  0x55   :  { %2014 = vmatprep.subr.bf16.mxu0 %v2810_v29  ;;  %v36_v29 = vld [vmem:[%s4059_s0 + $0xc8] sm:$0xff]  ;;  %v2894_v49 = vld [vmem:[%s4058_s1 + $0x634] ss:$8 sps:$4 sm:$0xff]  }
  0x57   :  { %1803 = vmatpush1.bf16.msra.mxu1 %v2805_v32  ;;  %v32_v32 = vld [vmem:[%s4059_s0 + $0xa8] sm:$0xff] }
  0x58   :  { %2015 = vmatpush1.bf16.msra.mxu0 %v2808_v34  ;;  %1804 = vmatprep.subr.bf16.mxu1 %v2813_v38  ;;  %v2346_v34 = vcombine.high %v28_v26, %v36_v29  ;;  %v2354_v35 = vcombine.high %v32_v32, %v40_v33  ;;  %v2885_v38 = vld [vmem:[%s4058_s1 + $0x224] ss:$8 sps:$4 sm:$0xff]   ;;  %v2353_v44 = vcombine.low %v32_v32, %v40_v33  ;;  %v2955_v32 = vld [vmem:[%s4058_s1 + $0x2e0] ss:$8 sps:$4 sm:$0xff]  }
  0x59   :  { %2016 = vmatprep.subr.bf16.mxu0 %v2816_v41  ;;  %v2886_v41 = vld [vmem:[%s4058_s1 + $0x620] ss:$8 sps:$4 sm:$0xff]  }
  0x5a   :  { %v2958_v33 = vld [vmem:[%s4058_s1 + $0x6e0] ss:$8 sps:$4 sm:$0xff]  }
  0x5b   :  { %1805 = vmatpush1.bf16.msra.mxu1 %v2811_v42  ;;  %v3573_v42 = vld [vmem:[%s4059_s0 + $0x10] sm:$0xff] }
  0x5c   :  { %2017 = vmatpush1.bf16.msra.mxu0 %v2814_v43  ;;  %1806 = vmatprep.subr.bf16.mxu1 %v2819_v46  ;;  %v2345_v43 = vcombine.low %v28_v26, %v36_v29  ;;  %v3583_v46 = vld [vmem:[%s4059_s0 + $0x30] sm:$0xff]  ;;  %v2332_v50 = vcombine.high %v3573_v42, %v3578_v45 }
  0x5d   :  { %2018 = vmatprep.subr.bf16.mxu0 %v2822_v47  ;;  %v3588_v47 = vld [vmem:[%s4059_s0 + $0x70] sm:$0xff] }
  0x5e   :  { %v2951_v26 = vld [vmem:[%s4058_s1 + $0x2d4] ss:$8 sps:$4 sm:$0xff]   ;;  %v2952_v29 = vld [vmem:[%s4058_s1 + $0x6d0] ss:$8 sps:$4 sm:$0xff]  }
  0x5f   :  { %1807 = vmatpush1.bf16.msra.mxu1 %v2817_v51  ;;  %v2340_v51 = vcombine.high %v3583_v46, %v3588_v47 }
  0x60   :  { %2019 = vmatpush1.bf16.msra.mxu0 %v2820_v52  ;;  %1808 = vmatprep.subr.bf16.mxu1 %v2825_v54  ;;  %v2889_v52 = vld [vmem:[%s4058_s1 + $0x230] ss:$8 sps:$4 sm:$0xff]   ;;  %v2897_v54 = vld [vmem:[%s4058_s1 + $0x244] ss:$8 sps:$4 sm:$0xff]  }
  0x61   :  { %2020 = vmatprep.subr.bf16.mxu0 %v2828_v55  ;;  %v2900_v55 = vld [vmem:[%s4058_s1 + $0x644] ss:$8 sps:$4 sm:$0xff]  }
  0x63   :  { %1809 = vmatpush1.bf16.msra.mxu1 %v2823_v56  ;;  %v2895_v56 = vld [vmem:[%s4058_s1 + $0x240] ss:$8 sps:$4 sm:$0xff]  }
  0x64   :  { %2021 = vmatpush1.bf16.msra.mxu0 %v2826_v57  ;;  %1810 = vmatprep.subr.bf16.mxu1 %v2831_v58  ;;  %v2898_v57 = vld [vmem:[%s4058_s1 + $0x640] ss:$8 sps:$4 sm:$0xff]   ;;  %v2903_v58 = vld [vmem:[%s4058_s1 + $0x254] ss:$8 sps:$4 sm:$0xff]  }
  0x65   :  { %2022 = vmatprep.subr.bf16.mxu0 %v2834_v59  ;;  %v2906_v59 = vld [vmem:[%s4058_s1 + $0x654] ss:$8 sps:$4 sm:$0xff]  }
  0x67   :  { %1811 = vmatpush1.bf16.msra.mxu1 %v2829_v60  ;;  %v2901_v60 = vld [vmem:[%s4058_s1 + $0x250] ss:$8 sps:$4 sm:$0xff]  }
  0x68   :  { %2023 = vmatpush1.bf16.msra.mxu0 %v2832_v61  ;;  %1812 = vmatprep.subr.bf16.mxu1 %v2837_v62  ;;  %v2904_v61 = vld [vmem:[%s4058_s1 + $0x650] ss:$8 sps:$4 sm:$0xff]   ;;  %v2909_v62 = vld [vmem:[%s4058_s1 + $0x264] ss:$8 sps:$4 sm:$0xff]  }
  0x69   :  { %2024 = vmatprep.subr.bf16.mxu0 %v2840_v63  ;;  %v2912_v63 = vld [vmem:[%s4058_s1 + $0x664] ss:$8 sps:$4 sm:$0xff]  }
  0x6b   :  { %1813 = vmatpush1.bf16.msra.mxu1 %v2835_v0  ;;  %v2907_v0 = vld [vmem:[%s4058_s1 + $0x260] ss:$8 sps:$4 sm:$0xff]  }
  0x6c   :  { %2025 = vmatpush1.bf16.msra.mxu0 %v2838_v1  ;;  %1814 = vmatprep.subr.bf16.mxu1 %v2843_v2  ;;  %v2910_v1 = vld [vmem:[%s4058_s1 + $0x660] ss:$8 sps:$4 sm:$0xff]   ;;  %v2915_v2 = vld [vmem:[%s4058_s1 + $0x274] ss:$8 sps:$4 sm:$0xff]  }
  0x6d   :  { %2026 = vmatprep.subr.bf16.mxu0 %v2846_v3  ;;  %v2918_v3 = vld [vmem:[%s4058_s1 + $0x674] ss:$8 sps:$4 sm:$0xff]  }
  0x6f   :  { %1815 = vmatpush1.bf16.msra.mxu1 %v2841_v4  ;;  %v2913_v4 = vld [vmem:[%s4058_s1 + $0x270] ss:$8 sps:$4 sm:$0xff]  }
  0x70   :  { %2027 = vmatpush1.bf16.msra.mxu0 %v2844_v5  ;;  %1816 = vmatprep.subr.bf16.mxu1 %v2849_v6  ;;  %v2916_v5 = vld [vmem:[%s4058_s1 + $0x670] ss:$8 sps:$4 sm:$0xff]   ;;  %v2921_v6 = vld [vmem:[%s4058_s1 + $0x284] ss:$8 sps:$4 sm:$0xff]  }
  0x71   :  { %2028 = vmatprep.subr.bf16.mxu0 %v2852_v7  ;;  %v2924_v7 = vld [vmem:[%s4058_s1 + $0x684] ss:$8 sps:$4 sm:$0xff]  }
  0x73   :  { %1817 = vmatpush1.bf16.msra.mxu1 %v2847_v8  ;;  %v2919_v8 = vld [vmem:[%s4058_s1 + $0x280] ss:$8 sps:$4 sm:$0xff]  }
  0x74   :  { %2029 = vmatpush1.bf16.msra.mxu0 %v2850_v9  ;;  %1818 = vmatprep.subr.bf16.mxu1 %v2855_v10  ;;  %v2922_v9 = vld [vmem:[%s4058_s1 + $0x680] ss:$8 sps:$4 sm:$0xff]   ;;  %v2927_v10 = vld [vmem:[%s4058_s1 + $0x294] ss:$8 sps:$4 sm:$0xff]  }
  0x75   :  { %2030 = vmatprep.subr.bf16.mxu0 %v2858_v11  ;;  %v2930_v11 = vld [vmem:[%s4058_s1 + $0x694] ss:$8 sps:$4 sm:$0xff]  }
  0x77   :  { %1819 = vmatpush1.bf16.msra.mxu1 %v2853_v12  ;;  %v2925_v12 = vld [vmem:[%s4058_s1 + $0x290] ss:$8 sps:$4 sm:$0xff]  }
  0x78   :  { %2031 = vmatpush1.bf16.msra.mxu0 %v2856_v13  ;;  %1820 = vmatprep.subr.bf16.mxu1 %v2861_v14  ;;  %v2928_v13 = vld [vmem:[%s4058_s1 + $0x690] ss:$8 sps:$4 sm:$0xff]   ;;  %v2933_v14 = vld [vmem:[%s4058_s1 + $0x2a4] ss:$8 sps:$4 sm:$0xff]  }
  0x79   :  { %2032 = vmatprep.subr.bf16.mxu0 %v2864_v15  ;;  %v2936_v15 = vld [vmem:[%s4058_s1 + $0x6a4] ss:$8 sps:$4 sm:$0xff]  }
  0x7b   :  { %1821 = vmatpush1.bf16.msra.mxu1 %v2859_v16  ;;  %v2931_v16 = vld [vmem:[%s4058_s1 + $0x2a0] ss:$8 sps:$4 sm:$0xff]  }
  0x7c   :  { %2033 = vmatpush1.bf16.msra.mxu0 %v2862_v17  ;;  %1822 = vmatprep.subr.bf16.mxu1 %v2867_v18  ;;  %v2934_v17 = vld [vmem:[%s4058_s1 + $0x6a0] ss:$8 sps:$4 sm:$0xff]   ;;  %v2939_v18 = vld [vmem:[%s4058_s1 + $0x2b4] ss:$8 sps:$4 sm:$0xff]  }
  0x7d   :  { %2034 = vmatprep.subr.bf16.mxu0 %v2870_v19  ;;  %v2942_v19 = vld [vmem:[%s4058_s1 + $0x6b4] ss:$8 sps:$4 sm:$0xff]  }
  0x7f   :  { %1823 = vmatpush1.bf16.msra.mxu1 %v2865_v20  ;;  %v2937_v20 = vld [vmem:[%s4058_s1 + $0x2b0] ss:$8 sps:$4 sm:$0xff]  }
  0x80   :  { %2035 = vmatpush1.bf16.msra.mxu0 %v2868_v21  ;;  %1845 = vmatprep.subr.bf16.mxu1 %v2873_v22  ;;  %v2940_v21 = vld [vmem:[%s4058_s1 + $0x6b0] ss:$8 sps:$4 sm:$0xff]   ;;  %v2945_v22 = vld [vmem:[%s4058_s1 + $0x2c4] ss:$8 sps:$4 sm:$0xff]  }
  0x81   :  { %2057 = vmatprep.subr.bf16.mxu0 %v2876_v23  ;;  %v2948_v23 = vld [vmem:[%s4058_s1 + $0x6c4] ss:$8 sps:$4 sm:$0xff]  }
  0x82   :  { %1825 = vmatmul.mubr.bf16.vlgmr.msra.gmra.mrb[0].mxu1 %v2329_v27  ;;  %v2954_v27 = vld [vmem:[%s4058_s1 + $0x6d4] ss:$8 sps:$4 sm:$0xff]  }
  0x83   :  { %2037 = vmatmul.mubr.bf16.vlgmr.msra.gmra.mrb[0].mxu0 %v2337_v28  ;;  %1846 = vmatpush1.bf16.msra.mxu1 %v2871_v24  ;;  %v2943_v24 = vld [vmem:[%s4058_s1 + $0x2c0] ss:$8 sps:$4 sm:$0xff]   ;;  %v2949_v28 = vld [vmem:[%s4058_s1 + $0x2d0] ss:$8 sps:$4 sm:$0xff]  }
  0x84   :  { %2058 = vmatpush1.bf16.msra.mxu0 %v2874_v25  ;;  %1847 = vmatprep.subr.bf16.mxu1 %v2879_v30  ;;  %v2946_v25 = vld [vmem:[%s4058_s1 + $0x6c0] ss:$8 sps:$4 sm:$0xff]   ;;  %v2957_v30 = vld [vmem:[%s4058_s1 + $0x2e4] ss:$8 sps:$4 sm:$0xff]  }
  0x85   :  { %2059 = vmatprep.subr.bf16.mxu0 %v2882_v31  ;;  %1834 = vmatprep.mubr.bf16.mxu1 %v2346_v34  ;;  %v2960_v31 = vld [vmem:[%s4058_s1 + $0x6e4] ss:$8 sps:$4 sm:$0xff]   ;;  %v2963_v34 = vld [vmem:[%s4058_s1 + $0x2f4] ss:$8 sps:$4 sm:$0xff]  }
  0x86   :  { %2046 = vmatprep.mubr.bf16.mxu0 %v2354_v35  ;;  %v2966_v35 = vld [vmem:[%s4058_s1 + $0x6f4] ss:$8 sps:$4 sm:$0xff]  }
  0x87   :  { %1848 = vmatpush1.bf16.msra.mxu1 %v2877_v36  ;;  %v2961_v36 = vld [vmem:[%s4058_s1 + $0x2f0] ss:$8 sps:$4 sm:$0xff]  }
  0x88   :  { %2060 = vmatpush1.bf16.msra.mxu0 %v2880_v37  ;;  %1849 = vmatprep.subr.bf16.mxu1 %v2885_v38  ;;  %v2964_v37 = vld [vmem:[%s4058_s1 + $0x6f0] ss:$8 sps:$4 sm:$0xff]   ;;  %v2969_v38 = vld [vmem:[%s4058_s1 + $0x304] ss:$8 sps:$4 sm:$0xff]  }
  0x89   :  { %2061 = vmatprep.subr.bf16.mxu0 %v2888_v39  ;;  %v2972_v39 = vld [vmem:[%s4058_s1 + $0x704] ss:$8 sps:$4 sm:$0xff]  }
  0x8a   :  { %1835 = vmatmul.mubr.bf16.gmra.mrb[4].mxu1 %v2345_v43  ;;  %v2339_v43 = vcombine.low %v3583_v46, %v3588_v47  ;;  %v2975_v46 = vld [vmem:[%s4058_s1 + $0x314] ss:$8 sps:$4 sm:$0xff]  }
  0x8b   :  { %2047 = vmatmul.mubr.bf16.gmra.mrb[4].mxu0 %v2353_v44  ;;  %1850 = vmatpush1.bf16.msra.mxu1 %v2883_v40  ;;  %v29_v40 = vld [vmem:[%s4059_s0 + $0x90] sm:$0xff] }
  0x8c   :  { %2062 = vmatpush1.bf16.msra.mxu0 %v2886_v41  ;;  %1851 = vmatprep.subr.bf16.mxu1 %v2891_v48  ;;  %v2331_v41 = vcombine.low %v3573_v42, %v3578_v45  ;;  %v37_v44 = vld [vmem:[%s4059_s0 + $0xd0] sm:$0xff]  ;;  %v2967_v42 = vld [vmem:[%s4058_s1 + $0x300] ss:$8 sps:$4 sm:$0xff]  }
  0x8d   :  { %2063 = vmatprep.subr.bf16.mxu0 %v2894_v49  ;;  %1877 = vmatprep.mubr.bf16.mxu1 %v2332_v50  ;;  %v33_v48 = vld [vmem:[%s4059_s0 + $0xb0] sm:$0xff]  ;;  %v2970_v45 = vld [vmem:[%s4058_s1 + $0x700] ss:$8 sps:$4 sm:$0xff]   ;;  %v2348_v50 = vcombine.high %v29_v40, %v37_v44 }
  0x8e   :  { %2089 = vmatprep.mubr.bf16.mxu0 %v2340_v51  ;;  %v41_v49 = vld [vmem:[%s4059_s0 + $0xf0] sm:$0xff] }
  0x8f   :  { %1852 = vmatpush1.bf16.msra.mxu1 %v2889_v52  ;;  %v2978_v47 = vld [vmem:[%s4058_s1 + $0x714] ss:$8 sps:$4 sm:$0xff]   ;;  %v2356_v51 = vcombine.high %v33_v48, %v41_v49  ;;  %v2973_v52 = vld [vmem:[%s4058_s1 + $0x310] ss:$8 sps:$4 sm:$0xff]  }
  0x90   :  { %2064 = vmatpush1.bf16.msra.mxu0 %v2892_v53  ;;  %1853 = vmatprep.subr.bf16.mxu1 %v2897_v54  ;;  %v2976_v53 = vld [vmem:[%s4058_s1 + $0x710] ss:$8 sps:$4 sm:$0xff]   ;;  %v2981_v54 = vld [vmem:[%s4058_s1 + $0x324] ss:$8 sps:$4 sm:$0xff]  }
  0x91   :  { %2065 = vmatprep.subr.bf16.mxu0 %v2900_v55  ;;  %v2984_v55 = vld [vmem:[%s4058_s1 + $0x724] ss:$8 sps:$4 sm:$0xff]  }
  0x93   :  { %1854 = vmatpush1.bf16.msra.mxu1 %v2895_v56  ;;  %v3799_v56 = vld [vmem:[%s4059_s0 + $0x18] sm:$0xff] }
  0x94   :  { %2066 = vmatpush1.bf16.msra.mxu0 %v2898_v57  ;;  %1855 = vmatprep.subr.bf16.mxu1 %v2903_v58  ;;  %v2347_v57 = vcombine.low %v29_v40, %v37_v44  ;;  %v2355_v58 = vcombine.low %v33_v48, %v41_v49  ;;  %v3039_v40 = vld [vmem:[%s4058_s1 + $0x3c0] ss:$8 sps:$4 sm:$0xff]   ;;  %v3050_v44 = vld [vmem:[%s4058_s1 + $0x7d4] ss:$8 sps:$4 sm:$0xff]   ;;  %v3045_v48 = vld [vmem:[%s4058_s1 + $0x3d0] ss:$8 sps:$4 sm:$0xff]  }
  0x95   :  { %2067 = vmatprep.subr.bf16.mxu0 %v2906_v59  ;;  %v3804_v59 = vld [vmem:[%s4059_s0 + $0x58] sm:$0xff] }
  0x96   :  { %v3048_v49 = vld [vmem:[%s4058_s1 + $0x7d0] ss:$8 sps:$4 sm:$0xff]  }
  0x97   :  { %1856 = vmatpush1.bf16.msra.mxu1 %v2901_v60  ;;  %v3809_v60 = vld [vmem:[%s4059_s0 + $0x38] sm:$0xff] }
  0x98   :  { %2068 = vmatpush1.bf16.msra.mxu0 %v2904_v61  ;;  %1857 = vmatprep.subr.bf16.mxu1 %v2909_v62  ;;  %v3814_v61 = vld [vmem:[%s4059_s0 + $0x78] sm:$0xff]  ;;  %v2979_v62 = vld [vmem:[%s4058_s1 + $0x320] ss:$8 sps:$4 sm:$0xff]  }
  0x99   :  { %2069 = vmatprep.subr.bf16.mxu0 %v2912_v63  ;;  %v2982_v63 = vld [vmem:[%s4058_s1 + $0x720] ss:$8 sps:$4 sm:$0xff]  }
  0x9b   :  { %1858 = vmatpush1.bf16.msra.mxu1 %v2907_v0  ;;  %v2987_v0 = vld [vmem:[%s4058_s1 + $0x334] ss:$8 sps:$4 sm:$0xff]  }
  0x9c   :  { %2070 = vmatpush1.bf16.msra.mxu0 %v2910_v1  ;;  %1859 = vmatprep.subr.bf16.mxu1 %v2915_v2  ;;  %v2990_v1 = vld [vmem:[%s4058_s1 + $0x734] ss:$8 sps:$4 sm:$0xff]   ;;  %v2334_v2 = vcombine.high %v3799_v56, %v3804_v59 }
  0x9d   :  { %2071 = vmatprep.subr.bf16.mxu0 %v2918_v3  ;;  %v2342_v3 = vcombine.high %v3809_v60, %v3814_v61 }
  0x9f   :  { %1860 = vmatpush1.bf16.msra.mxu1 %v2913_v4  ;;  %v2985_v4 = vld [vmem:[%s4058_s1 + $0x330] ss:$8 sps:$4 sm:$0xff]  }
  0xa0   :  { %2072 = vmatpush1.bf16.msra.mxu0 %v2916_v5  ;;  %1861 = vmatprep.subr.bf16.mxu1 %v2921_v6  ;;  %v2988_v5 = vld [vmem:[%s4058_s1 + $0x730] ss:$8 sps:$4 sm:$0xff]   ;;  %v2993_v6 = vld [vmem:[%s4058_s1 + $0x344] ss:$8 sps:$4 sm:$0xff]  }
  0xa1   :  { %2073 = vmatprep.subr.bf16.mxu0 %v2924_v7  ;;  %v2996_v7 = vld [vmem:[%s4058_s1 + $0x744] ss:$8 sps:$4 sm:$0xff]  }
  0xa3   :  { %1862 = vmatpush1.bf16.msra.mxu1 %v2919_v8  ;;  %v2991_v8 = vld [vmem:[%s4058_s1 + $0x340] ss:$8 sps:$4 sm:$0xff]  }
  0xa4   :  { %2074 = vmatpush1.bf16.msra.mxu0 %v2922_v9  ;;  %1863 = vmatprep.subr.bf16.mxu1 %v2927_v10  ;;  %v2994_v9 = vld [vmem:[%s4058_s1 + $0x740] ss:$8 sps:$4 sm:$0xff]   ;;  %v2999_v10 = vld [vmem:[%s4058_s1 + $0x354] ss:$8 sps:$4 sm:$0xff]  }
  0xa5   :  { %2075 = vmatprep.subr.bf16.mxu0 %v2930_v11  ;;  %v3002_v11 = vld [vmem:[%s4058_s1 + $0x754] ss:$8 sps:$4 sm:$0xff]  }
  0xa7   :  { %1864 = vmatpush1.bf16.msra.mxu1 %v2925_v12  ;;  %v2997_v12 = vld [vmem:[%s4058_s1 + $0x350] ss:$8 sps:$4 sm:$0xff]  }
  0xa8   :  { %2076 = vmatpush1.bf16.msra.mxu0 %v2928_v13  ;;  %1865 = vmatprep.subr.bf16.mxu1 %v2933_v14  ;;  %v3000_v13 = vld [vmem:[%s4058_s1 + $0x750] ss:$8 sps:$4 sm:$0xff]   ;;  %v3005_v14 = vld [vmem:[%s4058_s1 + $0x364] ss:$8 sps:$4 sm:$0xff]  }
  0xa9   :  { %2077 = vmatprep.subr.bf16.mxu0 %v2936_v15  ;;  %v3008_v15 = vld [vmem:[%s4058_s1 + $0x764] ss:$8 sps:$4 sm:$0xff]  }
  0xab   :  { %1866 = vmatpush1.bf16.msra.mxu1 %v2931_v16  ;;  %v3003_v16 = vld [vmem:[%s4058_s1 + $0x360] ss:$8 sps:$4 sm:$0xff]  }
  0xac   :  { %2078 = vmatpush1.bf16.msra.mxu0 %v2934_v17  ;;  %1867 = vmatprep.subr.bf16.mxu1 %v2939_v18  ;;  %v3006_v17 = vld [vmem:[%s4058_s1 + $0x760] ss:$8 sps:$4 sm:$0xff]   ;;  %v3011_v18 = vld [vmem:[%s4058_s1 + $0x374] ss:$8 sps:$4 sm:$0xff]  }
  0xad   :  { %2079 = vmatprep.subr.bf16.mxu0 %v2942_v19  ;;  %v3014_v19 = vld [vmem:[%s4058_s1 + $0x774] ss:$8 sps:$4 sm:$0xff]  }
  0xaf   :  { %1868 = vmatpush1.bf16.msra.mxu1 %v2937_v20  ;;  %v3009_v20 = vld [vmem:[%s4058_s1 + $0x370] ss:$8 sps:$4 sm:$0xff]  }
  0xb0   :  { %2080 = vmatpush1.bf16.msra.mxu0 %v2940_v21  ;;  %1869 = vmatprep.subr.bf16.mxu1 %v2945_v22  ;;  %v3012_v21 = vld [vmem:[%s4058_s1 + $0x770] ss:$8 sps:$4 sm:$0xff]   ;;  %v3017_v22 = vld [vmem:[%s4058_s1 + $0x384] ss:$8 sps:$4 sm:$0xff]  }
  0xb1   :  { %2081 = vmatprep.subr.bf16.mxu0 %v2948_v23  ;;  %v3020_v23 = vld [vmem:[%s4058_s1 + $0x784] ss:$8 sps:$4 sm:$0xff]  }
  0xb3   :  { %1870 = vmatpush1.bf16.msra.mxu1 %v2943_v24  ;;  %v3015_v24 = vld [vmem:[%s4058_s1 + $0x380] ss:$8 sps:$4 sm:$0xff]  }
  0xb4   :  { %2082 = vmatpush1.bf16.msra.mxu0 %v2946_v25  ;;  %1871 = vmatprep.subr.bf16.mxu1 %v2951_v26  ;;  %v3018_v25 = vld [vmem:[%s4058_s1 + $0x780] ss:$8 sps:$4 sm:$0xff]   ;;  %v3023_v26 = vld [vmem:[%s4058_s1 + $0x394] ss:$8 sps:$4 sm:$0xff]  }
  0xb5   :  { %2083 = vmatprep.subr.bf16.mxu0 %v2954_v27  ;;  %v3026_v27 = vld [vmem:[%s4058_s1 + $0x794] ss:$8 sps:$4 sm:$0xff]  }
  0xb7   :  { %1872 = vmatpush1.bf16.msra.mxu1 %v2949_v28  ;;  %v3021_v28 = vld [vmem:[%s4058_s1 + $0x390] ss:$8 sps:$4 sm:$0xff]  }
  0xb8   :  { %2084 = vmatpush1.bf16.msra.mxu0 %v2952_v29  ;;  %1873 = vmatprep.subr.bf16.mxu1 %v2957_v30  ;;  %v3024_v29 = vld [vmem:[%s4058_s1 + $0x790] ss:$8 sps:$4 sm:$0xff]   ;;  %v3029_v30 = vld [vmem:[%s4058_s1 + $0x3a4] ss:$8 sps:$4 sm:$0xff]  }
  0xb9   :  { %2085 = vmatprep.subr.bf16.mxu0 %v2960_v31  ;;  %v3032_v31 = vld [vmem:[%s4058_s1 + $0x7a4] ss:$8 sps:$4 sm:$0xff]  }
  0xbb   :  { %1874 = vmatpush1.bf16.msra.mxu1 %v2955_v32  ;;  %v3027_v32 = vld [vmem:[%s4058_s1 + $0x3a0] ss:$8 sps:$4 sm:$0xff]  }
  0xbc   :  { %2086 = vmatpush1.bf16.msra.mxu0 %v2958_v33  ;;  %1875 = vmatprep.subr.bf16.mxu1 %v2963_v34  ;;  %v3030_v33 = vld [vmem:[%s4058_s1 + $0x7a0] ss:$8 sps:$4 sm:$0xff]   ;;  %v3035_v34 = vld [vmem:[%s4058_s1 + $0x3b4] ss:$8 sps:$4 sm:$0xff]  }
  0xbd   :  { %2087 = vmatprep.subr.bf16.mxu0 %v2966_v35  ;;  %v3038_v35 = vld [vmem:[%s4058_s1 + $0x7b4] ss:$8 sps:$4 sm:$0xff]  }
  0xbf   :  { %1876 = vmatpush1.bf16.msra.mxu1 %v2961_v36  ;;  %v3033_v36 = vld [vmem:[%s4058_s1 + $0x3b0] ss:$8 sps:$4 sm:$0xff]  }
  0xc0   :  { %2088 = vmatpush1.bf16.msra.mxu0 %v2964_v37  ;;  %1898 = vmatprep.subr.bf16.mxu1 %v2969_v38  ;;  %v3036_v37 = vld [vmem:[%s4058_s1 + $0x7b0] ss:$8 sps:$4 sm:$0xff]   ;;  %v3041_v38 = vld [vmem:[%s4058_s1 + $0x3c4] ss:$8 sps:$4 sm:$0xff]  }
  0xc1   :  { %2110 = vmatprep.subr.bf16.mxu0 %v2972_v39  ;;  %v3044_v39 = vld [vmem:[%s4058_s1 + $0x7c4] ss:$8 sps:$4 sm:$0xff]  }
  0xc2   :  { %1878 = vmatmul.mubr.bf16.vlgmr.msra.gmra.mrb[0].mxu1 %v2331_v41  ;;  %v3042_v41 = vld [vmem:[%s4058_s1 + $0x7c0] ss:$8 sps:$4 sm:$0xff]  }
  0xc3   :  { %2090 = vmatmul.mubr.bf16.vlgmr.msra.gmra.mrb[0].mxu0 %v2339_v43  ;;  %1899 = vmatpush1.bf16.msra.mxu1 %v2967_v42  ;;  %v3047_v43 = vld [vmem:[%s4058_s1 + $0x3d4] ss:$8 sps:$4 sm:$0xff]   ;;  %v3053_v42 = vld [vmem:[%s4058_s1 + $0x3e4] ss:$8 sps:$4 sm:$0xff]  }
  0xc4   :  { %2111 = vmatpush1.bf16.msra.mxu0 %v2970_v45  ;;  %1900 = vmatprep.subr.bf16.mxu1 %v2975_v46  ;;  %v3056_v45 = vld [vmem:[%s4058_s1 + $0x7e4] ss:$8 sps:$4 sm:$0xff]   ;;  %v3051_v46 = vld [vmem:[%s4058_s1 + $0x3e0] ss:$8 sps:$4 sm:$0xff]  }
  0xc5   :  { %2112 = vmatprep.subr.bf16.mxu0 %v2978_v47  ;;  %1887 = vmatprep.mubr.bf16.mxu1 %v2348_v50  ;;  %v3054_v47 = vld [vmem:[%s4058_s1 + $0x7e0] ss:$8 sps:$4 sm:$0xff]   ;;  %v3059_v50 = vld [vmem:[%s4058_s1 + $0x3f4] ss:$8 sps:$4 sm:$0xff]  }
  0xc6   :  { %2099 = vmatprep.mubr.bf16.mxu0 %v2356_v51  ;;  %v3062_v51 = vld [vmem:[%s4058_s1 + $0x7f4] ss:$8 sps:$4 sm:$0xff]  }
  0xc7   :  { %1901 = vmatpush1.bf16.msra.mxu1 %v2973_v52  ;;  %v3057_v52 = vld [vmem:[%s4058_s1 + $0x3f0] ss:$8 sps:$4 sm:$0xff]  }
  0xc8   :  { %2113 = vmatpush1.bf16.msra.mxu0 %v2976_v53  ;;  %1902 = vmatprep.subr.bf16.mxu1 %v2981_v54  ;;  %v3060_v53 = vld [vmem:[%s4058_s1 + $0x7f0] ss:$8 sps:$4 sm:$0xff]  }
  0xc9   :  { %2114 = vmatprep.subr.bf16.mxu0 %v2984_v55  ;;  %v30_v54 = vld [vmem:[%s4059_s0 + $0x98] sm:$0xff] }
  0xca   :  { %1888 = vmatmul.mubr.bf16.gmra.mrb[4].mxu1 %v2347_v57  ;;  %v38_v55 = vld [vmem:[%s4059_s0 + $0xd8] sm:$0xff] }
  0xcb   :  { %2100 = vmatmul.mubr.bf16.gmra.mrb[4].mxu0 %v2355_v58  ;;  %1903 = vmatpush1.bf16.msra.mxu1 %v2979_v62  ;;  %v34_v57 = vld [vmem:[%s4059_s0 + $0xb8] sm:$0xff]  ;;  %v2333_v62 = vcombine.low %v3799_v56, %v3804_v59 }
  0xcc   :  { %2115 = vmatpush1.bf16.msra.mxu0 %v2982_v63  ;;  %1904 = vmatprep.subr.bf16.mxu1 %v2987_v0  ;;  %v42_v58 = vld [vmem:[%s4059_s0 + $0xf8] sm:$0xff]  ;;  %v2341_v63 = vcombine.low %v3809_v60, %v3814_v61  ;;  %v2350_v0 = vcombine.high %v30_v54, %v38_v55 }
  0xcd   :  { %2116 = vmatprep.subr.bf16.mxu0 %v2990_v1  ;;  %1930 = vmatprep.mubr.bf16.mxu1 %v2334_v2  ;;  %v2358_v1 = vcombine.high %v34_v57, %v42_v58  ;;  %v2349_v2 = vcombine.low %v30_v54, %v38_v55 }
  0xce   :  { %2142 = vmatprep.mubr.bf16.mxu0 %v2342_v3  ;;  %v2357_v3 = vcombine.low %v34_v57, %v42_v58 }
  0xcf   :  { %1905 = vmatpush1.bf16.msra.mxu1 %v2985_v4 }
  0xd0   :  { %2117 = vmatpush1.bf16.msra.mxu0 %v2988_v5  ;;  %1906 = vmatprep.subr.bf16.mxu1 %v2993_v6 }
  0xd1   :  { %2118 = vmatprep.subr.bf16.mxu0 %v2996_v7 }
  0xd3   :  { %1907 = vmatpush1.bf16.msra.mxu1 %v2991_v8 }
  0xd4   :  { %2119 = vmatpush1.bf16.msra.mxu0 %v2994_v9  ;;  %1908 = vmatprep.subr.bf16.mxu1 %v2999_v10 }
  0xd5   :  { %2120 = vmatprep.subr.bf16.mxu0 %v3002_v11 }
  0xd7   :  { %1909 = vmatpush1.bf16.msra.mxu1 %v2997_v12 }
  0xd8   :  { %2121 = vmatpush1.bf16.msra.mxu0 %v3000_v13  ;;  %1910 = vmatprep.subr.bf16.mxu1 %v3005_v14 }
  0xd9   :  { %2122 = vmatprep.subr.bf16.mxu0 %v3008_v15 }
  0xdb   :  { %1911 = vmatpush1.bf16.msra.mxu1 %v3003_v16 }
  0xdc   :  { %2123 = vmatpush1.bf16.msra.mxu0 %v3006_v17  ;;  %1912 = vmatprep.subr.bf16.mxu1 %v3011_v18 }
  0xdd   :  { %2124 = vmatprep.subr.bf16.mxu0 %v3014_v19 }
  0xdf   :  { %1913 = vmatpush1.bf16.msra.mxu1 %v3009_v20 }
  0xe0   :  { %2125 = vmatpush1.bf16.msra.mxu0 %v3012_v21  ;;  %1914 = vmatprep.subr.bf16.mxu1 %v3017_v22 }
  0xe1   :  { %2126 = vmatprep.subr.bf16.mxu0 %v3020_v23 }
  0xe3   :  { %1915 = vmatpush1.bf16.msra.mxu1 %v3015_v24 }
  0xe4   :  { %2127 = vmatpush1.bf16.msra.mxu0 %v3018_v25  ;;  %1916 = vmatprep.subr.bf16.mxu1 %v3023_v26 }
  0xe5   :  { %2128 = vmatprep.subr.bf16.mxu0 %v3026_v27 }
  0xe7   :  { %1917 = vmatpush1.bf16.msra.mxu1 %v3021_v28 }
  0xe8   :  { %2129 = vmatpush1.bf16.msra.mxu0 %v3024_v29  ;;  %1918 = vmatprep.subr.bf16.mxu1 %v3029_v30 }
  0xe9   :  { %2130 = vmatprep.subr.bf16.mxu0 %v3032_v31 }
  0xeb   :  { %1919 = vmatpush1.bf16.msra.mxu1 %v3027_v32 }
  0xec   :  { %2131 = vmatpush1.bf16.msra.mxu0 %v3030_v33  ;;  %1920 = vmatprep.subr.bf16.mxu1 %v3035_v34 }
  0xed   :  { %2132 = vmatprep.subr.bf16.mxu0 %v3038_v35 }
  0xef   :  { %1921 = vmatpush1.bf16.msra.mxu1 %v3033_v36 }
  0xf0   :  { %2133 = vmatpush1.bf16.msra.mxu0 %v3036_v37  ;;  %1922 = vmatprep.subr.bf16.mxu1 %v3041_v38 }
  0xf1   :  { %2134 = vmatprep.subr.bf16.mxu0 %v3044_v39 }
  0xf3   :  { %1923 = vmatpush1.bf16.msra.mxu1 %v3039_v40 }
  0xf4   :  { %2135 = vmatpush1.bf16.msra.mxu0 %v3042_v41  ;;  %1924 = vmatprep.subr.bf16.mxu1 %v3047_v43 }
  0xf5   :  { %2136 = vmatprep.subr.bf16.mxu0 %v3050_v44 }
  0xf7   :  { %1925 = vmatpush1.bf16.msra.mxu1 %v3045_v48 }
  0xf8   :  { %2137 = vmatpush1.bf16.msra.mxu0 %v3048_v49  ;;  %1926 = vmatprep.subr.bf16.mxu1 %v3053_v42 }
  0xf9   :  { %2138 = vmatprep.subr.bf16.mxu0 %v3056_v45 }
  0xfb   :  { %1927 = vmatpush1.bf16.msra.mxu1 %v3051_v46 }
  0xfc   :  { %2139 = vmatpush1.bf16.msra.mxu0 %v3054_v47  ;;  %1928 = vmatprep.subr.bf16.mxu1 %v3059_v50 }
  0xfd   :  { %2140 = vmatprep.subr.bf16.mxu0 %v3062_v51 }
  0xff   :  { %1929 = vmatpush1.bf16.msra.mxu1 %v3057_v52 }
 0x100   :  { %2141 = vmatpush1.bf16.msra.mxu0 %v3060_v53 }
 0x102   :  { %1931 = vmatmul.mubr.bf16.vlgmr.msra.gmra.mrb[0].mxu1 %v2333_v62 }
 0x103   :  { %2143 = vmatmul.mubr.bf16.vlgmr.msra.gmra.mrb[0].mxu0 %v2341_v63  ;;  %1940 = vmatprep.mubr.bf16.mxu1 %v2350_v0 }
 0x104   :  { %2152 = vmatprep.mubr.bf16.mxu0 %v2358_v1 }
 0x10a   :  { %1941 = vmatmul.mubr.bf16.gmra.mrb[4].mxu1 %v2349_v2 }
 0x10b   :  { %2153 = vmatmul.mubr.bf16.gmra.mrb[4].mxu0 %v2357_v3 }
 0x1d5   :  { %v1932_v4 = vpop.f32.mrb[0].mxu1 }
 0x1d6   :  { %v2144_v5 = vpop.f32.mrb[0].mxu0  ;;  %v1934_v56 = vpop.f32.mrb[1].mxu1 }
 0x1d7   :  { %v3998_v6 = vadd.f32 %v2144_v5, %v1932_v4  ;;  %v2146_v59 = vpop.f32.mrb[1].mxu0  ;;  %v1936_v60 = vpop.f32.mrb[2].mxu1 }
 0x1d8   :  { %v4000_v7 = vadd.f32 %v2146_v59, %v1934_v56  ;;  %v2148_v61 = vpop.f32.mrb[2].mxu0  ;;  %v1938_v9 = vpop.f32.mrb[3].mxu1 }
 0x1d9   :  { %v4002_v8 = vadd.f32 %v2148_v61, %v1936_v60  ;;  %v2150_v10 = vpop.f32.mrb[3].mxu0  ;;  %v2191_v12 = vmul.f32 %v3998_v6, %v3998_v6 }
 0x1da   :  { %v4004_v11 = vadd.f32 %v2150_v10, %v1938_v9  ;;  %v2192_v15 = vmul.f32 %v4000_v7, %v4000_v7 }
 0x1db   :  { %v2163_v13 = vadd.f32 %v4002_v8, %v3998_v6  ;;  %v2193_v14 = vmul.f32 %v4002_v8, %v4002_v8 }
 0x1dc   :  { %v2170_v16 = vadd.f32 %v4004_v11, %v4000_v7  ;;  %v2194_v17 = vmul.f32 %v4004_v11, %v4004_v11 }
 0x1dd   :  { %v2164_v18 = vrot.slane %v2163_v13, 4  ;;  %v2199_v19 = vadd.f32 %v2193_v14, %v2191_v12  ;;  %v1942_v22 = vpop.f32.mrb[4].mxu1 }
 0x1de   :  { %v2171_v20 = vrot.slane %v2170_v16, 4  ;;  %v2206_v21 = vadd.f32 %v2194_v17, %v2192_v15  ;;  %v2154_v23 = vpop.f32.mrb[4].mxu0  ;;  %v1944_v27 = vpop.f32.mrb[5].mxu1 }
 0x1df   :  { %v2165_v24 = vadd.f32 %v2164_v18, %v2163_v13  ;;  %v2200_v25 = vrot.slane %v2199_v19, 4  ;;  %v4018_v26 = vadd.f32 %v2154_v23, %v1942_v22  ;;  %v2156_v28 = vpop.f32.mrb[5].mxu0  ;;  %v1946_v32 = vpop.f32.mrb[6].mxu1 }
 0x1e0   :  { %v2172_v29 = vadd.f32 %v2171_v20, %v2170_v16  ;;  %v2207_v30 = vrot.slane %v2206_v21, 4  ;;  %v4020_v31 = vadd.f32 %v2156_v28, %v1944_v27  ;;  %v2158_v33 = vpop.f32.mrb[6].mxu0  ;;  %v1948_v38 = vpop.f32.mrb[7].mxu1 }
 0x1e1   :  { %v2166_v34 = vrot.slane %v2165_v24, 2  ;;  %v2201_v35 = vadd.f32 %v2200_v25, %v2199_v19  ;;  %v2195_v36 = vmul.f32 %v4018_v26, %v4018_v26  ;;  %v4024_v37 = vadd.f32 %v2158_v33, %v1946_v32  ;;  %v2160_v39 = vpop.f32.mrb[7].mxu0 }
 0x1e2   :  { %v2173_v40 = vrot.slane %v2172_v29, 2  ;;  %v2208_v41 = vadd.f32 %v2207_v30, %v2206_v21  ;;  %v2196_v43 = vmul.f32 %v4020_v31, %v4020_v31  ;;  %v4028_v44 = vadd.f32 %v2160_v39, %v1948_v38 }
 0x1e3   :  { %v2167_v48 = vadd.f32 %v2166_v34, %v2165_v24  ;;  %v2202_v49 = vrot.slane %v2201_v35, 2  ;;  %v2177_v42 = vadd.f32 %v4024_v37, %v4018_v26  ;;  %v2197_v45 = vmul.f32 %v4024_v37, %v4024_v37 }
 0x1e4   :  { %v2174_v46 = vadd.f32 %v2173_v40, %v2172_v29  ;;  %v2209_v47 = vrot.slane %v2208_v41, 2  ;;  %v2184_v50 = vadd.f32 %v4028_v44, %v4020_v31  ;;  %v2198_v51 = vmul.f32 %v4028_v44, %v4028_v44 }
 0x1e5   :  { %v2168_v52 = vrot.slane %v2167_v48, 1  ;;  %v2203_v53 = vadd.f32 %v2202_v49, %v2201_v35  ;;  %v2178_v54 = vrot.slane %v2177_v42, 4  ;;  %v2213_v55 = vadd.f32 %v2197_v45, %v2195_v36 }
 0x1e6   :  { %v2175_v57 = vrot.slane %v2174_v46, 1  ;;  %v2210_v58 = vadd.f32 %v2209_v47, %v2208_v41  ;;  %v2185_v62 = vrot.slane %v2184_v50, 4  ;;  %v2220_v63 = vadd.f32 %v2198_v51, %v2196_v43 }
 0x1e7   :  { %v2169_v0 = vadd.f32 %v2168_v52, %v2167_v48  ;;  %v2204_v1 = vrot.slane %v2203_v53, 1  ;;  %v2179_v2 = vadd.f32 %v2178_v54, %v2177_v42  ;;  %v2214_v3 = vrot.slane %v2213_v55, 4 }
 0x1e8   :  { %v2176_v4 = vadd.f32 %v2175_v57, %v2174_v46  ;;  %v2211_v5 = vrot.slane %v2210_v58, 1  ;;  %v2186_v56 = vadd.f32 %v2185_v62, %v2184_v50  ;;  %v2221_v59 = vrot.slane %v2220_v63, 4 }
 0x1e9   :  { %v2205_v60 = vadd.f32 %v2204_v1, %v2203_v53  ;;  %v2227_v61 = vmul.f32 0.0625, %v2169_v0  ;;  %v2180_v9 = vrot.slane %v2179_v2, 2  ;;  %v2215_v10 = vadd.f32 %v2214_v3, %v2213_v55 }
 0x1ea   :  { %v2212_v12 = vadd.f32 %v2211_v5, %v2210_v58  ;;  %v2228_v13 = vmul.f32 0.0625, %v2176_v4  ;;  %v2187_v14 = vrot.slane %v2186_v56, 2  ;;  %v2222_v15 = vadd.f32 %v2221_v59, %v2220_v63 }
 0x1eb   :  { %v2231_v16 = vmul.f32 0.0625, %v2205_v60  ;;  %v2235_v17 = vmul.f32 %v2227_v61, %v2227_v61  ;;  %v2247_v18 = vsub.f32 %v3998_v6, %v2227_v61  ;;  %v2249_v19 = vsub.f32 %v4002_v8, %v2227_v61 }
 0x1ec   :  { %v2232_v20 = vmul.f32 0.0625, %v2212_v12  ;;  %v2236_v21 = vmul.f32 %v2228_v13, %v2228_v13  ;;  %v2248_v22 = vsub.f32 %v4000_v7, %v2228_v13  ;;  %v2250_v23 = vsub.f32 %v4004_v11, %v2228_v13 }
 0x1ed   :  { %v2239_v24 = vsub.f32 %v2231_v16, %v2235_v17  ;;  %v2181_v25 = vadd.f32 %v2180_v9, %v2179_v2  ;;  %v2216_v27 = vrot.slane %v2215_v10, 2  ;;  %v2188_v28 = vadd.f32 %v2187_v14, %v2186_v56 }
 0x1ee   :  { %v2240_v29 = vsub.f32 %v2232_v20, %v2236_v21  ;;  %v2223_v30 = vrot.slane %v2222_v15, 2 }
 0x1ef   :  { %v2243_v32 = vmax.f32 %v2239_v24, 0.0  ;;  %v2182_v33 = vrot.slane %v2181_v25, 1  ;;  %v2217_v34 = vadd.f32 %v2216_v27, %v2215_v10  ;;  %v2189_v35 = vrot.slane %v2188_v28, 1 }
 0x1f0   :  { %v2244_v36 = vmax.f32 %v2240_v29, 0.0  ;;  %v2224_v6 = vadd.f32 %v2223_v30, %v2222_v15 }
 0x1f1   :  { %v2255_v38 = vadd.f32 1e-05, %v2243_v32  ;;  %v2183_v8 = vadd.f32 %v2182_v33, %v2181_v25  ;;  %v2218_v39 = vrot.slane %v2217_v34, 1  ;;  %v2190_v40 = vadd.f32 %v2189_v35, %v2188_v28 }
 0x1f2   :  { %v2256_v41 = vadd.f32 1e-05, %v2244_v36  ;;  %v2225_v7 = vrot.slane %v2224_v6, 1 }
 0x1f3   :  { %3063 = vrsqrt.f32 %v2255_v38  ;;  %v2219_v11 = vadd.f32 %v2218_v39, %v2217_v34  ;;  %v2229_v43 = vmul.f32 0.0625, %v2183_v8  ;;  %v2230_v48 = vmul.f32 0.0625, %v2190_v40 }
 0x1f4   :  { %3065 = vrsqrt.f32 %v2256_v41  ;;  %v2226_v49 = vadd.f32 %v2225_v7, %v2224_v6 }
 0x1f5   :  { %v2233_v42 = vmul.f32 0.0625, %v2219_v11  ;;  %v2237_v45 = vmul.f32 %v2229_v43, %v2229_v43  ;;  %v2251_v46 = vsub.f32 %v4018_v26, %v2229_v43  ;;  %v2253_v47 = vsub.f32 %v4024_v37, %v2229_v43 }
 0x1f6   :  { %v2234_v50 = vmul.f32 0.0625, %v2226_v49  ;;  %v2238_v51 = vmul.f32 %v2230_v48, %v2230_v48  ;;  %v2252_v52 = vsub.f32 %v4020_v31, %v2230_v48  ;;  %v2254_v53 = vsub.f32 %v4028_v44, %v2230_v48 }
 0x1f7   :  { %v2241_v54 = vsub.f32 %v2233_v42, %v2237_v45 }
 0x1f8   :  { %v2242_v55 = vsub.f32 %v2234_v50, %v2238_v51 }
 0x1f9   :  { %v2245_v57 = vmax.f32 %v2241_v54, 0.0 }
 0x1fa   :  { %v2246_v58 = vmax.f32 %v2242_v55, 0.0 }
 0x1fb   :  { %v2257_v62 = vadd.f32 1e-05, %v2245_v57 }
 0x1fc   :  { %v2258_v63 = vadd.f32 1e-05, %v2246_v58 }
 0x1fd   :  { %v3064_v0 = vpop.eup %3063  ;;  %3067 = vrsqrt.f32 %v2257_v62 }
 0x1fe   :  { %v3066_v1 = vpop.eup %3065  ;;  %v2263_v2 = vmul.f32 %v3064_v0, %v2247_v18  ;;  %v2265_v3 = vmul.f32 %v3064_v0, %v2249_v19  ;;  %3069 = vrsqrt.f32 %v2258_v63 }
 0x1ff   :  { %v2264_v26 = vmul.f32 %v3066_v1, %v2248_v22  ;;  %v2266_v37 = vmul.f32 %v3066_v1, %v2250_v23 }
 0x200   :  { %vm2271_vm0 = vcmp.gt.f32.partialorder %v2263_v2, 0.0  ;;  %vm2273_vm1 = vcmp.gt.f32.partialorder %v2265_v3, 0.0  ;;  %v2279_v4 = vmul.f32 0.2, %v2263_v2  ;;  %v2281_v31 = vmul.f32 0.2, %v2265_v3 }
 0x201   :  { %vm2272_vm2 = vcmp.gt.f32.partialorder %v2264_v26, 0.0  ;;  %vm2274_vm3 = vcmp.gt.f32.partialorder %v2266_v37, 0.0  ;;  %v2280_v44 = vmul.f32 0.2, %v2264_v26  ;;  %v2282_v5 = vmul.f32 0.2, %v2266_v37 }
 0x202   :  { %v2287_v56 = vsel %vm2271_vm0, %v2263_v2, %v2279_v4  ;;  %v2289_v59 = vsel %vm2273_vm1, %v2265_v3, %v2281_v31 }
 0x203   :  { %v2288_v60 = vsel %vm2272_vm2, %v2264_v26, %v2280_v44  ;;  %v2290_v61 = vsel %vm2274_vm3, %v2266_v37, %v2282_v5 }
 0x204   :  { %v2619_v9 = vpack.c.bf16 %v2288_v60, %v2287_v56  ;;  %v2620_v10 = vpack.c.bf16 %v2290_v61, %v2289_v59 }
 0x206   :  { %2319 = vst [vmem:[%s4060_s2] sm:$0xff] %v2619_v9  ;;  %2320 = vst [vmem:[%s4060_s2 + $0x8] sm:$0xff] %v2620_v10 }
 0x207   :  { %v3068_v12 = vpop.eup %3067 }
 0x208   :  { %v3070_v13 = vpop.eup %3069  ;;  %v2267_v14 = vmul.f32 %v3068_v12, %v2251_v46  ;;  %v2269_v15 = vmul.f32 %v3068_v12, %v2253_v47 }
 0x209   :  { %v2268_v16 = vmul.f32 %v3070_v13, %v2252_v52  ;;  %v2270_v17 = vmul.f32 %v3070_v13, %v2254_v53 }
 0x20a   :  { %vm2275_vm4 = vcmp.gt.f32.partialorder %v2267_v14, 0.0  ;;  %vm2277_vm5 = vcmp.gt.f32.partialorder %v2269_v15, 0.0  ;;  %v2283_v18 = vmul.f32 0.2, %v2267_v14  ;;  %v2285_v19 = vmul.f32 0.2, %v2269_v15 }
 0x20b   :  { %vm2276_vm6 = vcmp.gt.f32.partialorder %v2268_v16, 0.0  ;;  %vm2278_vm7 = vcmp.gt.f32.partialorder %v2270_v17, 0.0  ;;  %v2284_v20 = vmul.f32 0.2, %v2268_v16  ;;  %v2286_v21 = vmul.f32 0.2, %v2270_v17 }
 0x20c   :  { %v2291_v22 = vsel %vm2275_vm4, %v2267_v14, %v2283_v18  ;;  %v2293_v23 = vsel %vm2277_vm5, %v2269_v15, %v2285_v19 }
 0x20d   :  { %v2292_v24 = vsel %vm2276_vm6, %v2268_v16, %v2284_v20  ;;  %v2294_v25 = vsel %vm2278_vm7, %v2270_v17, %v2286_v21 }
 0x20e   :  { %v2621_v27 = vpack.c.bf16 %v2292_v24, %v2291_v22  ;;  %v2622_v28 = vpack.c.bf16 %v2294_v25, %v2293_v23 }
 0x210   :  { %2321 = vst [vmem:[%s4060_s2 + $0x10] sm:$0xff] %v2621_v27  ;;  %2322 = vst [vmem:[%s4060_s2 + $0x18] sm:$0xff] %v2622_v28 }

// kernel: discriminator_forward.8
= control target key start
LH: loop header
LB: loop body
LE: loop exit
PB: predicated region body
PF: predicated region fallthrough
CT: control target
= control target key end

     0   :  { %s10050_s9 = smov 0   ;;  %s10052_s10 = smov 0   ;;  %s11926_s0 = inlined_call_operand.vmem [shape: bf16[16,4096], index: 0, kind: input, shape index: {}]   ;;  %s11927_s1 = inlined_call_operand.vmem [shape: bf16[4096,512], index: 1, kind: input, shape index: {}]   ;;  %s11928_s2 = inlined_call_operand.vmem [shape: bf16[16,512], index: 2, kind: output, shape index: {}]  }
   0x1   :  { %s10054_s11 = smov 0   ;;  %s10056_s12 = smov 0  }
   0x2   :  { %s10058_s13 = smov 0  }
   0x3 LB: > { %s21_s14 = sadd.s32 1, %s10029_s12  ;;  %s8553_s15 = sadd.s32 4294967295, %s10033_s13   ;;  %s10033_s13 = sphi %s10058_s13, %s12_s13   ;;  %s10029_s12 = sphi %s10056_s12, %s11933_s12   ;;  %s10025_s11 = sphi %s10054_s11, %s11932_s11   ;;  %s10021_s10 = sphi %s10052_s10, %s11931_s10   ;;  %s10017_s9 = sphi %s10050_s9, %s11930_s9  }
   0x4   : > { %p22_p0 = scmp.ge.s32.totalorder %s21_s14, 2  ;;  %p64_p1 = scmp.ne.s32.totalorder %s10021_s10, %s10017_s9 }
   0x5   : > { %p65_p2 = scmp.eq.s32.totalorder %s10033_s13, 0  ;;  %p96_p4 = scmp.eq.s32.totalorder %s8553_s15, 1 }
   0x6   : > { %s11935_s14 = smov (%p22_p0, %s21_s14), 0  ;;  %s57_s17 = sadd.s32 1, %s10021_s10 }
   0x7   : > { %p66_p3 = por %p65_p2, %p64_p1  ;;  %s54_s16 = ssub.s32 %s10029_s12, %s11935_s14 }
   0x8   : > { %p55_p5 = scmp.eq.s32.totalorder %s54_s16, 0  ;;  %p10085_p6 = por %p96_p4, %p64_p1 }
   0x9   : > { %p8557_p7 = scmp.ge.s32.totalorder %s10033_s13, 2 }
   0xa   : > { %s10090_s19 = scalar_select %p55_p5, %s10021_s10, %s57_s17  }
   0xb   : > { %128 = sbr.rel (%p8557_p7) target bundleno = 278 (0x116), region = 20 }
  0x12   : > { %131 = sbr.rel (!%p66_p3) target bundleno = 278 (0x116), region = 24  ;;  %s133_s20 = sand.u32 (%p66_p3), 1, %s10021_s10  }
  0x13   : > { %s9115_s21 = sshll.u32 (%p66_p3), %s10029_s12, 3  ;;  %s8558_s22 = sshll.u32 (%p66_p3), %s133_s20, 12 }
  0x14   : > { %s10098_s25 = scalar_lea.vmem (%p66_p3), %s11927_s1, %s9115_s21  ;;  %s10103_s26 = scalar_lea.vmem (%p66_p3), [#allocation2], %s8558_s22 }
  0x15   : > { %v1191_v0 = vld [vmem:[%s10098_s25] sm:$0xff] (%p66_p3)  ;;  %v1193_v1 = vld [vmem:[%s10098_s25 + $0x10] sm:$0xff] (%p66_p3) }
  0x16   : > { %v1195_v2 = vld [vmem:[%s10098_s25 + $0x20] sm:$0xff] (%p66_p3)  ;;  %1192 = vst [vmem:[%s10103_s26] sm:$0xff] (%p66_p3), %v1191_v0  ;;  %1194 = vst [vmem:[%s10103_s26 + $0x8] sm:$0xff] (%p66_p3), %v1193_v1  ;;  %v1197_v3 = vld [vmem:[%s10098_s25 + $0x30] sm:$0xff] (%p66_p3) }
  0x17   : > { %1196 = vst [vmem:[%s10103_s26 + $0x10] sm:$0xff] (%p66_p3), %v1195_v2  ;;  %v1199_v4 = vld [vmem:[%s10098_s25 + $0x40] sm:$0xff] (%p66_p3)  ;;  %v1201_v5 = vld [vmem:[%s10098_s25 + $0x50] sm:$0xff] (%p66_p3)  ;;  %1198 = vst [vmem:[%s10103_s26 + $0x18] sm:$0xff] (%p66_p3), %v1197_v3 }
  0x18   : > { %1200 = vst [vmem:[%s10103_s26 + $0x20] sm:$0xff] (%p66_p3), %v1199_v4  ;;  %1202 = vst [vmem:[%s10103_s26 + $0x28] sm:$0xff] (%p66_p3), %v1201_v5  ;;  %v1203_v6 = vld [vmem:[%s10098_s25 + $0x60] sm:$0xff] (%p66_p3)  ;;  %v1205_v7 = vld [vmem:[%s10098_s25 + $0x70] sm:$0xff] (%p66_p3) }
  0x19   : > { %v1207_v8 = vld [vmem:[%s10098_s25 + $0x80] sm:$0xff]  ;;  %1204 = vst [vmem:[%s10103_s26 + $0x30] sm:$0xff] %v1203_v6  ;;  %1206 = vst [vmem:[%s10103_s26 + $0x38] sm:$0xff] %v1205_v7  ;;  %v1209_v9 = vld [vmem:[%s10098_s25 + $0x90] sm:$0xff] }
  0x1a   : > { %1208 = vst [vmem:[%s10103_s26 + $0x40] sm:$0xff] %v1207_v8  ;;  %v1211_v10 = vld [vmem:[%s10098_s25 + $0xa0] sm:$0xff]  ;;  %v1213_v11 = vld [vmem:[%s10098_s25 + $0xb0] sm:$0xff]  ;;  %1210 = vst [vmem:[%s10103_s26 + $0x48] sm:$0xff] %v1209_v9 }
  0x1b   : > { %1212 = vst [vmem:[%s10103_s26 + $0x50] sm:$0xff] %v1211_v10  ;;  %1214 = vst [vmem:[%s10103_s26 + $0x58] sm:$0xff] %v1213_v11  ;;  %v1215_v12 = vld [vmem:[%s10098_s25 + $0xc0] sm:$0xff]  ;;  %v1217_v13 = vld [vmem:[%s10098_s25 + $0xd0] sm:$0xff] }
  0x1c   : > { %v1219_v14 = vld [vmem:[%s10098_s25 + $0xe0] sm:$0xff]  ;;  %1216 = vst [vmem:[%s10103_s26 + $0x60] sm:$0xff] %v1215_v12  ;;  %1218 = vst [vmem:[%s10103_s26 + $0x68] sm:$0xff] %v1217_v13  ;;  %v1221_v15 = vld [vmem:[%s10098_s25 + $0xf0] sm:$0xff] }
  0x1d   : > { %1220 = vst [vmem:[%s10103_s26 + $0x70] sm:$0xff] %v1219_v14  ;;  %v1223_v16 = vld [vmem:[%s10098_s25 + $0x100] sm:$0xff]  ;;  %v1225_v17 = vld [vmem:[%s10098_s25 + $0x110] sm:$0xff]  ;;  %1222 = vst [vmem:[%s10103_s26 + $0x78] sm:$0xff] %v1221_v15 }
  0x1e   : > { %1224 = vst [vmem:[%s10103_s26 + $0x80] sm:$0xff] %v1223_v16  ;;  %1226 = vst [vmem:[%s10103_s26 + $0x88] sm:$0xff] %v1225_v17  ;;  %v1227_v18 = vld [vmem:[%s10098_s25 + $0x120] sm:$0xff]  ;;  %v1229_v19 = vld [vmem:[%s10098_s25 + $0x130] sm:$0xff] }
  0x1f   : > { %v1231_v20 = vld [vmem:[%s10098_s25 + $0x140] sm:$0xff]  ;;  %1228 = vst [vmem:[%s10103_s26 + $0x90] sm:$0xff] %v1227_v18  ;;  %1230 = vst [vmem:[%s10103_s26 + $0x98] sm:$0xff] %v1229_v19  ;;  %v1233_v21 = vld [vmem:[%s10098_s25 + $0x150] sm:$0xff] }
  0x20   : > { %1232 = vst [vmem:[%s10103_s26 + $0xa0] sm:$0xff] %v1231_v20  ;;  %v1235_v22 = vld [vmem:[%s10098_s25 + $0x160] sm:$0xff]  ;;  %v1237_v23 = vld [vmem:[%s10098_s25 + $0x170] sm:$0xff]  ;;  %1234 = vst [vmem:[%s10103_s26 + $0xa8] sm:$0xff] %v1233_v21 }
  0x21   : > { %1236 = vst [vmem:[%s10103_s26 + $0xb0] sm:$0xff] %v1235_v22  ;;  %1238 = vst [vmem:[%s10103_s26 + $0xb8] sm:$0xff] %v1237_v23  ;;  %v1239_v24 = vld [vmem:[%s10098_s25 + $0x180] sm:$0xff]  ;;  %v1241_v25 = vld [vmem:[%s10098_s25 + $0x190] sm:$0xff] }
  0x22   : > { %v1243_v26 = vld [vmem:[%s10098_s25 + $0x1a0] sm:$0xff]  ;;  %1240 = vst [vmem:[%s10103_s26 + $0xc0] sm:$0xff] %v1239_v24  ;;  %1242 = vst [vmem:[%s10103_s26 + $0xc8] sm:$0xff] %v1241_v25  ;;  %v1245_v27 = vld [vmem:[%s10098_s25 + $0x1b0] sm:$0xff] }
  0x23   : > { %1244 = vst [vmem:[%s10103_s26 + $0xd0] sm:$0xff] %v1243_v26  ;;  %v1247_v28 = vld [vmem:[%s10098_s25 + $0x1c0] sm:$0xff]  ;;  %v1249_v29 = vld [vmem:[%s10098_s25 + $0x1d0] sm:$0xff]  ;;  %1246 = vst [vmem:[%s10103_s26 + $0xd8] sm:$0xff] %v1245_v27 }
  0x24   : > { %1248 = vst [vmem:[%s10103_s26 + $0xe0] sm:$0xff] %v1247_v28  ;;  %1250 = vst [vmem:[%s10103_s26 + $0xe8] sm:$0xff] %v1249_v29  ;;  %v1251_v30 = vld [vmem:[%s10098_s25 + $0x1e0] sm:$0xff]  ;;  %v1253_v31 = vld [vmem:[%s10098_s25 + $0x1f0] sm:$0xff] }
  0x25   : > { %v1255_v32 = vld [vmem:[%s10098_s25 + $0x200] sm:$0xff]  ;;  %1252 = vst [vmem:[%s10103_s26 + $0xf0] sm:$0xff] %v1251_v30  ;;  %1254 = vst [vmem:[%s10103_s26 + $0xf8] sm:$0xff] %v1253_v31  ;;  %v1257_v33 = vld [vmem:[%s10098_s25 + $0x210] sm:$0xff] }
  0x26   : > { %1256 = vst [vmem:[%s10103_s26 + $0x100] sm:$0xff] %v1255_v32  ;;  %v1259_v34 = vld [vmem:[%s10098_s25 + $0x220] sm:$0xff]  ;;  %v1261_v35 = vld [vmem:[%s10098_s25 + $0x230] sm:$0xff]  ;;  %1258 = vst [vmem:[%s10103_s26 + $0x108] sm:$0xff] %v1257_v33 }
  0x27   : > { %1260 = vst [vmem:[%s10103_s26 + $0x110] sm:$0xff] %v1259_v34  ;;  %1262 = vst [vmem:[%s10103_s26 + $0x118] sm:$0xff] %v1261_v35  ;;  %v1263_v36 = vld [vmem:[%s10098_s25 + $0x240] sm:$0xff]  ;;  %v1265_v37 = vld [vmem:[%s10098_s25 + $0x250] sm:$0xff] }
  0x28   : > { %v1267_v38 = vld [vmem:[%s10098_s25 + $0x260] sm:$0xff]  ;;  %1264 = vst [vmem:[%s10103_s26 + $0x120] sm:$0xff] %v1263_v36  ;;  %1266 = vst [vmem:[%s10103_s26 + $0x128] sm:$0xff] %v1265_v37  ;;  %v1269_v39 = vld [vmem:[%s10098_s25 + $0x270] sm:$0xff] }
  0x29   : > { %1268 = vst [vmem:[%s10103_s26 + $0x130] sm:$0xff] %v1267_v38  ;;  %v1271_v40 = vld [vmem:[%s10098_s25 + $0x280] sm:$0xff]  ;;  %v1273_v41 = vld [vmem:[%s10098_s25 + $0x290] sm:$0xff]  ;;  %1270 = vst [vmem:[%s10103_s26 + $0x138] sm:$0xff] %v1269_v39 }
  0x2a   : > { %1272 = vst [vmem:[%s10103_s26 + $0x140] sm:$0xff] %v1271_v40  ;;  %1274 = vst [vmem:[%s10103_s26 + $0x148] sm:$0xff] %v1273_v41  ;;  %v1275_v42 = vld [vmem:[%s10098_s25 + $0x2a0] sm:$0xff]  ;;  %v1277_v43 = vld [vmem:[%s10098_s25 + $0x2b0] sm:$0xff] }
  0x2b   : > { %v1279_v44 = vld [vmem:[%s10098_s25 + $0x2c0] sm:$0xff]  ;;  %1276 = vst [vmem:[%s10103_s26 + $0x150] sm:$0xff] %v1275_v42  ;;  %1278 = vst [vmem:[%s10103_s26 + $0x158] sm:$0xff] %v1277_v43  ;;  %v1281_v45 = vld [vmem:[%s10098_s25 + $0x2d0] sm:$0xff] }
  0x2c   : > { %1280 = vst [vmem:[%s10103_s26 + $0x160] sm:$0xff] %v1279_v44  ;;  %v1283_v46 = vld [vmem:[%s10098_s25 + $0x2e0] sm:$0xff]  ;;  %v1285_v47 = vld [vmem:[%s10098_s25 + $0x2f0] sm:$0xff]  ;;  %1282 = vst [vmem:[%s10103_s26 + $0x168] sm:$0xff] %v1281_v45 }
  0x2d   : > { %1284 = vst [vmem:[%s10103_s26 + $0x170] sm:$0xff] %v1283_v46  ;;  %1286 = vst [vmem:[%s10103_s26 + $0x178] sm:$0xff] %v1285_v47  ;;  %v1287_v48 = vld [vmem:[%s10098_s25 + $0x300] sm:$0xff]  ;;  %v1289_v49 = vld [vmem:[%s10098_s25 + $0x310] sm:$0xff] }
  0x2e   : > { %v1291_v50 = vld [vmem:[%s10098_s25 + $0x320] sm:$0xff]  ;;  %1288 = vst [vmem:[%s10103_s26 + $0x180] sm:$0xff] %v1287_v48  ;;  %1290 = vst [vmem:[%s10103_s26 + $0x188] sm:$0xff] %v1289_v49  ;;  %v1293_v51 = vld [vmem:[%s10098_s25 + $0x330] sm:$0xff] }
  0x2f   : > { %1292 = vst [vmem:[%s10103_s26 + $0x190] sm:$0xff] %v1291_v50  ;;  %v1295_v52 = vld [vmem:[%s10098_s25 + $0x340] sm:$0xff]  ;;  %v1297_v53 = vld [vmem:[%s10098_s25 + $0x350] sm:$0xff]  ;;  %1294 = vst [vmem:[%s10103_s26 + $0x198] sm:$0xff] %v1293_v51 }
  0x30   : > { %1296 = vst [vmem:[%s10103_s26 + $0x1a0] sm:$0xff] %v1295_v52  ;;  %1298 = vst [vmem:[%s10103_s26 + $0x1a8] sm:$0xff] %v1297_v53  ;;  %v1299_v54 = vld [vmem:[%s10098_s25 + $0x360] sm:$0xff]  ;;  %v1301_v55 = vld [vmem:[%s10098_s25 + $0x370] sm:$0xff] }
  0x31   : > { %v1303_v56 = vld [vmem:[%s10098_s25 + $0x380] sm:$0xff]  ;;  %1300 = vst [vmem:[%s10103_s26 + $0x1b0] sm:$0xff] %v1299_v54  ;;  %1302 = vst [vmem:[%s10103_s26 + $0x1b8] sm:$0xff] %v1301_v55  ;;  %v1305_v57 = vld [vmem:[%s10098_s25 + $0x390] sm:$0xff] }
  0x32   : > { %1304 = vst [vmem:[%s10103_s26 + $0x1c0] sm:$0xff] %v1303_v56  ;;  %v1307_v58 = vld [vmem:[%s10098_s25 + $0x3a0] sm:$0xff]  ;;  %v1309_v59 = vld [vmem:[%s10098_s25 + $0x3b0] sm:$0xff]  ;;  %1306 = vst [vmem:[%s10103_s26 + $0x1c8] sm:$0xff] %v1305_v57 }
  0x33   : > { %1308 = vst [vmem:[%s10103_s26 + $0x1d0] sm:$0xff] %v1307_v58  ;;  %1310 = vst [vmem:[%s10103_s26 + $0x1d8] sm:$0xff] %v1309_v59  ;;  %v1311_v60 = vld [vmem:[%s10098_s25 + $0x3c0] sm:$0xff]  ;;  %v1313_v61 = vld [vmem:[%s10098_s25 + $0x3d0] sm:$0xff] }
  0x34   : > { %v1315_v62 = vld [vmem:[%s10098_s25 + $0x3e0] sm:$0xff]  ;;  %1312 = vst [vmem:[%s10103_s26 + $0x1e0] sm:$0xff] %v1311_v60  ;;  %1314 = vst [vmem:[%s10103_s26 + $0x1e8] sm:$0xff] %v1313_v61  ;;  %v1317_v63 = vld [vmem:[%s10098_s25 + $0x3f0] sm:$0xff] }
  0x35   : > { %1316 = vst [vmem:[%s10103_s26 + $0x1f0] sm:$0xff] %v1315_v62  ;;  %v1319_v0 = vld [vmem:[%s10098_s25 + $0x400] sm:$0xff]  ;;  %v1321_v1 = vld [vmem:[%s10098_s25 + $0x410] sm:$0xff]  ;;  %1318 = vst [vmem:[%s10103_s26 + $0x1f8] sm:$0xff] %v1317_v63 }
  0x36   : > { %1320 = vst [vmem:[%s10103_s26 + $0x200] sm:$0xff] %v1319_v0  ;;  %1322 = vst [vmem:[%s10103_s26 + $0x208] sm:$0xff] %v1321_v1  ;;  %v1323_v2 = vld [vmem:[%s10098_s25 + $0x420] sm:$0xff]  ;;  %v1325_v3 = vld [vmem:[%s10098_s25 + $0x430] sm:$0xff] }
  0x37   : > { %v1327_v4 = vld [vmem:[%s10098_s25 + $0x440] sm:$0xff]  ;;  %1324 = vst [vmem:[%s10103_s26 + $0x210] sm:$0xff] %v1323_v2  ;;  %1326 = vst [vmem:[%s10103_s26 + $0x218] sm:$0xff] %v1325_v3  ;;  %v1329_v5 = vld [vmem:[%s10098_s25 + $0x450] sm:$0xff] }
  0x38   : > { %1328 = vst [vmem:[%s10103_s26 + $0x220] sm:$0xff] %v1327_v4  ;;  %v1331_v6 = vld [vmem:[%s10098_s25 + $0x460] sm:$0xff]  ;;  %v1333_v7 = vld [vmem:[%s10098_s25 + $0x470] sm:$0xff]  ;;  %1330 = vst [vmem:[%s10103_s26 + $0x228] sm:$0xff] %v1329_v5 }
  0x39   : > { %1332 = vst [vmem:[%s10103_s26 + $0x230] sm:$0xff] %v1331_v6  ;;  %1334 = vst [vmem:[%s10103_s26 + $0x238] sm:$0xff] %v1333_v7  ;;  %v1335_v8 = vld [vmem:[%s10098_s25 + $0x480] sm:$0xff]  ;;  %v1337_v9 = vld [vmem:[%s10098_s25 + $0x490] sm:$0xff] }
  0x3a   : > { %v1339_v10 = vld [vmem:[%s10098_s25 + $0x4a0] sm:$0xff]  ;;  %1336 = vst [vmem:[%s10103_s26 + $0x240] sm:$0xff] %v1335_v8  ;;  %1338 = vst [vmem:[%s10103_s26 + $0x248] sm:$0xff] %v1337_v9  ;;  %v1341_v11 = vld [vmem:[%s10098_s25 + $0x4b0] sm:$0xff] }
  0x3b   : > { %1340 = vst [vmem:[%s10103_s26 + $0x250] sm:$0xff] %v1339_v10  ;;  %v1343_v12 = vld [vmem:[%s10098_s25 + $0x4c0] sm:$0xff]  ;;  %v1345_v13 = vld [vmem:[%s10098_s25 + $0x4d0] sm:$0xff]  ;;  %1342 = vst [vmem:[%s10103_s26 + $0x258] sm:$0xff] %v1341_v11 }
  0x3c   : > { %1344 = vst [vmem:[%s10103_s26 + $0x260] sm:$0xff] %v1343_v12  ;;  %1346 = vst [vmem:[%s10103_s26 + $0x268] sm:$0xff] %v1345_v13  ;;  %v1347_v14 = vld [vmem:[%s10098_s25 + $0x4e0] sm:$0xff]  ;;  %v1349_v15 = vld [vmem:[%s10098_s25 + $0x4f0] sm:$0xff] }
  0x3d   : > { %v1351_v16 = vld [vmem:[%s10098_s25 + $0x500] sm:$0xff]  ;;  %1348 = vst [vmem:[%s10103_s26 + $0x270] sm:$0xff] %v1347_v14  ;;  %1350 = vst [vmem:[%s10103_s26 + $0x278] sm:$0xff] %v1349_v15  ;;  %v1353_v17 = vld [vmem:[%s10098_s25 + $0x510] sm:$0xff] }
  0x3e   : > { %1352 = vst [vmem:[%s10103_s26 + $0x280] sm:$0xff] %v1351_v16  ;;  %v1355_v18 = vld [vmem:[%s10098_s25 + $0x520] sm:$0xff]  ;;  %v1357_v19 = vld [vmem:[%s10098_s25 + $0x530] sm:$0xff]  ;;  %1354 = vst [vmem:[%s10103_s26 + $0x288] sm:$0xff] %v1353_v17 }
  0x3f   : > { %1356 = vst [vmem:[%s10103_s26 + $0x290] sm:$0xff] %v1355_v18  ;;  %1358 = vst [vmem:[%s10103_s26 + $0x298] sm:$0xff] %v1357_v19  ;;  %v1359_v20 = vld [vmem:[%s10098_s25 + $0x540] sm:$0xff]  ;;  %v1361_v21 = vld [vmem:[%s10098_s25 + $0x550] sm:$0xff] }
  0x40   : > { %v1363_v22 = vld [vmem:[%s10098_s25 + $0x560] sm:$0xff]  ;;  %1360 = vst [vmem:[%s10103_s26 + $0x2a0] sm:$0xff] %v1359_v20  ;;  %1362 = vst [vmem:[%s10103_s26 + $0x2a8] sm:$0xff] %v1361_v21  ;;  %v1365_v23 = vld [vmem:[%s10098_s25 + $0x570] sm:$0xff] }
  0x41   : > { %1364 = vst [vmem:[%s10103_s26 + $0x2b0] sm:$0xff] %v1363_v22  ;;  %v1367_v24 = vld [vmem:[%s10098_s25 + $0x580] sm:$0xff]  ;;  %v1369_v25 = vld [vmem:[%s10098_s25 + $0x590] sm:$0xff]  ;;  %1366 = vst [vmem:[%s10103_s26 + $0x2b8] sm:$0xff] %v1365_v23 }
  0x42   : > { %1368 = vst [vmem:[%s10103_s26 + $0x2c0] sm:$0xff] %v1367_v24  ;;  %1370 = vst [vmem:[%s10103_s26 + $0x2c8] sm:$0xff] %v1369_v25  ;;  %v1371_v26 = vld [vmem:[%s10098_s25 + $0x5a0] sm:$0xff]  ;;  %v1373_v27 = vld [vmem:[%s10098_s25 + $0x5b0] sm:$0xff] }
  0x43   : > { %v1375_v28 = vld [vmem:[%s10098_s25 + $0x5c0] sm:$0xff]  ;;  %1372 = vst [vmem:[%s10103_s26 + $0x2d0] sm:$0xff] %v1371_v26  ;;  %1374 = vst [vmem:[%s10103_s26 + $0x2d8] sm:$0xff] %v1373_v27  ;;  %v1377_v29 = vld [vmem:[%s10098_s25 + $0x5d0] sm:$0xff] }
  0x44   : > { %1376 = vst [vmem:[%s10103_s26 + $0x2e0] sm:$0xff] %v1375_v28  ;;  %v1379_v30 = vld [vmem:[%s10098_s25 + $0x5e0] sm:$0xff]  ;;  %v1381_v31 = vld [vmem:[%s10098_s25 + $0x5f0] sm:$0xff]  ;;  %1378 = vst [vmem:[%s10103_s26 + $0x2e8] sm:$0xff] %v1377_v29 }
  0x45   : > { %1380 = vst [vmem:[%s10103_s26 + $0x2f0] sm:$0xff] %v1379_v30  ;;  %1382 = vst [vmem:[%s10103_s26 + $0x2f8] sm:$0xff] %v1381_v31  ;;  %v1383_v32 = vld [vmem:[%s10098_s25 + $0x600] sm:$0xff]  ;;  %v1385_v33 = vld [vmem:[%s10098_s25 + $0x610] sm:$0xff] }
  0x46   : > { %v1387_v34 = vld [vmem:[%s10098_s25 + $0x620] sm:$0xff]  ;;  %1384 = vst [vmem:[%s10103_s26 + $0x300] sm:$0xff] %v1383_v32  ;;  %1386 = vst [vmem:[%s10103_s26 + $0x308] sm:$0xff] %v1385_v33  ;;  %v1389_v35 = vld [vmem:[%s10098_s25 + $0x630] sm:$0xff] }
  0x47   : > { %1388 = vst [vmem:[%s10103_s26 + $0x310] sm:$0xff] %v1387_v34  ;;  %v1391_v36 = vld [vmem:[%s10098_s25 + $0x640] sm:$0xff]  ;;  %v1393_v37 = vld [vmem:[%s10098_s25 + $0x650] sm:$0xff]  ;;  %1390 = vst [vmem:[%s10103_s26 + $0x318] sm:$0xff] %v1389_v35 }
  0x48   : > { %1392 = vst [vmem:[%s10103_s26 + $0x320] sm:$0xff] %v1391_v36  ;;  %1394 = vst [vmem:[%s10103_s26 + $0x328] sm:$0xff] %v1393_v37  ;;  %v1395_v38 = vld [vmem:[%s10098_s25 + $0x660] sm:$0xff]  ;;  %v1397_v39 = vld [vmem:[%s10098_s25 + $0x670] sm:$0xff] }
  0x49   : > { %v1399_v40 = vld [vmem:[%s10098_s25 + $0x680] sm:$0xff]  ;;  %1396 = vst [vmem:[%s10103_s26 + $0x330] sm:$0xff] %v1395_v38  ;;  %1398 = vst [vmem:[%s10103_s26 + $0x338] sm:$0xff] %v1397_v39  ;;  %v1401_v41 = vld [vmem:[%s10098_s25 + $0x690] sm:$0xff] }
  0x4a   : > { %1400 = vst [vmem:[%s10103_s26 + $0x340] sm:$0xff] %v1399_v40  ;;  %v1403_v42 = vld [vmem:[%s10098_s25 + $0x6a0] sm:$0xff]  ;;  %v1405_v43 = vld [vmem:[%s10098_s25 + $0x6b0] sm:$0xff]  ;;  %1402 = vst [vmem:[%s10103_s26 + $0x348] sm:$0xff] %v1401_v41 }
  0x4b   : > { %1404 = vst [vmem:[%s10103_s26 + $0x350] sm:$0xff] %v1403_v42  ;;  %1406 = vst [vmem:[%s10103_s26 + $0x358] sm:$0xff] %v1405_v43  ;;  %v1407_v44 = vld [vmem:[%s10098_s25 + $0x6c0] sm:$0xff]  ;;  %v1409_v45 = vld [vmem:[%s10098_s25 + $0x6d0] sm:$0xff] }
  0x4c   : > { %v1411_v46 = vld [vmem:[%s10098_s25 + $0x6e0] sm:$0xff]  ;;  %1408 = vst [vmem:[%s10103_s26 + $0x360] sm:$0xff] %v1407_v44  ;;  %1410 = vst [vmem:[%s10103_s26 + $0x368] sm:$0xff] %v1409_v45  ;;  %v1413_v47 = vld [vmem:[%s10098_s25 + $0x6f0] sm:$0xff] }
  0x4d   : > { %1412 = vst [vmem:[%s10103_s26 + $0x370] sm:$0xff] %v1411_v46  ;;  %v1415_v48 = vld [vmem:[%s10098_s25 + $0x700] sm:$0xff]  ;;  %v1417_v49 = vld [vmem:[%s10098_s25 + $0x710] sm:$0xff]  ;;  %1414 = vst [vmem:[%s10103_s26 + $0x378] sm:$0xff] %v1413_v47 }
  0x4e   : > { %1416 = vst [vmem:[%s10103_s26 + $0x380] sm:$0xff] %v1415_v48  ;;  %1418 = vst [vmem:[%s10103_s26 + $0x388] sm:$0xff] %v1417_v49  ;;  %v1419_v50 = vld [vmem:[%s10098_s25 + $0x720] sm:$0xff]  ;;  %v1421_v51 = vld [vmem:[%s10098_s25 + $0x730] sm:$0xff] }
  0x4f   : > { %v1423_v52 = vld [vmem:[%s10098_s25 + $0x740] sm:$0xff]  ;;  %1420 = vst [vmem:[%s10103_s26 + $0x390] sm:$0xff] %v1419_v50  ;;  %1422 = vst [vmem:[%s10103_s26 + $0x398] sm:$0xff] %v1421_v51  ;;  %v1425_v53 = vld [vmem:[%s10098_s25 + $0x750] sm:$0xff] }
  0x50   : > { %1424 = vst [vmem:[%s10103_s26 + $0x3a0] sm:$0xff] %v1423_v52  ;;  %v1427_v54 = vld [vmem:[%s10098_s25 + $0x760] sm:$0xff]  ;;  %v1429_v55 = vld [vmem:[%s10098_s25 + $0x770] sm:$0xff]  ;;  %1426 = vst [vmem:[%s10103_s26 + $0x3a8] sm:$0xff] %v1425_v53 }
  0x51   : > { %1428 = vst [vmem:[%s10103_s26 + $0x3b0] sm:$0xff] %v1427_v54  ;;  %1430 = vst [vmem:[%s10103_s26 + $0x3b8] sm:$0xff] %v1429_v55  ;;  %v1431_v56 = vld [vmem:[%s10098_s25 + $0x780] sm:$0xff]  ;;  %v1433_v57 = vld [vmem:[%s10098_s25 + $0x790] sm:$0xff] }
  0x52   : > { %v1435_v58 = vld [vmem:[%s10098_s25 + $0x7a0] sm:$0xff]  ;;  %1432 = vst [vmem:[%s10103_s26 + $0x3c0] sm:$0xff] %v1431_v56  ;;  %1434 = vst [vmem:[%s10103_s26 + $0x3c8] sm:$0xff] %v1433_v57  ;;  %v1437_v59 = vld [vmem:[%s10098_s25 + $0x7b0] sm:$0xff] }
  0x53   : > { %1436 = vst [vmem:[%s10103_s26 + $0x3d0] sm:$0xff] %v1435_v58  ;;  %v1439_v60 = vld [vmem:[%s10098_s25 + $0x7c0] sm:$0xff]  ;;  %v1441_v61 = vld [vmem:[%s10098_s25 + $0x7d0] sm:$0xff]  ;;  %1438 = vst [vmem:[%s10103_s26 + $0x3d8] sm:$0xff] %v1437_v59 }
  0x54   : > { %1440 = vst [vmem:[%s10103_s26 + $0x3e0] sm:$0xff] %v1439_v60  ;;  %1442 = vst [vmem:[%s10103_s26 + $0x3e8] sm:$0xff] %v1441_v61  ;;  %v1443_v62 = vld [vmem:[%s10098_s25 + $0x7e0] sm:$0xff]  ;;  %v1445_v63 = vld [vmem:[%s10098_s25 + $0x7f0] sm:$0xff] }
  0x55   : > { %v1447_v0 = vld [vmem:[%s10098_s25 + $0x800] sm:$0xff]  ;;  %1444 = vst [vmem:[%s10103_s26 + $0x3f0] sm:$0xff] %v1443_v62  ;;  %1446 = vst [vmem:[%s10103_s26 + $0x3f8] sm:$0xff] %v1445_v63  ;;  %v1449_v1 = vld [vmem:[%s10098_s25 + $0x810] sm:$0xff] }
  0x56   : > { %1448 = vst [vmem:[%s10103_s26 + $0x400] sm:$0xff] %v1447_v0  ;;  %v1451_v2 = vld [vmem:[%s10098_s25 + $0x820] sm:$0xff]  ;;  %v1453_v3 = vld [vmem:[%s10098_s25 + $0x830] sm:$0xff]  ;;  %1450 = vst [vmem:[%s10103_s26 + $0x408] sm:$0xff] %v1449_v1 }
  0x57   : > { %1452 = vst [vmem:[%s10103_s26 + $0x410] sm:$0xff] %v1451_v2  ;;  %1454 = vst [vmem:[%s10103_s26 + $0x418] sm:$0xff] %v1453_v3  ;;  %v1455_v4 = vld [vmem:[%s10098_s25 + $0x840] sm:$0xff]  ;;  %v1457_v5 = vld [vmem:[%s10098_s25 + $0x850] sm:$0xff] }
  0x58   : > { %v1459_v6 = vld [vmem:[%s10098_s25 + $0x860] sm:$0xff]  ;;  %1456 = vst [vmem:[%s10103_s26 + $0x420] sm:$0xff] %v1455_v4  ;;  %1458 = vst [vmem:[%s10103_s26 + $0x428] sm:$0xff] %v1457_v5  ;;  %v1461_v7 = vld [vmem:[%s10098_s25 + $0x870] sm:$0xff] }
  0x59   : > { %1460 = vst [vmem:[%s10103_s26 + $0x430] sm:$0xff] %v1459_v6  ;;  %v1463_v8 = vld [vmem:[%s10098_s25 + $0x880] sm:$0xff]  ;;  %v1465_v9 = vld [vmem:[%s10098_s25 + $0x890] sm:$0xff]  ;;  %1462 = vst [vmem:[%s10103_s26 + $0x438] sm:$0xff] %v1461_v7 }
  0x5a   : > { %1464 = vst [vmem:[%s10103_s26 + $0x440] sm:$0xff] %v1463_v8  ;;  %1466 = vst [vmem:[%s10103_s26 + $0x448] sm:$0xff] %v1465_v9  ;;  %v1467_v10 = vld [vmem:[%s10098_s25 + $0x8a0] sm:$0xff]  ;;  %v1469_v11 = vld [vmem:[%s10098_s25 + $0x8b0] sm:$0xff] }
  0x5b   : > { %v1471_v12 = vld [vmem:[%s10098_s25 + $0x8c0] sm:$0xff]  ;;  %1468 = vst [vmem:[%s10103_s26 + $0x450] sm:$0xff] %v1467_v10  ;;  %1470 = vst [vmem:[%s10103_s26 + $0x458] sm:$0xff] %v1469_v11  ;;  %v1473_v13 = vld [vmem:[%s10098_s25 + $0x8d0] sm:$0xff] }
  0x5c   : > { %1472 = vst [vmem:[%s10103_s26 + $0x460] sm:$0xff] %v1471_v12  ;;  %v1475_v14 = vld [vmem:[%s10098_s25 + $0x8e0] sm:$0xff]  ;;  %v1477_v15 = vld [vmem:[%s10098_s25 + $0x8f0] sm:$0xff]  ;;  %1474 = vst [vmem:[%s10103_s26 + $0x468] sm:$0xff] %v1473_v13 }
  0x5d   : > { %1476 = vst [vmem:[%s10103_s26 + $0x470] sm:$0xff] %v1475_v14  ;;  %1478 = vst [vmem:[%s10103_s26 + $0x478] sm:$0xff] %v1477_v15  ;;  %v1479_v16 = vld [vmem:[%s10098_s25 + $0x900] sm:$0xff]  ;;  %v1481_v17 = vld [vmem:[%s10098_s25 + $0x910] sm:$0xff] }
  0x5e   : > { %v1483_v18 = vld [vmem:[%s10098_s25 + $0x920] sm:$0xff]  ;;  %1480 = vst [vmem:[%s10103_s26 + $0x480] sm:$0xff] %v1479_v16  ;;  %1482 = vst [vmem:[%s10103_s26 + $0x488] sm:$0xff] %v1481_v17  ;;  %v1485_v19 = vld [vmem:[%s10098_s25 + $0x930] sm:$0xff] }
  0x5f   : > { %1484 = vst [vmem:[%s10103_s26 + $0x490] sm:$0xff] %v1483_v18  ;;  %v1487_v20 = vld [vmem:[%s10098_s25 + $0x940] sm:$0xff]  ;;  %v1489_v21 = vld [vmem:[%s10098_s25 + $0x950] sm:$0xff]  ;;  %1486 = vst [vmem:[%s10103_s26 + $0x498] sm:$0xff] %v1485_v19 }
  0x60   : > { %1488 = vst [vmem:[%s10103_s26 + $0x4a0] sm:$0xff] %v1487_v20  ;;  %1490 = vst [vmem:[%s10103_s26 + $0x4a8] sm:$0xff] %v1489_v21  ;;  %v1491_v22 = vld [vmem:[%s10098_s25 + $0x960] sm:$0xff]  ;;  %v1493_v23 = vld [vmem:[%s10098_s25 + $0x970] sm:$0xff] }
  0x61   : > { %v1495_v24 = vld [vmem:[%s10098_s25 + $0x980] sm:$0xff]  ;;  %1492 = vst [vmem:[%s10103_s26 + $0x4b0] sm:$0xff] %v1491_v22  ;;  %1494 = vst [vmem:[%s10103_s26 + $0x4b8] sm:$0xff] %v1493_v23  ;;  %v1497_v25 = vld [vmem:[%s10098_s25 + $0x990] sm:$0xff] }
  0x62   : > { %1496 = vst [vmem:[%s10103_s26 + $0x4c0] sm:$0xff] %v1495_v24  ;;  %v1499_v26 = vld [vmem:[%s10098_s25 + $0x9a0] sm:$0xff]  ;;  %v1501_v27 = vld [vmem:[%s10098_s25 + $0x9b0] sm:$0xff]  ;;  %1498 = vst [vmem:[%s10103_s26 + $0x4c8] sm:$0xff] %v1497_v25 }
  0x63   : > { %1500 = vst [vmem:[%s10103_s26 + $0x4d0] sm:$0xff] %v1499_v26  ;;  %1502 = vst [vmem:[%s10103_s26 + $0x4d8] sm:$0xff] %v1501_v27  ;;  %v1503_v28 = vld [vmem:[%s10098_s25 + $0x9c0] sm:$0xff]  ;;  %v1505_v29 = vld [vmem:[%s10098_s25 + $0x9d0] sm:$0xff] }
  0x64   : > { %v1507_v30 = vld [vmem:[%s10098_s25 + $0x9e0] sm:$0xff]  ;;  %1504 = vst [vmem:[%s10103_s26 + $0x4e0] sm:$0xff] %v1503_v28  ;;  %1506 = vst [vmem:[%s10103_s26 + $0x4e8] sm:$0xff] %v1505_v29  ;;  %v1509_v31 = vld [vmem:[%s10098_s25 + $0x9f0] sm:$0xff] }
  0x65   : > { %1508 = vst [vmem:[%s10103_s26 + $0x4f0] sm:$0xff] %v1507_v30  ;;  %v1511_v32 = vld [vmem:[%s10098_s25 + $0xa00] sm:$0xff]  ;;  %v1513_v33 = vld [vmem:[%s10098_s25 + $0xa10] sm:$0xff]  ;;  %1510 = vst [vmem:[%s10103_s26 + $0x4f8] sm:$0xff] %v1509_v31 }
  0x66   : > { %1512 = vst [vmem:[%s10103_s26 + $0x500] sm:$0xff] %v1511_v32  ;;  %1514 = vst [vmem:[%s10103_s26 + $0x508] sm:$0xff] %v1513_v33  ;;  %v1515_v34 = vld [vmem:[%s10098_s25 + $0xa20] sm:$0xff]  ;;  %v1517_v35 = vld [vmem:[%s10098_s25 + $0xa30] sm:$0xff] }
  0x67   : > { %v1519_v36 = vld [vmem:[%s10098_s25 + $0xa40] sm:$0xff]  ;;  %1516 = vst [vmem:[%s10103_s26 + $0x510] sm:$0xff] %v1515_v34  ;;  %1518 = vst [vmem:[%s10103_s26 + $0x518] sm:$0xff] %v1517_v35  ;;  %v1521_v37 = vld [vmem:[%s10098_s25 + $0xa50] sm:$0xff] }
  0x68   : > { %1520 = vst [vmem:[%s10103_s26 + $0x520] sm:$0xff] %v1519_v36  ;;  %v1523_v38 = vld [vmem:[%s10098_s25 + $0xa60] sm:$0xff]  ;;  %v1525_v39 = vld [vmem:[%s10098_s25 + $0xa70] sm:$0xff]  ;;  %1522 = vst [vmem:[%s10103_s26 + $0x528] sm:$0xff] %v1521_v37 }
  0x69   : > { %1524 = vst [vmem:[%s10103_s26 + $0x530] sm:$0xff] %v1523_v38  ;;  %1526 = vst [vmem:[%s10103_s26 + $0x538] sm:$0xff] %v1525_v39  ;;  %v1527_v40 = vld [vmem:[%s10098_s25 + $0xa80] sm:$0xff]  ;;  %v1529_v41 = vld [vmem:[%s10098_s25 + $0xa90] sm:$0xff] }
  0x6a   : > { %v1531_v42 = vld [vmem:[%s10098_s25 + $0xaa0] sm:$0xff]  ;;  %1528 = vst [vmem:[%s10103_s26 + $0x540] sm:$0xff] %v1527_v40  ;;  %1530 = vst [vmem:[%s10103_s26 + $0x548] sm:$0xff] %v1529_v41  ;;  %v1533_v43 = vld [vmem:[%s10098_s25 + $0xab0] sm:$0xff] }
  0x6b   : > { %1532 = vst [vmem:[%s10103_s26 + $0x550] sm:$0xff] %v1531_v42  ;;  %v1535_v44 = vld [vmem:[%s10098_s25 + $0xac0] sm:$0xff]  ;;  %v1537_v45 = vld [vmem:[%s10098_s25 + $0xad0] sm:$0xff]  ;;  %1534 = vst [vmem:[%s10103_s26 + $0x558] sm:$0xff] %v1533_v43 }
  0x6c   : > { %1536 = vst [vmem:[%s10103_s26 + $0x560] sm:$0xff] %v1535_v44  ;;  %1538 = vst [vmem:[%s10103_s26 + $0x568] sm:$0xff] %v1537_v45  ;;  %v1539_v46 = vld [vmem:[%s10098_s25 + $0xae0] sm:$0xff]  ;;  %v1541_v47 = vld [vmem:[%s10098_s25 + $0xaf0] sm:$0xff] }
  0x6d   : > { %v1543_v48 = vld [vmem:[%s10098_s25 + $0xb00] sm:$0xff]  ;;  %1540 = vst [vmem:[%s10103_s26 + $0x570] sm:$0xff] %v1539_v46  ;;  %1542 = vst [vmem:[%s10103_s26 + $0x578] sm:$0xff] %v1541_v47  ;;  %v1545_v49 = vld [vmem:[%s10098_s25 + $0xb10] sm:$0xff] }
  0x6e   : > { %1544 = vst [vmem:[%s10103_s26 + $0x580] sm:$0xff] %v1543_v48  ;;  %v1547_v50 = vld [vmem:[%s10098_s25 + $0xb20] sm:$0xff]  ;;  %v1549_v51 = vld [vmem:[%s10098_s25 + $0xb30] sm:$0xff]  ;;  %1546 = vst [vmem:[%s10103_s26 + $0x588] sm:$0xff] %v1545_v49 }
  0x6f   : > { %1548 = vst [vmem:[%s10103_s26 + $0x590] sm:$0xff] %v1547_v50  ;;  %1550 = vst [vmem:[%s10103_s26 + $0x598] sm:$0xff] %v1549_v51  ;;  %v1551_v52 = vld [vmem:[%s10098_s25 + $0xb40] sm:$0xff]  ;;  %v1553_v53 = vld [vmem:[%s10098_s25 + $0xb50] sm:$0xff] }
  0x70   : > { %v1555_v54 = vld [vmem:[%s10098_s25 + $0xb60] sm:$0xff]  ;;  %1552 = vst [vmem:[%s10103_s26 + $0x5a0] sm:$0xff] %v1551_v52  ;;  %1554 = vst [vmem:[%s10103_s26 + $0x5a8] sm:$0xff] %v1553_v53  ;;  %v1557_v55 = vld [vmem:[%s10098_s25 + $0xb70] sm:$0xff] }
  0x71   : > { %1556 = vst [vmem:[%s10103_s26 + $0x5b0] sm:$0xff] %v1555_v54  ;;  %v1559_v56 = vld [vmem:[%s10098_s25 + $0xb80] sm:$0xff]  ;;  %v1561_v57 = vld [vmem:[%s10098_s25 + $0xb90] sm:$0xff]  ;;  %1558 = vst [vmem:[%s10103_s26 + $0x5b8] sm:$0xff] %v1557_v55 }
  0x72   : > { %1560 = vst [vmem:[%s10103_s26 + $0x5c0] sm:$0xff] %v1559_v56  ;;  %1562 = vst [vmem:[%s10103_s26 + $0x5c8] sm:$0xff] %v1561_v57  ;;  %v1563_v58 = vld [vmem:[%s10098_s25 + $0xba0] sm:$0xff]  ;;  %v1565_v59 = vld [vmem:[%s10098_s25 + $0xbb0] sm:$0xff] }
  0x73   : > { %v1567_v60 = vld [vmem:[%s10098_s25 + $0xbc0] sm:$0xff]  ;;  %1564 = vst [vmem:[%s10103_s26 + $0x5d0] sm:$0xff] %v1563_v58  ;;  %1566 = vst [vmem:[%s10103_s26 + $0x5d8] sm:$0xff] %v1565_v59  ;;  %v1569_v61 = vld [vmem:[%s10098_s25 + $0xbd0] sm:$0xff] }
  0x74   : > { %1568 = vst [vmem:[%s10103_s26 + $0x5e0] sm:$0xff] %v1567_v60  ;;  %v1571_v62 = vld [vmem:[%s10098_s25 + $0xbe0] sm:$0xff]  ;;  %v1573_v63 = vld [vmem:[%s10098_s25 + $0xbf0] sm:$0xff]  ;;  %1570 = vst [vmem:[%s10103_s26 + $0x5e8] sm:$0xff] %v1569_v61 }
  0x75   : > { %1572 = vst [vmem:[%s10103_s26 + $0x5f0] sm:$0xff] %v1571_v62  ;;  %1574 = vst [vmem:[%s10103_s26 + $0x5f8] sm:$0xff] %v1573_v63  ;;  %v1575_v0 = vld [vmem:[%s10098_s25 + $0xc00] sm:$0xff]  ;;  %v1577_v1 = vld [vmem:[%s10098_s25 + $0xc10] sm:$0xff] }
  0x76   : > { %v1579_v2 = vld [vmem:[%s10098_s25 + $0xc20] sm:$0xff]  ;;  %1576 = vst [vmem:[%s10103_s26 + $0x600] sm:$0xff] %v1575_v0  ;;  %1578 = vst [vmem:[%s10103_s26 + $0x608] sm:$0xff] %v1577_v1  ;;  %v1581_v3 = vld [vmem:[%s10098_s25 + $0xc30] sm:$0xff] }
  0x77   : > { %1580 = vst [vmem:[%s10103_s26 + $0x610] sm:$0xff] %v1579_v2  ;;  %v1583_v4 = vld [vmem:[%s10098_s25 + $0xc40] sm:$0xff]  ;;  %v1585_v5 = vld [vmem:[%s10098_s25 + $0xc50] sm:$0xff]  ;;  %1582 = vst [vmem:[%s10103_s26 + $0x618] sm:$0xff] %v1581_v3 }
  0x78   : > { %1584 = vst [vmem:[%s10103_s26 + $0x620] sm:$0xff] %v1583_v4  ;;  %1586 = vst [vmem:[%s10103_s26 + $0x628] sm:$0xff] %v1585_v5  ;;  %v1587_v6 = vld [vmem:[%s10098_s25 + $0xc60] sm:$0xff]  ;;  %v1589_v7 = vld [vmem:[%s10098_s25 + $0xc70] sm:$0xff] }
  0x79   : > { %v1591_v8 = vld [vmem:[%s10098_s25 + $0xc80] sm:$0xff]  ;;  %1588 = vst [vmem:[%s10103_s26 + $0x630] sm:$0xff] %v1587_v6  ;;  %1590 = vst [vmem:[%s10103_s26 + $0x638] sm:$0xff] %v1589_v7  ;;  %v1593_v9 = vld [vmem:[%s10098_s25 + $0xc90] sm:$0xff] }
  0x7a   : > { %1592 = vst [vmem:[%s10103_s26 + $0x640] sm:$0xff] %v1591_v8  ;;  %v1595_v10 = vld [vmem:[%s10098_s25 + $0xca0] sm:$0xff]  ;;  %v1597_v11 = vld [vmem:[%s10098_s25 + $0xcb0] sm:$0xff]  ;;  %1594 = vst [vmem:[%s10103_s26 + $0x648] sm:$0xff] %v1593_v9 }
  0x7b   : > { %1596 = vst [vmem:[%s10103_s26 + $0x650] sm:$0xff] %v1595_v10  ;;  %1598 = vst [vmem:[%s10103_s26 + $0x658] sm:$0xff] %v1597_v11  ;;  %v1599_v12 = vld [vmem:[%s10098_s25 + $0xcc0] sm:$0xff]  ;;  %v1601_v13 = vld [vmem:[%s10098_s25 + $0xcd0] sm:$0xff] }
  0x7c   : > { %v1603_v14 = vld [vmem:[%s10098_s25 + $0xce0] sm:$0xff]  ;;  %1600 = vst [vmem:[%s10103_s26 + $0x660] sm:$0xff] %v1599_v12  ;;  %1602 = vst [vmem:[%s10103_s26 + $0x668] sm:$0xff] %v1601_v13  ;;  %v1605_v15 = vld [vmem:[%s10098_s25 + $0xcf0] sm:$0xff] }
  0x7d   : > { %1604 = vst [vmem:[%s10103_s26 + $0x670] sm:$0xff] %v1603_v14  ;;  %v1607_v16 = vld [vmem:[%s10098_s25 + $0xd00] sm:$0xff]  ;;  %v1609_v17 = vld [vmem:[%s10098_s25 + $0xd10] sm:$0xff]  ;;  %1606 = vst [vmem:[%s10103_s26 + $0x678] sm:$0xff] %v1605_v15 }
  0x7e   : > { %1608 = vst [vmem:[%s10103_s26 + $0x680] sm:$0xff] %v1607_v16  ;;  %1610 = vst [vmem:[%s10103_s26 + $0x688] sm:$0xff] %v1609_v17  ;;  %v1611_v18 = vld [vmem:[%s10098_s25 + $0xd20] sm:$0xff]  ;;  %v1613_v19 = vld [vmem:[%s10098_s25 + $0xd30] sm:$0xff] }
  0x7f   : > { %v1615_v20 = vld [vmem:[%s10098_s25 + $0xd40] sm:$0xff]  ;;  %1612 = vst [vmem:[%s10103_s26 + $0x690] sm:$0xff] %v1611_v18  ;;  %1614 = vst [vmem:[%s10103_s26 + $0x698] sm:$0xff] %v1613_v19  ;;  %v1617_v21 = vld [vmem:[%s10098_s25 + $0xd50] sm:$0xff] }
  0x80   : > { %1616 = vst [vmem:[%s10103_s26 + $0x6a0] sm:$0xff] %v1615_v20  ;;  %v1619_v22 = vld [vmem:[%s10098_s25 + $0xd60] sm:$0xff]  ;;  %v1621_v23 = vld [vmem:[%s10098_s25 + $0xd70] sm:$0xff]  ;;  %1618 = vst [vmem:[%s10103_s26 + $0x6a8] sm:$0xff] %v1617_v21 }
  0x81   : > { %1620 = vst [vmem:[%s10103_s26 + $0x6b0] sm:$0xff] %v1619_v22  ;;  %1622 = vst [vmem:[%s10103_s26 + $0x6b8] sm:$0xff] %v1621_v23  ;;  %v1623_v24 = vld [vmem:[%s10098_s25 + $0xd80] sm:$0xff]  ;;  %v1625_v25 = vld [vmem:[%s10098_s25 + $0xd90] sm:$0xff] }
  0x82   : > { %v1627_v26 = vld [vmem:[%s10098_s25 + $0xda0] sm:$0xff]  ;;  %1624 = vst [vmem:[%s10103_s26 + $0x6c0] sm:$0xff] %v1623_v24  ;;  %1626 = vst [vmem:[%s10103_s26 + $0x6c8] sm:$0xff] %v1625_v25  ;;  %v1629_v27 = vld [vmem:[%s10098_s25 + $0xdb0] sm:$0xff] }
  0x83   : > { %1628 = vst [vmem:[%s10103_s26 + $0x6d0] sm:$0xff] %v1627_v26  ;;  %v1631_v28 = vld [vmem:[%s10098_s25 + $0xdc0] sm:$0xff]  ;;  %v1633_v29 = vld [vmem:[%s10098_s25 + $0xdd0] sm:$0xff]  ;;  %1630 = vst [vmem:[%s10103_s26 + $0x6d8] sm:$0xff] %v1629_v27 }
  0x84   : > { %1632 = vst [vmem:[%s10103_s26 + $0x6e0] sm:$0xff] %v1631_v28  ;;  %1634 = vst [vmem:[%s10103_s26 + $0x6e8] sm:$0xff] %v1633_v29  ;;  %v1635_v30 = vld [vmem:[%s10098_s25 + $0xde0] sm:$0xff]  ;;  %v1637_v31 = vld [vmem:[%s10098_s25 + $0xdf0] sm:$0xff] }
  0x85   : > { %v1639_v32 = vld [vmem:[%s10098_s25 + $0xe00] sm:$0xff]  ;;  %1636 = vst [vmem:[%s10103_s26 + $0x6f0] sm:$0xff] %v1635_v30  ;;  %1638 = vst [vmem:[%s10103_s26 + $0x6f8] sm:$0xff] %v1637_v31  ;;  %v1641_v33 = vld [vmem:[%s10098_s25 + $0xe10] sm:$0xff] }
  0x86   : > { %1640 = vst [vmem:[%s10103_s26 + $0x700] sm:$0xff] %v1639_v32  ;;  %v1643_v34 = vld [vmem:[%s10098_s25 + $0xe20] sm:$0xff]  ;;  %v1645_v35 = vld [vmem:[%s10098_s25 + $0xe30] sm:$0xff]  ;;  %1642 = vst [vmem:[%s10103_s26 + $0x708] sm:$0xff] %v1641_v33 }
  0x87   : > { %1644 = vst [vmem:[%s10103_s26 + $0x710] sm:$0xff] %v1643_v34  ;;  %1646 = vst [vmem:[%s10103_s26 + $0x718] sm:$0xff] %v1645_v35  ;;  %v1647_v36 = vld [vmem:[%s10098_s25 + $0xe40] sm:$0xff]  ;;  %v1649_v37 = vld [vmem:[%s10098_s25 + $0xe50] sm:$0xff] }
  0x88   : > { %v1651_v38 = vld [vmem:[%s10098_s25 + $0xe60] sm:$0xff]  ;;  %1648 = vst [vmem:[%s10103_s26 + $0x720] sm:$0xff] %v1647_v36  ;;  %1650 = vst [vmem:[%s10103_s26 + $0x728] sm:$0xff] %v1649_v37  ;;  %v1653_v39 = vld [vmem:[%s10098_s25 + $0xe70] sm:$0xff] }
  0x89   : > { %1652 = vst [vmem:[%s10103_s26 + $0x730] sm:$0xff] %v1651_v38  ;;  %v1655_v40 = vld [vmem:[%s10098_s25 + $0xe80] sm:$0xff]  ;;  %v1657_v41 = vld [vmem:[%s10098_s25 + $0xe90] sm:$0xff]  ;;  %1654 = vst [vmem:[%s10103_s26 + $0x738] sm:$0xff] %v1653_v39 }
  0x8a   : > { %1656 = vst [vmem:[%s10103_s26 + $0x740] sm:$0xff] %v1655_v40  ;;  %1658 = vst [vmem:[%s10103_s26 + $0x748] sm:$0xff] %v1657_v41  ;;  %v1659_v42 = vld [vmem:[%s10098_s25 + $0xea0] sm:$0xff]  ;;  %v1661_v43 = vld [vmem:[%s10098_s25 + $0xeb0] sm:$0xff] }
  0x8b   : > { %v1663_v44 = vld [vmem:[%s10098_s25 + $0xec0] sm:$0xff]  ;;  %1660 = vst [vmem:[%s10103_s26 + $0x750] sm:$0xff] %v1659_v42  ;;  %1662 = vst [vmem:[%s10103_s26 + $0x758] sm:$0xff] %v1661_v43  ;;  %v1665_v45 = vld [vmem:[%s10098_s25 + $0xed0] sm:$0xff] }
  0x8c   : > { %1664 = vst [vmem:[%s10103_s26 + $0x760] sm:$0xff] %v1663_v44  ;;  %v1667_v46 = vld [vmem:[%s10098_s25 + $0xee0] sm:$0xff]  ;;  %v1669_v47 = vld [vmem:[%s10098_s25 + $0xef0] sm:$0xff]  ;;  %1666 = vst [vmem:[%s10103_s26 + $0x768] sm:$0xff] %v1665_v45 }
  0x8d   : > { %1668 = vst [vmem:[%s10103_s26 + $0x770] sm:$0xff] %v1667_v46  ;;  %1670 = vst [vmem:[%s10103_s26 + $0x778] sm:$0xff] %v1669_v47  ;;  %v1671_v48 = vld [vmem:[%s10098_s25 + $0xf00] sm:$0xff]  ;;  %v1673_v49 = vld [vmem:[%s10098_s25 + $0xf10] sm:$0xff] }
  0x8e   : > { %v1675_v50 = vld [vmem:[%s10098_s25 + $0xf20] sm:$0xff]  ;;  %1672 = vst [vmem:[%s10103_s26 + $0x780] sm:$0xff] %v1671_v48  ;;  %1674 = vst [vmem:[%s10103_s26 + $0x788] sm:$0xff] %v1673_v49  ;;  %v1677_v51 = vld [vmem:[%s10098_s25 + $0xf30] sm:$0xff] }
  0x8f   : > { %1676 = vst [vmem:[%s10103_s26 + $0x790] sm:$0xff] %v1675_v50  ;;  %v1679_v52 = vld [vmem:[%s10098_s25 + $0xf40] sm:$0xff]  ;;  %v1681_v53 = vld [vmem:[%s10098_s25 + $0xf50] sm:$0xff]  ;;  %1678 = vst [vmem:[%s10103_s26 + $0x798] sm:$0xff] %v1677_v51 }
  0x90   : > { %1680 = vst [vmem:[%s10103_s26 + $0x7a0] sm:$0xff] %v1679_v52  ;;  %1682 = vst [vmem:[%s10103_s26 + $0x7a8] sm:$0xff] %v1681_v53  ;;  %v1683_v54 = vld [vmem:[%s10098_s25 + $0xf60] sm:$0xff]  ;;  %v1685_v55 = vld [vmem:[%s10098_s25 + $0xf70] sm:$0xff] }
  0x91   : > { %v1687_v56 = vld [vmem:[%s10098_s25 + $0xf80] sm:$0xff]  ;;  %1684 = vst [vmem:[%s10103_s26 + $0x7b0] sm:$0xff] %v1683_v54  ;;  %1686 = vst [vmem:[%s10103_s26 + $0x7b8] sm:$0xff] %v1685_v55  ;;  %v1689_v57 = vld [vmem:[%s10098_s25 + $0xf90] sm:$0xff] }
  0x92   : > { %1688 = vst [vmem:[%s10103_s26 + $0x7c0] sm:$0xff] %v1687_v56  ;;  %v1691_v58 = vld [vmem:[%s10098_s25 + $0xfa0] sm:$0xff]  ;;  %v1693_v59 = vld [vmem:[%s10098_s25 + $0xfb0] sm:$0xff]  ;;  %1690 = vst [vmem:[%s10103_s26 + $0x7c8] sm:$0xff] %v1689_v57 }
  0x93   : > { %1692 = vst [vmem:[%s10103_s26 + $0x7d0] sm:$0xff] %v1691_v58  ;;  %1694 = vst [vmem:[%s10103_s26 + $0x7d8] sm:$0xff] %v1693_v59  ;;  %v1695_v60 = vld [vmem:[%s10098_s25 + $0xfc0] sm:$0xff]  ;;  %v1697_v61 = vld [vmem:[%s10098_s25 + $0xfd0] sm:$0xff] }
  0x94   : > { %v1699_v62 = vld [vmem:[%s10098_s25 + $0xfe0] sm:$0xff]  ;;  %1696 = vst [vmem:[%s10103_s26 + $0x7e0] sm:$0xff] %v1695_v60  ;;  %1698 = vst [vmem:[%s10103_s26 + $0x7e8] sm:$0xff] %v1697_v61  ;;  %v1701_v63 = vld [vmem:[%s10098_s25 + $0xff0] sm:$0xff] }
  0x95   : > { %1700 = vst [vmem:[%s10103_s26 + $0x7f0] sm:$0xff] %v1699_v62  ;;  %v1703_v0 = vld [vmem:[%s10098_s25 + $0x1000] sm:$0xff]  ;;  %v1705_v1 = vld [vmem:[%s10098_s25 + $0x1010] sm:$0xff]  ;;  %1702 = vst [vmem:[%s10103_s26 + $0x7f8] sm:$0xff] %v1701_v63 }
  0x96   : > { %1704 = vst [vmem:[%s10103_s26 + $0x800] sm:$0xff] %v1703_v0  ;;  %1706 = vst [vmem:[%s10103_s26 + $0x808] sm:$0xff] %v1705_v1  ;;  %v1707_v2 = vld [vmem:[%s10098_s25 + $0x1020] sm:$0xff]  ;;  %v1709_v3 = vld [vmem:[%s10098_s25 + $0x1030] sm:$0xff] }
  0x97   : > { %v1711_v4 = vld [vmem:[%s10098_s25 + $0x1040] sm:$0xff]  ;;  %1708 = vst [vmem:[%s10103_s26 + $0x810] sm:$0xff] %v1707_v2  ;;  %1710 = vst [vmem:[%s10103_s26 + $0x818] sm:$0xff] %v1709_v3  ;;  %v1713_v5 = vld [vmem:[%s10098_s25 + $0x1050] sm:$0xff] }
  0x98   : > { %1712 = vst [vmem:[%s10103_s26 + $0x820] sm:$0xff] %v1711_v4  ;;  %v1715_v6 = vld [vmem:[%s10098_s25 + $0x1060] sm:$0xff]  ;;  %v1717_v7 = vld [vmem:[%s10098_s25 + $0x1070] sm:$0xff]  ;;  %1714 = vst [vmem:[%s10103_s26 + $0x828] sm:$0xff] %v1713_v5 }
  0x99   : > { %1716 = vst [vmem:[%s10103_s26 + $0x830] sm:$0xff] %v1715_v6  ;;  %1718 = vst [vmem:[%s10103_s26 + $0x838] sm:$0xff] %v1717_v7  ;;  %v1719_v8 = vld [vmem:[%s10098_s25 + $0x1080] sm:$0xff]  ;;  %v1721_v9 = vld [vmem:[%s10098_s25 + $0x1090] sm:$0xff] }
  0x9a   : > { %v1723_v10 = vld [vmem:[%s10098_s25 + $0x10a0] sm:$0xff]  ;;  %1720 = vst [vmem:[%s10103_s26 + $0x840] sm:$0xff] %v1719_v8  ;;  %1722 = vst [vmem:[%s10103_s26 + $0x848] sm:$0xff] %v1721_v9  ;;  %v1725_v11 = vld [vmem:[%s10098_s25 + $0x10b0] sm:$0xff] }
  0x9b   : > { %1724 = vst [vmem:[%s10103_s26 + $0x850] sm:$0xff] %v1723_v10  ;;  %v1727_v12 = vld [vmem:[%s10098_s25 + $0x10c0] sm:$0xff]  ;;  %v1729_v13 = vld [vmem:[%s10098_s25 + $0x10d0] sm:$0xff]  ;;  %1726 = vst [vmem:[%s10103_s26 + $0x858] sm:$0xff] %v1725_v11 }
  0x9c   : > { %1728 = vst [vmem:[%s10103_s26 + $0x860] sm:$0xff] %v1727_v12  ;;  %1730 = vst [vmem:[%s10103_s26 + $0x868] sm:$0xff] %v1729_v13  ;;  %v1731_v14 = vld [vmem:[%s10098_s25 + $0x10e0] sm:$0xff]  ;;  %v1733_v15 = vld [vmem:[%s10098_s25 + $0x10f0] sm:$0xff] }
  0x9d   : > { %v1735_v16 = vld [vmem:[%s10098_s25 + $0x1100] sm:$0xff]  ;;  %1732 = vst [vmem:[%s10103_s26 + $0x870] sm:$0xff] %v1731_v14  ;;  %1734 = vst [vmem:[%s10103_s26 + $0x878] sm:$0xff] %v1733_v15  ;;  %v1737_v17 = vld [vmem:[%s10098_s25 + $0x1110] sm:$0xff] }
  0x9e   : > { %1736 = vst [vmem:[%s10103_s26 + $0x880] sm:$0xff] %v1735_v16  ;;  %v1739_v18 = vld [vmem:[%s10098_s25 + $0x1120] sm:$0xff]  ;;  %v1741_v19 = vld [vmem:[%s10098_s25 + $0x1130] sm:$0xff]  ;;  %1738 = vst [vmem:[%s10103_s26 + $0x888] sm:$0xff] %v1737_v17 }
  0x9f   : > { %1740 = vst [vmem:[%s10103_s26 + $0x890] sm:$0xff] %v1739_v18  ;;  %1742 = vst [vmem:[%s10103_s26 + $0x898] sm:$0xff] %v1741_v19  ;;  %v1743_v20 = vld [vmem:[%s10098_s25 + $0x1140] sm:$0xff]  ;;  %v1745_v21 = vld [vmem:[%s10098_s25 + $0x1150] sm:$0xff] }
  0xa0   : > { %v1747_v22 = vld [vmem:[%s10098_s25 + $0x1160] sm:$0xff]  ;;  %1744 = vst [vmem:[%s10103_s26 + $0x8a0] sm:$0xff] %v1743_v20  ;;  %1746 = vst [vmem:[%s10103_s26 + $0x8a8] sm:$0xff] %v1745_v21  ;;  %v1749_v23 = vld [vmem:[%s10098_s25 + $0x1170] sm:$0xff] }
  0xa1   : > { %1748 = vst [vmem:[%s10103_s26 + $0x8b0] sm:$0xff] %v1747_v22  ;;  %v1751_v24 = vld [vmem:[%s10098_s25 + $0x1180] sm:$0xff]  ;;  %v1753_v25 = vld [vmem:[%s10098_s25 + $0x1190] sm:$0xff]  ;;  %1750 = vst [vmem:[%s10103_s26 + $0x8b8] sm:$0xff] %v1749_v23 }
  0xa2   : > { %1752 = vst [vmem:[%s10103_s26 + $0x8c0] sm:$0xff] %v1751_v24  ;;  %1754 = vst [vmem:[%s10103_s26 + $0x8c8] sm:$0xff] %v1753_v25  ;;  %v1755_v26 = vld [vmem:[%s10098_s25 + $0x11a0] sm:$0xff]  ;;  %v1757_v27 = vld [vmem:[%s10098_s25 + $0x11b0] sm:$0xff] }
  0xa3   : > { %v1759_v28 = vld [vmem:[%s10098_s25 + $0x11c0] sm:$0xff]  ;;  %1756 = vst [vmem:[%s10103_s26 + $0x8d0] sm:$0xff] %v1755_v26  ;;  %1758 = vst [vmem:[%s10103_s26 + $0x8d8] sm:$0xff] %v1757_v27  ;;  %v1761_v29 = vld [vmem:[%s10098_s25 + $0x11d0] sm:$0xff] }
  0xa4   : > { %1760 = vst [vmem:[%s10103_s26 + $0x8e0] sm:$0xff] %v1759_v28  ;;  %v1763_v30 = vld [vmem:[%s10098_s25 + $0x11e0] sm:$0xff]  ;;  %v1765_v31 = vld [vmem:[%s10098_s25 + $0x11f0] sm:$0xff]  ;;  %1762 = vst [vmem:[%s10103_s26 + $0x8e8] sm:$0xff] %v1761_v29 }
  0xa5   : > { %1764 = vst [vmem:[%s10103_s26 + $0x8f0] sm:$0xff] %v1763_v30  ;;  %1766 = vst [vmem:[%s10103_s26 + $0x8f8] sm:$0xff] %v1765_v31  ;;  %v1767_v32 = vld [vmem:[%s10098_s25 + $0x1200] sm:$0xff]  ;;  %v1769_v33 = vld [vmem:[%s10098_s25 + $0x1210] sm:$0xff] }
  0xa6   : > { %v1771_v34 = vld [vmem:[%s10098_s25 + $0x1220] sm:$0xff]  ;;  %1768 = vst [vmem:[%s10103_s26 + $0x900] sm:$0xff] %v1767_v32  ;;  %1770 = vst [vmem:[%s10103_s26 + $0x908] sm:$0xff] %v1769_v33  ;;  %v1773_v35 = vld [vmem:[%s10098_s25 + $0x1230] sm:$0xff] }
  0xa7   : > { %1772 = vst [vmem:[%s10103_s26 + $0x910] sm:$0xff] %v1771_v34  ;;  %v1775_v36 = vld [vmem:[%s10098_s25 + $0x1240] sm:$0xff]  ;;  %v1777_v37 = vld [vmem:[%s10098_s25 + $0x1250] sm:$0xff]  ;;  %1774 = vst [vmem:[%s10103_s26 + $0x918] sm:$0xff] %v1773_v35 }
  0xa8   : > { %1776 = vst [vmem:[%s10103_s26 + $0x920] sm:$0xff] %v1775_v36  ;;  %1778 = vst [vmem:[%s10103_s26 + $0x928] sm:$0xff] %v1777_v37  ;;  %v1779_v38 = vld [vmem:[%s10098_s25 + $0x1260] sm:$0xff]  ;;  %v1781_v39 = vld [vmem:[%s10098_s25 + $0x1270] sm:$0xff] }
  0xa9   : > { %v1783_v40 = vld [vmem:[%s10098_s25 + $0x1280] sm:$0xff]  ;;  %1780 = vst [vmem:[%s10103_s26 + $0x930] sm:$0xff] %v1779_v38  ;;  %1782 = vst [vmem:[%s10103_s26 + $0x938] sm:$0xff] %v1781_v39  ;;  %v1785_v41 = vld [vmem:[%s10098_s25 + $0x1290] sm:$0xff] }
  0xaa   : > { %1784 = vst [vmem:[%s10103_s26 + $0x940] sm:$0xff] %v1783_v40  ;;  %v1787_v42 = vld [vmem:[%s10098_s25 + $0x12a0] sm:$0xff]  ;;  %v1789_v43 = vld [vmem:[%s10098_s25 + $0x12b0] sm:$0xff]  ;;  %1786 = vst [vmem:[%s10103_s26 + $0x948] sm:$0xff] %v1785_v41 }
  0xab   : > { %1788 = vst [vmem:[%s10103_s26 + $0x950] sm:$0xff] %v1787_v42  ;;  %1790 = vst [vmem:[%s10103_s26 + $0x958] sm:$0xff] %v1789_v43  ;;  %v1791_v44 = vld [vmem:[%s10098_s25 + $0x12c0] sm:$0xff]  ;;  %v1793_v45 = vld [vmem:[%s10098_s25 + $0x12d0] sm:$0xff] }
  0xac   : > { %v1795_v46 = vld [vmem:[%s10098_s25 + $0x12e0] sm:$0xff]  ;;  %1792 = vst [vmem:[%s10103_s26 + $0x960] sm:$0xff] %v1791_v44  ;;  %1794 = vst [vmem:[%s10103_s26 + $0x968] sm:$0xff] %v1793_v45  ;;  %v1797_v47 = vld [vmem:[%s10098_s25 + $0x12f0] sm:$0xff] }
  0xad   : > { %1796 = vst [vmem:[%s10103_s26 + $0x970] sm:$0xff] %v1795_v46  ;;  %v1799_v48 = vld [vmem:[%s10098_s25 + $0x1300] sm:$0xff]  ;;  %v1801_v49 = vld [vmem:[%s10098_s25 + $0x1310] sm:$0xff]  ;;  %1798 = vst [vmem:[%s10103_s26 + $0x978] sm:$0xff] %v1797_v47 }
  0xae   : > { %1800 = vst [vmem:[%s10103_s26 + $0x980] sm:$0xff] %v1799_v48  ;;  %1802 = vst [vmem:[%s10103_s26 + $0x988] sm:$0xff] %v1801_v49  ;;  %v1803_v50 = vld [vmem:[%s10098_s25 + $0x1320] sm:$0xff]  ;;  %v1805_v51 = vld [vmem:[%s10098_s25 + $0x1330] sm:$0xff] }
  0xaf   : > { %v1807_v52 = vld [vmem:[%s10098_s25 + $0x1340] sm:$0xff]  ;;  %1804 = vst [vmem:[%s10103_s26 + $0x990] sm:$0xff] %v1803_v50  ;;  %1806 = vst [vmem:[%s10103_s26 + $0x998] sm:$0xff] %v1805_v51  ;;  %v1809_v53 = vld [vmem:[%s10098_s25 + $0x1350] sm:$0xff] }
  0xb0   : > { %1808 = vst [vmem:[%s10103_s26 + $0x9a0] sm:$0xff] %v1807_v52  ;;  %v1811_v54 = vld [vmem:[%s10098_s25 + $0x1360] sm:$0xff]  ;;  %v1813_v55 = vld [vmem:[%s10098_s25 + $0x1370] sm:$0xff]  ;;  %1810 = vst [vmem:[%s10103_s26 + $0x9a8] sm:$0xff] %v1809_v53 }
  0xb1   : > { %1812 = vst [vmem:[%s10103_s26 + $0x9b0] sm:$0xff] %v1811_v54  ;;  %1814 = vst [vmem:[%s10103_s26 + $0x9b8] sm:$0xff] %v1813_v55  ;;  %v1815_v56 = vld [vmem:[%s10098_s25 + $0x1380] sm:$0xff]  ;;  %v1817_v57 = vld [vmem:[%s10098_s25 + $0x1390] sm:$0xff] }
  0xb2   : > { %v1819_v58 = vld [vmem:[%s10098_s25 + $0x13a0] sm:$0xff]  ;;  %1816 = vst [vmem:[%s10103_s26 + $0x9c0] sm:$0xff] %v1815_v56  ;;  %1818 = vst [vmem:[%s10103_s26 + $0x9c8] sm:$0xff] %v1817_v57  ;;  %v1821_v59 = vld [vmem:[%s10098_s25 + $0x13b0] sm:$0xff] }
  0xb3   : > { %1820 = vst [vmem:[%s10103_s26 + $0x9d0] sm:$0xff] %v1819_v58  ;;  %v1823_v60 = vld [vmem:[%s10098_s25 + $0x13c0] sm:$0xff]  ;;  %v1825_v61 = vld [vmem:[%s10098_s25 + $0x13d0] sm:$0xff]  ;;  %1822 = vst [vmem:[%s10103_s26 + $0x9d8] sm:$0xff] %v1821_v59 }
  0xb4   : > { %1824 = vst [vmem:[%s10103_s26 + $0x9e0] sm:$0xff] %v1823_v60  ;;  %1826 = vst [vmem:[%s10103_s26 + $0x9e8] sm:$0xff] %v1825_v61  ;;  %v1827_v62 = vld [vmem:[%s10098_s25 + $0x13e0] sm:$0xff]  ;;  %v1829_v63 = vld [vmem:[%s10098_s25 + $0x13f0] sm:$0xff] }
  0xb5   : > { %v1831_v0 = vld [vmem:[%s10098_s25 + $0x1400] sm:$0xff]  ;;  %1828 = vst [vmem:[%s10103_s26 + $0x9f0] sm:$0xff] %v1827_v62  ;;  %1830 = vst [vmem:[%s10103_s26 + $0x9f8] sm:$0xff] %v1829_v63  ;;  %v1833_v1 = vld [vmem:[%s10098_s25 + $0x1410] sm:$0xff] }
  0xb6   : > { %1832 = vst [vmem:[%s10103_s26 + $0xa00] sm:$0xff] %v1831_v0  ;;  %v1835_v2 = vld [vmem:[%s10098_s25 + $0x1420] sm:$0xff]  ;;  %v1837_v3 = vld [vmem:[%s10098_s25 + $0x1430] sm:$0xff]  ;;  %1834 = vst [vmem:[%s10103_s26 + $0xa08] sm:$0xff] %v1833_v1 }
  0xb7   : > { %1836 = vst [vmem:[%s10103_s26 + $0xa10] sm:$0xff] %v1835_v2  ;;  %1838 = vst [vmem:[%s10103_s26 + $0xa18] sm:$0xff] %v1837_v3  ;;  %v1839_v4 = vld [vmem:[%s10098_s25 + $0x1440] sm:$0xff]  ;;  %v1841_v5 = vld [vmem:[%s10098_s25 + $0x1450] sm:$0xff] }
  0xb8   : > { %v1843_v6 = vld [vmem:[%s10098_s25 + $0x1460] sm:$0xff]  ;;  %1840 = vst [vmem:[%s10103_s26 + $0xa20] sm:$0xff] %v1839_v4  ;;  %1842 = vst [vmem:[%s10103_s26 + $0xa28] sm:$0xff] %v1841_v5  ;;  %v1845_v7 = vld [vmem:[%s10098_s25 + $0x1470] sm:$0xff] }
  0xb9   : > { %1844 = vst [vmem:[%s10103_s26 + $0xa30] sm:$0xff] %v1843_v6  ;;  %v1847_v8 = vld [vmem:[%s10098_s25 + $0x1480] sm:$0xff]  ;;  %v1849_v9 = vld [vmem:[%s10098_s25 + $0x1490] sm:$0xff]  ;;  %1846 = vst [vmem:[%s10103_s26 + $0xa38] sm:$0xff] %v1845_v7 }
  0xba   : > { %1848 = vst [vmem:[%s10103_s26 + $0xa40] sm:$0xff] %v1847_v8  ;;  %1850 = vst [vmem:[%s10103_s26 + $0xa48] sm:$0xff] %v1849_v9  ;;  %v1851_v10 = vld [vmem:[%s10098_s25 + $0x14a0] sm:$0xff]  ;;  %v1853_v11 = vld [vmem:[%s10098_s25 + $0x14b0] sm:$0xff] }
  0xbb   : > { %v1855_v12 = vld [vmem:[%s10098_s25 + $0x14c0] sm:$0xff]  ;;  %1852 = vst [vmem:[%s10103_s26 + $0xa50] sm:$0xff] %v1851_v10  ;;  %1854 = vst [vmem:[%s10103_s26 + $0xa58] sm:$0xff] %v1853_v11  ;;  %v1857_v13 = vld [vmem:[%s10098_s25 + $0x14d0] sm:$0xff] }
  0xbc   : > { %1856 = vst [vmem:[%s10103_s26 + $0xa60] sm:$0xff] %v1855_v12  ;;  %v1859_v14 = vld [vmem:[%s10098_s25 + $0x14e0] sm:$0xff]  ;;  %v1861_v15 = vld [vmem:[%s10098_s25 + $0x14f0] sm:$0xff]  ;;  %1858 = vst [vmem:[%s10103_s26 + $0xa68] sm:$0xff] %v1857_v13 }
  0xbd   : > { %1860 = vst [vmem:[%s10103_s26 + $0xa70] sm:$0xff] %v1859_v14  ;;  %1862 = vst [vmem:[%s10103_s26 + $0xa78] sm:$0xff] %v1861_v15  ;;  %v1863_v16 = vld [vmem:[%s10098_s25 + $0x1500] sm:$0xff]  ;;  %v1865_v17 = vld [vmem:[%s10098_s25 + $0x1510] sm:$0xff] }
  0xbe   : > { %v1867_v18 = vld [vmem:[%s10098_s25 + $0x1520] sm:$0xff]  ;;  %1864 = vst [vmem:[%s10103_s26 + $0xa80] sm:$0xff] %v1863_v16  ;;  %1866 = vst [vmem:[%s10103_s26 + $0xa88] sm:$0xff] %v1865_v17  ;;  %v1869_v19 = vld [vmem:[%s10098_s25 + $0x1530] sm:$0xff] }
  0xbf   : > { %1868 = vst [vmem:[%s10103_s26 + $0xa90] sm:$0xff] %v1867_v18  ;;  %v1871_v20 = vld [vmem:[%s10098_s25 + $0x1540] sm:$0xff]  ;;  %v1873_v21 = vld [vmem:[%s10098_s25 + $0x1550] sm:$0xff]  ;;  %1870 = vst [vmem:[%s10103_s26 + $0xa98] sm:$0xff] %v1869_v19 }
  0xc0   : > { %1872 = vst [vmem:[%s10103_s26 + $0xaa0] sm:$0xff] %v1871_v20  ;;  %1874 = vst [vmem:[%s10103_s26 + $0xaa8] sm:$0xff] %v1873_v21  ;;  %v1875_v22 = vld [vmem:[%s10098_s25 + $0x1560] sm:$0xff]  ;;  %v1877_v23 = vld [vmem:[%s10098_s25 + $0x1570] sm:$0xff] }
  0xc1   : > { %v1879_v24 = vld [vmem:[%s10098_s25 + $0x1580] sm:$0xff]  ;;  %1876 = vst [vmem:[%s10103_s26 + $0xab0] sm:$0xff] %v1875_v22  ;;  %1878 = vst [vmem:[%s10103_s26 + $0xab8] sm:$0xff] %v1877_v23  ;;  %v1881_v25 = vld [vmem:[%s10098_s25 + $0x1590] sm:$0xff] }
  0xc2   : > { %1880 = vst [vmem:[%s10103_s26 + $0xac0] sm:$0xff] %v1879_v24  ;;  %v1883_v26 = vld [vmem:[%s10098_s25 + $0x15a0] sm:$0xff]  ;;  %v1885_v27 = vld [vmem:[%s10098_s25 + $0x15b0] sm:$0xff]  ;;  %1882 = vst [vmem:[%s10103_s26 + $0xac8] sm:$0xff] %v1881_v25 }
  0xc3   : > { %1884 = vst [vmem:[%s10103_s26 + $0xad0] sm:$0xff] %v1883_v26  ;;  %1886 = vst [vmem:[%s10103_s26 + $0xad8] sm:$0xff] %v1885_v27  ;;  %v1887_v28 = vld [vmem:[%s10098_s25 + $0x15c0] sm:$0xff]  ;;  %v1889_v29 = vld [vmem:[%s10098_s25 + $0x15d0] sm:$0xff] }
  0xc4   : > { %v1891_v30 = vld [vmem:[%s10098_s25 + $0x15e0] sm:$0xff]  ;;  %1888 = vst [vmem:[%s10103_s26 + $0xae0] sm:$0xff] %v1887_v28  ;;  %1890 = vst [vmem:[%s10103_s26 + $0xae8] sm:$0xff] %v1889_v29  ;;  %v1893_v31 = vld [vmem:[%s10098_s25 + $0x15f0] sm:$0xff] }
  0xc5   : > { %1892 = vst [vmem:[%s10103_s26 + $0xaf0] sm:$0xff] %v1891_v30  ;;  %v1895_v32 = vld [vmem:[%s10098_s25 + $0x1600] sm:$0xff]  ;;  %v1897_v33 = vld [vmem:[%s10098_s25 + $0x1610] sm:$0xff]  ;;  %1894 = vst [vmem:[%s10103_s26 + $0xaf8] sm:$0xff] %v1893_v31 }
  0xc6   : > { %1896 = vst [vmem:[%s10103_s26 + $0xb00] sm:$0xff] %v1895_v32  ;;  %1898 = vst [vmem:[%s10103_s26 + $0xb08] sm:$0xff] %v1897_v33  ;;  %v1899_v34 = vld [vmem:[%s10098_s25 + $0x1620] sm:$0xff]  ;;  %v1901_v35 = vld [vmem:[%s10098_s25 + $0x1630] sm:$0xff] }
  0xc7   : > { %v1903_v36 = vld [vmem:[%s10098_s25 + $0x1640] sm:$0xff]  ;;  %1900 = vst [vmem:[%s10103_s26 + $0xb10] sm:$0xff] %v1899_v34  ;;  %1902 = vst [vmem:[%s10103_s26 + $0xb18] sm:$0xff] %v1901_v35  ;;  %v1905_v37 = vld [vmem:[%s10098_s25 + $0x1650] sm:$0xff] }
  0xc8   : > { %1904 = vst [vmem:[%s10103_s26 + $0xb20] sm:$0xff] %v1903_v36  ;;  %v1907_v38 = vld [vmem:[%s10098_s25 + $0x1660] sm:$0xff]  ;;  %v1909_v39 = vld [vmem:[%s10098_s25 + $0x1670] sm:$0xff]  ;;  %1906 = vst [vmem:[%s10103_s26 + $0xb28] sm:$0xff] %v1905_v37 }
  0xc9   : > { %1908 = vst [vmem:[%s10103_s26 + $0xb30] sm:$0xff] %v1907_v38  ;;  %1910 = vst [vmem:[%s10103_s26 + $0xb38] sm:$0xff] %v1909_v39  ;;  %v1911_v40 = vld [vmem:[%s10098_s25 + $0x1680] sm:$0xff]  ;;  %v1913_v41 = vld [vmem:[%s10098_s25 + $0x1690] sm:$0xff] }
  0xca   : > { %v1915_v42 = vld [vmem:[%s10098_s25 + $0x16a0] sm:$0xff]  ;;  %1912 = vst [vmem:[%s10103_s26 + $0xb40] sm:$0xff] %v1911_v40  ;;  %1914 = vst [vmem:[%s10103_s26 + $0xb48] sm:$0xff] %v1913_v41  ;;  %v1917_v43 = vld [vmem:[%s10098_s25 + $0x16b0] sm:$0xff] }
  0xcb   : > { %1916 = vst [vmem:[%s10103_s26 + $0xb50] sm:$0xff] %v1915_v42  ;;  %v1919_v44 = vld [vmem:[%s10098_s25 + $0x16c0] sm:$0xff]  ;;  %v1921_v45 = vld [vmem:[%s10098_s25 + $0x16d0] sm:$0xff]  ;;  %1918 = vst [vmem:[%s10103_s26 + $0xb58] sm:$0xff] %v1917_v43 }
  0xcc   : > { %1920 = vst [vmem:[%s10103_s26 + $0xb60] sm:$0xff] %v1919_v44  ;;  %1922 = vst [vmem:[%s10103_s26 + $0xb68] sm:$0xff] %v1921_v45  ;;  %v1923_v46 = vld [vmem:[%s10098_s25 + $0x16e0] sm:$0xff]  ;;  %v1925_v47 = vld [vmem:[%s10098_s25 + $0x16f0] sm:$0xff] }
  0xcd   : > { %v1927_v48 = vld [vmem:[%s10098_s25 + $0x1700] sm:$0xff]  ;;  %1924 = vst [vmem:[%s10103_s26 + $0xb70] sm:$0xff] %v1923_v46  ;;  %1926 = vst [vmem:[%s10103_s26 + $0xb78] sm:$0xff] %v1925_v47  ;;  %v1929_v49 = vld [vmem:[%s10098_s25 + $0x1710] sm:$0xff] }
  0xce   : > { %1928 = vst [vmem:[%s10103_s26 + $0xb80] sm:$0xff] %v1927_v48  ;;  %v1931_v50 = vld [vmem:[%s10098_s25 + $0x1720] sm:$0xff]  ;;  %v1933_v51 = vld [vmem:[%s10098_s25 + $0x1730] sm:$0xff]  ;;  %1930 = vst [vmem:[%s10103_s26 + $0xb88] sm:$0xff] %v1929_v49 }
  0xcf   : > { %1932 = vst [vmem:[%s10103_s26 + $0xb90] sm:$0xff] %v1931_v50  ;;  %1934 = vst [vmem:[%s10103_s26 + $0xb98] sm:$0xff] %v1933_v51  ;;  %v1935_v52 = vld [vmem:[%s10098_s25 + $0x1740] sm:$0xff]  ;;  %v1937_v53 = vld [vmem:[%s10098_s25 + $0x1750] sm:$0xff] }
  0xd0   : > { %v1939_v54 = vld [vmem:[%s10098_s25 + $0x1760] sm:$0xff]  ;;  %1936 = vst [vmem:[%s10103_s26 + $0xba0] sm:$0xff] %v1935_v52  ;;  %1938 = vst [vmem:[%s10103_s26 + $0xba8] sm:$0xff] %v1937_v53  ;;  %v1941_v55 = vld [vmem:[%s10098_s25 + $0x1770] sm:$0xff] }
  0xd1   : > { %1940 = vst [vmem:[%s10103_s26 + $0xbb0] sm:$0xff] %v1939_v54  ;;  %v1943_v56 = vld [vmem:[%s10098_s25 + $0x1780] sm:$0xff]  ;;  %v1945_v57 = vld [vmem:[%s10098_s25 + $0x1790] sm:$0xff]  ;;  %1942 = vst [vmem:[%s10103_s26 + $0xbb8] sm:$0xff] %v1941_v55 }
  0xd2   : > { %1944 = vst [vmem:[%s10103_s26 + $0xbc0] sm:$0xff] %v1943_v56  ;;  %1946 = vst [vmem:[%s10103_s26 + $0xbc8] sm:$0xff] %v1945_v57  ;;  %v1947_v58 = vld [vmem:[%s10098_s25 + $0x17a0] sm:$0xff]  ;;  %v1949_v59 = vld [vmem:[%s10098_s25 + $0x17b0] sm:$0xff] }
  0xd3   : > { %v1951_v60 = vld [vmem:[%s10098_s25 + $0x17c0] sm:$0xff]  ;;  %1948 = vst [vmem:[%s10103_s26 + $0xbd0] sm:$0xff] %v1947_v58  ;;  %1950 = vst [vmem:[%s10103_s26 + $0xbd8] sm:$0xff] %v1949_v59  ;;  %v1953_v61 = vld [vmem:[%s10098_s25 + $0x17d0] sm:$0xff] }
  0xd4   : > { %1952 = vst [vmem:[%s10103_s26 + $0xbe0] sm:$0xff] %v1951_v60  ;;  %v1955_v62 = vld [vmem:[%s10098_s25 + $0x17e0] sm:$0xff]  ;;  %v1957_v63 = vld [vmem:[%s10098_s25 + $0x17f0] sm:$0xff]  ;;  %1954 = vst [vmem:[%s10103_s26 + $0xbe8] sm:$0xff] %v1953_v61 }
  0xd5   : > { %1956 = vst [vmem:[%s10103_s26 + $0xbf0] sm:$0xff] %v1955_v62  ;;  %1958 = vst [vmem:[%s10103_s26 + $0xbf8] sm:$0xff] %v1957_v63  ;;  %v1959_v0 = vld [vmem:[%s10098_s25 + $0x1800] sm:$0xff]  ;;  %v1961_v1 = vld [vmem:[%s10098_s25 + $0x1810] sm:$0xff] }
  0xd6   : > { %v1963_v2 = vld [vmem:[%s10098_s25 + $0x1820] sm:$0xff]  ;;  %1960 = vst [vmem:[%s10103_s26 + $0xc00] sm:$0xff] %v1959_v0  ;;  %1962 = vst [vmem:[%s10103_s26 + $0xc08] sm:$0xff] %v1961_v1  ;;  %v1965_v3 = vld [vmem:[%s10098_s25 + $0x1830] sm:$0xff] }
  0xd7   : > { %1964 = vst [vmem:[%s10103_s26 + $0xc10] sm:$0xff] %v1963_v2  ;;  %v1967_v4 = vld [vmem:[%s10098_s25 + $0x1840] sm:$0xff]  ;;  %v1969_v5 = vld [vmem:[%s10098_s25 + $0x1850] sm:$0xff]  ;;  %1966 = vst [vmem:[%s10103_s26 + $0xc18] sm:$0xff] %v1965_v3 }
  0xd8   : > { %1968 = vst [vmem:[%s10103_s26 + $0xc20] sm:$0xff] %v1967_v4  ;;  %1970 = vst [vmem:[%s10103_s26 + $0xc28] sm:$0xff] %v1969_v5  ;;  %v1971_v6 = vld [vmem:[%s10098_s25 + $0x1860] sm:$0xff]  ;;  %v1973_v7 = vld [vmem:[%s10098_s25 + $0x1870] sm:$0xff] }
  0xd9   : > { %v1975_v8 = vld [vmem:[%s10098_s25 + $0x1880] sm:$0xff]  ;;  %1972 = vst [vmem:[%s10103_s26 + $0xc30] sm:$0xff] %v1971_v6  ;;  %1974 = vst [vmem:[%s10103_s26 + $0xc38] sm:$0xff] %v1973_v7  ;;  %v1977_v9 = vld [vmem:[%s10098_s25 + $0x1890] sm:$0xff] }
  0xda   : > { %1976 = vst [vmem:[%s10103_s26 + $0xc40] sm:$0xff] %v1975_v8  ;;  %v1979_v10 = vld [vmem:[%s10098_s25 + $0x18a0] sm:$0xff]  ;;  %v1981_v11 = vld [vmem:[%s10098_s25 + $0x18b0] sm:$0xff]  ;;  %1978 = vst [vmem:[%s10103_s26 + $0xc48] sm:$0xff] %v1977_v9 }
  0xdb   : > { %1980 = vst [vmem:[%s10103_s26 + $0xc50] sm:$0xff] %v1979_v10  ;;  %1982 = vst [vmem:[%s10103_s26 + $0xc58] sm:$0xff] %v1981_v11  ;;  %v1983_v12 = vld [vmem:[%s10098_s25 + $0x18c0] sm:$0xff]  ;;  %v1985_v13 = vld [vmem:[%s10098_s25 + $0x18d0] sm:$0xff] }
  0xdc   : > { %v1987_v14 = vld [vmem:[%s10098_s25 + $0x18e0] sm:$0xff]  ;;  %1984 = vst [vmem:[%s10103_s26 + $0xc60] sm:$0xff] %v1983_v12  ;;  %1986 = vst [vmem:[%s10103_s26 + $0xc68] sm:$0xff] %v1985_v13  ;;  %v1989_v15 = vld [vmem:[%s10098_s25 + $0x18f0] sm:$0xff] }
  0xdd   : > { %1988 = vst [vmem:[%s10103_s26 + $0xc70] sm:$0xff] %v1987_v14  ;;  %v1991_v16 = vld [vmem:[%s10098_s25 + $0x1900] sm:$0xff]  ;;  %v1993_v17 = vld [vmem:[%s10098_s25 + $0x1910] sm:$0xff]  ;;  %1990 = vst [vmem:[%s10103_s26 + $0xc78] sm:$0xff] %v1989_v15 }
  0xde   : > { %1992 = vst [vmem:[%s10103_s26 + $0xc80] sm:$0xff] %v1991_v16  ;;  %1994 = vst [vmem:[%s10103_s26 + $0xc88] sm:$0xff] %v1993_v17  ;;  %v1995_v18 = vld [vmem:[%s10098_s25 + $0x1920] sm:$0xff]  ;;  %v1997_v19 = vld [vmem:[%s10098_s25 + $0x1930] sm:$0xff] }
  0xdf   : > { %v1999_v20 = vld [vmem:[%s10098_s25 + $0x1940] sm:$0xff]  ;;  %1996 = vst [vmem:[%s10103_s26 + $0xc90] sm:$0xff] %v1995_v18  ;;  %1998 = vst [vmem:[%s10103_s26 + $0xc98] sm:$0xff] %v1997_v19  ;;  %v2001_v21 = vld [vmem:[%s10098_s25 + $0x1950] sm:$0xff] }
  0xe0   : > { %2000 = vst [vmem:[%s10103_s26 + $0xca0] sm:$0xff] %v1999_v20  ;;  %v2003_v22 = vld [vmem:[%s10098_s25 + $0x1960] sm:$0xff]  ;;  %v2005_v23 = vld [vmem:[%s10098_s25 + $0x1970] sm:$0xff]  ;;  %2002 = vst [vmem:[%s10103_s26 + $0xca8] sm:$0xff] %v2001_v21 }
  0xe1   : > { %2004 = vst [vmem:[%s10103_s26 + $0xcb0] sm:$0xff] %v2003_v22  ;;  %2006 = vst [vmem:[%s10103_s26 + $0xcb8] sm:$0xff] %v2005_v23  ;;  %v2007_v24 = vld [vmem:[%s10098_s25 + $0x1980] sm:$0xff]  ;;  %v2009_v25 = vld [vmem:[%s10098_s25 + $0x1990] sm:$0xff] }
  0xe2   : > { %v2011_v26 = vld [vmem:[%s10098_s25 + $0x19a0] sm:$0xff]  ;;  %2008 = vst [vmem:[%s10103_s26 + $0xcc0] sm:$0xff] %v2007_v24  ;;  %2010 = vst [vmem:[%s10103_s26 + $0xcc8] sm:$0xff] %v2009_v25  ;;  %v2013_v27 = vld [vmem:[%s10098_s25 + $0x19b0] sm:$0xff] }
  0xe3   : > { %2012 = vst [vmem:[%s10103_s26 + $0xcd0] sm:$0xff] %v2011_v26  ;;  %v2015_v28 = vld [vmem:[%s10098_s25 + $0x19c0] sm:$0xff]  ;;  %v2017_v29 = vld [vmem:[%s10098_s25 + $0x19d0] sm:$0xff]  ;;  %2014 = vst [vmem:[%s10103_s26 + $0xcd8] sm:$0xff] %v2013_v27 }
  0xe4   : > { %2016 = vst [vmem:[%s10103_s26 + $0xce0] sm:$0xff] %v2015_v28  ;;  %2018 = vst [vmem:[%s10103_s26 + $0xce8] sm:$0xff] %v2017_v29  ;;  %v2019_v30 = vld [vmem:[%s10098_s25 + $0x19e0] sm:$0xff]  ;;  %v2021_v31 = vld [vmem:[%s10098_s25 + $0x19f0] sm:$0xff] }
  0xe5   : > { %v2023_v32 = vld [vmem:[%s10098_s25 + $0x1a00] sm:$0xff]  ;;  %2020 = vst [vmem:[%s10103_s26 + $0xcf0] sm:$0xff] %v2019_v30  ;;  %2022 = vst [vmem:[%s10103_s26 + $0xcf8] sm:$0xff] %v2021_v31  ;;  %v2025_v33 = vld [vmem:[%s10098_s25 + $0x1a10] sm:$0xff] }
  0xe6   : > { %2024 = vst [vmem:[%s10103_s26 + $0xd00] sm:$0xff] %v2023_v32  ;;  %v2027_v34 = vld [vmem:[%s10098_s25 + $0x1a20] sm:$0xff]  ;;  %v2029_v35 = vld [vmem:[%s10098_s25 + $0x1a30] sm:$0xff]  ;;  %2026 = vst [vmem:[%s10103_s26 + $0xd08] sm:$0xff] %v2025_v33 }
  0xe7   : > { %2028 = vst [vmem:[%s10103_s26 + $0xd10] sm:$0xff] %v2027_v34  ;;  %2030 = vst [vmem:[%s10103_s26 + $0xd18] sm:$0xff] %v2029_v35  ;;  %v2031_v36 = vld [vmem:[%s10098_s25 + $0x1a40] sm:$0xff]  ;;  %v2033_v37 = vld [vmem:[%s10098_s25 + $0x1a50] sm:$0xff] }
  0xe8   : > { %v2035_v38 = vld [vmem:[%s10098_s25 + $0x1a60] sm:$0xff]  ;;  %2032 = vst [vmem:[%s10103_s26 + $0xd20] sm:$0xff] %v2031_v36  ;;  %2034 = vst [vmem:[%s10103_s26 + $0xd28] sm:$0xff] %v2033_v37  ;;  %v2037_v39 = vld [vmem:[%s10098_s25 + $0x1a70] sm:$0xff] }
  0xe9   : > { %2036 = vst [vmem:[%s10103_s26 + $0xd30] sm:$0xff] %v2035_v38  ;;  %v2039_v40 = vld [vmem:[%s10098_s25 + $0x1a80] sm:$0xff]  ;;  %v2041_v41 = vld [vmem:[%s10098_s25 + $0x1a90] sm:$0xff]  ;;  %2038 = vst [vmem:[%s10103_s26 + $0xd38] sm:$0xff] %v2037_v39 }
  0xea   : > { %2040 = vst [vmem:[%s10103_s26 + $0xd40] sm:$0xff] %v2039_v40  ;;  %2042 = vst [vmem:[%s10103_s26 + $0xd48] sm:$0xff] %v2041_v41  ;;  %v2043_v42 = vld [vmem:[%s10098_s25 + $0x1aa0] sm:$0xff]  ;;  %v2045_v43 = vld [vmem:[%s10098_s25 + $0x1ab0] sm:$0xff] }
  0xeb   : > { %v2047_v44 = vld [vmem:[%s10098_s25 + $0x1ac0] sm:$0xff]  ;;  %2044 = vst [vmem:[%s10103_s26 + $0xd50] sm:$0xff] %v2043_v42  ;;  %2046 = vst [vmem:[%s10103_s26 + $0xd58] sm:$0xff] %v2045_v43  ;;  %v2049_v45 = vld [vmem:[%s10098_s25 + $0x1ad0] sm:$0xff] }
  0xec   : > { %2048 = vst [vmem:[%s10103_s26 + $0xd60] sm:$0xff] %v2047_v44  ;;  %v2051_v46 = vld [vmem:[%s10098_s25 + $0x1ae0] sm:$0xff]  ;;  %v2053_v47 = vld [vmem:[%s10098_s25 + $0x1af0] sm:$0xff]  ;;  %2050 = vst [vmem:[%s10103_s26 + $0xd68] sm:$0xff] %v2049_v45 }
  0xed   : > { %2052 = vst [vmem:[%s10103_s26 + $0xd70] sm:$0xff] %v2051_v46  ;;  %2054 = vst [vmem:[%s10103_s26 + $0xd78] sm:$0xff] %v2053_v47  ;;  %v2055_v48 = vld [vmem:[%s10098_s25 + $0x1b00] sm:$0xff]  ;;  %v2057_v49 = vld [vmem:[%s10098_s25 + $0x1b10] sm:$0xff] }
  0xee   : > { %v2059_v50 = vld [vmem:[%s10098_s25 + $0x1b20] sm:$0xff]  ;;  %2056 = vst [vmem:[%s10103_s26 + $0xd80] sm:$0xff] %v2055_v48  ;;  %2058 = vst [vmem:[%s10103_s26 + $0xd88] sm:$0xff] %v2057_v49  ;;  %v2061_v51 = vld [vmem:[%s10098_s25 + $0x1b30] sm:$0xff] }
  0xef   : > { %2060 = vst [vmem:[%s10103_s26 + $0xd90] sm:$0xff] %v2059_v50  ;;  %v2063_v52 = vld [vmem:[%s10098_s25 + $0x1b40] sm:$0xff]  ;;  %v2065_v53 = vld [vmem:[%s10098_s25 + $0x1b50] sm:$0xff]  ;;  %2062 = vst [vmem:[%s10103_s26 + $0xd98] sm:$0xff] %v2061_v51 }
  0xf0   : > { %2064 = vst [vmem:[%s10103_s26 + $0xda0] sm:$0xff] %v2063_v52  ;;  %2066 = vst [vmem:[%s10103_s26 + $0xda8] sm:$0xff] %v2065_v53  ;;  %v2067_v54 = vld [vmem:[%s10098_s25 + $0x1b60] sm:$0xff]  ;;  %v2069_v55 = vld [vmem:[%s10098_s25 + $0x1b70] sm:$0xff] }
  0xf1   : > { %v2071_v56 = vld [vmem:[%s10098_s25 + $0x1b80] sm:$0xff]  ;;  %2068 = vst [vmem:[%s10103_s26 + $0xdb0] sm:$0xff] %v2067_v54  ;;  %2070 = vst [vmem:[%s10103_s26 + $0xdb8] sm:$0xff] %v2069_v55  ;;  %v2073_v57 = vld [vmem:[%s10098_s25 + $0x1b90] sm:$0xff] }
  0xf2   : > { %2072 = vst [vmem:[%s10103_s26 + $0xdc0] sm:$0xff] %v2071_v56  ;;  %v2075_v58 = vld [vmem:[%s10098_s25 + $0x1ba0] sm:$0xff]  ;;  %v2077_v59 = vld [vmem:[%s10098_s25 + $0x1bb0] sm:$0xff]  ;;  %2074 = vst [vmem:[%s10103_s26 + $0xdc8] sm:$0xff] %v2073_v57 }
  0xf3   : > { %2076 = vst [vmem:[%s10103_s26 + $0xdd0] sm:$0xff] %v2075_v58  ;;  %2078 = vst [vmem:[%s10103_s26 + $0xdd8] sm:$0xff] %v2077_v59  ;;  %v2079_v60 = vld [vmem:[%s10098_s25 + $0x1bc0] sm:$0xff]  ;;  %v2081_v61 = vld [vmem:[%s10098_s25 + $0x1bd0] sm:$0xff] }
  0xf4   : > { %v2083_v62 = vld [vmem:[%s10098_s25 + $0x1be0] sm:$0xff]  ;;  %2080 = vst [vmem:[%s10103_s26 + $0xde0] sm:$0xff] %v2079_v60  ;;  %2082 = vst [vmem:[%s10103_s26 + $0xde8] sm:$0xff] %v2081_v61  ;;  %v2085_v63 = vld [vmem:[%s10098_s25 + $0x1bf0] sm:$0xff] }
  0xf5   : > { %2084 = vst [vmem:[%s10103_s26 + $0xdf0] sm:$0xff] %v2083_v62  ;;  %v2087_v0 = vld [vmem:[%s10098_s25 + $0x1c00] sm:$0xff]  ;;  %v2089_v1 = vld [vmem:[%s10098_s25 + $0x1c10] sm:$0xff]  ;;  %2086 = vst [vmem:[%s10103_s26 + $0xdf8] sm:$0xff] %v2085_v63 }
  0xf6   : > { %2088 = vst [vmem:[%s10103_s26 + $0xe00] sm:$0xff] %v2087_v0  ;;  %2090 = vst [vmem:[%s10103_s26 + $0xe08] sm:$0xff] %v2089_v1  ;;  %v2091_v2 = vld [vmem:[%s10098_s25 + $0x1c20] sm:$0xff]  ;;  %v2093_v3 = vld [vmem:[%s10098_s25 + $0x1c30] sm:$0xff] }
  0xf7   : > { %v2095_v4 = vld [vmem:[%s10098_s25 + $0x1c40] sm:$0xff]  ;;  %2092 = vst [vmem:[%s10103_s26 + $0xe10] sm:$0xff] %v2091_v2  ;;  %2094 = vst [vmem:[%s10103_s26 + $0xe18] sm:$0xff] %v2093_v3  ;;  %v2097_v5 = vld [vmem:[%s10098_s25 + $0x1c50] sm:$0xff] }
  0xf8   : > { %2096 = vst [vmem:[%s10103_s26 + $0xe20] sm:$0xff] %v2095_v4  ;;  %v2099_v6 = vld [vmem:[%s10098_s25 + $0x1c60] sm:$0xff]  ;;  %v2101_v7 = vld [vmem:[%s10098_s25 + $0x1c70] sm:$0xff]  ;;  %2098 = vst [vmem:[%s10103_s26 + $0xe28] sm:$0xff] %v2097_v5 }
  0xf9   : > { %2100 = vst [vmem:[%s10103_s26 + $0xe30] sm:$0xff] %v2099_v6  ;;  %2102 = vst [vmem:[%s10103_s26 + $0xe38] sm:$0xff] %v2101_v7  ;;  %v2103_v8 = vld [vmem:[%s10098_s25 + $0x1c80] sm:$0xff]  ;;  %v2105_v9 = vld [vmem:[%s10098_s25 + $0x1c90] sm:$0xff] }
  0xfa   : > { %v2107_v10 = vld [vmem:[%s10098_s25 + $0x1ca0] sm:$0xff]  ;;  %2104 = vst [vmem:[%s10103_s26 + $0xe40] sm:$0xff] %v2103_v8  ;;  %2106 = vst [vmem:[%s10103_s26 + $0xe48] sm:$0xff] %v2105_v9  ;;  %v2109_v11 = vld [vmem:[%s10098_s25 + $0x1cb0] sm:$0xff] }
  0xfb   : > { %2108 = vst [vmem:[%s10103_s26 + $0xe50] sm:$0xff] %v2107_v10  ;;  %v2111_v12 = vld [vmem:[%s10098_s25 + $0x1cc0] sm:$0xff]  ;;  %v2113_v13 = vld [vmem:[%s10098_s25 + $0x1cd0] sm:$0xff]  ;;  %2110 = vst [vmem:[%s10103_s26 + $0xe58] sm:$0xff] %v2109_v11 }
  0xfc   : > { %2112 = vst [vmem:[%s10103_s26 + $0xe60] sm:$0xff] %v2111_v12  ;;  %2114 = vst [vmem:[%s10103_s26 + $0xe68] sm:$0xff] %v2113_v13  ;;  %v2115_v14 = vld [vmem:[%s10098_s25 + $0x1ce0] sm:$0xff]  ;;  %v2117_v15 = vld [vmem:[%s10098_s25 + $0x1cf0] sm:$0xff] }
  0xfd   : > { %v2119_v16 = vld [vmem:[%s10098_s25 + $0x1d00] sm:$0xff]  ;;  %2116 = vst [vmem:[%s10103_s26 + $0xe70] sm:$0xff] %v2115_v14  ;;  %2118 = vst [vmem:[%s10103_s26 + $0xe78] sm:$0xff] %v2117_v15  ;;  %v2121_v17 = vld [vmem:[%s10098_s25 + $0x1d10] sm:$0xff] }
  0xfe   : > { %2120 = vst [vmem:[%s10103_s26 + $0xe80] sm:$0xff] %v2119_v16  ;;  %v2123_v18 = vld [vmem:[%s10098_s25 + $0x1d20] sm:$0xff]  ;;  %v2125_v19 = vld [vmem:[%s10098_s25 + $0x1d30] sm:$0xff]  ;;  %2122 = vst [vmem:[%s10103_s26 + $0xe88] sm:$0xff] %v2121_v17 }
  0xff   : > { %2124 = vst [vmem:[%s10103_s26 + $0xe90] sm:$0xff] %v2123_v18  ;;  %2126 = vst [vmem:[%s10103_s26 + $0xe98] sm:$0xff] %v2125_v19  ;;  %v2127_v20 = vld [vmem:[%s10098_s25 + $0x1d40] sm:$0xff]  ;;  %v2129_v21 = vld [vmem:[%s10098_s25 + $0x1d50] sm:$0xff] }
 0x100   : > { %v2131_v22 = vld [vmem:[%s10098_s25 + $0x1d60] sm:$0xff]  ;;  %2128 = vst [vmem:[%s10103_s26 + $0xea0] sm:$0xff] %v2127_v20  ;;  %2130 = vst [vmem:[%s10103_s26 + $0xea8] sm:$0xff] %v2129_v21  ;;  %v2133_v23 = vld [vmem:[%s10098_s25 + $0x1d70] sm:$0xff] }
 0x101   : > { %2132 = vst [vmem:[%s10103_s26 + $0xeb0] sm:$0xff] %v2131_v22  ;;  %v2135_v24 = vld [vmem:[%s10098_s25 + $0x1d80] sm:$0xff]  ;;  %v2137_v25 = vld [vmem:[%s10098_s25 + $0x1d90] sm:$0xff]  ;;  %2134 = vst [vmem:[%s10103_s26 + $0xeb8] sm:$0xff] %v2133_v23 }
 0x102   : > { %2136 = vst [vmem:[%s10103_s26 + $0xec0] sm:$0xff] %v2135_v24  ;;  %2138 = vst [vmem:[%s10103_s26 + $0xec8] sm:$0xff] %v2137_v25  ;;  %v2139_v26 = vld [vmem:[%s10098_s25 + $0x1da0] sm:$0xff]  ;;  %v2141_v27 = vld [vmem:[%s10098_s25 + $0x1db0] sm:$0xff] }
 0x103   : > { %v2143_v28 = vld [vmem:[%s10098_s25 + $0x1dc0] sm:$0xff]  ;;  %2140 = vst [vmem:[%s10103_s26 + $0xed0] sm:$0xff] %v2139_v26  ;;  %2142 = vst [vmem:[%s10103_s26 + $0xed8] sm:$0xff] %v2141_v27  ;;  %v2145_v29 = vld [vmem:[%s10098_s25 + $0x1dd0] sm:$0xff] }
 0x104   : > { %2144 = vst [vmem:[%s10103_s26 + $0xee0] sm:$0xff] %v2143_v28  ;;  %v2147_v30 = vld [vmem:[%s10098_s25 + $0x1de0] sm:$0xff]  ;;  %v2149_v31 = vld [vmem:[%s10098_s25 + $0x1df0] sm:$0xff]  ;;  %2146 = vst [vmem:[%s10103_s26 + $0xee8] sm:$0xff] %v2145_v29 }
 0x105   : > { %2148 = vst [vmem:[%s10103_s26 + $0xef0] sm:$0xff] %v2147_v30  ;;  %2150 = vst [vmem:[%s10103_s26 + $0xef8] sm:$0xff] %v2149_v31  ;;  %v2151_v32 = vld [vmem:[%s10098_s25 + $0x1e00] sm:$0xff]  ;;  %v2153_v33 = vld [vmem:[%s10098_s25 + $0x1e10] sm:$0xff] }
 0x106   : > { %v2155_v34 = vld [vmem:[%s10098_s25 + $0x1e20] sm:$0xff]  ;;  %2152 = vst [vmem:[%s10103_s26 + $0xf00] sm:$0xff] %v2151_v32  ;;  %2154 = vst [vmem:[%s10103_s26 + $0xf08] sm:$0xff] %v2153_v33  ;;  %v2157_v35 = vld [vmem:[%s10098_s25 + $0x1e30] sm:$0xff] }
 0x107   : > { %2156 = vst [vmem:[%s10103_s26 + $0xf10] sm:$0xff] %v2155_v34  ;;  %v2159_v36 = vld [vmem:[%s10098_s25 + $0x1e40] sm:$0xff]  ;;  %v2161_v37 = vld [vmem:[%s10098_s25 + $0x1e50] sm:$0xff]  ;;  %2158 = vst [vmem:[%s10103_s26 + $0xf18] sm:$0xff] %v2157_v35 }
 0x108   : > { %2160 = vst [vmem:[%s10103_s26 + $0xf20] sm:$0xff] %v2159_v36  ;;  %2162 = vst [vmem:[%s10103_s26 + $0xf28] sm:$0xff] %v2161_v37  ;;  %v2163_v38 = vld [vmem:[%s10098_s25 + $0x1e60] sm:$0xff]  ;;  %v2165_v39 = vld [vmem:[%s10098_s25 + $0x1e70] sm:$0xff] }
 0x109   : > { %v2167_v40 = vld [vmem:[%s10098_s25 + $0x1e80] sm:$0xff]  ;;  %2164 = vst [vmem:[%s10103_s26 + $0xf30] sm:$0xff] %v2163_v38  ;;  %2166 = vst [vmem:[%s10103_s26 + $0xf38] sm:$0xff] %v2165_v39  ;;  %v2169_v41 = vld [vmem:[%s10098_s25 + $0x1e90] sm:$0xff] }
 0x10a   : > { %2168 = vst [vmem:[%s10103_s26 + $0xf40] sm:$0xff] %v2167_v40  ;;  %v2171_v42 = vld [vmem:[%s10098_s25 + $0x1ea0] sm:$0xff]  ;;  %v2173_v43 = vld [vmem:[%s10098_s25 + $0x1eb0] sm:$0xff]  ;;  %2170 = vst [vmem:[%s10103_s26 + $0xf48] sm:$0xff] %v2169_v41 }
 0x10b   : > { %2172 = vst [vmem:[%s10103_s26 + $0xf50] sm:$0xff] %v2171_v42  ;;  %2174 = vst [vmem:[%s10103_s26 + $0xf58] sm:$0xff] %v2173_v43  ;;  %v2175_v44 = vld [vmem:[%s10098_s25 + $0x1ec0] sm:$0xff]  ;;  %v2177_v45 = vld [vmem:[%s10098_s25 + $0x1ed0] sm:$0xff] }
 0x10c   : > { %v2179_v46 = vld [vmem:[%s10098_s25 + $0x1ee0] sm:$0xff]  ;;  %2176 = vst [vmem:[%s10103_s26 + $0xf60] sm:$0xff] %v2175_v44  ;;  %2178 = vst [vmem:[%s10103_s26 + $0xf68] sm:$0xff] %v2177_v45  ;;  %v2181_v47 = vld [vmem:[%s10098_s25 + $0x1ef0] sm:$0xff] }
 0x10d   : > { %2180 = vst [vmem:[%s10103_s26 + $0xf70] sm:$0xff] %v2179_v46  ;;  %v2183_v48 = vld [vmem:[%s10098_s25 + $0x1f00] sm:$0xff]  ;;  %v2185_v49 = vld [vmem:[%s10098_s25 + $0x1f10] sm:$0xff]  ;;  %2182 = vst [vmem:[%s10103_s26 + $0xf78] sm:$0xff] %v2181_v47 }
 0x10e   : > { %2184 = vst [vmem:[%s10103_s26 + $0xf80] sm:$0xff] %v2183_v48  ;;  %2186 = vst [vmem:[%s10103_s26 + $0xf88] sm:$0xff] %v2185_v49  ;;  %v2187_v50 = vld [vmem:[%s10098_s25 + $0x1f20] sm:$0xff]  ;;  %v2189_v51 = vld [vmem:[%s10098_s25 + $0x1f30] sm:$0xff] }
 0x10f   : > { %v2191_v52 = vld [vmem:[%s10098_s25 + $0x1f40] sm:$0xff]  ;;  %2188 = vst [vmem:[%s10103_s26 + $0xf90] sm:$0xff] %v2187_v50  ;;  %2190 = vst [vmem:[%s10103_s26 + $0xf98] sm:$0xff] %v2189_v51  ;;  %v2193_v53 = vld [vmem:[%s10098_s25 + $0x1f50] sm:$0xff] }
 0x110   : > { %2192 = vst [vmem:[%s10103_s26 + $0xfa0] sm:$0xff] %v2191_v52  ;;  %v2195_v54 = vld [vmem:[%s10098_s25 + $0x1f60] sm:$0xff]  ;;  %v2197_v55 = vld [vmem:[%s10098_s25 + $0x1f70] sm:$0xff]  ;;  %2194 = vst [vmem:[%s10103_s26 + $0xfa8] sm:$0xff] %v2193_v53 }
 0x111   : > { %2196 = vst [vmem:[%s10103_s26 + $0xfb0] sm:$0xff] %v2195_v54  ;;  %2198 = vst [vmem:[%s10103_s26 + $0xfb8] sm:$0xff] %v2197_v55  ;;  %v2199_v56 = vld [vmem:[%s10098_s25 + $0x1f80] sm:$0xff]  ;;  %v2201_v57 = vld [vmem:[%s10098_s25 + $0x1f90] sm:$0xff] }
 0x112   : > { %v2203_v58 = vld [vmem:[%s10098_s25 + $0x1fa0] sm:$0xff]  ;;  %2200 = vst [vmem:[%s10103_s26 + $0xfc0] sm:$0xff] %v2199_v56  ;;  %2202 = vst [vmem:[%s10103_s26 + $0xfc8] sm:$0xff] %v2201_v57  ;;  %v2205_v59 = vld [vmem:[%s10098_s25 + $0x1fb0] sm:$0xff] }
 0x113   : > { %2204 = vst [vmem:[%s10103_s26 + $0xfd0] sm:$0xff] %v2203_v58  ;;  %v2207_v60 = vld [vmem:[%s10098_s25 + $0x1fc0] sm:$0xff]  ;;  %v2209_v61 = vld [vmem:[%s10098_s25 + $0x1fd0] sm:$0xff]  ;;  %2206 = vst [vmem:[%s10103_s26 + $0xfd8] sm:$0xff] %v2205_v59 }
 0x114   : > { %2208 = vst [vmem:[%s10103_s26 + $0xfe0] sm:$0xff] %v2207_v60  ;;  %2210 = vst [vmem:[%s10103_s26 + $0xfe8] sm:$0xff] %v2209_v61  ;;  %v2211_v62 = vld [vmem:[%s10098_s25 + $0x1fe0] sm:$0xff]  ;;  %v2213_v63 = vld [vmem:[%s10098_s25 + $0x1ff0] sm:$0xff] }
 0x115   : > { %2212 = vst [vmem:[%s10103_s26 + $0xff0] sm:$0xff] %v2211_v62  ;;  %2214 = vst [vmem:[%s10103_s26 + $0xff8] sm:$0xff] %v2213_v63 }
 0x116 PF: > { %p8561_p8 = scmp.ge.s32.totalorder %s10033_s13, 1  ;;  %p4303_p9 = scmp.lt.s32.totalorder %s10033_s13, 3 }
 0x118   : > { %p4304_p10 = pnand %p8561_p8, %p4303_p9 }
 0x119   : > { %s4310_s27 = sand.u32 (!%p4304_p10), 1, %s10017_s9   ;;  %v11132_v0 = vld [vmem:[%s11926_s0] sm:$0xff] (!%p4304_p10) }
 0x11a   : > { %4307 = sbr.rel (%p4304_p10) target bundleno = 1065 (0x429), region = 76  ;;  %v11137_v1 = vld [vmem:[%s11926_s0 + $0x80] sm:$0xff] (!%p4304_p10)  ;;  %s8562_s6 = sshll.u32 (!%p4304_p10), %s4310_s27, 12 }
 0x11b   : > { %v11142_v2 = vld [vmem:[%s11926_s0 + $0x40] sm:$0xff] (!%p4304_p10)  ;;  %v8564_v3 = vcombine.low (!%p4304_p10), %v11132_v0, %v11137_v1  ;;  %v8565_v4 = vcombine.high (!%p4304_p10), %v11132_v0, %v11137_v1  ;;  %s11159_s15 = scalar_lea.vmem (!%p4304_p10), [#allocation2], %s8562_s6 }
 0x11c   : > { %v11153_v5 = vld [vmem:[%s11926_s0 + $0xc0] sm:$0xff] (!%p4304_p10)  ;;  %v9225_v12 = vld [vmem:[%s11159_s15 + $0x14] ss:$8 sps:$4 sm:$0xff] (!%p4304_p10)   ;;  %v9229_v14 = vld [vmem:[%s11159_s15 + $0x10] ss:$8 sps:$4 sm:$0xff] (!%p4304_p10)  }
 0x11d   : > { %v8580_v6 = vcombine.low (!%p4304_p10), %v11142_v2, %v11153_v5  ;;  %v8581_v7 = vcombine.high (!%p4304_p10), %v11142_v2, %v11153_v5  ;;  %v9219_v8 = vld [vmem:[%s11159_s15 + $0x4] ss:$8 sps:$4 sm:$0xff] (!%p4304_p10)   ;;  %7642 = vmatprep.mubr.bf16.mxu1 (!%p4304_p10), %v8565_v4  ;;  %v9223_v10 = vld [vmem:[%s11159_s15] ss:$8 sps:$4 sm:$0xff] (!%p4304_p10)   ;;  %v9227_v13 = vld [vmem:[%s11159_s15 + $0x814] ss:$8 sps:$4 sm:$0xff] (!%p4304_p10)  }
 0x11e   : > { %v9221_v9 = vld [vmem:[%s11159_s15 + $0x804] ss:$8 sps:$4 sm:$0xff] (!%p4304_p10)   ;;  %7610 = vmatprep.subr.bf16.mxu1 (!%p4304_p10), %v9219_v8  ;;  %v9224_v11 = vld [vmem:[%s11159_s15 + $0x800] ss:$8 sps:$4 sm:$0xff] (!%p4304_p10)   ;;  %v9230_v15 = vld [vmem:[%s11159_s15 + $0x810] ss:$8 sps:$4 sm:$0xff] (!%p4304_p10)  }
 0x11f   : > { %7986 = vmatprep.mubr.bf16.mxu0 (!%p4304_p10), %v8581_v7  ;;  %7954 = vmatprep.subr.bf16.mxu0 (!%p4304_p10), %v9221_v9  ;;  %v9231_v16 = vld [vmem:[%s11159_s15 + $0x24] ss:$8 sps:$4 sm:$0xff] (!%p4304_p10)   ;;  %v9235_v18 = vld [vmem:[%s11159_s15 + $0x20] ss:$8 sps:$4 sm:$0xff] (!%p4304_p10)   ;;  %v9237_v20 = vld [vmem:[%s11159_s15 + $0x34] ss:$8 sps:$4 sm:$0xff] (!%p4304_p10)  }
 0x120   : > { %7611 = vmatpush1.bf16.msra.mxu1 (!%p4304_p10), %v9223_v10  ;;  %7955 = vmatpush1.bf16.msra.mxu0 (!%p4304_p10), %v9224_v11  ;;  %v9233_v17 = vld [vmem:[%s11159_s15 + $0x824] ss:$8 sps:$4 sm:$0xff] (!%p4304_p10)   ;;  %v9236_v19 = vld [vmem:[%s11159_s15 + $0x820] ss:$8 sps:$4 sm:$0xff] (!%p4304_p10)   ;;  %v9239_v21 = vld [vmem:[%s11159_s15 + $0x834] ss:$8 sps:$4 sm:$0xff] (!%p4304_p10)  }
 0x121   : > { %7612 = vmatprep.subr.bf16.mxu1 %v9225_v12  ;;  %7956 = vmatprep.subr.bf16.mxu0 %v9227_v13  ;;  %v9241_v22 = vld [vmem:[%s11159_s15 + $0x30] ss:$8 sps:$4 sm:$0xff]   ;;  %v9243_v24 = vld [vmem:[%s11159_s15 + $0x44] ss:$8 sps:$4 sm:$0xff]   ;;  %v9247_v26 = vld [vmem:[%s11159_s15 + $0x40] ss:$8 sps:$4 sm:$0xff]  }
 0x122   : > { %v9242_v23 = vld [vmem:[%s11159_s15 + $0x830] ss:$8 sps:$4 sm:$0xff]   ;;  %v9245_v25 = vld [vmem:[%s11159_s15 + $0x844] ss:$8 sps:$4 sm:$0xff]   ;;  %v9248_v27 = vld [vmem:[%s11159_s15 + $0x840] ss:$8 sps:$4 sm:$0xff]  }
 0x123   : > { %v9249_v28 = vld [vmem:[%s11159_s15 + $0x54] ss:$8 sps:$4 sm:$0xff]   ;;  %v9253_v30 = vld [vmem:[%s11159_s15 + $0x50] ss:$8 sps:$4 sm:$0xff]   ;;  %v9255_v32 = vld [vmem:[%s11159_s15 + $0x64] ss:$8 sps:$4 sm:$0xff]  }
 0x124   : > { %7613 = vmatpush1.bf16.msra.mxu1 %v9229_v14  ;;  %7957 = vmatpush1.bf16.msra.mxu0 %v9230_v15  ;;  %v9251_v29 = vld [vmem:[%s11159_s15 + $0x854] ss:$8 sps:$4 sm:$0xff]   ;;  %v9254_v31 = vld [vmem:[%s11159_s15 + $0x850] ss:$8 sps:$4 sm:$0xff]   ;;  %v9257_v33 = vld [vmem:[%s11159_s15 + $0x864] ss:$8 sps:$4 sm:$0xff]  }
 0x125   : > { %7614 = vmatprep.subr.bf16.mxu1 %v9231_v16  ;;  %7958 = vmatprep.subr.bf16.mxu0 %v9233_v17  ;;  %v9259_v34 = vld [vmem:[%s11159_s15 + $0x60] ss:$8 sps:$4 sm:$0xff]   ;;  %v9261_v36 = vld [vmem:[%s11159_s15 + $0x74] ss:$8 sps:$4 sm:$0xff]   ;;  %v9265_v38 = vld [vmem:[%s11159_s15 + $0x70] ss:$8 sps:$4 sm:$0xff]  }
 0x126   : > { %v9260_v35 = vld [vmem:[%s11159_s15 + $0x860] ss:$8 sps:$4 sm:$0xff]   ;;  %v9263_v37 = vld [vmem:[%s11159_s15 + $0x874] ss:$8 sps:$4 sm:$0xff]   ;;  %v9266_v39 = vld [vmem:[%s11159_s15 + $0x870] ss:$8 sps:$4 sm:$0xff]  }
 0x127   : > { %v9267_v40 = vld [vmem:[%s11159_s15 + $0x84] ss:$8 sps:$4 sm:$0xff]   ;;  %v9271_v42 = vld [vmem:[%s11159_s15 + $0x80] ss:$8 sps:$4 sm:$0xff]   ;;  %v9273_v44 = vld [vmem:[%s11159_s15 + $0x94] ss:$8 sps:$4 sm:$0xff]  }
 0x128   : > { %7615 = vmatpush1.bf16.msra.mxu1 %v9235_v18  ;;  %7959 = vmatpush1.bf16.msra.mxu0 %v9236_v19  ;;  %v9269_v41 = vld [vmem:[%s11159_s15 + $0x884] ss:$8 sps:$4 sm:$0xff]   ;;  %v9272_v43 = vld [vmem:[%s11159_s15 + $0x880] ss:$8 sps:$4 sm:$0xff]   ;;  %v9275_v45 = vld [vmem:[%s11159_s15 + $0x894] ss:$8 sps:$4 sm:$0xff]  }
 0x129   : > { %7616 = vmatprep.subr.bf16.mxu1 %v9237_v20  ;;  %7960 = vmatprep.subr.bf16.mxu0 %v9239_v21  ;;  %v9277_v46 = vld [vmem:[%s11159_s15 + $0x90] ss:$8 sps:$4 sm:$0xff]   ;;  %v9279_v48 = vld [vmem:[%s11159_s15 + $0xa4] ss:$8 sps:$4 sm:$0xff]   ;;  %v9283_v50 = vld [vmem:[%s11159_s15 + $0xa0] ss:$8 sps:$4 sm:$0xff]  }
 0x12a   : > { %v9278_v47 = vld [vmem:[%s11159_s15 + $0x890] ss:$8 sps:$4 sm:$0xff]   ;;  %v9281_v49 = vld [vmem:[%s11159_s15 + $0x8a4] ss:$8 sps:$4 sm:$0xff]   ;;  %v9284_v51 = vld [vmem:[%s11159_s15 + $0x8a0] ss:$8 sps:$4 sm:$0xff]  }
 0x12b   : > { %v9285_v52 = vld [vmem:[%s11159_s15 + $0xb4] ss:$8 sps:$4 sm:$0xff]   ;;  %v9289_v54 = vld [vmem:[%s11159_s15 + $0xb0] ss:$8 sps:$4 sm:$0xff]   ;;  %v9291_v56 = vld [vmem:[%s11159_s15 + $0xc4] ss:$8 sps:$4 sm:$0xff]  }
 0x12c   : > { %7617 = vmatpush1.bf16.msra.mxu1 %v9241_v22  ;;  %7961 = vmatpush1.bf16.msra.mxu0 %v9242_v23  ;;  %v9287_v53 = vld [vmem:[%s11159_s15 + $0x8b4] ss:$8 sps:$4 sm:$0xff]   ;;  %v9290_v55 = vld [vmem:[%s11159_s15 + $0x8b0] ss:$8 sps:$4 sm:$0xff]   ;;  %v9293_v57 = vld [vmem:[%s11159_s15 + $0x8c4] ss:$8 sps:$4 sm:$0xff]  }
 0x12d   : > { %7618 = vmatprep.subr.bf16.mxu1 %v9243_v24  ;;  %7962 = vmatprep.subr.bf16.mxu0 %v9245_v25  ;;  %v9295_v58 = vld [vmem:[%s11159_s15 + $0xc0] ss:$8 sps:$4 sm:$0xff]   ;;  %v9297_v60 = vld [vmem:[%s11159_s15 + $0xd4] ss:$8 sps:$4 sm:$0xff]   ;;  %v9301_v62 = vld [vmem:[%s11159_s15 + $0xd0] ss:$8 sps:$4 sm:$0xff]  }
 0x12e   : > { %v9296_v59 = vld [vmem:[%s11159_s15 + $0x8c0] ss:$8 sps:$4 sm:$0xff]   ;;  %v9299_v61 = vld [vmem:[%s11159_s15 + $0x8d4] ss:$8 sps:$4 sm:$0xff]   ;;  %v9302_v63 = vld [vmem:[%s11159_s15 + $0x8d0] ss:$8 sps:$4 sm:$0xff]  }
 0x12f   : > { %v9303_v4 = vld [vmem:[%s11159_s15 + $0xe4] ss:$8 sps:$4 sm:$0xff]   ;;  %v9307_v8 = vld [vmem:[%s11159_s15 + $0xe0] ss:$8 sps:$4 sm:$0xff]   ;;  %v9309_v10 = vld [vmem:[%s11159_s15 + $0xf4] ss:$8 sps:$4 sm:$0xff]  }
 0x130   : > { %7619 = vmatpush1.bf16.msra.mxu1 %v9247_v26  ;;  %7963 = vmatpush1.bf16.msra.mxu0 %v9248_v27  ;;  %v9305_v7 = vld [vmem:[%s11159_s15 + $0x8e4] ss:$8 sps:$4 sm:$0xff]   ;;  %v9308_v9 = vld [vmem:[%s11159_s15 + $0x8e0] ss:$8 sps:$4 sm:$0xff]   ;;  %v9311_v11 = vld [vmem:[%s11159_s15 + $0x8f4] ss:$8 sps:$4 sm:$0xff]  }
 0x131   : > { %7620 = vmatprep.subr.bf16.mxu1 %v9249_v28  ;;  %7964 = vmatprep.subr.bf16.mxu0 %v9251_v29  ;;  %v9313_v12 = vld [vmem:[%s11159_s15 + $0xf0] ss:$8 sps:$4 sm:$0xff]   ;;  %v9317_v14 = vld [vmem:[%s11159_s15 + $0x104] ss:$8 sps:$4 sm:$0xff]   ;;  %v9315_v16 = vld [vmem:[%s11159_s15 + $0x100] ss:$8 sps:$4 sm:$0xff]  }
 0x132   : > { %v9314_v13 = vld [vmem:[%s11159_s15 + $0x8f0] ss:$8 sps:$4 sm:$0xff]   ;;  %v9320_v15 = vld [vmem:[%s11159_s15 + $0x904] ss:$8 sps:$4 sm:$0xff]   ;;  %v9318_v17 = vld [vmem:[%s11159_s15 + $0x900] ss:$8 sps:$4 sm:$0xff]  }
 0x133   : > { %v9323_v18 = vld [vmem:[%s11159_s15 + $0x114] ss:$8 sps:$4 sm:$0xff]   ;;  %v9321_v20 = vld [vmem:[%s11159_s15 + $0x110] ss:$8 sps:$4 sm:$0xff]   ;;  %v9329_v22 = vld [vmem:[%s11159_s15 + $0x124] ss:$8 sps:$4 sm:$0xff]  }
 0x134   : > { %7621 = vmatpush1.bf16.msra.mxu1 %v9253_v30  ;;  %7965 = vmatpush1.bf16.msra.mxu0 %v9254_v31  ;;  %v9326_v19 = vld [vmem:[%s11159_s15 + $0x914] ss:$8 sps:$4 sm:$0xff]   ;;  %v9324_v21 = vld [vmem:[%s11159_s15 + $0x910] ss:$8 sps:$4 sm:$0xff]   ;;  %v9332_v23 = vld [vmem:[%s11159_s15 + $0x924] ss:$8 sps:$4 sm:$0xff]  }
 0x135   : > { %7622 = vmatprep.subr.bf16.mxu1 %v9255_v32  ;;  %7966 = vmatprep.subr.bf16.mxu0 %v9257_v33  ;;  %v9327_v24 = vld [vmem:[%s11159_s15 + $0x120] ss:$8 sps:$4 sm:$0xff]   ;;  %v9335_v1 = vld [vmem:[%s11159_s15 + $0x134] ss:$8 sps:$4 sm:$0xff]   ;;  %v9336_v5 = vld [vmem:[%s11159_s15 + $0x930] ss:$8 sps:$4 sm:$0xff]  }
 0x136   : > { %v9330_v0 = vld [vmem:[%s11159_s15 + $0x920] ss:$8 sps:$4 sm:$0xff]   ;;  %v9338_v2 = vld [vmem:[%s11159_s15 + $0x934] ss:$8 sps:$4 sm:$0xff]   ;;  %v9344_v25 = vld [vmem:[%s11159_s15 + $0x944] ss:$8 sps:$4 sm:$0xff]  }
 0x137   : > { %v9339_v26 = vld [vmem:[%s11159_s15 + $0x140] ss:$8 sps:$4 sm:$0xff]   ;;  %v9347_v28 = vld [vmem:[%s11159_s15 + $0x154] ss:$8 sps:$4 sm:$0xff]   ;;  %v9345_v30 = vld [vmem:[%s11159_s15 + $0x150] ss:$8 sps:$4 sm:$0xff]  }
 0x138   : > { %7623 = vmatpush1.bf16.msra.mxu1 %v9259_v34  ;;  %7967 = vmatpush1.bf16.msra.mxu0 %v9260_v35  ;;  %v9342_v27 = vld [vmem:[%s11159_s15 + $0x940] ss:$8 sps:$4 sm:$0xff]   ;;  %v9350_v29 = vld [vmem:[%s11159_s15 + $0x954] ss:$8 sps:$4 sm:$0xff]   ;;  %v9348_v31 = vld [vmem:[%s11159_s15 + $0x950] ss:$8 sps:$4 sm:$0xff]  }
 0x139   : > { %7624 = vmatprep.subr.bf16.mxu1 %v9261_v36  ;;  %7968 = vmatprep.subr.bf16.mxu0 %v9263_v37  ;;  %v9353_v32 = vld [vmem:[%s11159_s15 + $0x164] ss:$8 sps:$4 sm:$0xff]   ;;  %v9351_v36 = vld [vmem:[%s11159_s15 + $0x160] ss:$8 sps:$4 sm:$0xff]   ;;  %s9118_s9 = sshll.u32 (%p10085_p6), %s10025_s11, 3 }
 0x13a   : > { %v9356_v33 = vld [vmem:[%s11159_s15 + $0x964] ss:$8 sps:$4 sm:$0xff]   ;;  %s8424_s22 = scalar_lea.vmem (%p10085_p6), %s11928_s2, %s9118_s9 }
 0x13b   : > { %v11260_v34 = vld [vmem:[%s11926_s0 + $0x8] sm:$0xff] }
 0x13c   : > { %7625 = vmatpush1.bf16.msra.mxu1 %v9265_v38  ;;  %7969 = vmatpush1.bf16.msra.mxu0 %v9266_v39  ;;  %v11265_v35 = vld [vmem:[%s11926_s0 + $0x88] sm:$0xff] }
 0x13d   : > { %7626 = vmatprep.subr.bf16.mxu1 %v9267_v40  ;;  %7970 = vmatprep.subr.bf16.mxu0 %v9269_v41  ;;  %v8567_v37 = vcombine.high %v11260_v34, %v11265_v35  ;;  %v9354_v38 = vld [vmem:[%s11159_s15 + $0x960] ss:$8 sps:$4 sm:$0xff]   ;;  %v9359_v41 = vld [vmem:[%s11159_s15 + $0x174] ss:$8 sps:$4 sm:$0xff]  }
 0x13e   : > { %v11274_v39 = vld [vmem:[%s11926_s0 + $0x48] sm:$0xff] }
 0x13f   : > { %v11279_v40 = vld [vmem:[%s11926_s0 + $0xc8] sm:$0xff] }
 0x140   : > { %7627 = vmatpush1.bf16.msra.mxu1 %v9271_v42  ;;  %7971 = vmatpush1.bf16.msra.mxu0 %v9272_v43  ;;  %v8583_v42 = vcombine.high %v11274_v39, %v11279_v40  ;;  %v9362_v43 = vld [vmem:[%s11159_s15 + $0x974] ss:$8 sps:$4 sm:$0xff]  }
 0x141   : > { %7628 = vmatprep.subr.bf16.mxu1 %v9273_v44  ;;  %7972 = vmatprep.subr.bf16.mxu0 %v9275_v45  ;;  %v9357_v44 = vld [vmem:[%s11159_s15 + $0x170] ss:$8 sps:$4 sm:$0xff]  }
 0x142   : > { %v9360_v45 = vld [vmem:[%s11159_s15 + $0x970] ss:$8 sps:$4 sm:$0xff]  }
 0x144   : > { %7629 = vmatpush1.bf16.msra.mxu1 %v9277_v46  ;;  %7973 = vmatpush1.bf16.msra.mxu0 %v9278_v47  ;;  %v9365_v46 = vld [vmem:[%s11159_s15 + $0x184] ss:$8 sps:$4 sm:$0xff]  }
 0x145   : > { %7630 = vmatprep.subr.bf16.mxu1 %v9279_v48  ;;  %7974 = vmatprep.subr.bf16.mxu0 %v9281_v49  ;;  %v9368_v47 = vld [vmem:[%s11159_s15 + $0x984] ss:$8 sps:$4 sm:$0xff]   ;;  %v9363_v48 = vld [vmem:[%s11159_s15 + $0x180] ss:$8 sps:$4 sm:$0xff]  }
 0x146   : > { %v9366_v49 = vld [vmem:[%s11159_s15 + $0x980] ss:$8 sps:$4 sm:$0xff]  }
 0x148   : > { %7631 = vmatpush1.bf16.msra.mxu1 %v9283_v50  ;;  %7975 = vmatpush1.bf16.msra.mxu0 %v9284_v51  ;;  %v9371_v50 = vld [vmem:[%s11159_s15 + $0x194] ss:$8 sps:$4 sm:$0xff]  }
 0x149   : > { %7632 = vmatprep.subr.bf16.mxu1 %v9285_v52  ;;  %7976 = vmatprep.subr.bf16.mxu0 %v9287_v53  ;;  %v9374_v51 = vld [vmem:[%s11159_s15 + $0x994] ss:$8 sps:$4 sm:$0xff]   ;;  %v9369_v52 = vld [vmem:[%s11159_s15 + $0x190] ss:$8 sps:$4 sm:$0xff]  }
 0x14a   : > { %v9372_v53 = vld [vmem:[%s11159_s15 + $0x990] ss:$8 sps:$4 sm:$0xff]  }
 0x14c   : > { %7633 = vmatpush1.bf16.msra.mxu1 %v9289_v54  ;;  %7977 = vmatpush1.bf16.msra.mxu0 %v9290_v55  ;;  %v9377_v54 = vld [vmem:[%s11159_s15 + $0x1a4] ss:$8 sps:$4 sm:$0xff]  }
 0x14d   : > { %7634 = vmatprep.subr.bf16.mxu1 %v9291_v56  ;;  %7978 = vmatprep.subr.bf16.mxu0 %v9293_v57  ;;  %v9380_v55 = vld [vmem:[%s11159_s15 + $0x9a4] ss:$8 sps:$4 sm:$0xff]   ;;  %v9375_v56 = vld [vmem:[%s11159_s15 + $0x1a0] ss:$8 sps:$4 sm:$0xff]  }
 0x14e   : > { %v9378_v57 = vld [vmem:[%s11159_s15 + $0x9a0] ss:$8 sps:$4 sm:$0xff]  }
 0x150   : > { %7635 = vmatpush1.bf16.msra.mxu1 %v9295_v58  ;;  %7979 = vmatpush1.bf16.msra.mxu0 %v9296_v59  ;;  %v9383_v58 = vld [vmem:[%s11159_s15 + $0x1b4] ss:$8 sps:$4 sm:$0xff]  }
 0x151   : > { %7636 = vmatprep.subr.bf16.mxu1 %v9297_v60  ;;  %7980 = vmatprep.subr.bf16.mxu0 %v9299_v61  ;;  %v9386_v59 = vld [vmem:[%s11159_s15 + $0x9b4] ss:$8 sps:$4 sm:$0xff]   ;;  %v9381_v60 = vld [vmem:[%s11159_s15 + $0x1b0] ss:$8 sps:$4 sm:$0xff]  }
 0x152   : > { %v9384_v61 = vld [vmem:[%s11159_s15 + $0x9b0] ss:$8 sps:$4 sm:$0xff]  }
 0x154   : > { %7637 = vmatpush1.bf16.msra.mxu1 %v9301_v62  ;;  %7981 = vmatpush1.bf16.msra.mxu0 %v9302_v63  ;;  %v9389_v62 = vld [vmem:[%s11159_s15 + $0x1c4] ss:$8 sps:$4 sm:$0xff]  }
 0x155   : > { %7638 = vmatprep.subr.bf16.mxu1 %v9303_v4  ;;  %7982 = vmatprep.subr.bf16.mxu0 %v9305_v7  ;;  %v9392_v63 = vld [vmem:[%s11159_s15 + $0x9c4] ss:$8 sps:$4 sm:$0xff]   ;;  %v9387_v4 = vld [vmem:[%s11159_s15 + $0x1c0] ss:$8 sps:$4 sm:$0xff]  }
 0x156   : > { %v9390_v7 = vld [vmem:[%s11159_s15 + $0x9c0] ss:$8 sps:$4 sm:$0xff]  }
 0x158   : > { %7639 = vmatpush1.bf16.msra.mxu1 %v9307_v8  ;;  %7983 = vmatpush1.bf16.msra.mxu0 %v9308_v9  ;;  %v9395_v8 = vld [vmem:[%s11159_s15 + $0x1d4] ss:$8 sps:$4 sm:$0xff]  }
 0x159   : > { %7640 = vmatprep.subr.bf16.mxu1 %v9309_v10  ;;  %7984 = vmatprep.subr.bf16.mxu0 %v9311_v11  ;;  %v9398_v9 = vld [vmem:[%s11159_s15 + $0x9d4] ss:$8 sps:$4 sm:$0xff]   ;;  %v9393_v10 = vld [vmem:[%s11159_s15 + $0x1d0] ss:$8 sps:$4 sm:$0xff]  }
 0x15a   : > { %v9396_v11 = vld [vmem:[%s11159_s15 + $0x9d0] ss:$8 sps:$4 sm:$0xff]  }
 0x15c   : > { %7641 = vmatpush1.bf16.msra.mxu1 %v9313_v12  ;;  %7985 = vmatpush1.bf16.msra.mxu0 %v9314_v13  ;;  %v9401_v12 = vld [vmem:[%s11159_s15 + $0x1e4] ss:$8 sps:$4 sm:$0xff]  }
 0x15d   : > { %7653 = vmatprep.subr.bf16.mxu1 %v9317_v14  ;;  %7997 = vmatprep.subr.bf16.mxu0 %v9320_v15  ;;  %v9404_v13 = vld [vmem:[%s11159_s15 + $0x9e4] ss:$8 sps:$4 sm:$0xff]   ;;  %v9399_v14 = vld [vmem:[%s11159_s15 + $0x1e0] ss:$8 sps:$4 sm:$0xff]  }
 0x15e   : > { %v9402_v15 = vld [vmem:[%s11159_s15 + $0x9e0] ss:$8 sps:$4 sm:$0xff]  }
 0x15f   : > { %7643 = vmatmul.mubr.bf16.vlgmr.msra.gmra.mrb[0].mxu1 %v8564_v3  ;;  %7987 = vmatmul.mubr.bf16.vlgmr.msra.gmra.mrb[0].mxu0 %v8580_v6  ;;  %v9333_v3 = vld [vmem:[%s11159_s15 + $0x130] ss:$8 sps:$4 sm:$0xff]   ;;  %v9341_v6 = vld [vmem:[%s11159_s15 + $0x144] ss:$8 sps:$4 sm:$0xff]  }
 0x160   : > { %7654 = vmatpush1.bf16.msra.mxu1 %v9315_v16  ;;  %7998 = vmatpush1.bf16.msra.mxu0 %v9318_v17  ;;  %v9407_v16 = vld [vmem:[%s11159_s15 + $0x1f4] ss:$8 sps:$4 sm:$0xff]  }
 0x161   : > { %7655 = vmatprep.subr.bf16.mxu1 %v9323_v18  ;;  %7999 = vmatprep.subr.bf16.mxu0 %v9326_v19  ;;  %v9410_v17 = vld [vmem:[%s11159_s15 + $0x9f4] ss:$8 sps:$4 sm:$0xff]   ;;  %v9405_v18 = vld [vmem:[%s11159_s15 + $0x1f0] ss:$8 sps:$4 sm:$0xff]  }
 0x162   : > { %7685 = vmatprep.mubr.bf16.mxu1 %v8567_v37  ;;  %8029 = vmatprep.mubr.bf16.mxu0 %v8583_v42  ;;  %v9408_v19 = vld [vmem:[%s11159_s15 + $0x9f0] ss:$8 sps:$4 sm:$0xff]   ;;  %v9443_v42 = vld [vmem:[%s11159_s15 + $0x254] ss:$8 sps:$4 sm:$0xff]  }
 0x163   : > { %v9432_v37 = vld [vmem:[%s11159_s15 + $0xa30] ss:$8 sps:$4 sm:$0xff]  }
 0x164   : > { %7656 = vmatpush1.bf16.msra.mxu1 %v9321_v20  ;;  %8000 = vmatpush1.bf16.msra.mxu0 %v9324_v21  ;;  %v9413_v20 = vld [vmem:[%s11159_s15 + $0x204] ss:$8 sps:$4 sm:$0xff]  }
 0x165   : > { %7657 = vmatprep.subr.bf16.mxu1 %v9329_v22  ;;  %8001 = vmatprep.subr.bf16.mxu0 %v9332_v23  ;;  %v9416_v21 = vld [vmem:[%s11159_s15 + $0xa04] ss:$8 sps:$4 sm:$0xff]   ;;  %v8566_v22 = vcombine.low %v11260_v34, %v11265_v35  ;;  %v9411_v23 = vld [vmem:[%s11159_s15 + $0x200] ss:$8 sps:$4 sm:$0xff]   ;;  %v9431_v34 = vld [vmem:[%s11159_s15 + $0x234] ss:$8 sps:$4 sm:$0xff]  }
 0x166   : > { %v9434_v35 = vld [vmem:[%s11159_s15 + $0xa34] ss:$8 sps:$4 sm:$0xff]  }
 0x168   : > { %7658 = vmatpush1.bf16.msra.mxu1 %v9327_v24  ;;  %8002 = vmatpush1.bf16.msra.mxu0 %v9330_v0  ;;  %v8582_v24 = vcombine.low %v11274_v39, %v11279_v40  ;;  %v9414_v0 = vld [vmem:[%s11159_s15 + $0xa00] ss:$8 sps:$4 sm:$0xff]   ;;  %v9440_v39 = vld [vmem:[%s11159_s15 + $0xa44] ss:$8 sps:$4 sm:$0xff]  }
 0x169   : > { %7659 = vmatprep.subr.bf16.mxu1 %v9335_v1  ;;  %8003 = vmatprep.subr.bf16.mxu0 %v9338_v2  ;;  %v9419_v1 = vld [vmem:[%s11159_s15 + $0x214] ss:$8 sps:$4 sm:$0xff]   ;;  %v9435_v40 = vld [vmem:[%s11159_s15 + $0x240] ss:$8 sps:$4 sm:$0xff]  }
 0x16a   : > { %v9422_v2 = vld [vmem:[%s11159_s15 + $0xa14] ss:$8 sps:$4 sm:$0xff]  }
 0x16c   : > { %7660 = vmatpush1.bf16.msra.mxu1 %v9333_v3  ;;  %8004 = vmatpush1.bf16.msra.mxu0 %v9336_v5  ;;  %v11332_v3 = vld [vmem:[%s11926_s0 + $0x10] sm:$0xff] }
 0x16d   : > { %7661 = vmatprep.subr.bf16.mxu1 %v9341_v6  ;;  %8005 = vmatprep.subr.bf16.mxu0 %v9344_v25  ;;  %v11337_v5 = vld [vmem:[%s11926_s0 + $0x90] sm:$0xff] }
 0x16e   : > { %v9417_v6 = vld [vmem:[%s11159_s15 + $0x210] ss:$8 sps:$4 sm:$0xff]   ;;  %v8569_v25 = vcombine.high %v11332_v3, %v11337_v5 }
 0x170   : > { %7662 = vmatpush1.bf16.msra.mxu1 %v9339_v26  ;;  %8006 = vmatpush1.bf16.msra.mxu0 %v9342_v27  ;;  %v9420_v26 = vld [vmem:[%s11159_s15 + $0xa10] ss:$8 sps:$4 sm:$0xff]  }
 0x171   : > { %7663 = vmatprep.subr.bf16.mxu1 %v9347_v28  ;;  %8007 = vmatprep.subr.bf16.mxu0 %v9350_v29  ;;  %v11346_v27 = vld [vmem:[%s11926_s0 + $0x50] sm:$0xff]  ;;  %v9425_v29 = vld [vmem:[%s11159_s15 + $0x224] ss:$8 sps:$4 sm:$0xff]  }
 0x172   : > { %v11351_v28 = vld [vmem:[%s11926_s0 + $0xd0] sm:$0xff] }
 0x174   : > { %7664 = vmatpush1.bf16.msra.mxu1 %v9345_v30  ;;  %8008 = vmatpush1.bf16.msra.mxu0 %v9348_v31  ;;  %v8585_v30 = vcombine.high %v11346_v27, %v11351_v28  ;;  %v9428_v31 = vld [vmem:[%s11159_s15 + $0xa24] ss:$8 sps:$4 sm:$0xff]  }
 0x175   : > { %7665 = vmatprep.subr.bf16.mxu1 %v9353_v32  ;;  %8009 = vmatprep.subr.bf16.mxu0 %v9356_v33  ;;  %v9423_v32 = vld [vmem:[%s11159_s15 + $0x220] ss:$8 sps:$4 sm:$0xff]  }
 0x176   : > { %v9426_v33 = vld [vmem:[%s11159_s15 + $0xa20] ss:$8 sps:$4 sm:$0xff]  }
 0x178   : > { %7666 = vmatpush1.bf16.msra.mxu1 %v9351_v36  ;;  %8010 = vmatpush1.bf16.msra.mxu0 %v9354_v38  ;;  %v9429_v36 = vld [vmem:[%s11159_s15 + $0x230] ss:$8 sps:$4 sm:$0xff]   ;;  %v9437_v38 = vld [vmem:[%s11159_s15 + $0x244] ss:$8 sps:$4 sm:$0xff]  }
 0x179   : > { %7667 = vmatprep.subr.bf16.mxu1 %v9359_v41  ;;  %8011 = vmatprep.subr.bf16.mxu0 %v9362_v43  ;;  %v9438_v41 = vld [vmem:[%s11159_s15 + $0xa40] ss:$8 sps:$4 sm:$0xff]   ;;  %v9446_v43 = vld [vmem:[%s11159_s15 + $0xa54] ss:$8 sps:$4 sm:$0xff]  }
 0x17c   : > { %7668 = vmatpush1.bf16.msra.mxu1 %v9357_v44  ;;  %8012 = vmatpush1.bf16.msra.mxu0 %v9360_v45  ;;  %v9441_v44 = vld [vmem:[%s11159_s15 + $0x250] ss:$8 sps:$4 sm:$0xff]  }
 0x17d   : > { %7669 = vmatprep.subr.bf16.mxu1 %v9365_v46  ;;  %8013 = vmatprep.subr.bf16.mxu0 %v9368_v47  ;;  %v9444_v45 = vld [vmem:[%s11159_s15 + $0xa50] ss:$8 sps:$4 sm:$0xff]   ;;  %v9449_v46 = vld [vmem:[%s11159_s15 + $0x264] ss:$8 sps:$4 sm:$0xff]  }
 0x17e   : > { %v9452_v47 = vld [vmem:[%s11159_s15 + $0xa64] ss:$8 sps:$4 sm:$0xff]  }
 0x180   : > { %7670 = vmatpush1.bf16.msra.mxu1 %v9363_v48  ;;  %8014 = vmatpush1.bf16.msra.mxu0 %v9366_v49  ;;  %v9447_v48 = vld [vmem:[%s11159_s15 + $0x260] ss:$8 sps:$4 sm:$0xff]  }
 0x181   : > { %7671 = vmatprep.subr.bf16.mxu1 %v9371_v50  ;;  %8015 = vmatprep.subr.bf16.mxu0 %v9374_v51  ;;  %v9450_v49 = vld [vmem:[%s11159_s15 + $0xa60] ss:$8 sps:$4 sm:$0xff]   ;;  %v9455_v50 = vld [vmem:[%s11159_s15 + $0x274] ss:$8 sps:$4 sm:$0xff]  }
 0x182   : > { %v9458_v51 = vld [vmem:[%s11159_s15 + $0xa74] ss:$8 sps:$4 sm:$0xff]  }
 0x184   : > { %7672 = vmatpush1.bf16.msra.mxu1 %v9369_v52  ;;  %8016 = vmatpush1.bf16.msra.mxu0 %v9372_v53  ;;  %v9453_v52 = vld [vmem:[%s11159_s15 + $0x270] ss:$8 sps:$4 sm:$0xff]  }
 0x185   : > { %7673 = vmatprep.subr.bf16.mxu1 %v9377_v54  ;;  %8017 = vmatprep.subr.bf16.mxu0 %v9380_v55  ;;  %v9456_v53 = vld [vmem:[%s11159_s15 + $0xa70] ss:$8 sps:$4 sm:$0xff]   ;;  %v9461_v54 = vld [vmem:[%s11159_s15 + $0x284] ss:$8 sps:$4 sm:$0xff]  }
 0x186   : > { %v9464_v55 = vld [vmem:[%s11159_s15 + $0xa84] ss:$8 sps:$4 sm:$0xff]  }
 0x188   : > { %7674 = vmatpush1.bf16.msra.mxu1 %v9375_v56  ;;  %8018 = vmatpush1.bf16.msra.mxu0 %v9378_v57  ;;  %v9459_v56 = vld [vmem:[%s11159_s15 + $0x280] ss:$8 sps:$4 sm:$0xff]  }
 0x189   : > { %7675 = vmatprep.subr.bf16.mxu1 %v9383_v58  ;;  %8019 = vmatprep.subr.bf16.mxu0 %v9386_v59  ;;  %v9462_v57 = vld [vmem:[%s11159_s15 + $0xa80] ss:$8 sps:$4 sm:$0xff]   ;;  %v9467_v58 = vld [vmem:[%s11159_s15 + $0x294] ss:$8 sps:$4 sm:$0xff]  }
 0x18a   : > { %v9470_v59 = vld [vmem:[%s11159_s15 + $0xa94] ss:$8 sps:$4 sm:$0xff]  }
 0x18c   : > { %7676 = vmatpush1.bf16.msra.mxu1 %v9381_v60  ;;  %8020 = vmatpush1.bf16.msra.mxu0 %v9384_v61  ;;  %v9465_v60 = vld [vmem:[%s11159_s15 + $0x290] ss:$8 sps:$4 sm:$0xff]  }
 0x18d   : > { %7677 = vmatprep.subr.bf16.mxu1 %v9389_v62  ;;  %8021 = vmatprep.subr.bf16.mxu0 %v9392_v63  ;;  %v9468_v61 = vld [vmem:[%s11159_s15 + $0xa90] ss:$8 sps:$4 sm:$0xff]   ;;  %v9473_v62 = vld [vmem:[%s11159_s15 + $0x2a4] ss:$8 sps:$4 sm:$0xff]  }
 0x18e   : > { %v9476_v63 = vld [vmem:[%s11159_s15 + $0xaa4] ss:$8 sps:$4 sm:$0xff]  }
 0x190   : > { %7678 = vmatpush1.bf16.msra.mxu1 %v9387_v4  ;;  %8022 = vmatpush1.bf16.msra.mxu0 %v9390_v7  ;;  %v9471_v4 = vld [vmem:[%s11159_s15 + $0x2a0] ss:$8 sps:$4 sm:$0xff]  }
 0x191   : > { %7679 = vmatprep.subr.bf16.mxu1 %v9395_v8  ;;  %8023 = vmatprep.subr.bf16.mxu0 %v9398_v9  ;;  %v9474_v7 = vld [vmem:[%s11159_s15 + $0xaa0] ss:$8 sps:$4 sm:$0xff]   ;;  %v9479_v8 = vld [vmem:[%s11159_s15 + $0x2b4] ss:$8 sps:$4 sm:$0xff]  }
 0x192   : > { %v9482_v9 = vld [vmem:[%s11159_s15 + $0xab4] ss:$8 sps:$4 sm:$0xff]  }
 0x194   : > { %7680 = vmatpush1.bf16.msra.mxu1 %v9393_v10  ;;  %8024 = vmatpush1.bf16.msra.mxu0 %v9396_v11  ;;  %v9477_v10 = vld [vmem:[%s11159_s15 + $0x2b0] ss:$8 sps:$4 sm:$0xff]  }
 0x195   : > { %7681 = vmatprep.subr.bf16.mxu1 %v9401_v12  ;;  %8025 = vmatprep.subr.bf16.mxu0 %v9404_v13  ;;  %v9480_v11 = vld [vmem:[%s11159_s15 + $0xab0] ss:$8 sps:$4 sm:$0xff]   ;;  %v9485_v12 = vld [vmem:[%s11159_s15 + $0x2c4] ss:$8 sps:$4 sm:$0xff]  }
 0x196   : > { %v9488_v13 = vld [vmem:[%s11159_s15 + $0xac4] ss:$8 sps:$4 sm:$0xff]  }
 0x198   : > { %7682 = vmatpush1.bf16.msra.mxu1 %v9399_v14  ;;  %8026 = vmatpush1.bf16.msra.mxu0 %v9402_v15  ;;  %v9483_v14 = vld [vmem:[%s11159_s15 + $0x2c0] ss:$8 sps:$4 sm:$0xff]  }
 0x199   : > { %7683 = vmatprep.subr.bf16.mxu1 %v9407_v16  ;;  %8027 = vmatprep.subr.bf16.mxu0 %v9410_v17  ;;  %v9486_v15 = vld [vmem:[%s11159_s15 + $0xac0] ss:$8 sps:$4 sm:$0xff]   ;;  %v9491_v16 = vld [vmem:[%s11159_s15 + $0x2d4] ss:$8 sps:$4 sm:$0xff]  }
 0x19a   : > { %v9494_v17 = vld [vmem:[%s11159_s15 + $0xad4] ss:$8 sps:$4 sm:$0xff]  }
 0x19c   : > { %7684 = vmatpush1.bf16.msra.mxu1 %v9405_v18  ;;  %8028 = vmatpush1.bf16.msra.mxu0 %v9408_v19  ;;  %v9489_v18 = vld [vmem:[%s11159_s15 + $0x2d0] ss:$8 sps:$4 sm:$0xff]  }
 0x19d   : > { %7696 = vmatprep.subr.bf16.mxu1 %v9413_v20  ;;  %8040 = vmatprep.subr.bf16.mxu0 %v9416_v21  ;;  %v9492_v19 = vld [vmem:[%s11159_s15 + $0xad0] ss:$8 sps:$4 sm:$0xff]   ;;  %v9497_v20 = vld [vmem:[%s11159_s15 + $0x2e4] ss:$8 sps:$4 sm:$0xff]  }
 0x19e   : > { %v9500_v21 = vld [vmem:[%s11159_s15 + $0xae4] ss:$8 sps:$4 sm:$0xff]  }
 0x19f   : > { %7686 = vmatmul.mubr.bf16.vlgmr.msra.gmra.mrb[0].mxu1 %v8566_v22  ;;  %8030 = vmatmul.mubr.bf16.vlgmr.msra.gmra.mrb[0].mxu0 %v8582_v24  ;;  %v9495_v22 = vld [vmem:[%s11159_s15 + $0x2e0] ss:$8 sps:$4 sm:$0xff]   ;;  %v9503_v24 = vld [vmem:[%s11159_s15 + $0x2f4] ss:$8 sps:$4 sm:$0xff]  }
 0x1a0   : > { %7697 = vmatpush1.bf16.msra.mxu1 %v9411_v23  ;;  %8041 = vmatpush1.bf16.msra.mxu0 %v9414_v0  ;;  %v9498_v23 = vld [vmem:[%s11159_s15 + $0xae0] ss:$8 sps:$4 sm:$0xff]   ;;  %v9506_v0 = vld [vmem:[%s11159_s15 + $0xaf4] ss:$8 sps:$4 sm:$0xff]  }
 0x1a1   : > { %7698 = vmatprep.subr.bf16.mxu1 %v9419_v1  ;;  %8042 = vmatprep.subr.bf16.mxu0 %v9422_v2  ;;  %v9501_v1 = vld [vmem:[%s11159_s15 + $0x2f0] ss:$8 sps:$4 sm:$0xff]  }
 0x1a2   : > { %7728 = vmatprep.mubr.bf16.mxu1 %v8569_v25  ;;  %8072 = vmatprep.mubr.bf16.mxu0 %v8585_v30  ;;  %v9504_v2 = vld [vmem:[%s11159_s15 + $0xaf0] ss:$8 sps:$4 sm:$0xff]   ;;  %v9512_v25 = vld [vmem:[%s11159_s15 + $0xb04] ss:$8 sps:$4 sm:$0xff]  }
 0x1a3   : > { %v11418_v30 = vld [vmem:[%s11926_s0 + $0x18] sm:$0xff] }
 0x1a4   : > { %7699 = vmatpush1.bf16.msra.mxu1 %v9417_v6  ;;  %8043 = vmatpush1.bf16.msra.mxu0 %v9420_v26  ;;  %v9509_v6 = vld [vmem:[%s11159_s15 + $0x304] ss:$8 sps:$4 sm:$0xff]   ;;  %v9507_v26 = vld [vmem:[%s11159_s15 + $0x300] ss:$8 sps:$4 sm:$0xff]  }
 0x1a5   : > { %7700 = vmatprep.subr.bf16.mxu1 %v9425_v29  ;;  %8044 = vmatprep.subr.bf16.mxu0 %v9428_v31  ;;  %v9510_v29 = vld [vmem:[%s11159_s15 + $0xb00] ss:$8 sps:$4 sm:$0xff]   ;;  %v11423_v31 = vld [vmem:[%s11926_s0 + $0x98] sm:$0xff] }
 0x1a8   : > { %7701 = vmatpush1.bf16.msra.mxu1 %v9423_v32  ;;  %8045 = vmatpush1.bf16.msra.mxu0 %v9426_v33  ;;  %v8568_v32 = vcombine.low %v11332_v3, %v11337_v5  ;;  %v8584_v33 = vcombine.low %v11346_v27, %v11351_v28  ;;  %v9518_v3 = vld [vmem:[%s11159_s15 + $0xb14] ss:$8 sps:$4 sm:$0xff]   ;;  %v8571_v5 = vcombine.high %v11418_v30, %v11423_v31  ;;  %v9513_v28 = vld [vmem:[%s11159_s15 + $0x310] ss:$8 sps:$4 sm:$0xff]  }
 0x1a9   : > { %7702 = vmatprep.subr.bf16.mxu1 %v9431_v34  ;;  %8046 = vmatprep.subr.bf16.mxu0 %v9434_v35  ;;  %v11432_v34 = vld [vmem:[%s11926_s0 + $0x58] sm:$0xff] }
 0x1aa   : > { %v11437_v35 = vld [vmem:[%s11926_s0 + $0xd8] sm:$0xff] }
 0x1ab   : > { %v8587_v27 = vcombine.high %v11432_v34, %v11437_v35 }
 0x1ac   : > { %7703 = vmatpush1.bf16.msra.mxu1 %v9429_v36  ;;  %8047 = vmatpush1.bf16.msra.mxu0 %v9432_v37  ;;  %v9515_v36 = vld [vmem:[%s11159_s15 + $0x314] ss:$8 sps:$4 sm:$0xff]   ;;  %v9516_v37 = vld [vmem:[%s11159_s15 + $0xb10] ss:$8 sps:$4 sm:$0xff]  }
 0x1ad   : > { %7704 = vmatprep.subr.bf16.mxu1 %v9437_v38  ;;  %8048 = vmatprep.subr.bf16.mxu0 %v9440_v39  ;;  %v9521_v38 = vld [vmem:[%s11159_s15 + $0x324] ss:$8 sps:$4 sm:$0xff]  }
 0x1ae   : > { %v9524_v39 = vld [vmem:[%s11159_s15 + $0xb24] ss:$8 sps:$4 sm:$0xff]  }
 0x1b0   : > { %7705 = vmatpush1.bf16.msra.mxu1 %v9435_v40  ;;  %8049 = vmatpush1.bf16.msra.mxu0 %v9438_v41  ;;  %v9519_v40 = vld [vmem:[%s11159_s15 + $0x320] ss:$8 sps:$4 sm:$0xff]  }
 0x1b1   : > { %7706 = vmatprep.subr.bf16.mxu1 %v9443_v42  ;;  %8050 = vmatprep.subr.bf16.mxu0 %v9446_v43  ;;  %v9522_v41 = vld [vmem:[%s11159_s15 + $0xb20] ss:$8 sps:$4 sm:$0xff]   ;;  %v9527_v42 = vld [vmem:[%s11159_s15 + $0x334] ss:$8 sps:$4 sm:$0xff]  }
 0x1b2   : > { %v9530_v43 = vld [vmem:[%s11159_s15 + $0xb34] ss:$8 sps:$4 sm:$0xff]  }
 0x1b4   : > { %7707 = vmatpush1.bf16.msra.mxu1 %v9441_v44  ;;  %8051 = vmatpush1.bf16.msra.mxu0 %v9444_v45  ;;  %v9525_v44 = vld [vmem:[%s11159_s15 + $0x330] ss:$8 sps:$4 sm:$0xff]  }
 0x1b5   : > { %7708 = vmatprep.subr.bf16.mxu1 %v9449_v46  ;;  %8052 = vmatprep.subr.bf16.mxu0 %v9452_v47  ;;  %v9528_v45 = vld [vmem:[%s11159_s15 + $0xb30] ss:$8 sps:$4 sm:$0xff]   ;;  %v9533_v46 = vld [vmem:[%s11159_s15 + $0x344] ss:$8 sps:$4 sm:$0xff]  }
 0x1b6   : > { %v9536_v47 = vld [vmem:[%s11159_s15 + $0xb44] ss:$8 sps:$4 sm:$0xff]  }
 0x1b8   : > { %7709 = vmatpush1.bf16.msra.mxu1 %v9447_v48  ;;  %8053 = vmatpush1.bf16.msra.mxu0 %v9450_v49  ;;  %v9531_v48 = vld [vmem:[%s11159_s15 + $0x340] ss:$8 sps:$4 sm:$0xff]  }
 0x1b9   : > { %7710 = vmatprep.subr.bf16.mxu1 %v9455_v50  ;;  %8054 = vmatprep.subr.bf16.mxu0 %v9458_v51  ;;  %v9534_v49 = vld [vmem:[%s11159_s15 + $0xb40] ss:$8 sps:$4 sm:$0xff]   ;;  %v9539_v50 = vld [vmem:[%s11159_s15 + $0x354] ss:$8 sps:$4 sm:$0xff]  }
 0x1ba   : > { %v9542_v51 = vld [vmem:[%s11159_s15 + $0xb54] ss:$8 sps:$4 sm:$0xff]  }
 0x1bc   : > { %7711 = vmatpush1.bf16.msra.mxu1 %v9453_v52  ;;  %8055 = vmatpush1.bf16.msra.mxu0 %v9456_v53  ;;  %v9537_v52 = vld [vmem:[%s11159_s15 + $0x350] ss:$8 sps:$4 sm:$0xff]  }
 0x1bd   : > { %7712 = vmatprep.subr.bf16.mxu1 %v9461_v54  ;;  %8056 = vmatprep.subr.bf16.mxu0 %v9464_v55  ;;  %v9540_v53 = vld [vmem:[%s11159_s15 + $0xb50] ss:$8 sps:$4 sm:$0xff]   ;;  %v9545_v54 = vld [vmem:[%s11159_s15 + $0x364] ss:$8 sps:$4 sm:$0xff]  }
 0x1be   : > { %v9548_v55 = vld [vmem:[%s11159_s15 + $0xb64] ss:$8 sps:$4 sm:$0xff]  }
 0x1c0   : > { %7713 = vmatpush1.bf16.msra.mxu1 %v9459_v56  ;;  %8057 = vmatpush1.bf16.msra.mxu0 %v9462_v57  ;;  %v9543_v56 = vld [vmem:[%s11159_s15 + $0x360] ss:$8 sps:$4 sm:$0xff]  }
 0x1c1   : > { %7714 = vmatprep.subr.bf16.mxu1 %v9467_v58  ;;  %8058 = vmatprep.subr.bf16.mxu0 %v9470_v59  ;;  %v9546_v57 = vld [vmem:[%s11159_s15 + $0xb60] ss:$8 sps:$4 sm:$0xff]   ;;  %v9551_v58 = vld [vmem:[%s11159_s15 + $0x374] ss:$8 sps:$4 sm:$0xff]  }
 0x1c2   : > { %v9554_v59 = vld [vmem:[%s11159_s15 + $0xb74] ss:$8 sps:$4 sm:$0xff]  }
 0x1c4   : > { %7715 = vmatpush1.bf16.msra.mxu1 %v9465_v60  ;;  %8059 = vmatpush1.bf16.msra.mxu0 %v9468_v61  ;;  %v9549_v60 = vld [vmem:[%s11159_s15 + $0x370] ss:$8 sps:$4 sm:$0xff]  }
 0x1c5   : > { %7716 = vmatprep.subr.bf16.mxu1 %v9473_v62  ;;  %8060 = vmatprep.subr.bf16.mxu0 %v9476_v63  ;;  %v9552_v61 = vld [vmem:[%s11159_s15 + $0xb70] ss:$8 sps:$4 sm:$0xff]   ;;  %v9557_v62 = vld [vmem:[%s11159_s15 + $0x384] ss:$8 sps:$4 sm:$0xff]  }
 0x1c6   : > { %v9560_v63 = vld [vmem:[%s11159_s15 + $0xb84] ss:$8 sps:$4 sm:$0xff]  }
 0x1c8   : > { %7717 = vmatpush1.bf16.msra.mxu1 %v9471_v4  ;;  %8061 = vmatpush1.bf16.msra.mxu0 %v9474_v7  ;;  %v9555_v4 = vld [vmem:[%s11159_s15 + $0x380] ss:$8 sps:$4 sm:$0xff]  }
 0x1c9   : > { %7718 = vmatprep.subr.bf16.mxu1 %v9479_v8  ;;  %8062 = vmatprep.subr.bf16.mxu0 %v9482_v9  ;;  %v9558_v7 = vld [vmem:[%s11159_s15 + $0xb80] ss:$8 sps:$4 sm:$0xff]   ;;  %v9563_v8 = vld [vmem:[%s11159_s15 + $0x394] ss:$8 sps:$4 sm:$0xff]  }
 0x1ca   : > { %v9566_v9 = vld [vmem:[%s11159_s15 + $0xb94] ss:$8 sps:$4 sm:$0xff]  }
 0x1cc   : > { %7719 = vmatpush1.bf16.msra.mxu1 %v9477_v10  ;;  %8063 = vmatpush1.bf16.msra.mxu0 %v9480_v11  ;;  %v9561_v10 = vld [vmem:[%s11159_s15 + $0x390] ss:$8 sps:$4 sm:$0xff]  }
 0x1cd   : > { %7720 = vmatprep.subr.bf16.mxu1 %v9485_v12  ;;  %8064 = vmatprep.subr.bf16.mxu0 %v9488_v13  ;;  %v9564_v11 = vld [vmem:[%s11159_s15 + $0xb90] ss:$8 sps:$4 sm:$0xff]   ;;  %v9569_v12 = vld [vmem:[%s11159_s15 + $0x3a4] ss:$8 sps:$4 sm:$0xff]  }
 0x1ce   : > { %v9572_v13 = vld [vmem:[%s11159_s15 + $0xba4] ss:$8 sps:$4 sm:$0xff]  }
 0x1d0   : > { %7721 = vmatpush1.bf16.msra.mxu1 %v9483_v14  ;;  %8065 = vmatpush1.bf16.msra.mxu0 %v9486_v15  ;;  %v9567_v14 = vld [vmem:[%s11159_s15 + $0x3a0] ss:$8 sps:$4 sm:$0xff]  }
 0x1d1   : > { %7722 = vmatprep.subr.bf16.mxu1 %v9491_v16  ;;  %8066 = vmatprep.subr.bf16.mxu0 %v9494_v17  ;;  %v9570_v15 = vld [vmem:[%s11159_s15 + $0xba0] ss:$8 sps:$4 sm:$0xff]   ;;  %v9575_v16 = vld [vmem:[%s11159_s15 + $0x3b4] ss:$8 sps:$4 sm:$0xff]  }
 0x1d2   : > { %v9578_v17 = vld [vmem:[%s11159_s15 + $0xbb4] ss:$8 sps:$4 sm:$0xff]  }
 0x1d4   : > { %7723 = vmatpush1.bf16.msra.mxu1 %v9489_v18  ;;  %8067 = vmatpush1.bf16.msra.mxu0 %v9492_v19  ;;  %v9573_v18 = vld [vmem:[%s11159_s15 + $0x3b0] ss:$8 sps:$4 sm:$0xff]  }
 0x1d5   : > { %7724 = vmatprep.subr.bf16.mxu1 %v9497_v20  ;;  %8068 = vmatprep.subr.bf16.mxu0 %v9500_v21  ;;  %v9576_v19 = vld [vmem:[%s11159_s15 + $0xbb0] ss:$8 sps:$4 sm:$0xff]   ;;  %v9581_v20 = vld [vmem:[%s11159_s15 + $0x3c4] ss:$8 sps:$4 sm:$0xff]  }
 0x1d6   : > { %v9584_v21 = vld [vmem:[%s11159_s15 + $0xbc4] ss:$8 sps:$4 sm:$0xff]  }
 0x1d8   : > { %7725 = vmatpush1.bf16.msra.mxu1 %v9495_v22  ;;  %8069 = vmatpush1.bf16.msra.mxu0 %v9498_v23  ;;  %v9579_v22 = vld [vmem:[%s11159_s15 + $0x3c0] ss:$8 sps:$4 sm:$0xff]  }
 0x1d9   : > { %7726 = vmatprep.subr.bf16.mxu1 %v9503_v24  ;;  %8070 = vmatprep.subr.bf16.mxu0 %v9506_v0  ;;  %v9582_v23 = vld [vmem:[%s11159_s15 + $0xbc0] ss:$8 sps:$4 sm:$0xff]   ;;  %v9587_v24 = vld [vmem:[%s11159_s15 + $0x3d4] ss:$8 sps:$4 sm:$0xff]  }
 0x1da   : > { %v9590_v0 = vld [vmem:[%s11159_s15 + $0xbd4] ss:$8 sps:$4 sm:$0xff]  }
 0x1dc   : > { %7727 = vmatpush1.bf16.msra.mxu1 %v9501_v1  ;;  %8071 = vmatpush1.bf16.msra.mxu0 %v9504_v2  ;;  %v9585_v1 = vld [vmem:[%s11159_s15 + $0x3d0] ss:$8 sps:$4 sm:$0xff]  }
 0x1dd   : > { %7739 = vmatprep.subr.bf16.mxu1 %v9509_v6  ;;  %8083 = vmatprep.subr.bf16.mxu0 %v9512_v25  ;;  %v9588_v2 = vld [vmem:[%s11159_s15 + $0xbd0] ss:$8 sps:$4 sm:$0xff]   ;;  %v9593_v6 = vld [vmem:[%s11159_s15 + $0x3e4] ss:$8 sps:$4 sm:$0xff]  }
 0x1de   : > { %v9596_v25 = vld [vmem:[%s11159_s15 + $0xbe4] ss:$8 sps:$4 sm:$0xff]  }
 0x1df   : > { %7729 = vmatmul.mubr.bf16.vlgmr.msra.gmra.mrb[0].mxu1 %v8568_v32  ;;  %8073 = vmatmul.mubr.bf16.vlgmr.msra.gmra.mrb[0].mxu0 %v8584_v33  ;;  %v9599_v32 = vld [vmem:[%s11159_s15 + $0x3f4] ss:$8 sps:$4 sm:$0xff]  }
 0x1e0   : > { %7740 = vmatpush1.bf16.msra.mxu1 %v9507_v26  ;;  %8084 = vmatpush1.bf16.msra.mxu0 %v9510_v29  ;;  %v9591_v26 = vld [vmem:[%s11159_s15 + $0x3e0] ss:$8 sps:$4 sm:$0xff]   ;;  %v9602_v33 = vld [vmem:[%s11159_s15 + $0xbf4] ss:$8 sps:$4 sm:$0xff]  }
 0x1e1   : > { %7741 = vmatprep.subr.bf16.mxu1 %v9515_v36  ;;  %8085 = vmatprep.subr.bf16.mxu0 %v9518_v3  ;;  %v9594_v29 = vld [vmem:[%s11159_s15 + $0xbe0] ss:$8 sps:$4 sm:$0xff]   ;;  %v9597_v36 = vld [vmem:[%s11159_s15 + $0x3f0] ss:$8 sps:$4 sm:$0xff]  }
 0x1e2   : > { %7771 = vmatprep.mubr.bf16.mxu1 %v8571_v5  ;;  %8115 = vmatprep.mubr.bf16.mxu0 %v8587_v27  ;;  %v9600_v3 = vld [vmem:[%s11159_s15 + $0xbf0] ss:$8 sps:$4 sm:$0xff]   ;;  %v9605_v5 = vld [vmem:[%s11159_s15 + $0x404] ss:$8 sps:$4 sm:$0xff]  }
 0x1e3   : > { %v9608_v27 = vld [vmem:[%s11159_s15 + $0xc04] ss:$8 sps:$4 sm:$0xff]  }
 0x1e4   : > { %7742 = vmatpush1.bf16.msra.mxu1 %v9513_v28  ;;  %8086 = vmatpush1.bf16.msra.mxu0 %v9516_v37  ;;  %v9603_v28 = vld [vmem:[%s11159_s15 + $0x400] ss:$8 sps:$4 sm:$0xff]  }
 0x1e5   : > { %7743 = vmatprep.subr.bf16.mxu1 %v9521_v38  ;;  %8087 = vmatprep.subr.bf16.mxu0 %v9524_v39  ;;  %v9606_v37 = vld [vmem:[%s11159_s15 + $0xc00] ss:$8 sps:$4 sm:$0xff]  }
 0x1e6   : > { %v11510_v38 = vld [vmem:[%s11926_s0 + $0x20] sm:$0xff] }
 0x1e7   : > { %v11515_v39 = vld [vmem:[%s11926_s0 + $0xa0] sm:$0xff] }
 0x1e8   : > { %7744 = vmatpush1.bf16.msra.mxu1 %v9519_v40  ;;  %8088 = vmatpush1.bf16.msra.mxu0 %v9522_v41  ;;  %v8570_v40 = vcombine.low %v11418_v30, %v11423_v31  ;;  %v8586_v41 = vcombine.low %v11432_v34, %v11437_v35  ;;  %v9614_v30 = vld [vmem:[%s11159_s15 + $0xc14] ss:$8 sps:$4 sm:$0xff]   ;;  %v8573_v31 = vcombine.high %v11510_v38, %v11515_v39  ;;  %v9609_v35 = vld [vmem:[%s11159_s15 + $0x410] ss:$8 sps:$4 sm:$0xff]  }
 0x1e9   : > { %7745 = vmatprep.subr.bf16.mxu1 %v9527_v42  ;;  %8089 = vmatprep.subr.bf16.mxu0 %v9530_v43  ;;  %v11524_v42 = vld [vmem:[%s11926_s0 + $0x60] sm:$0xff] }
 0x1ea   : > { %v11529_v43 = vld [vmem:[%s11926_s0 + $0xe0] sm:$0xff] }
 0x1eb   : > { %v8589_v34 = vcombine.high %v11524_v42, %v11529_v43 }
 0x1ec   : > { %7746 = vmatpush1.bf16.msra.mxu1 %v9525_v44  ;;  %8090 = vmatpush1.bf16.msra.mxu0 %v9528_v45  ;;  %v9611_v44 = vld [vmem:[%s11159_s15 + $0x414] ss:$8 sps:$4 sm:$0xff]   ;;  %v9612_v45 = vld [vmem:[%s11159_s15 + $0xc10] ss:$8 sps:$4 sm:$0xff]  }
 0x1ed   : > { %7747 = vmatprep.subr.bf16.mxu1 %v9533_v46  ;;  %8091 = vmatprep.subr.bf16.mxu0 %v9536_v47  ;;  %v9617_v46 = vld [vmem:[%s11159_s15 + $0x424] ss:$8 sps:$4 sm:$0xff]  }
 0x1ee   : > { %v9620_v47 = vld [vmem:[%s11159_s15 + $0xc24] ss:$8 sps:$4 sm:$0xff]  }
 0x1f0   : > { %7748 = vmatpush1.bf16.msra.mxu1 %v9531_v48  ;;  %8092 = vmatpush1.bf16.msra.mxu0 %v9534_v49  ;;  %v9615_v48 = vld [vmem:[%s11159_s15 + $0x420] ss:$8 sps:$4 sm:$0xff]  }
 0x1f1   : > { %7749 = vmatprep.subr.bf16.mxu1 %v9539_v50  ;;  %8093 = vmatprep.subr.bf16.mxu0 %v9542_v51  ;;  %v9618_v49 = vld [vmem:[%s11159_s15 + $0xc20] ss:$8 sps:$4 sm:$0xff]   ;;  %v9623_v50 = vld [vmem:[%s11159_s15 + $0x434] ss:$8 sps:$4 sm:$0xff]  }
 0x1f2   : > { %v9626_v51 = vld [vmem:[%s11159_s15 + $0xc34] ss:$8 sps:$4 sm:$0xff]  }
 0x1f4   : > { %7750 = vmatpush1.bf16.msra.mxu1 %v9537_v52  ;;  %8094 = vmatpush1.bf16.msra.mxu0 %v9540_v53  ;;  %v9621_v52 = vld [vmem:[%s11159_s15 + $0x430] ss:$8 sps:$4 sm:$0xff]  }
 0x1f5   : > { %7751 = vmatprep.subr.bf16.mxu1 %v9545_v54  ;;  %8095 = vmatprep.subr.bf16.mxu0 %v9548_v55  ;;  %v9624_v53 = vld [vmem:[%s11159_s15 + $0xc30] ss:$8 sps:$4 sm:$0xff]   ;;  %v9629_v54 = vld [vmem:[%s11159_s15 + $0x444] ss:$8 sps:$4 sm:$0xff]  }
 0x1f6   : > { %v9632_v55 = vld [vmem:[%s11159_s15 + $0xc44] ss:$8 sps:$4 sm:$0xff]  }
 0x1f8   : > { %7752 = vmatpush1.bf16.msra.mxu1 %v9543_v56  ;;  %8096 = vmatpush1.bf16.msra.mxu0 %v9546_v57  ;;  %v9627_v56 = vld [vmem:[%s11159_s15 + $0x440] ss:$8 sps:$4 sm:$0xff]  }
 0x1f9   : > { %7753 = vmatprep.subr.bf16.mxu1 %v9551_v58  ;;  %8097 = vmatprep.subr.bf16.mxu0 %v9554_v59  ;;  %v9630_v57 = vld [vmem:[%s11159_s15 + $0xc40] ss:$8 sps:$4 sm:$0xff]   ;;  %v9635_v58 = vld [vmem:[%s11159_s15 + $0x454] ss:$8 sps:$4 sm:$0xff]  }
 0x1fa   : > { %v9638_v59 = vld [vmem:[%s11159_s15 + $0xc54] ss:$8 sps:$4 sm:$0xff]  }
 0x1fc   : > { %7754 = vmatpush1.bf16.msra.mxu1 %v9549_v60  ;;  %8098 = vmatpush1.bf16.msra.mxu0 %v9552_v61  ;;  %v9633_v60 = vld [vmem:[%s11159_s15 + $0x450] ss:$8 sps:$4 sm:$0xff]  }
 0x1fd   : > { %7755 = vmatprep.subr.bf16.mxu1 %v9557_v62  ;;  %8099 = vmatprep.subr.bf16.mxu0 %v9560_v63  ;;  %v9636_v61 = vld [vmem:[%s11159_s15 + $0xc50] ss:$8 sps:$4 sm:$0xff]   ;;  %v9641_v62 = vld [vmem:[%s11159_s15 + $0x464] ss:$8 sps:$4 sm:$0xff]  }
 0x1fe   : > { %v9644_v63 = vld [vmem:[%s11159_s15 + $0xc64] ss:$8 sps:$4 sm:$0xff]  }
 0x200   : > { %7756 = vmatpush1.bf16.msra.mxu1 %v9555_v4  ;;  %8100 = vmatpush1.bf16.msra.mxu0 %v9558_v7  ;;  %v9639_v4 = vld [vmem:[%s11159_s15 + $0x460] ss:$8 sps:$4 sm:$0xff]  }
 0x201   : > { %7757 = vmatprep.subr.bf16.mxu1 %v9563_v8  ;;  %8101 = vmatprep.subr.bf16.mxu0 %v9566_v9  ;;  %v9642_v7 = vld [vmem:[%s11159_s15 + $0xc60] ss:$8 sps:$4 sm:$0xff]   ;;  %v9647_v8 = vld [vmem:[%s11159_s15 + $0x474] ss:$8 sps:$4 sm:$0xff]  }
 0x202   : > { %v9650_v9 = vld [vmem:[%s11159_s15 + $0xc74] ss:$8 sps:$4 sm:$0xff]  }
 0x204   : > { %7758 = vmatpush1.bf16.msra.mxu1 %v9561_v10  ;;  %8102 = vmatpush1.bf16.msra.mxu0 %v9564_v11  ;;  %v9645_v10 = vld [vmem:[%s11159_s15 + $0x470] ss:$8 sps:$4 sm:$0xff]  }
 0x205   : > { %7759 = vmatprep.subr.bf16.mxu1 %v9569_v12  ;;  %8103 = vmatprep.subr.bf16.mxu0 %v9572_v13  ;;  %v9648_v11 = vld [vmem:[%s11159_s15 + $0xc70] ss:$8 sps:$4 sm:$0xff]   ;;  %v9653_v12 = vld [vmem:[%s11159_s15 + $0x484] ss:$8 sps:$4 sm:$0xff]  }
 0x206   : > { %v9656_v13 = vld [vmem:[%s11159_s15 + $0xc84] ss:$8 sps:$4 sm:$0xff]  }
 0x208   : > { %7760 = vmatpush1.bf16.msra.mxu1 %v9567_v14  ;;  %8104 = vmatpush1.bf16.msra.mxu0 %v9570_v15  ;;  %v9651_v14 = vld [vmem:[%s11159_s15 + $0x480] ss:$8 sps:$4 sm:$0xff]  }
 0x209   : > { %7761 = vmatprep.subr.bf16.mxu1 %v9575_v16  ;;  %8105 = vmatprep.subr.bf16.mxu0 %v9578_v17  ;;  %v9654_v15 = vld [vmem:[%s11159_s15 + $0xc80] ss:$8 sps:$4 sm:$0xff]   ;;  %v9659_v16 = vld [vmem:[%s11159_s15 + $0x494] ss:$8 sps:$4 sm:$0xff]  }
 0x20a   : > { %v9662_v17 = vld [vmem:[%s11159_s15 + $0xc94] ss:$8 sps:$4 sm:$0xff]  }
 0x20c   : > { %7762 = vmatpush1.bf16.msra.mxu1 %v9573_v18  ;;  %8106 = vmatpush1.bf16.msra.mxu0 %v9576_v19  ;;  %v9657_v18 = vld [vmem:[%s11159_s15 + $0x490] ss:$8 sps:$4 sm:$0xff]  }
 0x20d   : > { %7763 = vmatprep.subr.bf16.mxu1 %v9581_v20  ;;  %8107 = vmatprep.subr.bf16.mxu0 %v9584_v21  ;;  %v9660_v19 = vld [vmem:[%s11159_s15 + $0xc90] ss:$8 sps:$4 sm:$0xff]   ;;  %v9665_v20 = vld [vmem:[%s11159_s15 + $0x4a4] ss:$8 sps:$4 sm:$0xff]  }
 0x20e   : > { %v9668_v21 = vld [vmem:[%s11159_s15 + $0xca4] ss:$8 sps:$4 sm:$0xff]  }
 0x210   : > { %7764 = vmatpush1.bf16.msra.mxu1 %v9579_v22  ;;  %8108 = vmatpush1.bf16.msra.mxu0 %v9582_v23  ;;  %v9663_v22 = vld [vmem:[%s11159_s15 + $0x4a0] ss:$8 sps:$4 sm:$0xff]  }
 0x211   : > { %7765 = vmatprep.subr.bf16.mxu1 %v9587_v24  ;;  %8109 = vmatprep.subr.bf16.mxu0 %v9590_v0  ;;  %v9666_v23 = vld [vmem:[%s11159_s15 + $0xca0] ss:$8 sps:$4 sm:$0xff]   ;;  %v9671_v24 = vld [vmem:[%s11159_s15 + $0x4b4] ss:$8 sps:$4 sm:$0xff]  }
 0x212   : > { %v9674_v0 = vld [vmem:[%s11159_s15 + $0xcb4] ss:$8 sps:$4 sm:$0xff]  }
 0x214   : > { %7766 = vmatpush1.bf16.msra.mxu1 %v9585_v1  ;;  %8110 = vmatpush1.bf16.msra.mxu0 %v9588_v2  ;;  %v9669_v1 = vld [vmem:[%s11159_s15 + $0x4b0] ss:$8 sps:$4 sm:$0xff]  }
 0x215   : > { %7767 = vmatprep.subr.bf16.mxu1 %v9593_v6  ;;  %8111 = vmatprep.subr.bf16.mxu0 %v9596_v25  ;;  %v9672_v2 = vld [vmem:[%s11159_s15 + $0xcb0] ss:$8 sps:$4 sm:$0xff]   ;;  %v9677_v6 = vld [vmem:[%s11159_s15 + $0x4c4] ss:$8 sps:$4 sm:$0xff]  }
 0x216   : > { %v9680_v25 = vld [vmem:[%s11159_s15 + $0xcc4] ss:$8 sps:$4 sm:$0xff]  }
 0x218   : > { %7768 = vmatpush1.bf16.msra.mxu1 %v9591_v26  ;;  %8112 = vmatpush1.bf16.msra.mxu0 %v9594_v29  ;;  %v9675_v26 = vld [vmem:[%s11159_s15 + $0x4c0] ss:$8 sps:$4 sm:$0xff]  }
 0x219   : > { %7769 = vmatprep.subr.bf16.mxu1 %v9599_v32  ;;  %8113 = vmatprep.subr.bf16.mxu0 %v9602_v33  ;;  %v9678_v29 = vld [vmem:[%s11159_s15 + $0xcc0] ss:$8 sps:$4 sm:$0xff]   ;;  %v9683_v32 = vld [vmem:[%s11159_s15 + $0x4d4] ss:$8 sps:$4 sm:$0xff]  }
 0x21a   : > { %v9686_v33 = vld [vmem:[%s11159_s15 + $0xcd4] ss:$8 sps:$4 sm:$0xff]  }
 0x21c   : > { %7770 = vmatpush1.bf16.msra.mxu1 %v9597_v36  ;;  %8114 = vmatpush1.bf16.msra.mxu0 %v9600_v3  ;;  %v9681_v36 = vld [vmem:[%s11159_s15 + $0x4d0] ss:$8 sps:$4 sm:$0xff]  }
 0x21d   : > { %7782 = vmatprep.subr.bf16.mxu1 %v9605_v5  ;;  %8126 = vmatprep.subr.bf16.mxu0 %v9608_v27  ;;  %v9684_v3 = vld [vmem:[%s11159_s15 + $0xcd0] ss:$8 sps:$4 sm:$0xff]   ;;  %v9689_v5 = vld [vmem:[%s11159_s15 + $0x4e4] ss:$8 sps:$4 sm:$0xff]  }
 0x21e   : > { %v9692_v27 = vld [vmem:[%s11159_s15 + $0xce4] ss:$8 sps:$4 sm:$0xff]  }
 0x21f   : > { %7772 = vmatmul.mubr.bf16.vlgmr.msra.gmra.mrb[0].mxu1 %v8570_v40  ;;  %8116 = vmatmul.mubr.bf16.vlgmr.msra.gmra.mrb[0].mxu0 %v8586_v41  ;;  %v9695_v40 = vld [vmem:[%s11159_s15 + $0x4f4] ss:$8 sps:$4 sm:$0xff]  }
 0x220   : > { %7783 = vmatpush1.bf16.msra.mxu1 %v9603_v28  ;;  %8127 = vmatpush1.bf16.msra.mxu0 %v9606_v37  ;;  %v9687_v28 = vld [vmem:[%s11159_s15 + $0x4e0] ss:$8 sps:$4 sm:$0xff]   ;;  %v9698_v41 = vld [vmem:[%s11159_s15 + $0xcf4] ss:$8 sps:$4 sm:$0xff]  }
 0x221   : > { %7784 = vmatprep.subr.bf16.mxu1 %v9611_v44  ;;  %8128 = vmatprep.subr.bf16.mxu0 %v9614_v30  ;;  %v9690_v37 = vld [vmem:[%s11159_s15 + $0xce0] ss:$8 sps:$4 sm:$0xff]   ;;  %v9693_v44 = vld [vmem:[%s11159_s15 + $0x4f0] ss:$8 sps:$4 sm:$0xff]  }
 0x222   : > { %7814 = vmatprep.mubr.bf16.mxu1 %v8573_v31  ;;  %8158 = vmatprep.mubr.bf16.mxu0 %v8589_v34  ;;  %v9696_v30 = vld [vmem:[%s11159_s15 + $0xcf0] ss:$8 sps:$4 sm:$0xff]   ;;  %v9701_v31 = vld [vmem:[%s11159_s15 + $0x504] ss:$8 sps:$4 sm:$0xff]  }
 0x223   : > { %v9704_v34 = vld [vmem:[%s11159_s15 + $0xd04] ss:$8 sps:$4 sm:$0xff]  }
 0x224   : > { %7785 = vmatpush1.bf16.msra.mxu1 %v9609_v35  ;;  %8129 = vmatpush1.bf16.msra.mxu0 %v9612_v45  ;;  %v11600_v35 = vld [vmem:[%s11926_s0 + $0x28] sm:$0xff] }
 0x225   : > { %7786 = vmatprep.subr.bf16.mxu1 %v9617_v46  ;;  %8130 = vmatprep.subr.bf16.mxu0 %v9620_v47  ;;  %v11605_v45 = vld [vmem:[%s11926_s0 + $0xa8] sm:$0xff] }
 0x226   : > { %v11610_v46 = vld [vmem:[%s11926_s0 + $0x68] sm:$0xff] }
 0x227   : > { %v11615_v47 = vld [vmem:[%s11926_s0 + $0xe8] sm:$0xff] }
 0x228   : > { %7787 = vmatpush1.bf16.msra.mxu1 %v9615_v48  ;;  %8131 = vmatpush1.bf16.msra.mxu0 %v9618_v49  ;;  %v8572_v48 = vcombine.low %v11510_v38, %v11515_v39  ;;  %v8588_v49 = vcombine.low %v11524_v42, %v11529_v43  ;;  %v8591_v38 = vcombine.high %v11610_v46, %v11615_v47  ;;  %v9705_v39 = vld [vmem:[%s11159_s15 + $0x510] ss:$8 sps:$4 sm:$0xff]   ;;  %v9713_v43 = vld [vmem:[%s11159_s15 + $0x524] ss:$8 sps:$4 sm:$0xff]  }
 0x229   : > { %7788 = vmatprep.subr.bf16.mxu1 %v9623_v50  ;;  %8132 = vmatprep.subr.bf16.mxu0 %v9626_v51  ;;  %v9699_v50 = vld [vmem:[%s11159_s15 + $0x500] ss:$8 sps:$4 sm:$0xff]   ;;  %v9708_v42 = vld [vmem:[%s11159_s15 + $0xd10] ss:$8 sps:$4 sm:$0xff]  }
 0x22a   : > { %v9702_v51 = vld [vmem:[%s11159_s15 + $0xd00] ss:$8 sps:$4 sm:$0xff]  }
 0x22c   : > { %7789 = vmatpush1.bf16.msra.mxu1 %v9621_v52  ;;  %8133 = vmatpush1.bf16.msra.mxu0 %v9624_v53  ;;  %v9707_v52 = vld [vmem:[%s11159_s15 + $0x514] ss:$8 sps:$4 sm:$0xff]  }
 0x22d   : > { %7790 = vmatprep.subr.bf16.mxu1 %v9629_v54  ;;  %8134 = vmatprep.subr.bf16.mxu0 %v9632_v55  ;;  %v9710_v53 = vld [vmem:[%s11159_s15 + $0xd14] ss:$8 sps:$4 sm:$0xff]   ;;  %v8575_v54 = vcombine.high %v11600_v35, %v11605_v45  ;;  %v9716_v55 = vld [vmem:[%s11159_s15 + $0xd24] ss:$8 sps:$4 sm:$0xff]  }
 0x230   : > { %7791 = vmatpush1.bf16.msra.mxu1 %v9627_v56  ;;  %8135 = vmatpush1.bf16.msra.mxu0 %v9630_v57  ;;  %v9711_v56 = vld [vmem:[%s11159_s15 + $0x520] ss:$8 sps:$4 sm:$0xff]  }
 0x231   : > { %7792 = vmatprep.subr.bf16.mxu1 %v9635_v58  ;;  %8136 = vmatprep.subr.bf16.mxu0 %v9638_v59  ;;  %v9714_v57 = vld [vmem:[%s11159_s15 + $0xd20] ss:$8 sps:$4 sm:$0xff]   ;;  %v9719_v58 = vld [vmem:[%s11159_s15 + $0x534] ss:$8 sps:$4 sm:$0xff]  }
 0x232   : > { %v9722_v59 = vld [vmem:[%s11159_s15 + $0xd34] ss:$8 sps:$4 sm:$0xff]  }
 0x234   : > { %7793 = vmatpush1.bf16.msra.mxu1 %v9633_v60  ;;  %8137 = vmatpush1.bf16.msra.mxu0 %v9636_v61  ;;  %v9717_v60 = vld [vmem:[%s11159_s15 + $0x530] ss:$8 sps:$4 sm:$0xff]  }
 0x235   : > { %7794 = vmatprep.subr.bf16.mxu1 %v9641_v62  ;;  %8138 = vmatprep.subr.bf16.mxu0 %v9644_v63  ;;  %v9720_v61 = vld [vmem:[%s11159_s15 + $0xd30] ss:$8 sps:$4 sm:$0xff]   ;;  %v9725_v62 = vld [vmem:[%s11159_s15 + $0x544] ss:$8 sps:$4 sm:$0xff]  }
 0x236   : > { %v9728_v63 = vld [vmem:[%s11159_s15 + $0xd44] ss:$8 sps:$4 sm:$0xff]  }
 0x238   : > { %7795 = vmatpush1.bf16.msra.mxu1 %v9639_v4  ;;  %8139 = vmatpush1.bf16.msra.mxu0 %v9642_v7  ;;  %v9723_v4 = vld [vmem:[%s11159_s15 + $0x540] ss:$8 sps:$4 sm:$0xff]  }
 0x239   : > { %7796 = vmatprep.subr.bf16.mxu1 %v9647_v8  ;;  %8140 = vmatprep.subr.bf16.mxu0 %v9650_v9  ;;  %v9726_v7 = vld [vmem:[%s11159_s15 + $0xd40] ss:$8 sps:$4 sm:$0xff]   ;;  %v9731_v8 = vld [vmem:[%s11159_s15 + $0x554] ss:$8 sps:$4 sm:$0xff]  }
 0x23a   : > { %v9734_v9 = vld [vmem:[%s11159_s15 + $0xd54] ss:$8 sps:$4 sm:$0xff]  }
 0x23c   : > { %7797 = vmatpush1.bf16.msra.mxu1 %v9645_v10  ;;  %8141 = vmatpush1.bf16.msra.mxu0 %v9648_v11  ;;  %v9729_v10 = vld [vmem:[%s11159_s15 + $0x550] ss:$8 sps:$4 sm:$0xff]  }
 0x23d   : > { %7798 = vmatprep.subr.bf16.mxu1 %v9653_v12  ;;  %8142 = vmatprep.subr.bf16.mxu0 %v9656_v13  ;;  %v9732_v11 = vld [vmem:[%s11159_s15 + $0xd50] ss:$8 sps:$4 sm:$0xff]   ;;  %v9737_v12 = vld [vmem:[%s11159_s15 + $0x564] ss:$8 sps:$4 sm:$0xff]  }
 0x23e   : > { %v9740_v13 = vld [vmem:[%s11159_s15 + $0xd64] ss:$8 sps:$4 sm:$0xff]  }
 0x240   : > { %7799 = vmatpush1.bf16.msra.mxu1 %v9651_v14  ;;  %8143 = vmatpush1.bf16.msra.mxu0 %v9654_v15  ;;  %v9735_v14 = vld [vmem:[%s11159_s15 + $0x560] ss:$8 sps:$4 sm:$0xff]  }
 0x241   : > { %7800 = vmatprep.subr.bf16.mxu1 %v9659_v16  ;;  %8144 = vmatprep.subr.bf16.mxu0 %v9662_v17  ;;  %v9738_v15 = vld [vmem:[%s11159_s15 + $0xd60] ss:$8 sps:$4 sm:$0xff]   ;;  %v9743_v16 = vld [vmem:[%s11159_s15 + $0x574] ss:$8 sps:$4 sm:$0xff]  }
 0x242   : > { %v9746_v17 = vld [vmem:[%s11159_s15 + $0xd74] ss:$8 sps:$4 sm:$0xff]  }
 0x244   : > { %7801 = vmatpush1.bf16.msra.mxu1 %v9657_v18  ;;  %8145 = vmatpush1.bf16.msra.mxu0 %v9660_v19  ;;  %v9741_v18 = vld [vmem:[%s11159_s15 + $0x570] ss:$8 sps:$4 sm:$0xff]  }
 0x245   : > { %7802 = vmatprep.subr.bf16.mxu1 %v9665_v20  ;;  %8146 = vmatprep.subr.bf16.mxu0 %v9668_v21  ;;  %v9744_v19 = vld [vmem:[%s11159_s15 + $0xd70] ss:$8 sps:$4 sm:$0xff]   ;;  %v9749_v20 = vld [vmem:[%s11159_s15 + $0x584] ss:$8 sps:$4 sm:$0xff]  }
 0x246   : > { %v9752_v21 = vld [vmem:[%s11159_s15 + $0xd84] ss:$8 sps:$4 sm:$0xff]  }
 0x248   : > { %7803 = vmatpush1.bf16.msra.mxu1 %v9663_v22  ;;  %8147 = vmatpush1.bf16.msra.mxu0 %v9666_v23  ;;  %v9747_v22 = vld [vmem:[%s11159_s15 + $0x580] ss:$8 sps:$4 sm:$0xff]  }
 0x249   : > { %7804 = vmatprep.subr.bf16.mxu1 %v9671_v24  ;;  %8148 = vmatprep.subr.bf16.mxu0 %v9674_v0  ;;  %v9750_v23 = vld [vmem:[%s11159_s15 + $0xd80] ss:$8 sps:$4 sm:$0xff]   ;;  %v9755_v24 = vld [vmem:[%s11159_s15 + $0x594] ss:$8 sps:$4 sm:$0xff]  }
 0x24a   : > { %v9758_v0 = vld [vmem:[%s11159_s15 + $0xd94] ss:$8 sps:$4 sm:$0xff]  }
 0x24c   : > { %7805 = vmatpush1.bf16.msra.mxu1 %v9669_v1  ;;  %8149 = vmatpush1.bf16.msra.mxu0 %v9672_v2  ;;  %v9753_v1 = vld [vmem:[%s11159_s15 + $0x590] ss:$8 sps:$4 sm:$0xff]  }
 0x24d   : > { %7806 = vmatprep.subr.bf16.mxu1 %v9677_v6  ;;  %8150 = vmatprep.subr.bf16.mxu0 %v9680_v25  ;;  %v9756_v2 = vld [vmem:[%s11159_s15 + $0xd90] ss:$8 sps:$4 sm:$0xff]   ;;  %v9761_v6 = vld [vmem:[%s11159_s15 + $0x5a4] ss:$8 sps:$4 sm:$0xff]  }
 0x24e   : > { %v9764_v25 = vld [vmem:[%s11159_s15 + $0xda4] ss:$8 sps:$4 sm:$0xff]  }
 0x250   : > { %7807 = vmatpush1.bf16.msra.mxu1 %v9675_v26  ;;  %8151 = vmatpush1.bf16.msra.mxu0 %v9678_v29  ;;  %v9759_v26 = vld [vmem:[%s11159_s15 + $0x5a0] ss:$8 sps:$4 sm:$0xff]  }
 0x251   : > { %7808 = vmatprep.subr.bf16.mxu1 %v9683_v32  ;;  %8152 = vmatprep.subr.bf16.mxu0 %v9686_v33  ;;  %v9762_v29 = vld [vmem:[%s11159_s15 + $0xda0] ss:$8 sps:$4 sm:$0xff]   ;;  %v9767_v32 = vld [vmem:[%s11159_s15 + $0x5b4] ss:$8 sps:$4 sm:$0xff]  }
 0x252   : > { %v9770_v33 = vld [vmem:[%s11159_s15 + $0xdb4] ss:$8 sps:$4 sm:$0xff]  }
 0x254   : > { %7809 = vmatpush1.bf16.msra.mxu1 %v9681_v36  ;;  %8153 = vmatpush1.bf16.msra.mxu0 %v9684_v3  ;;  %v9765_v36 = vld [vmem:[%s11159_s15 + $0x5b0] ss:$8 sps:$4 sm:$0xff]  }
 0x255   : > { %7810 = vmatprep.subr.bf16.mxu1 %v9689_v5  ;;  %8154 = vmatprep.subr.bf16.mxu0 %v9692_v27  ;;  %v9768_v3 = vld [vmem:[%s11159_s15 + $0xdb0] ss:$8 sps:$4 sm:$0xff]   ;;  %v9773_v5 = vld [vmem:[%s11159_s15 + $0x5c4] ss:$8 sps:$4 sm:$0xff]  }
 0x256   : > { %v9776_v27 = vld [vmem:[%s11159_s15 + $0xdc4] ss:$8 sps:$4 sm:$0xff]  }
 0x258   : > { %7811 = vmatpush1.bf16.msra.mxu1 %v9687_v28  ;;  %8155 = vmatpush1.bf16.msra.mxu0 %v9690_v37  ;;  %v9771_v28 = vld [vmem:[%s11159_s15 + $0x5c0] ss:$8 sps:$4 sm:$0xff]  }
 0x259   : > { %7812 = vmatprep.subr.bf16.mxu1 %v9695_v40  ;;  %8156 = vmatprep.subr.bf16.mxu0 %v9698_v41  ;;  %v9774_v37 = vld [vmem:[%s11159_s15 + $0xdc0] ss:$8 sps:$4 sm:$0xff]   ;;  %v9779_v40 = vld [vmem:[%s11159_s15 + $0x5d4] ss:$8 sps:$4 sm:$0xff]  }
 0x25a   : > { %v9782_v41 = vld [vmem:[%s11159_s15 + $0xdd4] ss:$8 sps:$4 sm:$0xff]  }
 0x25c   : > { %7813 = vmatpush1.bf16.msra.mxu1 %v9693_v44  ;;  %8157 = vmatpush1.bf16.msra.mxu0 %v9696_v30  ;;  %v9777_v44 = vld [vmem:[%s11159_s15 + $0x5d0] ss:$8 sps:$4 sm:$0xff]  }
 0x25d   : > { %7825 = vmatprep.subr.bf16.mxu1 %v9701_v31  ;;  %8169 = vmatprep.subr.bf16.mxu0 %v9704_v34  ;;  %v9780_v30 = vld [vmem:[%s11159_s15 + $0xdd0] ss:$8 sps:$4 sm:$0xff]   ;;  %v9785_v31 = vld [vmem:[%s11159_s15 + $0x5e4] ss:$8 sps:$4 sm:$0xff]  }
 0x25e   : > { %v9788_v34 = vld [vmem:[%s11159_s15 + $0xde4] ss:$8 sps:$4 sm:$0xff]  }
 0x25f   : > { %7815 = vmatmul.mubr.bf16.vlgmr.msra.gmra.mrb[0].mxu1 %v8572_v48  ;;  %8159 = vmatmul.mubr.bf16.vlgmr.msra.gmra.mrb[0].mxu0 %v8588_v49  ;;  %v9783_v48 = vld [vmem:[%s11159_s15 + $0x5e0] ss:$8 sps:$4 sm:$0xff]  }
 0x260   : > { %7826 = vmatpush1.bf16.msra.mxu1 %v9699_v50  ;;  %8170 = vmatpush1.bf16.msra.mxu0 %v9702_v51  ;;  %v9786_v49 = vld [vmem:[%s11159_s15 + $0xde0] ss:$8 sps:$4 sm:$0xff]   ;;  %v9791_v50 = vld [vmem:[%s11159_s15 + $0x5f4] ss:$8 sps:$4 sm:$0xff]  }
 0x261   : > { %7827 = vmatprep.subr.bf16.mxu1 %v9707_v52  ;;  %8171 = vmatprep.subr.bf16.mxu0 %v9710_v53  ;;  %v9794_v51 = vld [vmem:[%s11159_s15 + $0xdf4] ss:$8 sps:$4 sm:$0xff]   ;;  %v9789_v52 = vld [vmem:[%s11159_s15 + $0x5f0] ss:$8 sps:$4 sm:$0xff]  }
 0x262   : > { %7857 = vmatprep.mubr.bf16.mxu1 %v8575_v54  ;;  %8201 = vmatprep.mubr.bf16.mxu0 %v8591_v38  ;;  %v9792_v53 = vld [vmem:[%s11159_s15 + $0xdf0] ss:$8 sps:$4 sm:$0xff]   ;;  %v9797_v54 = vld [vmem:[%s11159_s15 + $0x604] ss:$8 sps:$4 sm:$0xff]  }
 0x263   : > { %v9800_v38 = vld [vmem:[%s11159_s15 + $0xe04] ss:$8 sps:$4 sm:$0xff]  }
 0x264   : > { %7828 = vmatpush1.bf16.msra.mxu1 %v9705_v39  ;;  %8172 = vmatpush1.bf16.msra.mxu0 %v9708_v42  ;;  %v11692_v39 = vld [vmem:[%s11926_s0 + $0x30] sm:$0xff]  ;;  %v8574_v42 = vcombine.low %v11600_v35, %v11605_v45  ;;  %v9795_v35 = vld [vmem:[%s11159_s15 + $0x600] ss:$8 sps:$4 sm:$0xff]  }
 0x265   : > { %7829 = vmatprep.subr.bf16.mxu1 %v9713_v43  ;;  %8173 = vmatprep.subr.bf16.mxu0 %v9716_v55  ;;  %v8590_v43 = vcombine.low %v11610_v46, %v11615_v47  ;;  %v11701_v55 = vld [vmem:[%s11926_s0 + $0xb0] sm:$0xff]  ;;  %v9798_v45 = vld [vmem:[%s11159_s15 + $0xe00] ss:$8 sps:$4 sm:$0xff]  }
 0x266   : > { %v9803_v46 = vld [vmem:[%s11159_s15 + $0x614] ss:$8 sps:$4 sm:$0xff]  }
 0x267   : > { %v9806_v47 = vld [vmem:[%s11159_s15 + $0xe14] ss:$8 sps:$4 sm:$0xff]  }
 0x268   : > { %7830 = vmatpush1.bf16.msra.mxu1 %v9711_v56  ;;  %8174 = vmatpush1.bf16.msra.mxu0 %v9714_v57  ;;  %v11706_v56 = vld [vmem:[%s11926_s0 + $0x70] sm:$0xff] }
 0x269   : > { %7831 = vmatprep.subr.bf16.mxu1 %v9719_v58  ;;  %8175 = vmatprep.subr.bf16.mxu0 %v9722_v59  ;;  %v11711_v57 = vld [vmem:[%s11926_s0 + $0xf0] sm:$0xff]  ;;  %v8577_v58 = vcombine.high %v11692_v39, %v11701_v55 }
 0x26a   : > { %v8593_v59 = vcombine.high %v11706_v56, %v11711_v57 }
 0x26c   : > { %7832 = vmatpush1.bf16.msra.mxu1 %v9717_v60  ;;  %8176 = vmatpush1.bf16.msra.mxu0 %v9720_v61  ;;  %v9801_v60 = vld [vmem:[%s11159_s15 + $0x610] ss:$8 sps:$4 sm:$0xff]  }
 0x26d   : > { %7833 = vmatprep.subr.bf16.mxu1 %v9725_v62  ;;  %8177 = vmatprep.subr.bf16.mxu0 %v9728_v63  ;;  %v9804_v61 = vld [vmem:[%s11159_s15 + $0xe10] ss:$8 sps:$4 sm:$0xff]   ;;  %v9809_v62 = vld [vmem:[%s11159_s15 + $0x624] ss:$8 sps:$4 sm:$0xff]  }
 0x26e   : > { %v9812_v63 = vld [vmem:[%s11159_s15 + $0xe24] ss:$8 sps:$4 sm:$0xff]  }
 0x270   : > { %7834 = vmatpush1.bf16.msra.mxu1 %v9723_v4  ;;  %8178 = vmatpush1.bf16.msra.mxu0 %v9726_v7  ;;  %v9807_v4 = vld [vmem:[%s11159_s15 + $0x620] ss:$8 sps:$4 sm:$0xff]  }
 0x271   : > { %7835 = vmatprep.subr.bf16.mxu1 %v9731_v8  ;;  %8179 = vmatprep.subr.bf16.mxu0 %v9734_v9  ;;  %v9810_v7 = vld [vmem:[%s11159_s15 + $0xe20] ss:$8 sps:$4 sm:$0xff]   ;;  %v9815_v8 = vld [vmem:[%s11159_s15 + $0x634] ss:$8 sps:$4 sm:$0xff]  }
 0x272   : > { %v9818_v9 = vld [vmem:[%s11159_s15 + $0xe34] ss:$8 sps:$4 sm:$0xff]  }
 0x274   : > { %7836 = vmatpush1.bf16.msra.mxu1 %v9729_v10  ;;  %8180 = vmatpush1.bf16.msra.mxu0 %v9732_v11  ;;  %v9813_v10 = vld [vmem:[%s11159_s15 + $0x630] ss:$8 sps:$4 sm:$0xff]  }
 0x275   : > { %7837 = vmatprep.subr.bf16.mxu1 %v9737_v12  ;;  %8181 = vmatprep.subr.bf16.mxu0 %v9740_v13  ;;  %v9816_v11 = vld [vmem:[%s11159_s15 + $0xe30] ss:$8 sps:$4 sm:$0xff]   ;;  %v9821_v12 = vld [vmem:[%s11159_s15 + $0x644] ss:$8 sps:$4 sm:$0xff]  }
 0x276   : > { %v9824_v13 = vld [vmem:[%s11159_s15 + $0xe44] ss:$8 sps:$4 sm:$0xff]  }
 0x278   : > { %7838 = vmatpush1.bf16.msra.mxu1 %v9735_v14  ;;  %8182 = vmatpush1.bf16.msra.mxu0 %v9738_v15  ;;  %v9819_v14 = vld [vmem:[%s11159_s15 + $0x640] ss:$8 sps:$4 sm:$0xff]  }
 0x279   : > { %7839 = vmatprep.subr.bf16.mxu1 %v9743_v16  ;;  %8183 = vmatprep.subr.bf16.mxu0 %v9746_v17  ;;  %v9822_v15 = vld [vmem:[%s11159_s15 + $0xe40] ss:$8 sps:$4 sm:$0xff]   ;;  %v9827_v16 = vld [vmem:[%s11159_s15 + $0x654] ss:$8 sps:$4 sm:$0xff]  }
 0x27a   : > { %v9830_v17 = vld [vmem:[%s11159_s15 + $0xe54] ss:$8 sps:$4 sm:$0xff]  }
 0x27c   : > { %7840 = vmatpush1.bf16.msra.mxu1 %v9741_v18  ;;  %8184 = vmatpush1.bf16.msra.mxu0 %v9744_v19  ;;  %v9825_v18 = vld [vmem:[%s11159_s15 + $0x650] ss:$8 sps:$4 sm:$0xff]  }
 0x27d   : > { %7841 = vmatprep.subr.bf16.mxu1 %v9749_v20  ;;  %8185 = vmatprep.subr.bf16.mxu0 %v9752_v21  ;;  %v9828_v19 = vld [vmem:[%s11159_s15 + $0xe50] ss:$8 sps:$4 sm:$0xff]   ;;  %v9833_v20 = vld [vmem:[%s11159_s15 + $0x664] ss:$8 sps:$4 sm:$0xff]  }
 0x27e   : > { %v9836_v21 = vld [vmem:[%s11159_s15 + $0xe64] ss:$8 sps:$4 sm:$0xff]  }
 0x280   : > { %7842 = vmatpush1.bf16.msra.mxu1 %v9747_v22  ;;  %8186 = vmatpush1.bf16.msra.mxu0 %v9750_v23  ;;  %v9831_v22 = vld [vmem:[%s11159_s15 + $0x660] ss:$8 sps:$4 sm:$0xff]  }
 0x281   : > { %7843 = vmatprep.subr.bf16.mxu1 %v9755_v24  ;;  %8187 = vmatprep.subr.bf16.mxu0 %v9758_v0  ;;  %v9834_v23 = vld [vmem:[%s11159_s15 + $0xe60] ss:$8 sps:$4 sm:$0xff]   ;;  %v9839_v24 = vld [vmem:[%s11159_s15 + $0x674] ss:$8 sps:$4 sm:$0xff]  }
 0x282   : > { %v9842_v0 = vld [vmem:[%s11159_s15 + $0xe74] ss:$8 sps:$4 sm:$0xff]  }
 0x284   : > { %7844 = vmatpush1.bf16.msra.mxu1 %v9753_v1  ;;  %8188 = vmatpush1.bf16.msra.mxu0 %v9756_v2  ;;  %v9837_v1 = vld [vmem:[%s11159_s15 + $0x670] ss:$8 sps:$4 sm:$0xff]  }
 0x285   : > { %7845 = vmatprep.subr.bf16.mxu1 %v9761_v6  ;;  %8189 = vmatprep.subr.bf16.mxu0 %v9764_v25  ;;  %v9840_v2 = vld [vmem:[%s11159_s15 + $0xe70] ss:$8 sps:$4 sm:$0xff]   ;;  %v9845_v6 = vld [vmem:[%s11159_s15 + $0x684] ss:$8 sps:$4 sm:$0xff]  }
 0x286   : > { %v9848_v25 = vld [vmem:[%s11159_s15 + $0xe84] ss:$8 sps:$4 sm:$0xff]  }
 0x288   : > { %7846 = vmatpush1.bf16.msra.mxu1 %v9759_v26  ;;  %8190 = vmatpush1.bf16.msra.mxu0 %v9762_v29  ;;  %v9843_v26 = vld [vmem:[%s11159_s15 + $0x680] ss:$8 sps:$4 sm:$0xff]  }
 0x289   : > { %7847 = vmatprep.subr.bf16.mxu1 %v9767_v32  ;;  %8191 = vmatprep.subr.bf16.mxu0 %v9770_v33  ;;  %v9846_v29 = vld [vmem:[%s11159_s15 + $0xe80] ss:$8 sps:$4 sm:$0xff]   ;;  %v9851_v32 = vld [vmem:[%s11159_s15 + $0x694] ss:$8 sps:$4 sm:$0xff]  }
 0x28a   : > { %v9854_v33 = vld [vmem:[%s11159_s15 + $0xe94] ss:$8 sps:$4 sm:$0xff]  }
 0x28c   : > { %7848 = vmatpush1.bf16.msra.mxu1 %v9765_v36  ;;  %8192 = vmatpush1.bf16.msra.mxu0 %v9768_v3  ;;  %v9849_v36 = vld [vmem:[%s11159_s15 + $0x690] ss:$8 sps:$4 sm:$0xff]  }
 0x28d   : > { %7849 = vmatprep.subr.bf16.mxu1 %v9773_v5  ;;  %8193 = vmatprep.subr.bf16.mxu0 %v9776_v27  ;;  %v9852_v3 = vld [vmem:[%s11159_s15 + $0xe90] ss:$8 sps:$4 sm:$0xff]   ;;  %v9857_v5 = vld [vmem:[%s11159_s15 + $0x6a4] ss:$8 sps:$4 sm:$0xff]  }
 0x28e   : > { %v9860_v27 = vld [vmem:[%s11159_s15 + $0xea4] ss:$8 sps:$4 sm:$0xff]  }
 0x290   : > { %7850 = vmatpush1.bf16.msra.mxu1 %v9771_v28  ;;  %8194 = vmatpush1.bf16.msra.mxu0 %v9774_v37  ;;  %v9855_v28 = vld [vmem:[%s11159_s15 + $0x6a0] ss:$8 sps:$4 sm:$0xff]  }
 0x291   : > { %7851 = vmatprep.subr.bf16.mxu1 %v9779_v40  ;;  %8195 = vmatprep.subr.bf16.mxu0 %v9782_v41  ;;  %v9858_v37 = vld [vmem:[%s11159_s15 + $0xea0] ss:$8 sps:$4 sm:$0xff]   ;;  %v9863_v40 = vld [vmem:[%s11159_s15 + $0x6b4] ss:$8 sps:$4 sm:$0xff]  }
 0x292   : > { %v9866_v41 = vld [vmem:[%s11159_s15 + $0xeb4] ss:$8 sps:$4 sm:$0xff]  }
 0x294   : > { %7852 = vmatpush1.bf16.msra.mxu1 %v9777_v44  ;;  %8196 = vmatpush1.bf16.msra.mxu0 %v9780_v30  ;;  %v9861_v44 = vld [vmem:[%s11159_s15 + $0x6b0] ss:$8 sps:$4 sm:$0xff]  }
 0x295   : > { %7853 = vmatprep.subr.bf16.mxu1 %v9785_v31  ;;  %8197 = vmatprep.subr.bf16.mxu0 %v9788_v34  ;;  %v9864_v30 = vld [vmem:[%s11159_s15 + $0xeb0] ss:$8 sps:$4 sm:$0xff]   ;;  %v9869_v31 = vld [vmem:[%s11159_s15 + $0x6c4] ss:$8 sps:$4 sm:$0xff]  }
 0x296   : > { %v9872_v34 = vld [vmem:[%s11159_s15 + $0xec4] ss:$8 sps:$4 sm:$0xff]  }
 0x298   : > { %7854 = vmatpush1.bf16.msra.mxu1 %v9783_v48  ;;  %8198 = vmatpush1.bf16.msra.mxu0 %v9786_v49  ;;  %v9867_v48 = vld [vmem:[%s11159_s15 + $0x6c0] ss:$8 sps:$4 sm:$0xff]  }
 0x299   : > { %7855 = vmatprep.subr.bf16.mxu1 %v9791_v50  ;;  %8199 = vmatprep.subr.bf16.mxu0 %v9794_v51  ;;  %v9870_v49 = vld [vmem:[%s11159_s15 + $0xec0] ss:$8 sps:$4 sm:$0xff]   ;;  %v9875_v50 = vld [vmem:[%s11159_s15 + $0x6d4] ss:$8 sps:$4 sm:$0xff]  }
 0x29a   : > { %v9878_v51 = vld [vmem:[%s11159_s15 + $0xed4] ss:$8 sps:$4 sm:$0xff]  }
 0x29c   : > { %7856 = vmatpush1.bf16.msra.mxu1 %v9789_v52  ;;  %8200 = vmatpush1.bf16.msra.mxu0 %v9792_v53  ;;  %v9873_v52 = vld [vmem:[%s11159_s15 + $0x6d0] ss:$8 sps:$4 sm:$0xff]  }
 0x29d   : > { %7868 = vmatprep.subr.bf16.mxu1 %v9797_v54  ;;  %8212 = vmatprep.subr.bf16.mxu0 %v9800_v38  ;;  %v9876_v53 = vld [vmem:[%s11159_s15 + $0xed0] ss:$8 sps:$4 sm:$0xff]   ;;  %v9881_v54 = vld [vmem:[%s11159_s15 + $0x6e4] ss:$8 sps:$4 sm:$0xff]  }
 0x29e   : > { %v9884_v38 = vld [vmem:[%s11159_s15 + $0xee4] ss:$8 sps:$4 sm:$0xff]  }
 0x29f   : > { %7858 = vmatmul.mubr.bf16.vlgmr.msra.gmra.mrb[0].mxu1 %v8574_v42  ;;  %8202 = vmatmul.mubr.bf16.vlgmr.msra.gmra.mrb[0].mxu0 %v8590_v43  ;;  %v9879_v42 = vld [vmem:[%s11159_s15 + $0x6e0] ss:$8 sps:$4 sm:$0xff]  }
 0x2a0   : > { %7869 = vmatpush1.bf16.msra.mxu1 %v9795_v35  ;;  %8213 = vmatpush1.bf16.msra.mxu0 %v9798_v45  ;;  %v9882_v43 = vld [vmem:[%s11159_s15 + $0xee0] ss:$8 sps:$4 sm:$0xff]   ;;  %v9887_v35 = vld [vmem:[%s11159_s15 + $0x6f4] ss:$8 sps:$4 sm:$0xff]  }
 0x2a1   : > { %7870 = vmatprep.subr.bf16.mxu1 %v9803_v46  ;;  %8214 = vmatprep.subr.bf16.mxu0 %v9806_v47  ;;  %v9890_v45 = vld [vmem:[%s11159_s15 + $0xef4] ss:$8 sps:$4 sm:$0xff]   ;;  %v9885_v46 = vld [vmem:[%s11159_s15 + $0x6f0] ss:$8 sps:$4 sm:$0xff]  }
 0x2a2   : > { %7900 = vmatprep.mubr.bf16.mxu1 %v8577_v58  ;;  %8244 = vmatprep.mubr.bf16.mxu0 %v8593_v59  ;;  %v9888_v47 = vld [vmem:[%s11159_s15 + $0xef0] ss:$8 sps:$4 sm:$0xff]   ;;  %v9893_v58 = vld [vmem:[%s11159_s15 + $0x704] ss:$8 sps:$4 sm:$0xff]  }
 0x2a3   : > { %v9896_v59 = vld [vmem:[%s11159_s15 + $0xf04] ss:$8 sps:$4 sm:$0xff]  }
 0x2a4   : > { %7871 = vmatpush1.bf16.msra.mxu1 %v9801_v60  ;;  %8215 = vmatpush1.bf16.msra.mxu0 %v9804_v61  ;;  %v11784_v60 = vld [vmem:[%s11926_s0 + $0x38] sm:$0xff]  ;;  %v8576_v61 = vcombine.low %v11692_v39, %v11701_v55  ;;  %v9891_v39 = vld [vmem:[%s11159_s15 + $0x700] ss:$8 sps:$4 sm:$0xff]  }
 0x2a5   : > { %7872 = vmatprep.subr.bf16.mxu1 %v9809_v62  ;;  %8216 = vmatprep.subr.bf16.mxu0 %v9812_v63  ;;  %v8592_v62 = vcombine.low %v11706_v56, %v11711_v57  ;;  %v11793_v63 = vld [vmem:[%s11926_s0 + $0xb8] sm:$0xff]  ;;  %v9894_v55 = vld [vmem:[%s11159_s15 + $0xf00] ss:$8 sps:$4 sm:$0xff]  }
 0x2a6   : > { %v9899_v56 = vld [vmem:[%s11159_s15 + $0x714] ss:$8 sps:$4 sm:$0xff]  }
 0x2a7   : > { %v9902_v57 = vld [vmem:[%s11159_s15 + $0xf14] ss:$8 sps:$4 sm:$0xff]  }
 0x2a8   : > { %7873 = vmatpush1.bf16.msra.mxu1 %v9807_v4  ;;  %8217 = vmatpush1.bf16.msra.mxu0 %v9810_v7  ;;  %v11798_v4 = vld [vmem:[%s11926_s0 + $0x78] sm:$0xff] }
 0x2a9   : > { %7874 = vmatprep.subr.bf16.mxu1 %v9815_v8  ;;  %8218 = vmatprep.subr.bf16.mxu0 %v9818_v9  ;;  %v11803_v7 = vld [vmem:[%s11926_s0 + $0xf8] sm:$0xff]  ;;  %v8579_v8 = vcombine.high %v11784_v60, %v11793_v63 }
 0x2aa   : > { %v8595_v9 = vcombine.high %v11798_v4, %v11803_v7 }
 0x2ac   : > { %7875 = vmatpush1.bf16.msra.mxu1 %v9813_v10  ;;  %8219 = vmatpush1.bf16.msra.mxu0 %v9816_v11  ;;  %v9897_v10 = vld [vmem:[%s11159_s15 + $0x710] ss:$8 sps:$4 sm:$0xff]  }
 0x2ad   : > { %7876 = vmatprep.subr.bf16.mxu1 %v9821_v12  ;;  %8220 = vmatprep.subr.bf16.mxu0 %v9824_v13  ;;  %v9900_v11 = vld [vmem:[%s11159_s15 + $0xf10] ss:$8 sps:$4 sm:$0xff]   ;;  %v9905_v12 = vld [vmem:[%s11159_s15 + $0x724] ss:$8 sps:$4 sm:$0xff]  }
 0x2ae   : > { %v9908_v13 = vld [vmem:[%s11159_s15 + $0xf24] ss:$8 sps:$4 sm:$0xff]  }
 0x2b0   : > { %7877 = vmatpush1.bf16.msra.mxu1 %v9819_v14  ;;  %8221 = vmatpush1.bf16.msra.mxu0 %v9822_v15  ;;  %v9903_v14 = vld [vmem:[%s11159_s15 + $0x720] ss:$8 sps:$4 sm:$0xff]  }
 0x2b1   : > { %7878 = vmatprep.subr.bf16.mxu1 %v9827_v16  ;;  %8222 = vmatprep.subr.bf16.mxu0 %v9830_v17  ;;  %v9906_v15 = vld [vmem:[%s11159_s15 + $0xf20] ss:$8 sps:$4 sm:$0xff]   ;;  %v9911_v16 = vld [vmem:[%s11159_s15 + $0x734] ss:$8 sps:$4 sm:$0xff]  }
 0x2b2   : > { %v9914_v17 = vld [vmem:[%s11159_s15 + $0xf34] ss:$8 sps:$4 sm:$0xff]  }
 0x2b4   : > { %7879 = vmatpush1.bf16.msra.mxu1 %v9825_v18  ;;  %8223 = vmatpush1.bf16.msra.mxu0 %v9828_v19  ;;  %v9909_v18 = vld [vmem:[%s11159_s15 + $0x730] ss:$8 sps:$4 sm:$0xff]  }
 0x2b5   : > { %7880 = vmatprep.subr.bf16.mxu1 %v9833_v20  ;;  %8224 = vmatprep.subr.bf16.mxu0 %v9836_v21  ;;  %v9912_v19 = vld [vmem:[%s11159_s15 + $0xf30] ss:$8 sps:$4 sm:$0xff]   ;;  %v9917_v20 = vld [vmem:[%s11159_s15 + $0x744] ss:$8 sps:$4 sm:$0xff]  }
 0x2b6   : > { %v9920_v21 = vld [vmem:[%s11159_s15 + $0xf44] ss:$8 sps:$4 sm:$0xff]  }
 0x2b8   : > { %7881 = vmatpush1.bf16.msra.mxu1 %v9831_v22  ;;  %8225 = vmatpush1.bf16.msra.mxu0 %v9834_v23  ;;  %v9915_v22 = vld [vmem:[%s11159_s15 + $0x740] ss:$8 sps:$4 sm:$0xff]  }
 0x2b9   : > { %7882 = vmatprep.subr.bf16.mxu1 %v9839_v24  ;;  %8226 = vmatprep.subr.bf16.mxu0 %v9842_v0  ;;  %v9918_v23 = vld [vmem:[%s11159_s15 + $0xf40] ss:$8 sps:$4 sm:$0xff]   ;;  %v9923_v24 = vld [vmem:[%s11159_s15 + $0x754] ss:$8 sps:$4 sm:$0xff]  }
 0x2ba   : > { %v9926_v0 = vld [vmem:[%s11159_s15 + $0xf54] ss:$8 sps:$4 sm:$0xff]  }
 0x2bc   : > { %7883 = vmatpush1.bf16.msra.mxu1 %v9837_v1  ;;  %8227 = vmatpush1.bf16.msra.mxu0 %v9840_v2  ;;  %v9921_v1 = vld [vmem:[%s11159_s15 + $0x750] ss:$8 sps:$4 sm:$0xff]  }
 0x2bd   : > { %7884 = vmatprep.subr.bf16.mxu1 %v9845_v6  ;;  %8228 = vmatprep.subr.bf16.mxu0 %v9848_v25  ;;  %v9924_v2 = vld [vmem:[%s11159_s15 + $0xf50] ss:$8 sps:$4 sm:$0xff]   ;;  %v9929_v6 = vld [vmem:[%s11159_s15 + $0x764] ss:$8 sps:$4 sm:$0xff]  }
 0x2be   : > { %v9932_v25 = vld [vmem:[%s11159_s15 + $0xf64] ss:$8 sps:$4 sm:$0xff]  }
 0x2c0   : > { %7885 = vmatpush1.bf16.msra.mxu1 %v9843_v26  ;;  %8229 = vmatpush1.bf16.msra.mxu0 %v9846_v29  ;;  %v9927_v26 = vld [vmem:[%s11159_s15 + $0x760] ss:$8 sps:$4 sm:$0xff]  }
 0x2c1   : > { %7886 = vmatprep.subr.bf16.mxu1 %v9851_v32  ;;  %8230 = vmatprep.subr.bf16.mxu0 %v9854_v33  ;;  %v9930_v29 = vld [vmem:[%s11159_s15 + $0xf60] ss:$8 sps:$4 sm:$0xff]   ;;  %v9935_v32 = vld [vmem:[%s11159_s15 + $0x774] ss:$8 sps:$4 sm:$0xff]  }
 0x2c2   : > { %v9938_v33 = vld [vmem:[%s11159_s15 + $0xf74] ss:$8 sps:$4 sm:$0xff]  }
 0x2c4   : > { %7887 = vmatpush1.bf16.msra.mxu1 %v9849_v36  ;;  %8231 = vmatpush1.bf16.msra.mxu0 %v9852_v3  ;;  %v9933_v36 = vld [vmem:[%s11159_s15 + $0x770] ss:$8 sps:$4 sm:$0xff]  }
 0x2c5   : > { %7888 = vmatprep.subr.bf16.mxu1 %v9857_v5  ;;  %8232 = vmatprep.subr.bf16.mxu0 %v9860_v27  ;;  %v9936_v3 = vld [vmem:[%s11159_s15 + $0xf70] ss:$8 sps:$4 sm:$0xff]   ;;  %v9941_v5 = vld [vmem:[%s11159_s15 + $0x784] ss:$8 sps:$4 sm:$0xff]  }
 0x2c6   : > { %v9944_v27 = vld [vmem:[%s11159_s15 + $0xf84] ss:$8 sps:$4 sm:$0xff]  }
 0x2c8   : > { %7889 = vmatpush1.bf16.msra.mxu1 %v9855_v28  ;;  %8233 = vmatpush1.bf16.msra.mxu0 %v9858_v37  ;;  %v9939_v28 = vld [vmem:[%s11159_s15 + $0x780] ss:$8 sps:$4 sm:$0xff]  }
 0x2c9   : > { %7890 = vmatprep.subr.bf16.mxu1 %v9863_v40  ;;  %8234 = vmatprep.subr.bf16.mxu0 %v9866_v41  ;;  %v9942_v37 = vld [vmem:[%s11159_s15 + $0xf80] ss:$8 sps:$4 sm:$0xff]   ;;  %v9947_v40 = vld [vmem:[%s11159_s15 + $0x794] ss:$8 sps:$4 sm:$0xff]  }
 0x2ca   : > { %v9950_v41 = vld [vmem:[%s11159_s15 + $0xf94] ss:$8 sps:$4 sm:$0xff]  }
 0x2cc   : > { %7891 = vmatpush1.bf16.msra.mxu1 %v9861_v44  ;;  %8235 = vmatpush1.bf16.msra.mxu0 %v9864_v30  ;;  %v9945_v44 = vld [vmem:[%s11159_s15 + $0x790] ss:$8 sps:$4 sm:$0xff]  }
 0x2cd   : > { %7892 = vmatprep.subr.bf16.mxu1 %v9869_v31  ;;  %8236 = vmatprep.subr.bf16.mxu0 %v9872_v34  ;;  %v9948_v30 = vld [vmem:[%s11159_s15 + $0xf90] ss:$8 sps:$4 sm:$0xff]   ;;  %v9953_v31 = vld [vmem:[%s11159_s15 + $0x7a4] ss:$8 sps:$4 sm:$0xff]  }
 0x2ce   : > { %v9956_v34 = vld [vmem:[%s11159_s15 + $0xfa4] ss:$8 sps:$4 sm:$0xff]  }
 0x2d0   : > { %7893 = vmatpush1.bf16.msra.mxu1 %v9867_v48  ;;  %8237 = vmatpush1.bf16.msra.mxu0 %v9870_v49  ;;  %v9951_v48 = vld [vmem:[%s11159_s15 + $0x7a0] ss:$8 sps:$4 sm:$0xff]  }
 0x2d1   : > { %7894 = vmatprep.subr.bf16.mxu1 %v9875_v50  ;;  %8238 = vmatprep.subr.bf16.mxu0 %v9878_v51  ;;  %v9954_v49 = vld [vmem:[%s11159_s15 + $0xfa0] ss:$8 sps:$4 sm:$0xff]   ;;  %v9959_v50 = vld [vmem:[%s11159_s15 + $0x7b4] ss:$8 sps:$4 sm:$0xff]  }
 0x2d2   : > { %v9962_v51 = vld [vmem:[%s11159_s15 + $0xfb4] ss:$8 sps:$4 sm:$0xff]  }
 0x2d4   : > { %7895 = vmatpush1.bf16.msra.mxu1 %v9873_v52  ;;  %8239 = vmatpush1.bf16.msra.mxu0 %v9876_v53  ;;  %v9957_v52 = vld [vmem:[%s11159_s15 + $0x7b0] ss:$8 sps:$4 sm:$0xff]  }
 0x2d5   : > { %7896 = vmatprep.subr.bf16.mxu1 %v9881_v54  ;;  %8240 = vmatprep.subr.bf16.mxu0 %v9884_v38  ;;  %v9960_v53 = vld [vmem:[%s11159_s15 + $0xfb0] ss:$8 sps:$4 sm:$0xff]   ;;  %v9965_v54 = vld [vmem:[%s11159_s15 + $0x7c4] ss:$8 sps:$4 sm:$0xff]  }
 0x2d6   : > { %v9968_v38 = vld [vmem:[%s11159_s15 + $0xfc4] ss:$8 sps:$4 sm:$0xff]  }
 0x2d8   : > { %7897 = vmatpush1.bf16.msra.mxu1 %v9879_v42  ;;  %8241 = vmatpush1.bf16.msra.mxu0 %v9882_v43  ;;  %v9963_v42 = vld [vmem:[%s11159_s15 + $0x7c0] ss:$8 sps:$4 sm:$0xff]  }
 0x2d9   : > { %7898 = vmatprep.subr.bf16.mxu1 %v9887_v35  ;;  %8242 = vmatprep.subr.bf16.mxu0 %v9890_v45  ;;  %v9966_v43 = vld [vmem:[%s11159_s15 + $0xfc0] ss:$8 sps:$4 sm:$0xff]   ;;  %v9971_v35 = vld [vmem:[%s11159_s15 + $0x7d4] ss:$8 sps:$4 sm:$0xff]  }
 0x2da   : > { %v9974_v45 = vld [vmem:[%s11159_s15 + $0xfd4] ss:$8 sps:$4 sm:$0xff]  }
 0x2dc   : > { %7899 = vmatpush1.bf16.msra.mxu1 %v9885_v46  ;;  %8243 = vmatpush1.bf16.msra.mxu0 %v9888_v47  ;;  %v9969_v46 = vld [vmem:[%s11159_s15 + $0x7d0] ss:$8 sps:$4 sm:$0xff]  }
 0x2dd   : > { %7911 = vmatprep.subr.bf16.mxu1 %v9893_v58  ;;  %8255 = vmatprep.subr.bf16.mxu0 %v9896_v59  ;;  %v9972_v47 = vld [vmem:[%s11159_s15 + $0xfd0] ss:$8 sps:$4 sm:$0xff]   ;;  %v9977_v58 = vld [vmem:[%s11159_s15 + $0x7e4] ss:$8 sps:$4 sm:$0xff]  }
 0x2de   : > { %v9980_v59 = vld [vmem:[%s11159_s15 + $0xfe4] ss:$8 sps:$4 sm:$0xff]  }
 0x2df   : > { %7901 = vmatmul.mubr.bf16.vlgmr.msra.gmra.mrb[0].mxu1 %v8576_v61  ;;  %8245 = vmatmul.mubr.bf16.vlgmr.msra.gmra.mrb[0].mxu0 %v8592_v62  ;;  %v9975_v61 = vld [vmem:[%s11159_s15 + $0x7e0] ss:$8 sps:$4 sm:$0xff]  }
 0x2e0   : > { %7912 = vmatpush1.bf16.msra.mxu1 %v9891_v39  ;;  %8256 = vmatpush1.bf16.msra.mxu0 %v9894_v55  ;;  %v9978_v62 = vld [vmem:[%s11159_s15 + $0xfe0] ss:$8 sps:$4 sm:$0xff]   ;;  %v9983_v39 = vld [vmem:[%s11159_s15 + $0x7f4] ss:$8 sps:$4 sm:$0xff]  }
 0x2e1   : > { %7913 = vmatprep.subr.bf16.mxu1 %v9899_v56  ;;  %8257 = vmatprep.subr.bf16.mxu0 %v9902_v57  ;;  %v9986_v55 = vld [vmem:[%s11159_s15 + $0xff4] ss:$8 sps:$4 sm:$0xff]   ;;  %v9981_v56 = vld [vmem:[%s11159_s15 + $0x7f0] ss:$8 sps:$4 sm:$0xff]  }
 0x2e2   : > { %7943 = vmatprep.mubr.bf16.mxu1 %v8579_v8  ;;  %8287 = vmatprep.mubr.bf16.mxu0 %v8595_v9  ;;  %v9984_v57 = vld [vmem:[%s11159_s15 + $0xff0] ss:$8 sps:$4 sm:$0xff]   ;;  %v8578_v8 = vcombine.low %v11784_v60, %v11793_v63  ;;  %v8594_v9 = vcombine.low %v11798_v4, %v11803_v7  ;;  %s8563_s15 = sshll.u32 %s4310_s27, 4 }
 0x2e3   : > { %s4335_s20 = scalar_lea.vmem [#allocation3], %s8563_s15 }
 0x2e4   : > { %7914 = vmatpush1.bf16.msra.mxu1 %v9897_v10  ;;  %8258 = vmatpush1.bf16.msra.mxu0 %v9900_v11 }
 0x2e5   : > { %7915 = vmatprep.subr.bf16.mxu1 %v9905_v12  ;;  %8259 = vmatprep.subr.bf16.mxu0 %v9908_v13 }
 0x2e8   : > { %7916 = vmatpush1.bf16.msra.mxu1 %v9903_v14  ;;  %8260 = vmatpush1.bf16.msra.mxu0 %v9906_v15 }
 0x2e9   : > { %7917 = vmatprep.subr.bf16.mxu1 %v9911_v16  ;;  %8261 = vmatprep.subr.bf16.mxu0 %v9914_v17 }
 0x2ec   : > { %7918 = vmatpush1.bf16.msra.mxu1 %v9909_v18  ;;  %8262 = vmatpush1.bf16.msra.mxu0 %v9912_v19 }
 0x2ed   : > { %7919 = vmatprep.subr.bf16.mxu1 %v9917_v20  ;;  %8263 = vmatprep.subr.bf16.mxu0 %v9920_v21 }
 0x2f0   : > { %7920 = vmatpush1.bf16.msra.mxu1 %v9915_v22  ;;  %8264 = vmatpush1.bf16.msra.mxu0 %v9918_v23 }
 0x2f1   : > { %7921 = vmatprep.subr.bf16.mxu1 %v9923_v24  ;;  %8265 = vmatprep.subr.bf16.mxu0 %v9926_v0 }
 0x2f4   : > { %7922 = vmatpush1.bf16.msra.mxu1 %v9921_v1  ;;  %8266 = vmatpush1.bf16.msra.mxu0 %v9924_v2 }
 0x2f5   : > { %7923 = vmatprep.subr.bf16.mxu1 %v9929_v6  ;;  %8267 = vmatprep.subr.bf16.mxu0 %v9932_v25 }
 0x2f8   : > { %7924 = vmatpush1.bf16.msra.mxu1 %v9927_v26  ;;  %8268 = vmatpush1.bf16.msra.mxu0 %v9930_v29 }
 0x2f9   : > { %7925 = vmatprep.subr.bf16.mxu1 %v9935_v32  ;;  %8269 = vmatprep.subr.bf16.mxu0 %v9938_v33 }
 0x2fc   : > { %7926 = vmatpush1.bf16.msra.mxu1 %v9933_v36  ;;  %8270 = vmatpush1.bf16.msra.mxu0 %v9936_v3 }
 0x2fd   : > { %7927 = vmatprep.subr.bf16.mxu1 %v9941_v5  ;;  %8271 = vmatprep.subr.bf16.mxu0 %v9944_v27 }
 0x300   : > { %7928 = vmatpush1.bf16.msra.mxu1 %v9939_v28  ;;  %8272 = vmatpush1.bf16.msra.mxu0 %v9942_v37 }
 0x301   : > { %7929 = vmatprep.subr.bf16.mxu1 %v9947_v40  ;;  %8273 = vmatprep.subr.bf16.mxu0 %v9950_v41 }
 0x304   : > { %7930 = vmatpush1.bf16.msra.mxu1 %v9945_v44  ;;  %8274 = vmatpush1.bf16.msra.mxu0 %v9948_v30 }
 0x305   : > { %7931 = vmatprep.subr.bf16.mxu1 %v9953_v31  ;;  %8275 = vmatprep.subr.bf16.mxu0 %v9956_v34 }
 0x308   : > { %7932 = vmatpush1.bf16.msra.mxu1 %v9951_v48  ;;  %8276 = vmatpush1.bf16.msra.mxu0 %v9954_v49 }
 0x309   : > { %7933 = vmatprep.subr.bf16.mxu1 %v9959_v50  ;;  %8277 = vmatprep.subr.bf16.mxu0 %v9962_v51 }
 0x30c   : > { %7934 = vmatpush1.bf16.msra.mxu1 %v9957_v52  ;;  %8278 = vmatpush1.bf16.msra.mxu0 %v9960_v53 }
 0x30d   : > { %7935 = vmatprep.subr.bf16.mxu1 %v9965_v54  ;;  %8279 = vmatprep.subr.bf16.mxu0 %v9968_v38 }
 0x310   : > { %7936 = vmatpush1.bf16.msra.mxu1 %v9963_v42  ;;  %8280 = vmatpush1.bf16.msra.mxu0 %v9966_v43 }
 0x311   : > { %7937 = vmatprep.subr.bf16.mxu1 %v9971_v35  ;;  %8281 = vmatprep.subr.bf16.mxu0 %v9974_v45 }
 0x314   : > { %7938 = vmatpush1.bf16.msra.mxu1 %v9969_v46  ;;  %8282 = vmatpush1.bf16.msra.mxu0 %v9972_v47 }
 0x315   : > { %7939 = vmatprep.subr.bf16.mxu1 %v9977_v58  ;;  %8283 = vmatprep.subr.bf16.mxu0 %v9980_v59 }
 0x318   : > { %7940 = vmatpush1.bf16.msra.mxu1 %v9975_v61  ;;  %8284 = vmatpush1.bf16.msra.mxu0 %v9978_v62 }
 0x319   : > { %7941 = vmatprep.subr.bf16.mxu1 %v9983_v39  ;;  %8285 = vmatprep.subr.bf16.mxu0 %v9986_v55 }
 0x31c   : > { %7942 = vmatpush1.bf16.msra.mxu1 %v9981_v56  ;;  %8286 = vmatpush1.bf16.msra.mxu0 %v9984_v57 }
 0x31f   : > { %7944 = vmatmul.mubr.bf16.vlgmr.msra.gmra.mrb[0].mxu1 %v8578_v8  ;;  %8288 = vmatmul.mubr.bf16.vlgmr.msra.gmra.mrb[0].mxu0 %v8594_v9 }
 0x3f2   : > { %v7945_v10 = vpop.f32.mrb[0].mxu1  ;;  %v8289_v11 = vpop.f32.mrb[0].mxu0 }
 0x3f3   : > { %v11875_v12 = vadd.f32 %v8289_v11, %v7945_v10  ;;  %v7947_v13 = vpop.f32.mrb[1].mxu1  ;;  %v8291_v14 = vpop.f32.mrb[1].mxu0 }
 0x3f4   : > { %v11877_v15 = vadd.f32 %v8291_v14, %v7947_v13  ;;  %v7949_v16 = vpop.f32.mrb[2].mxu1  ;;  %v8293_v17 = vpop.f32.mrb[2].mxu0 }
 0x3f5   : > { %v8298_v18 = vrot.slane %v11875_v12, 4  ;;  %v8322_v60 = vmul.f32 %v11875_v12, %v11875_v12  ;;  %v11882_v63 = vadd.f32 %v8293_v17, %v7949_v16  ;;  %v7951_v4 = vpop.f32.mrb[3].mxu1  ;;  %v8295_v7 = vpop.f32.mrb[3].mxu0 }
 0x3f6   : > { %v8304_v19 = vrot.slane %v11877_v15, 4  ;;  %v8323_v20 = vmul.f32 %v11877_v15, %v11877_v15  ;;  %v11887_v21 = vadd.f32 %v8295_v7, %v7951_v4 }
 0x3f7   : > { %v8299_v22 = vadd.f32 %v11875_v12, %v8298_v18  ;;  %v8326_v23 = vrot.slane %v8322_v60, 4  ;;  %v8310_v24 = vrot.slane %v11882_v63, 4  ;;  %v8324_v0 = vmul.f32 %v11882_v63, %v11882_v63 }
 0x3f8   : > { %v8305_v1 = vadd.f32 %v11877_v15, %v8304_v19  ;;  %v8332_v2 = vrot.slane %v8323_v20, 4  ;;  %v8316_v6 = vrot.slane %v11887_v21, 4  ;;  %v8325_v25 = vmul.f32 %v11887_v21, %v11887_v21 }
 0x3f9   : > { %v8300_v26 = vrot.slane %v8299_v22, 2  ;;  %v8327_v29 = vadd.f32 %v8326_v23, %v8322_v60  ;;  %v8311_v32 = vadd.f32 %v11882_v63, %v8310_v24  ;;  %v8338_v33 = vrot.slane %v8324_v0, 4 }
 0x3fa   : > { %v8306_v36 = vrot.slane %v8305_v1, 2  ;;  %v8333_v3 = vadd.f32 %v8332_v2, %v8323_v20  ;;  %v8317_v5 = vadd.f32 %v11887_v21, %v8316_v6  ;;  %v8344_v27 = vrot.slane %v8325_v25, 4 }
 0x3fb   : > { %v8301_v28 = vadd.f32 %v8300_v26, %v8299_v22  ;;  %v8328_v37 = vrot.slane %v8327_v29, 2  ;;  %v8312_v40 = vrot.slane %v8311_v32, 2  ;;  %v8339_v41 = vadd.f32 %v8338_v33, %v8324_v0 }
 0x3fc   : > { %v8307_v44 = vadd.f32 %v8306_v36, %v8305_v1  ;;  %v8334_v30 = vrot.slane %v8333_v3, 2  ;;  %v8318_v31 = vrot.slane %v8317_v5, 2  ;;  %v8345_v34 = vadd.f32 %v8344_v27, %v8325_v25 }
 0x3fd   : > { %v8302_v48 = vrot.slane %v8301_v28, 1  ;;  %v8329_v49 = vadd.f32 %v8328_v37, %v8327_v29  ;;  %v8313_v50 = vadd.f32 %v8312_v40, %v8311_v32  ;;  %v8340_v51 = vrot.slane %v8339_v41, 2 }
 0x3fe   : > { %v8308_v52 = vrot.slane %v8307_v44, 1  ;;  %v8335_v53 = vadd.f32 %v8334_v30, %v8333_v3  ;;  %v8319_v54 = vadd.f32 %v8318_v31, %v8317_v5  ;;  %v8346_v38 = vrot.slane %v8345_v34, 2 }
 0x3ff   : > { %v8303_v42 = vadd.f32 %v8302_v48, %v8301_v28  ;;  %v8330_v43 = vrot.slane %v8329_v49, 1  ;;  %v8314_v35 = vrot.slane %v8313_v50, 1  ;;  %v8341_v45 = vadd.f32 %v8340_v51, %v8339_v41 }
 0x400   : > { %v8309_v46 = vadd.f32 %v8308_v52, %v8307_v44  ;;  %v8336_v47 = vrot.slane %v8335_v53, 1  ;;  %v8320_v58 = vrot.slane %v8319_v54, 1  ;;  %v8347_v59 = vadd.f32 %v8346_v38, %v8345_v34 }
 0x401   : > { %v8331_v61 = vadd.f32 %v8330_v43, %v8329_v49  ;;  %v8350_v62 = vmul.f32 0.25, %v8303_v42  ;;  %v8315_v39 = vadd.f32 %v8314_v35, %v8313_v50  ;;  %v8342_v55 = vrot.slane %v8341_v45, 1 }
 0x402   : > { %v8337_v56 = vadd.f32 %v8336_v47, %v8335_v53  ;;  %v8351_v57 = vmul.f32 0.25, %v8309_v46  ;;  %v8321_v8 = vadd.f32 %v8320_v58, %v8319_v54  ;;  %v8348_v9 = vrot.slane %v8347_v59, 1 }
 0x403   : > { %v8354_v10 = vmul.f32 0.25, %v8331_v61  ;;  %v8358_v11 = vmul.f32 %v8350_v62, %v8350_v62  ;;  %v8343_v13 = vadd.f32 %v8342_v55, %v8341_v45  ;;  %v8352_v17 = vmul.f32 0.25, %v8315_v39 }
 0x404   : > { %v8355_v14 = vmul.f32 0.25, %v8337_v56  ;;  %v8359_v16 = vmul.f32 %v8351_v57, %v8351_v57  ;;  %v8349_v4 = vadd.f32 %v8348_v9, %v8347_v59  ;;  %v8353_v7 = vmul.f32 0.25, %v8321_v8 }
 0x405   : > { %v8362_v18 = vsub.f32 %v8354_v10, %v8358_v11  ;;  %v8356_v60 = vmul.f32 0.25, %v8343_v13  ;;  %v8360_v20 = vmul.f32 %v8352_v17, %v8352_v17  ;;  %v8370_v36 = vsub.f32 %v11875_v12, %v8350_v62 }
 0x406   : > { %v8363_v19 = vsub.f32 %v8355_v14, %v8359_v16  ;;  %v8357_v23 = vmul.f32 0.25, %v8349_v4  ;;  %v8361_v24 = vmul.f32 %v8353_v7, %v8353_v7  ;;  %v8371_v5 = vsub.f32 %v11877_v15, %v8351_v57 }
 0x407   : > { %v8366_v22 = vmax.f32 %v8362_v18, 0.0  ;;  %v8364_v1 = vsub.f32 %v8356_v60, %v8360_v20  ;;  %v8372_v40 = vsub.f32 %v11882_v63, %v8352_v17  ;;  %v8373_v30 = vsub.f32 %v11887_v21, %v8353_v7 }
 0x408   : > { %v8367_v0 = vmax.f32 %v8363_v19, 0.0  ;;  %v8365_v6 = vsub.f32 %v8357_v23, %v8361_v24 }
 0x409   : > { %v8374_v2 = vadd.f32 1e-05, %v8366_v22  ;;  %v8368_v26 = vmax.f32 %v8364_v1, 0.0 }
 0x40a   : > { %v8375_v25 = vadd.f32 1e-05, %v8367_v0  ;;  %v8369_v29 = vmax.f32 %v8365_v6, 0.0 }
 0x40b   : > { %9987 = vrsqrt.f32 %v8374_v2  ;;  %v8376_v32 = vadd.f32 1e-05, %v8368_v26 }
 0x40c   : > { %9989 = vrsqrt.f32 %v8375_v25  ;;  %v8377_v33 = vadd.f32 1e-05, %v8369_v29 }
 0x40d   : > { %9991 = vrsqrt.f32 %v8376_v32 }
 0x40e   : > { %9993 = vrsqrt.f32 %v8377_v33 }
 0x415   : > { %v9988_v3 = vpop.eup %9987 }
 0x416   : > { %v9990_v27 = vpop.eup %9989  ;;  %v8382_v28 = vmul.f32 %v9988_v3, %v8370_v36 }
 0x417   : > { %v8383_v37 = vmul.f32 %v9990_v27, %v8371_v5  ;;  %v9992_v41 = vpop.eup %9991 }
 0x418   : > { %vm8386_vm0 = vcmp.gt.f32.partialorder %v8382_v28, 0.0  ;;  %v8390_v44 = vmul.f32 0.2, %v8382_v28  ;;  %v9994_v31 = vpop.eup %9993  ;;  %v8384_v48 = vmul.f32 %v9992_v41, %v8372_v40 }
 0x419   : > { %vm8387_vm1 = vcmp.gt.f32.partialorder %v8383_v37, 0.0  ;;  %v8391_v34 = vmul.f32 0.2, %v8383_v37  ;;  %v8385_v49 = vmul.f32 %v9994_v31, %v8373_v30 }
 0x41a   : > { %v8394_v12 = vsel %vm8386_vm0, %v8382_v28, %v8390_v44  ;;  %vm8388_vm2 = vcmp.gt.f32.partialorder %v8384_v48, 0.0  ;;  %v8392_v15 = vmul.f32 0.2, %v8384_v48  ;;  %8418 = sbr.rel (!%p10085_p6) target bundleno = 1065 (0x429), region = 84 }
 0x41b   : > { %v8395_v50 = vsel %vm8387_vm1, %v8383_v37, %v8391_v34  ;;  %vm8389_vm3 = vcmp.gt.f32.partialorder %v8385_v49, 0.0  ;;  %v8393_v52 = vmul.f32 0.2, %v8385_v49 }
 0x41c   : > { %v9116_v51 = vpack.c.bf16 %v8395_v50, %v8394_v12  ;;  %v8396_v63 = vsel %vm8388_vm2, %v8384_v48, %v8392_v15 }
 0x41d   : > { %v8397_v53 = vsel %vm8389_vm3, %v8385_v49, %v8393_v52 }
 0x41e   : > { %8410 = vst [vmem:[%s4335_s20] sm:$0xff] %v9116_v51  ;;  %v9117_v54 = vpack.c.bf16 %v8397_v53, %v8396_v63 }
 0x420   : > { %8411 = vst [vmem:[%s4335_s20 + $0x8] sm:$0xff] %v9117_v54 }
 0x425   : > { %v8454_v21 = vld [vmem:[%s4335_s20] sm:$0xff] }
 0x426   : > { %8455 = vst [vmem:[%s8424_s22] sm:$0xff] %v8454_v21 }
 0x427   : > { %v8456_v38 = vld [vmem:[%s4335_s20 + $0x8] sm:$0xff] }
 0x428   : > { %8457 = vst [vmem:[%s8424_s22 + $0x10] sm:$0xff] %v8456_v38 }
 0x429 PF: > { %s12_s13 = sadd.s32 1, %s10033_s13   ;;  %s11930_s9 = smov %s10021_s10 }
 0x42a   : > { %p9_p11 = scmp.ge.s32.totalorder %s12_s13, 4   ;;  %s11931_s10 = smov %s10090_s19 }
 0x42b   : > { %s11932_s11 = smov %s10029_s12  ;;  %s11933_s12 = smov %s11935_s14 }
 0x42c   :  { %11 = sbr.rel (!%p9_p11) target bundleno = 3 (0x3), region = 162 }

// kernel: discriminator_forward.9
= control target key start
LH: loop header
LB: loop body
LE: loop exit
PB: predicated region body
PF: predicated region fallthrough
CT: control target
= control target key end

     0   :  { %v7608_v22 = vmov 1966171168   ;;  %v1062_v24 = vlaneseq  ;;  %s9309_s1 = inlined_call_operand.vmem [shape: bf16[8192,128], index: 1, kind: input, shape index: {}]   ;;  %s9310_s0 = inlined_call_operand.vmem [shape: bf16[2,8192], index: 0, kind: input, shape index: {}]   ;;  %s9311_s2 = inlined_call_operand.<no memory space> [shape: f32[1], index: 2, kind: input, shape index: {}]   ;;  %s9312_s3 = inlined_call_operand.vmem [shape: f32[2,128], index: 3, kind: output, shape index: {}]  }
   0x1   :  { %v7088_v0 = vld [vmem:[%s9309_s1 + $0x40] sm:$0xff]   ;;  %v7092_v4 = vld [vmem:[%s9309_s1 + $0x48] sm:$0xff]   ;;  %v7096_v8 = vld [vmem:[%s9309_s1 + $0x50] sm:$0xff]   ;;  %v1060_v23 = vunpack.c.l.s4 %v7608_v22 }
   0x2   :  { %v7089_v1 = vld [vmem:[%s9309_s1 + $0xc0] sm:$0xff]   ;;  %6383 = vmatprep.subr.bf16.mxu0 %v7088_v0  ;;  %v7093_v5 = vld [vmem:[%s9309_s1 + $0xc8] sm:$0xff]   ;;  %v7097_v9 = vld [vmem:[%s9309_s1 + $0xd0] sm:$0xff]   ;;  %v1063_v30 = vshrl.u32 %v1062_v24, 7 }
   0x3   :  { %v7090_v2 = vld [vmem:[%s9309_s1] sm:$0xff]   ;;  %6405 = vmatprep.subr.bf16.mxu1 %v7089_v1  ;;  %v7094_v6 = vld [vmem:[%s9309_s1 + $0x8] sm:$0xff]   ;;  %v7098_v10 = vld [vmem:[%s9309_s1 + $0x10] sm:$0xff]   ;;  %v1061_v29 = vunpack.c.0.s8 %v1060_v23 }
   0x4   :  { %v7091_v3 = vld [vmem:[%s9309_s1 + $0x80] sm:$0xff]   ;;  %6384 = vmatpush3.bf16.msra.mxu0 %v7090_v2  ;;  %v7095_v7 = vld [vmem:[%s9309_s1 + $0x88] sm:$0xff]   ;;  %v7099_v11 = vld [vmem:[%s9309_s1 + $0x90] sm:$0xff]  }
   0x5   :  { %6406 = vmatpush3.bf16.msra.mxu1 %v7091_v3  ;;  %6385 = vmatprep.subr.bf16.mxu0 %v7092_v4  ;;  %v7100_v12 = vld [vmem:[%s9309_s1 + $0x58] sm:$0xff]   ;;  %v7104_v16 = vld [vmem:[%s9309_s1 + $0x60] sm:$0xff]   ;;  %v7108_v20 = vld [vmem:[%s9309_s1 + $0x68] sm:$0xff]   ;;  %v7719_v35 = vsub.s32 %v1061_v29, %v1063_v30 }
   0x6   :  { %6407 = vmatprep.subr.bf16.mxu1 %v7093_v5  ;;  %v7101_v13 = vld [vmem:[%s9309_s1 + $0xd8] sm:$0xff]   ;;  %v7105_v17 = vld [vmem:[%s9309_s1 + $0xe0] sm:$0xff]   ;;  %v7109_v21 = vld [vmem:[%s9309_s1 + $0xe8] sm:$0xff]  }
   0x7   :  { %v7102_v14 = vld [vmem:[%s9309_s1 + $0x18] sm:$0xff]   ;;  %v7106_v18 = vld [vmem:[%s9309_s1 + $0x20] sm:$0xff]   ;;  %v7110_v25 = vld [vmem:[%s9309_s1 + $0x28] sm:$0xff]  }
   0x8   :  { %6386 = vmatpush3.bf16.msra.mxu0 %v7094_v6  ;;  %v7103_v15 = vld [vmem:[%s9309_s1 + $0x98] sm:$0xff]   ;;  %v7107_v19 = vld [vmem:[%s9309_s1 + $0xa0] sm:$0xff]   ;;  %v7111_v26 = vld [vmem:[%s9309_s1 + $0xa8] sm:$0xff]  }
   0x9   :  { %6408 = vmatpush3.bf16.msra.mxu1 %v7095_v7  ;;  %6387 = vmatprep.subr.bf16.mxu0 %v7096_v8  ;;  %v7112_v27 = vld [vmem:[%s9309_s1 + $0x70] sm:$0xff]   ;;  %v7116_v33 = vld [vmem:[%s9309_s1 + $0x78] sm:$0xff]   ;;  %v16_v38 = vld [vmem:[%s9310_s0] sm:$0xff] }
   0xa   :  { %6409 = vmatprep.subr.bf16.mxu1 %v7097_v9  ;;  %v7113_v28 = vld [vmem:[%s9309_s1 + $0xf0] sm:$0xff]   ;;  %v7117_v34 = vld [vmem:[%s9309_s1 + $0xf8] sm:$0xff]   ;;  %v1058_v39 = vcombine.high %v16_v38, %v16_v38  ;;  %v1065_v40 = vrot.slane %v16_v38, %v7719_v35  ;;  %v7121_v41 = vld [vmem:[%s9309_s1 + $0x140] sm:$0xff]  }
   0xb   :  { %v7114_v31 = vld [vmem:[%s9309_s1 + $0x30] sm:$0xff]   ;;  %v7118_v36 = vld [vmem:[%s9309_s1 + $0x38] sm:$0xff]   ;;  %v7122_v42 = vld [vmem:[%s9309_s1 + $0x1c0] sm:$0xff]  }
   0xc   :  { %6388 = vmatpush3.bf16.msra.mxu0 %v7098_v10  ;;  %v7115_v32 = vld [vmem:[%s9309_s1 + $0xb0] sm:$0xff]   ;;  %v7119_v37 = vld [vmem:[%s9309_s1 + $0xb8] sm:$0xff]   ;;  %v1073_v43 = vcombine.high %v1065_v40, %v1065_v40  ;;  %v1081_v44 = vrot.slane %v1065_v40, %v7719_v35  ;;  %v7739_v45 = vrot.slane %v1058_v39, %v7719_v35  ;;  %v7123_v46 = vld [vmem:[%s9309_s1 + $0x100] sm:$0xff]  }
   0xd   :  { %6410 = vmatpush3.bf16.msra.mxu1 %v7099_v11  ;;  %6389 = vmatprep.subr.bf16.mxu0 %v7100_v12  ;;  %v7124_v48 = vld [vmem:[%s9309_s1 + $0x180] sm:$0xff]   ;;  %v7125_v51 = vld [vmem:[%s9309_s1 + $0x148] sm:$0xff]   ;;  %v7129_v58 = vld [vmem:[%s9309_s1 + $0x150] sm:$0xff]  }
   0xe   :  { %6411 = vmatprep.subr.bf16.mxu1 %v7101_v13  ;;  %v1095_v47 = vrot.slane %v1073_v43, %v7719_v35  ;;  %v1074_v49 = vcombine.high %v7739_v45, %v7739_v45  ;;  %v1103_v50 = vcombine.high %v1081_v44, %v1081_v44  ;;  %v7126_v53 = vld [vmem:[%s9309_s1 + $0x1c8] sm:$0xff]   ;;  %v7130_v59 = vld [vmem:[%s9309_s1 + $0x1d0] sm:$0xff]   ;;  %v7133_v62 = vld [vmem:[%s9309_s1 + $0x158] sm:$0xff]  }
   0xf   :  { %v7127_v55 = vld [vmem:[%s9309_s1 + $0x108] sm:$0xff]   ;;  %v7131_v60 = vld [vmem:[%s9309_s1 + $0x110] sm:$0xff]   ;;  %v7134_v63 = vld [vmem:[%s9309_s1 + $0x1d8] sm:$0xff]  }
  0x10   :  { %6390 = vmatpush3.bf16.msra.mxu0 %v7102_v14  ;;  %4618 = vmatprep.mubr.bf16.mxu0 %v1095_v47  ;;  %v1105_v52 = vcombine.high %v1095_v47, %v1095_v47  ;;  %v1102_v54 = vrot.slane %v1074_v49, %v7719_v35  ;;  %v7128_v56 = vld [vmem:[%s9309_s1 + $0x188] sm:$0xff]   ;;  %v7132_v61 = vld [vmem:[%s9309_s1 + $0x190] sm:$0xff]   ;;  %v7135_v0 = vld [vmem:[%s9309_s1 + $0x118] sm:$0xff]  }
  0x11   :  { %6412 = vmatpush3.bf16.msra.mxu1 %v7103_v15  ;;  %6391 = vmatprep.subr.bf16.mxu0 %v7104_v16  ;;  %v7136_v1 = vld [vmem:[%s9309_s1 + $0x198] sm:$0xff]   ;;  %v7137_v2 = vld [vmem:[%s9309_s1 + $0x160] sm:$0xff]   ;;  %v7141_v6 = vld [vmem:[%s9309_s1 + $0x168] sm:$0xff]  }
  0x12   :  { %6413 = vmatprep.subr.bf16.mxu1 %v7105_v17  ;;  %4658 = vmatprep.mubr.bf16.mxu1 %v1105_v52  ;;  %v1106_v57 = vcombine.high %v1102_v54, %v1102_v54  ;;  %v7138_v3 = vld [vmem:[%s9309_s1 + $0x1e0] sm:$0xff]   ;;  %v7142_v7 = vld [vmem:[%s9309_s1 + $0x1e8] sm:$0xff]   ;;  %v7145_v10 = vld [vmem:[%s9309_s1 + $0x170] sm:$0xff]  }
  0x13   :  { %v7139_v4 = vld [vmem:[%s9309_s1 + $0x120] sm:$0xff]   ;;  %v7143_v8 = vld [vmem:[%s9309_s1 + $0x128] sm:$0xff]   ;;  %v7146_v11 = vld [vmem:[%s9309_s1 + $0x1f0] sm:$0xff]  }
  0x14   :  { %6392 = vmatpush3.bf16.msra.mxu0 %v7106_v18  ;;  %v7140_v5 = vld [vmem:[%s9309_s1 + $0x1a0] sm:$0xff]   ;;  %v7144_v9 = vld [vmem:[%s9309_s1 + $0x1a8] sm:$0xff]   ;;  %v7147_v12 = vld [vmem:[%s9309_s1 + $0x130] sm:$0xff]   ;;  %v1088_v18 = vrot.slane %v7739_v45, %v7719_v35 }
  0x15   :  { %6414 = vmatpush3.bf16.msra.mxu1 %v7107_v19  ;;  %6393 = vmatprep.subr.bf16.mxu0 %v7108_v20  ;;  %v7148_v13 = vld [vmem:[%s9309_s1 + $0x1b0] sm:$0xff]   ;;  %v7149_v14 = vld [vmem:[%s9309_s1 + $0x178] sm:$0xff]   ;;  %v7153_v19 = vld [vmem:[%s9309_s1 + $0x240] sm:$0xff]  }
  0x16   :  { %6415 = vmatprep.subr.bf16.mxu1 %v7109_v21  ;;  %v7150_v15 = vld [vmem:[%s9309_s1 + $0x1f8] sm:$0xff]   ;;  %v7154_v20 = vld [vmem:[%s9309_s1 + $0x2c0] sm:$0xff]   ;;  %v1104_v23 = vcombine.high %v1088_v18, %v1088_v18  ;;  %v7157_v24 = vld [vmem:[%s9309_s1 + $0x248] sm:$0xff]  }
  0x17   :  { %v7151_v16 = vld [vmem:[%s9309_s1 + $0x138] sm:$0xff]   ;;  %v7155_v21 = vld [vmem:[%s9309_s1 + $0x200] sm:$0xff]   ;;  %v7162_v29 = vld [vmem:[%s9309_s1 + $0x2d0] sm:$0xff]  }
  0x18   :  { %6394 = vmatpush3.bf16.msra.mxu0 %v7110_v25  ;;  %v7152_v17 = vld [vmem:[%s9309_s1 + $0x1b8] sm:$0xff]   ;;  %v7156_v22 = vld [vmem:[%s9309_s1 + $0x280] sm:$0xff]   ;;  %v7158_v25 = vld [vmem:[%s9309_s1 + $0x2c8] sm:$0xff]  }
  0x19   :  { %6416 = vmatpush3.bf16.msra.mxu1 %v7111_v26  ;;  %6395 = vmatprep.subr.bf16.mxu0 %v7112_v27  ;;  %v7159_v26 = vld [vmem:[%s9309_s1 + $0x208] sm:$0xff]   ;;  %v7163_v30 = vld [vmem:[%s9309_s1 + $0x210] sm:$0xff]   ;;  %v7170_v38 = vld [vmem:[%s9309_s1 + $0x2e0] sm:$0xff]  }
  0x1a   :  { %6417 = vmatprep.subr.bf16.mxu1 %v7113_v28  ;;  %v7160_v27 = vld [vmem:[%s9309_s1 + $0x288] sm:$0xff]   ;;  %v7161_v28 = vld [vmem:[%s9309_s1 + $0x250] sm:$0xff]   ;;  %v7171_v39 = vld [vmem:[%s9309_s1 + $0x220] sm:$0xff]  }
  0x1b   :  { %v7172_v40 = vld [vmem:[%s9309_s1 + $0x2a0] sm:$0xff]   ;;  %v7175_v43 = vld [vmem:[%s9309_s1 + $0x228] sm:$0xff]   ;;  %v7177_v45 = vld [vmem:[%s9309_s1 + $0x270] sm:$0xff]  }
  0x1c   :  { %6396 = vmatpush3.bf16.msra.mxu0 %v7114_v31  ;;  %v7164_v31 = vld [vmem:[%s9309_s1 + $0x290] sm:$0xff]   ;;  %v7181_v49 = vld [vmem:[%s9309_s1 + $0x278] sm:$0xff]   ;;  %v17_v52 = vld [vmem:[%s9310_s0 + $0x8] sm:$0xff] }
  0x1d   :  { %6418 = vmatpush3.bf16.msra.mxu1 %v7115_v32  ;;  %6397 = vmatprep.subr.bf16.mxu0 %v7116_v33  ;;  %v7165_v32 = vld [vmem:[%s9309_s1 + $0x258] sm:$0xff]   ;;  %v7179_v47 = vld [vmem:[%s9309_s1 + $0x230] sm:$0xff]  }
  0x1e   :  { %6419 = vmatprep.subr.bf16.mxu1 %v7117_v34  ;;  %v7166_v33 = vld [vmem:[%s9309_s1 + $0x2d8] sm:$0xff]  }
  0x1f   :  { %v7167_v34 = vld [vmem:[%s9309_s1 + $0x218] sm:$0xff]  }
  0x20   :  { %6398 = vmatpush3.bf16.msra.mxu0 %v7118_v36  ;;  %v7168_v36 = vld [vmem:[%s9309_s1 + $0x298] sm:$0xff]  }
  0x21   :  { %6420 = vmatpush3.bf16.msra.mxu1 %v7119_v37  ;;  %6427 = vmatprep.subr.bf16.mxu0 %v7121_v41  ;;  %v7169_v37 = vld [vmem:[%s9309_s1 + $0x260] sm:$0xff]   ;;  %v7173_v41 = vld [vmem:[%s9309_s1 + $0x268] sm:$0xff]  }
  0x22   :  { %6449 = vmatprep.subr.bf16.mxu1 %v7122_v42  ;;  %v7174_v42 = vld [vmem:[%s9309_s1 + $0x2e8] sm:$0xff]  }
  0x23   :  { %4619 = vmatmul.mubr.bf16.vlgmr.msra.gmra.mrb[0].mxu0 %v1081_v44  ;;  %v7176_v44 = vld [vmem:[%s9309_s1 + $0x2a8] sm:$0xff]  }
  0x24   :  { %6428 = vmatpush3.bf16.msra.mxu0 %v7123_v46  ;;  %4659 = vmatmul.mubr.bf16.vlgmr.msra.gmra.mrb[0].mxu1 %v1103_v50  ;;  %v7178_v46 = vld [vmem:[%s9309_s1 + $0x2f0] sm:$0xff]   ;;  %v7182_v50 = vld [vmem:[%s9309_s1 + $0x2f8] sm:$0xff]  }
  0x25   :  { %6429 = vmatprep.subr.bf16.mxu0 %v7125_v51  ;;  %6450 = vmatpush3.bf16.msra.mxu1 %v7124_v48  ;;  %v7180_v48 = vld [vmem:[%s9309_s1 + $0x2b0] sm:$0xff]   ;;  %v7183_v51 = vld [vmem:[%s9309_s1 + $0x238] sm:$0xff]  }
  0x26   :  { %4698 = vmatprep.mubr.bf16.mxu0 %v1102_v54  ;;  %6451 = vmatprep.subr.bf16.mxu1 %v7126_v53  ;;  %v7184_v53 = vld [vmem:[%s9309_s1 + $0x2b8] sm:$0xff]   ;;  %v1114_v54 = vrot.slane %v17_v52, %v7719_v35 }
  0x27   :  { %4738 = vmatprep.mubr.bf16.mxu1 %v1106_v57 }
  0x28   :  { %6430 = vmatpush3.bf16.msra.mxu0 %v7127_v55  ;;  %v1107_v55 = vcombine.high %v17_v52, %v17_v52  ;;  %v1122_v57 = vcombine.high %v1114_v54, %v1114_v54  ;;  %v7234_v52 = vld [vmem:[%s9309_s1 + $0x460] sm:$0xff]  }
  0x29   :  { %6431 = vmatprep.subr.bf16.mxu0 %v7129_v58  ;;  %6452 = vmatpush3.bf16.msra.mxu1 %v7128_v56  ;;  %v7185_v56 = vld [vmem:[%s9309_s1 + $0x340] sm:$0xff]   ;;  %v1130_v58 = vrot.slane %v1114_v54, %v7719_v35 }
  0x2a   :  { %6453 = vmatprep.subr.bf16.mxu1 %v7130_v59  ;;  %v7186_v59 = vld [vmem:[%s9309_s1 + $0x3c0] sm:$0xff]  }
  0x2b   :  { %v7236_v54 = vld [vmem:[%s9309_s1 + $0x420] sm:$0xff]  }
  0x2c   :  { %6432 = vmatpush3.bf16.msra.mxu0 %v7131_v60  ;;  %v7945_v60 = vrot.slane %v1107_v55, %v7719_v35  ;;  %v7237_v55 = vld [vmem:[%s9309_s1 + $0x4a0] sm:$0xff]  }
  0x2d   :  { %6433 = vmatprep.subr.bf16.mxu0 %v7133_v62  ;;  %6454 = vmatpush3.bf16.msra.mxu1 %v7132_v61  ;;  %v7187_v61 = vld [vmem:[%s9309_s1 + $0x300] sm:$0xff]   ;;  %v1144_v62 = vrot.slane %v1122_v57, %v7719_v35  ;;  %v7239_v57 = vld [vmem:[%s9309_s1 + $0x4e8] sm:$0xff]  }
  0x2e   :  { %6455 = vmatprep.subr.bf16.mxu1 %v7134_v63  ;;  %v7188_v63 = vld [vmem:[%s9309_s1 + $0x380] sm:$0xff]  }
  0x30   :  { %6434 = vmatpush3.bf16.msra.mxu0 %v7135_v0  ;;  %v1123_v0 = vcombine.high %v7945_v60, %v7945_v60 }
  0x31   :  { %6435 = vmatprep.subr.bf16.mxu0 %v7137_v2  ;;  %6456 = vmatpush3.bf16.msra.mxu1 %v7136_v1  ;;  %v1152_v1 = vcombine.high %v1130_v58, %v1130_v58  ;;  %v7189_v2 = vld [vmem:[%s9309_s1 + $0x348] sm:$0xff]  }
  0x32   :  { %6457 = vmatprep.subr.bf16.mxu1 %v7138_v3  ;;  %v1154_v3 = vcombine.high %v1144_v62, %v1144_v62 }
  0x34   :  { %6436 = vmatpush3.bf16.msra.mxu0 %v7139_v4  ;;  %v7190_v4 = vld [vmem:[%s9309_s1 + $0x3c8] sm:$0xff]  }
  0x35   :  { %6437 = vmatprep.subr.bf16.mxu0 %v7141_v6  ;;  %6458 = vmatpush3.bf16.msra.mxu1 %v7140_v5  ;;  %v1151_v5 = vrot.slane %v1123_v0, %v7719_v35  ;;  %v7191_v6 = vld [vmem:[%s9309_s1 + $0x308] sm:$0xff]   ;;  %v7246_v0 = vld [vmem:[%s9309_s1 + $0x478] sm:$0xff]  }
  0x36   :  { %6459 = vmatprep.subr.bf16.mxu1 %v7142_v7  ;;  %v7192_v7 = vld [vmem:[%s9309_s1 + $0x388] sm:$0xff]  }
  0x38   :  { %6438 = vmatpush3.bf16.msra.mxu0 %v7143_v8  ;;  %v1155_v8 = vcombine.high %v1151_v5, %v1151_v5 }
  0x39   :  { %6439 = vmatprep.subr.bf16.mxu0 %v7145_v10  ;;  %6460 = vmatpush3.bf16.msra.mxu1 %v7144_v9  ;;  %v7193_v9 = vld [vmem:[%s9309_s1 + $0x350] sm:$0xff]  }
  0x3a   :  { %6461 = vmatprep.subr.bf16.mxu1 %v7146_v11  ;;  %v7194_v10 = vld [vmem:[%s9309_s1 + $0x3d0] sm:$0xff]  }
  0x3b   :  { %v7195_v11 = vld [vmem:[%s9309_s1 + $0x310] sm:$0xff]  }
  0x3c   :  { %6440 = vmatpush3.bf16.msra.mxu0 %v7147_v12  ;;  %v7196_v12 = vld [vmem:[%s9309_s1 + $0x390] sm:$0xff]  }
  0x3d   :  { %6441 = vmatprep.subr.bf16.mxu0 %v7149_v14  ;;  %6462 = vmatpush3.bf16.msra.mxu1 %v7148_v13  ;;  %v7197_v13 = vld [vmem:[%s9309_s1 + $0x358] sm:$0xff]  }
  0x3e   :  { %6463 = vmatprep.subr.bf16.mxu1 %v7150_v15  ;;  %v7198_v14 = vld [vmem:[%s9309_s1 + $0x3d8] sm:$0xff]  }
  0x3f   :  { %v7199_v15 = vld [vmem:[%s9309_s1 + $0x318] sm:$0xff]  }
  0x40   :  { %6442 = vmatpush3.bf16.msra.mxu0 %v7151_v16  ;;  %v7200_v16 = vld [vmem:[%s9309_s1 + $0x398] sm:$0xff]  }
  0x41   :  { %6471 = vmatprep.subr.bf16.mxu0 %v7153_v19  ;;  %6464 = vmatpush3.bf16.msra.mxu1 %v7152_v17  ;;  %v7201_v17 = vld [vmem:[%s9309_s1 + $0x360] sm:$0xff]  }
  0x42   :  { %6493 = vmatprep.subr.bf16.mxu1 %v7154_v20  ;;  %v7203_v19 = vld [vmem:[%s9309_s1 + $0x320] sm:$0xff]  }
  0x43   :  { %4699 = vmatmul.mubr.bf16.vlgmr.msra.gmra.mrb[4].mxu0 %v1088_v18  ;;  %v7202_v18 = vld [vmem:[%s9309_s1 + $0x3e0] sm:$0xff]  }
  0x44   :  { %6472 = vmatpush3.bf16.msra.mxu0 %v7155_v21  ;;  %4739 = vmatmul.mubr.bf16.vlgmr.msra.gmra.mrb[4].mxu1 %v1104_v23  ;;  %v7204_v20 = vld [vmem:[%s9309_s1 + $0x3a0] sm:$0xff]   ;;  %v7205_v21 = vld [vmem:[%s9309_s1 + $0x368] sm:$0xff]  }
  0x45   :  { %6473 = vmatprep.subr.bf16.mxu0 %v7157_v24  ;;  %6494 = vmatpush3.bf16.msra.mxu1 %v7156_v22  ;;  %v7206_v22 = vld [vmem:[%s9309_s1 + $0x3e8] sm:$0xff]  }
  0x46   :  { %6495 = vmatprep.subr.bf16.mxu1 %v7158_v25  ;;  %4778 = vmatprep.mubr.bf16.mxu0 %v1144_v62  ;;  %v7207_v23 = vld [vmem:[%s9309_s1 + $0x328] sm:$0xff]   ;;  %v7209_v25 = vld [vmem:[%s9309_s1 + $0x370] sm:$0xff]  }
  0x47   :  { %4818 = vmatprep.mubr.bf16.mxu1 %v1154_v3  ;;  %v7208_v24 = vld [vmem:[%s9309_s1 + $0x3a8] sm:$0xff]   ;;  %v7244_v62 = vld [vmem:[%s9309_s1 + $0x430] sm:$0xff]  }
  0x48   :  { %6474 = vmatpush3.bf16.msra.mxu0 %v7159_v26  ;;  %v7210_v26 = vld [vmem:[%s9309_s1 + $0x3f0] sm:$0xff]  }
  0x49   :  { %6475 = vmatprep.subr.bf16.mxu0 %v7161_v28  ;;  %6496 = vmatpush3.bf16.msra.mxu1 %v7160_v27  ;;  %v7211_v27 = vld [vmem:[%s9309_s1 + $0x330] sm:$0xff]  }
  0x4a   :  { %6497 = vmatprep.subr.bf16.mxu1 %v7162_v29  ;;  %v7212_v28 = vld [vmem:[%s9309_s1 + $0x3b0] sm:$0xff]   ;;  %v7213_v29 = vld [vmem:[%s9309_s1 + $0x378] sm:$0xff]  }
  0x4b   :  { %v18_v3 = vld [vmem:[%s9310_s0 + $0x10] sm:$0xff] }
  0x4c   :  { %6476 = vmatpush3.bf16.msra.mxu0 %v7163_v30  ;;  %v7214_v30 = vld [vmem:[%s9309_s1 + $0x3f8] sm:$0xff]  }
  0x4d   :  { %6477 = vmatprep.subr.bf16.mxu0 %v7165_v32  ;;  %6498 = vmatpush3.bf16.msra.mxu1 %v7164_v31  ;;  %v7215_v31 = vld [vmem:[%s9309_s1 + $0x338] sm:$0xff]  }
  0x4e   :  { %6499 = vmatprep.subr.bf16.mxu1 %v7166_v33  ;;  %v7216_v32 = vld [vmem:[%s9309_s1 + $0x3b8] sm:$0xff]   ;;  %v1137_v33 = vrot.slane %v7945_v60, %v7719_v35  ;;  %v7242_v60 = vld [vmem:[%s9309_s1 + $0x470] sm:$0xff]  }
  0x50   :  { %6478 = vmatpush3.bf16.msra.mxu0 %v7167_v34  ;;  %v7218_v34 = vld [vmem:[%s9309_s1 + $0x440] sm:$0xff]  }
  0x51   :  { %6479 = vmatprep.subr.bf16.mxu0 %v7169_v37  ;;  %6500 = vmatpush3.bf16.msra.mxu1 %v7168_v36  ;;  %v7219_v36 = vld [vmem:[%s9309_s1 + $0x4c0] sm:$0xff]  }
  0x52   :  { %6501 = vmatprep.subr.bf16.mxu1 %v7170_v38  ;;  %v7220_v37 = vld [vmem:[%s9309_s1 + $0x400] sm:$0xff]  }
  0x53   :  { %v7221_v38 = vld [vmem:[%s9309_s1 + $0x480] sm:$0xff]  }
  0x54   :  { %6480 = vmatpush3.bf16.msra.mxu0 %v7171_v39  ;;  %v1153_v39 = vcombine.high %v1137_v33, %v1137_v33 }
  0x55   :  { %6481 = vmatprep.subr.bf16.mxu0 %v7173_v41  ;;  %6502 = vmatpush3.bf16.msra.mxu1 %v7172_v40  ;;  %v7222_v40 = vld [vmem:[%s9309_s1 + $0x448] sm:$0xff]  }
  0x56   :  { %6503 = vmatprep.subr.bf16.mxu1 %v7174_v42  ;;  %v7223_v41 = vld [vmem:[%s9309_s1 + $0x4c8] sm:$0xff]  }
  0x57   :  { %v7224_v42 = vld [vmem:[%s9309_s1 + $0x408] sm:$0xff]  }
  0x58   :  { %6482 = vmatpush3.bf16.msra.mxu0 %v7175_v43  ;;  %v7225_v43 = vld [vmem:[%s9309_s1 + $0x488] sm:$0xff]  }
  0x59   :  { %6483 = vmatprep.subr.bf16.mxu0 %v7177_v45  ;;  %6504 = vmatpush3.bf16.msra.mxu1 %v7176_v44  ;;  %v7226_v44 = vld [vmem:[%s9309_s1 + $0x450] sm:$0xff]  }
  0x5a   :  { %6505 = vmatprep.subr.bf16.mxu1 %v7178_v46  ;;  %v7227_v45 = vld [vmem:[%s9309_s1 + $0x4d0] sm:$0xff]  }
  0x5b   :  { %v7228_v46 = vld [vmem:[%s9309_s1 + $0x410] sm:$0xff]  }
  0x5c   :  { %6484 = vmatpush3.bf16.msra.mxu0 %v7179_v47  ;;  %v7229_v47 = vld [vmem:[%s9309_s1 + $0x490] sm:$0xff]  }
  0x5d   :  { %6485 = vmatprep.subr.bf16.mxu0 %v7181_v49  ;;  %6506 = vmatpush3.bf16.msra.mxu1 %v7180_v48  ;;  %v7230_v48 = vld [vmem:[%s9309_s1 + $0x458] sm:$0xff]  }
  0x5e   :  { %6507 = vmatprep.subr.bf16.mxu1 %v7182_v50  ;;  %v7231_v49 = vld [vmem:[%s9309_s1 + $0x4d8] sm:$0xff]  }
  0x5f   :  { %v7232_v50 = vld [vmem:[%s9309_s1 + $0x418] sm:$0xff]  }
  0x60   :  { %6486 = vmatpush3.bf16.msra.mxu0 %v7183_v51  ;;  %v7233_v51 = vld [vmem:[%s9309_s1 + $0x498] sm:$0xff]  }
  0x61   :  { %6515 = vmatprep.subr.bf16.mxu0 %v7185_v56  ;;  %6508 = vmatpush3.bf16.msra.mxu1 %v7184_v53  ;;  %v7235_v53 = vld [vmem:[%s9309_s1 + $0x4e0] sm:$0xff]   ;;  %v7238_v56 = vld [vmem:[%s9309_s1 + $0x468] sm:$0xff]  }
  0x62   :  { %6537 = vmatprep.subr.bf16.mxu1 %v7186_v59  ;;  %v7241_v59 = vld [vmem:[%s9309_s1 + $0x4a8] sm:$0xff]  }
  0x63   :  { %4779 = vmatmul.mubr.bf16.vlgmr.msra.gmra.mrb[8].mxu0 %v1130_v58  ;;  %v7240_v58 = vld [vmem:[%s9309_s1 + $0x428] sm:$0xff]  }
  0x64   :  { %6516 = vmatpush3.bf16.msra.mxu0 %v7187_v61  ;;  %4819 = vmatmul.mubr.bf16.vlgmr.msra.gmra.mrb[8].mxu1 %v1152_v1  ;;  %v7243_v61 = vld [vmem:[%s9309_s1 + $0x4f0] sm:$0xff]   ;;  %v7247_v1 = vld [vmem:[%s9309_s1 + $0x4f8] sm:$0xff]  }
  0x65   :  { %6517 = vmatprep.subr.bf16.mxu0 %v7189_v2  ;;  %6538 = vmatpush3.bf16.msra.mxu1 %v7188_v63  ;;  %v7245_v63 = vld [vmem:[%s9309_s1 + $0x4b0] sm:$0xff]   ;;  %v7248_v2 = vld [vmem:[%s9309_s1 + $0x438] sm:$0xff]  }
  0x66   :  { %4858 = vmatprep.mubr.bf16.mxu0 %v1151_v5  ;;  %6539 = vmatprep.subr.bf16.mxu1 %v7190_v4  ;;  %v7249_v4 = vld [vmem:[%s9309_s1 + $0x4b8] sm:$0xff]   ;;  %v1163_v5 = vrot.slane %v18_v3, %v7719_v35 }
  0x67   :  { %4898 = vmatprep.mubr.bf16.mxu1 %v1155_v8 }
  0x68   :  { %6518 = vmatpush3.bf16.msra.mxu0 %v7191_v6  ;;  %v1156_v6 = vcombine.high %v18_v3, %v18_v3  ;;  %v1171_v8 = vcombine.high %v1163_v5, %v1163_v5  ;;  %v7299_v3 = vld [vmem:[%s9309_s1 + $0x660] sm:$0xff]  }
  0x69   :  { %6519 = vmatprep.subr.bf16.mxu0 %v7193_v9  ;;  %6540 = vmatpush3.bf16.msra.mxu1 %v7192_v7  ;;  %v7250_v7 = vld [vmem:[%s9309_s1 + $0x540] sm:$0xff]   ;;  %v1179_v9 = vrot.slane %v1163_v5, %v7719_v35 }
  0x6a   :  { %6541 = vmatprep.subr.bf16.mxu1 %v7194_v10  ;;  %v7251_v10 = vld [vmem:[%s9309_s1 + $0x5c0] sm:$0xff]  }
  0x6b   :  { %v7301_v5 = vld [vmem:[%s9309_s1 + $0x620] sm:$0xff]  }
  0x6c   :  { %6520 = vmatpush3.bf16.msra.mxu0 %v7195_v11  ;;  %v8151_v11 = vrot.slane %v1156_v6, %v7719_v35  ;;  %v7302_v6 = vld [vmem:[%s9309_s1 + $0x6a0] sm:$0xff]  }
  0x6d   :  { %6521 = vmatprep.subr.bf16.mxu0 %v7197_v13  ;;  %6542 = vmatpush3.bf16.msra.mxu1 %v7196_v12  ;;  %v7252_v12 = vld [vmem:[%s9309_s1 + $0x500] sm:$0xff]   ;;  %v1193_v13 = vrot.slane %v1171_v8, %v7719_v35  ;;  %v7304_v8 = vld [vmem:[%s9309_s1 + $0x6e8] sm:$0xff]  }
  0x6e   :  { %6543 = vmatprep.subr.bf16.mxu1 %v7198_v14  ;;  %v7253_v14 = vld [vmem:[%s9309_s1 + $0x580] sm:$0xff]  }
  0x70   :  { %6522 = vmatpush3.bf16.msra.mxu0 %v7199_v15  ;;  %v1172_v15 = vcombine.high %v8151_v11, %v8151_v11 }
  0x71   :  { %6523 = vmatprep.subr.bf16.mxu0 %v7201_v17  ;;  %6544 = vmatpush3.bf16.msra.mxu1 %v7200_v16  ;;  %v1201_v16 = vcombine.high %v1179_v9, %v1179_v9  ;;  %v7254_v17 = vld [vmem:[%s9309_s1 + $0x548] sm:$0xff]  }
  0x72   :  { %6545 = vmatprep.subr.bf16.mxu1 %v7202_v18  ;;  %v1203_v18 = vcombine.high %v1193_v13, %v1193_v13 }
  0x74   :  { %6524 = vmatpush3.bf16.msra.mxu0 %v7203_v19  ;;  %v7255_v19 = vld [vmem:[%s9309_s1 + $0x5c8] sm:$0xff]  }
  0x75   :  { %6525 = vmatprep.subr.bf16.mxu0 %v7205_v21  ;;  %6546 = vmatpush3.bf16.msra.mxu1 %v7204_v20  ;;  %v1200_v20 = vrot.slane %v1172_v15, %v7719_v35  ;;  %v7256_v21 = vld [vmem:[%s9309_s1 + $0x508] sm:$0xff]   ;;  %v7311_v15 = vld [vmem:[%s9309_s1 + $0x678] sm:$0xff]  }
  0x76   :  { %6547 = vmatprep.subr.bf16.mxu1 %v7206_v22  ;;  %v7257_v22 = vld [vmem:[%s9309_s1 + $0x588] sm:$0xff]  }
  0x78   :  { %6526 = vmatpush3.bf16.msra.mxu0 %v7207_v23  ;;  %v1204_v23 = vcombine.high %v1200_v20, %v1200_v20 }
  0x79   :  { %6527 = vmatprep.subr.bf16.mxu0 %v7209_v25  ;;  %6548 = vmatpush3.bf16.msra.mxu1 %v7208_v24  ;;  %v7258_v24 = vld [vmem:[%s9309_s1 + $0x550] sm:$0xff]  }
  0x7a   :  { %6549 = vmatprep.subr.bf16.mxu1 %v7210_v26  ;;  %v7259_v25 = vld [vmem:[%s9309_s1 + $0x5d0] sm:$0xff]  }
  0x7b   :  { %v7260_v26 = vld [vmem:[%s9309_s1 + $0x510] sm:$0xff]  }
  0x7c   :  { %6528 = vmatpush3.bf16.msra.mxu0 %v7211_v27  ;;  %v7261_v27 = vld [vmem:[%s9309_s1 + $0x590] sm:$0xff]  }
  0x7d   :  { %6529 = vmatprep.subr.bf16.mxu0 %v7213_v29  ;;  %6550 = vmatpush3.bf16.msra.mxu1 %v7212_v28  ;;  %v7262_v28 = vld [vmem:[%s9309_s1 + $0x558] sm:$0xff]  }
  0x7e   :  { %6551 = vmatprep.subr.bf16.mxu1 %v7214_v30  ;;  %v7263_v29 = vld [vmem:[%s9309_s1 + $0x5d8] sm:$0xff]  }
  0x7f   :  { %v7264_v30 = vld [vmem:[%s9309_s1 + $0x518] sm:$0xff]  }
  0x80   :  { %6530 = vmatpush3.bf16.msra.mxu0 %v7215_v31  ;;  %v7265_v31 = vld [vmem:[%s9309_s1 + $0x598] sm:$0xff]  }
  0x81   :  { %6559 = vmatprep.subr.bf16.mxu0 %v7218_v34  ;;  %6552 = vmatpush3.bf16.msra.mxu1 %v7216_v32  ;;  %v7266_v32 = vld [vmem:[%s9309_s1 + $0x560] sm:$0xff]  }
  0x82   :  { %6581 = vmatprep.subr.bf16.mxu1 %v7219_v36  ;;  %v7268_v34 = vld [vmem:[%s9309_s1 + $0x520] sm:$0xff]  }
  0x83   :  { %4859 = vmatmul.mubr.bf16.vlgmr.msra.gmra.mrb[12].mxu0 %v1137_v33  ;;  %v7267_v33 = vld [vmem:[%s9309_s1 + $0x5e0] sm:$0xff]  }
  0x84   :  { %6560 = vmatpush3.bf16.msra.mxu0 %v7220_v37  ;;  %4899 = vmatmul.mubr.bf16.vlgmr.msra.gmra.mrb[12].mxu1 %v1153_v39  ;;  %v7269_v36 = vld [vmem:[%s9309_s1 + $0x5a0] sm:$0xff]   ;;  %v7270_v37 = vld [vmem:[%s9309_s1 + $0x568] sm:$0xff]  }
  0x85   :  { %6561 = vmatprep.subr.bf16.mxu0 %v7222_v40  ;;  %6582 = vmatpush3.bf16.msra.mxu1 %v7221_v38  ;;  %v7271_v38 = vld [vmem:[%s9309_s1 + $0x5e8] sm:$0xff]  }
  0x86   :  { %6583 = vmatprep.subr.bf16.mxu1 %v7223_v41  ;;  %4938 = vmatprep.mubr.bf16.mxu0 %v1193_v13  ;;  %v7272_v39 = vld [vmem:[%s9309_s1 + $0x528] sm:$0xff]   ;;  %v7274_v41 = vld [vmem:[%s9309_s1 + $0x570] sm:$0xff]  }
  0x87   :  { %4978 = vmatprep.mubr.bf16.mxu1 %v1203_v18  ;;  %v7273_v40 = vld [vmem:[%s9309_s1 + $0x5a8] sm:$0xff]   ;;  %v7309_v13 = vld [vmem:[%s9309_s1 + $0x630] sm:$0xff]   ;;  %v19_v18 = vld [vmem:[%s9310_s0 + $0x18] sm:$0xff] }
  0x88   :  { %6562 = vmatpush3.bf16.msra.mxu0 %v7224_v42  ;;  %v7275_v42 = vld [vmem:[%s9309_s1 + $0x5f0] sm:$0xff]  }
  0x89   :  { %6563 = vmatprep.subr.bf16.mxu0 %v7226_v44  ;;  %6584 = vmatpush3.bf16.msra.mxu1 %v7225_v43  ;;  %v7276_v43 = vld [vmem:[%s9309_s1 + $0x530] sm:$0xff]  }
  0x8a   :  { %6585 = vmatprep.subr.bf16.mxu1 %v7227_v45  ;;  %v7277_v44 = vld [vmem:[%s9309_s1 + $0x5b0] sm:$0xff]   ;;  %v7278_v45 = vld [vmem:[%s9309_s1 + $0x578] sm:$0xff]  }
  0x8c   :  { %6564 = vmatpush3.bf16.msra.mxu0 %v7228_v46  ;;  %v7279_v46 = vld [vmem:[%s9309_s1 + $0x5f8] sm:$0xff]  }
  0x8d   :  { %6565 = vmatprep.subr.bf16.mxu0 %v7230_v48  ;;  %6586 = vmatpush3.bf16.msra.mxu1 %v7229_v47  ;;  %v7280_v47 = vld [vmem:[%s9309_s1 + $0x538] sm:$0xff]  }
  0x8e   :  { %6587 = vmatprep.subr.bf16.mxu1 %v7231_v49  ;;  %v7281_v48 = vld [vmem:[%s9309_s1 + $0x5b8] sm:$0xff]   ;;  %v1186_v49 = vrot.slane %v8151_v11, %v7719_v35  ;;  %v7307_v11 = vld [vmem:[%s9309_s1 + $0x670] sm:$0xff]  }
  0x90   :  { %6566 = vmatpush3.bf16.msra.mxu0 %v7232_v50  ;;  %v7283_v50 = vld [vmem:[%s9309_s1 + $0x640] sm:$0xff]  }
  0x91   :  { %6567 = vmatprep.subr.bf16.mxu0 %v7234_v52  ;;  %6588 = vmatpush3.bf16.msra.mxu1 %v7233_v51  ;;  %v7284_v51 = vld [vmem:[%s9309_s1 + $0x6c0] sm:$0xff]  }
  0x92   :  { %6589 = vmatprep.subr.bf16.mxu1 %v7235_v53  ;;  %v7285_v52 = vld [vmem:[%s9309_s1 + $0x600] sm:$0xff]  }
  0x93   :  { %v7286_v53 = vld [vmem:[%s9309_s1 + $0x680] sm:$0xff]  }
  0x94   :  { %6568 = vmatpush3.bf16.msra.mxu0 %v7236_v54  ;;  %v1202_v54 = vcombine.high %v1186_v49, %v1186_v49 }
  0x95   :  { %6569 = vmatprep.subr.bf16.mxu0 %v7238_v56  ;;  %6590 = vmatpush3.bf16.msra.mxu1 %v7237_v55  ;;  %v7287_v55 = vld [vmem:[%s9309_s1 + $0x648] sm:$0xff]  }
  0x96   :  { %6591 = vmatprep.subr.bf16.mxu1 %v7239_v57  ;;  %v7288_v56 = vld [vmem:[%s9309_s1 + $0x6c8] sm:$0xff]  }
  0x97   :  { %v7289_v57 = vld [vmem:[%s9309_s1 + $0x608] sm:$0xff]  }
  0x98   :  { %6570 = vmatpush3.bf16.msra.mxu0 %v7240_v58  ;;  %v7290_v58 = vld [vmem:[%s9309_s1 + $0x688] sm:$0xff]  }
  0x99   :  { %6571 = vmatprep.subr.bf16.mxu0 %v7242_v60  ;;  %6592 = vmatpush3.bf16.msra.mxu1 %v7241_v59  ;;  %v7291_v59 = vld [vmem:[%s9309_s1 + $0x650] sm:$0xff]  }
  0x9a   :  { %6593 = vmatprep.subr.bf16.mxu1 %v7243_v61  ;;  %v7292_v60 = vld [vmem:[%s9309_s1 + $0x6d0] sm:$0xff]  }
  0x9b   :  { %v7293_v61 = vld [vmem:[%s9309_s1 + $0x610] sm:$0xff]  }
  0x9c   :  { %6572 = vmatpush3.bf16.msra.mxu0 %v7244_v62  ;;  %v7294_v62 = vld [vmem:[%s9309_s1 + $0x690] sm:$0xff]  }
  0x9d   :  { %6573 = vmatprep.subr.bf16.mxu0 %v7246_v0  ;;  %6594 = vmatpush3.bf16.msra.mxu1 %v7245_v63  ;;  %v7295_v63 = vld [vmem:[%s9309_s1 + $0x658] sm:$0xff]  }
  0x9e   :  { %6595 = vmatprep.subr.bf16.mxu1 %v7247_v1  ;;  %v7296_v0 = vld [vmem:[%s9309_s1 + $0x6d8] sm:$0xff]  }
  0x9f   :  { %v7297_v1 = vld [vmem:[%s9309_s1 + $0x618] sm:$0xff]  }
  0xa0   :  { %6574 = vmatpush3.bf16.msra.mxu0 %v7248_v2  ;;  %v7298_v2 = vld [vmem:[%s9309_s1 + $0x698] sm:$0xff]  }
  0xa1   :  { %6603 = vmatprep.subr.bf16.mxu0 %v7250_v7  ;;  %6596 = vmatpush3.bf16.msra.mxu1 %v7249_v4  ;;  %v7300_v4 = vld [vmem:[%s9309_s1 + $0x6e0] sm:$0xff]   ;;  %v7303_v7 = vld [vmem:[%s9309_s1 + $0x668] sm:$0xff]  }
  0xa2   :  { %6625 = vmatprep.subr.bf16.mxu1 %v7251_v10  ;;  %v7306_v10 = vld [vmem:[%s9309_s1 + $0x6a8] sm:$0xff]  }
  0xa3   :  { %4939 = vmatmul.mubr.bf16.vlgmr.msra.gmra.mrb[16].mxu0 %v1179_v9  ;;  %v7305_v9 = vld [vmem:[%s9309_s1 + $0x628] sm:$0xff]  }
  0xa4   :  { %6604 = vmatpush3.bf16.msra.mxu0 %v7252_v12  ;;  %4979 = vmatmul.mubr.bf16.vlgmr.msra.gmra.mrb[16].mxu1 %v1201_v16  ;;  %v7308_v12 = vld [vmem:[%s9309_s1 + $0x6f0] sm:$0xff]   ;;  %v7312_v16 = vld [vmem:[%s9309_s1 + $0x6f8] sm:$0xff]  }
  0xa5   :  { %6605 = vmatprep.subr.bf16.mxu0 %v7254_v17  ;;  %6626 = vmatpush3.bf16.msra.mxu1 %v7253_v14  ;;  %v7310_v14 = vld [vmem:[%s9309_s1 + $0x6b0] sm:$0xff]   ;;  %v7313_v17 = vld [vmem:[%s9309_s1 + $0x638] sm:$0xff]  }
  0xa6   :  { %5018 = vmatprep.mubr.bf16.mxu0 %v1200_v20  ;;  %6627 = vmatprep.subr.bf16.mxu1 %v7255_v19  ;;  %v1212_v19 = vrot.slane %v19_v18, %v7719_v35  ;;  %v7315_v20 = vld [vmem:[%s9309_s1 + $0x740] sm:$0xff]  }
  0xa7   :  { %5058 = vmatprep.mubr.bf16.mxu1 %v1204_v23 }
  0xa8   :  { %6606 = vmatpush3.bf16.msra.mxu0 %v7256_v21  ;;  %v1205_v21 = vcombine.high %v19_v18, %v19_v18  ;;  %v1220_v23 = vcombine.high %v1212_v19, %v1212_v19  ;;  %v7352_v18 = vld [vmem:[%s9309_s1 + $0x848] sm:$0xff]  }
  0xa9   :  { %6607 = vmatprep.subr.bf16.mxu0 %v7258_v24  ;;  %6628 = vmatpush3.bf16.msra.mxu1 %v7257_v22  ;;  %v7314_v22 = vld [vmem:[%s9309_s1 + $0x6b8] sm:$0xff]   ;;  %v1228_v24 = vrot.slane %v1212_v19, %v7719_v35  ;;  %v7351_v19 = vld [vmem:[%s9309_s1 + $0x880] sm:$0xff]  }
  0xaa   :  { %6629 = vmatprep.subr.bf16.mxu1 %v7259_v25  ;;  %v7316_v25 = vld [vmem:[%s9309_s1 + $0x7c0] sm:$0xff]  }
  0xac   :  { %6608 = vmatpush3.bf16.msra.mxu0 %v7260_v26  ;;  %v8357_v26 = vrot.slane %v1205_v21, %v7719_v35  ;;  %v7354_v21 = vld [vmem:[%s9309_s1 + $0x808] sm:$0xff]  }
  0xad   :  { %6609 = vmatprep.subr.bf16.mxu0 %v7262_v28  ;;  %6630 = vmatpush3.bf16.msra.mxu1 %v7261_v27  ;;  %v1242_v27 = vrot.slane %v1220_v23, %v7719_v35  ;;  %v7317_v28 = vld [vmem:[%s9309_s1 + $0x700] sm:$0xff]   ;;  %v7355_v23 = vld [vmem:[%s9309_s1 + $0x888] sm:$0xff]  }
  0xae   :  { %6631 = vmatprep.subr.bf16.mxu1 %v7263_v29  ;;  %v1221_v29 = vcombine.high %v8357_v26, %v8357_v26 }
  0xb0   :  { %6610 = vmatpush3.bf16.msra.mxu0 %v7264_v30  ;;  %v1250_v30 = vcombine.high %v1228_v24, %v1228_v24 }
  0xb1   :  { %6611 = vmatprep.subr.bf16.mxu0 %v7266_v32  ;;  %6632 = vmatpush3.bf16.msra.mxu1 %v7265_v31  ;;  %v7319_v31 = vld [vmem:[%s9309_s1 + $0x748] sm:$0xff]   ;;  %v1252_v32 = vcombine.high %v1242_v27, %v1242_v27 }
  0xb2   :  { %6633 = vmatprep.subr.bf16.mxu1 %v7267_v33  ;;  %v7318_v33 = vld [vmem:[%s9309_s1 + $0x780] sm:$0xff]  }
  0xb4   :  { %6612 = vmatpush3.bf16.msra.mxu0 %v7268_v34  ;;  %v1249_v34 = vrot.slane %v1221_v29, %v7719_v35  ;;  %v7362_v29 = vld [vmem:[%s9309_s1 + $0x818] sm:$0xff]  }
  0xb5   :  { %6613 = vmatprep.subr.bf16.mxu0 %v7270_v37  ;;  %6634 = vmatpush3.bf16.msra.mxu1 %v7269_v36  ;;  %v7320_v36 = vld [vmem:[%s9309_s1 + $0x7c8] sm:$0xff]  }
  0xb6   :  { %6635 = vmatprep.subr.bf16.mxu1 %v7271_v38  ;;  %v7321_v37 = vld [vmem:[%s9309_s1 + $0x708] sm:$0xff]   ;;  %v1253_v38 = vcombine.high %v1249_v34, %v1249_v34 }
  0xb8   :  { %6614 = vmatpush3.bf16.msra.mxu0 %v7272_v39  ;;  %v7323_v39 = vld [vmem:[%s9309_s1 + $0x750] sm:$0xff]  }
  0xb9   :  { %6615 = vmatprep.subr.bf16.mxu0 %v7274_v41  ;;  %6636 = vmatpush3.bf16.msra.mxu1 %v7273_v40  ;;  %v7322_v40 = vld [vmem:[%s9309_s1 + $0x788] sm:$0xff]   ;;  %v7324_v41 = vld [vmem:[%s9309_s1 + $0x7d0] sm:$0xff]  }
  0xba   :  { %6637 = vmatprep.subr.bf16.mxu1 %v7275_v42  ;;  %v7325_v42 = vld [vmem:[%s9309_s1 + $0x710] sm:$0xff]  }
  0xbc   :  { %6616 = vmatpush3.bf16.msra.mxu0 %v7276_v43  ;;  %v7327_v43 = vld [vmem:[%s9309_s1 + $0x758] sm:$0xff]  }
  0xbd   :  { %6617 = vmatprep.subr.bf16.mxu0 %v7278_v45  ;;  %6638 = vmatpush3.bf16.msra.mxu1 %v7277_v44  ;;  %v7326_v44 = vld [vmem:[%s9309_s1 + $0x790] sm:$0xff]   ;;  %v7328_v45 = vld [vmem:[%s9309_s1 + $0x7d8] sm:$0xff]  }
  0xbe   :  { %6639 = vmatprep.subr.bf16.mxu1 %v7279_v46  ;;  %v7329_v46 = vld [vmem:[%s9309_s1 + $0x718] sm:$0xff]  }
  0xc0   :  { %6618 = vmatpush3.bf16.msra.mxu0 %v7280_v47  ;;  %v7331_v47 = vld [vmem:[%s9309_s1 + $0x760] sm:$0xff]  }
  0xc1   :  { %6647 = vmatprep.subr.bf16.mxu0 %v7283_v50  ;;  %6640 = vmatpush3.bf16.msra.mxu1 %v7281_v48  ;;  %v7330_v48 = vld [vmem:[%s9309_s1 + $0x798] sm:$0xff]   ;;  %v7333_v50 = vld [vmem:[%s9309_s1 + $0x720] sm:$0xff]  }
  0xc2   :  { %6669 = vmatprep.subr.bf16.mxu1 %v7284_v51  ;;  %v7335_v51 = vld [vmem:[%s9309_s1 + $0x768] sm:$0xff]  }
  0xc3   :  { %5019 = vmatmul.mubr.bf16.vlgmr.msra.gmra.mrb[20].mxu0 %v1186_v49  ;;  %v7332_v49 = vld [vmem:[%s9309_s1 + $0x7e0] sm:$0xff]  }
  0xc4   :  { %6648 = vmatpush3.bf16.msra.mxu0 %v7285_v52  ;;  %5059 = vmatmul.mubr.bf16.vlgmr.msra.gmra.mrb[20].mxu1 %v1202_v54  ;;  %v7334_v52 = vld [vmem:[%s9309_s1 + $0x7a0] sm:$0xff]   ;;  %v7337_v54 = vld [vmem:[%s9309_s1 + $0x728] sm:$0xff]  }
  0xc5   :  { %6649 = vmatprep.subr.bf16.mxu0 %v7287_v55  ;;  %6670 = vmatpush3.bf16.msra.mxu1 %v7286_v53  ;;  %v7336_v53 = vld [vmem:[%s9309_s1 + $0x7e8] sm:$0xff]  }
  0xc6   :  { %6671 = vmatprep.subr.bf16.mxu1 %v7288_v56  ;;  %5098 = vmatprep.mubr.bf16.mxu0 %v1242_v27  ;;  %v7339_v56 = vld [vmem:[%s9309_s1 + $0x770] sm:$0xff]  }
  0xc7   :  { %5138 = vmatprep.mubr.bf16.mxu1 %v1252_v32  ;;  %v7359_v27 = vld [vmem:[%s9309_s1 + $0x890] sm:$0xff]   ;;  %v7365_v32 = vld [vmem:[%s9309_s1 + $0x8e0] sm:$0xff]  }
  0xc8   :  { %6650 = vmatpush3.bf16.msra.mxu0 %v7289_v57  ;;  %v1049_v57 = vstv %s9311_s2 }
  0xc9   :  { %6651 = vmatprep.subr.bf16.mxu0 %v7291_v59  ;;  %6672 = vmatpush3.bf16.msra.mxu1 %v7290_v58  ;;  %v7338_v59 = vld [vmem:[%s9309_s1 + $0x7a8] sm:$0xff]  }
  0xca   :  { %6673 = vmatprep.subr.bf16.mxu1 %v7292_v60 }
  0xcc   :  { %6652 = vmatpush3.bf16.msra.mxu0 %v7293_v61 }
  0xcd   :  { %6653 = vmatprep.subr.bf16.mxu0 %v7295_v63  ;;  %6674 = vmatpush3.bf16.msra.mxu1 %v7294_v62  ;;  %v7340_v63 = vld [vmem:[%s9309_s1 + $0x7f0] sm:$0xff]  }
  0xce   :  { %6675 = vmatprep.subr.bf16.mxu1 %v7296_v0  ;;  %v7341_v0 = vld [vmem:[%s9309_s1 + $0x730] sm:$0xff]  }
  0xd0   :  { %6654 = vmatpush3.bf16.msra.mxu0 %v7297_v1 }
  0xd1   :  { %6655 = vmatprep.subr.bf16.mxu0 %v7299_v3  ;;  %6676 = vmatpush3.bf16.msra.mxu1 %v7298_v2 }
  0xd2   :  { %6677 = vmatprep.subr.bf16.mxu1 %v7300_v4 }
  0xd4   :  { %6656 = vmatpush3.bf16.msra.mxu0 %v7301_v5 }
  0xd5   :  { %6657 = vmatprep.subr.bf16.mxu0 %v7303_v7  ;;  %6678 = vmatpush3.bf16.msra.mxu1 %v7302_v6  ;;  %v7343_v6 = vld [vmem:[%s9309_s1 + $0x778] sm:$0xff]  }
  0xd6   :  { %6679 = vmatprep.subr.bf16.mxu1 %v7304_v8  ;;  %v7342_v8 = vld [vmem:[%s9309_s1 + $0x7b0] sm:$0xff]  }
  0xd8   :  { %6658 = vmatpush3.bf16.msra.mxu0 %v7305_v9 }
  0xd9   :  { %6659 = vmatprep.subr.bf16.mxu0 %v7307_v11  ;;  %6680 = vmatpush3.bf16.msra.mxu1 %v7306_v10  ;;  %v7344_v10 = vld [vmem:[%s9309_s1 + $0x7f8] sm:$0xff]  }
  0xda   :  { %6681 = vmatprep.subr.bf16.mxu1 %v7308_v12  ;;  %v7345_v11 = vld [vmem:[%s9309_s1 + $0x738] sm:$0xff]   ;;  %v1235_v12 = vrot.slane %v8357_v26, %v7719_v35 }
  0xdb   :  { %v7360_v26 = vld [vmem:[%s9309_s1 + $0x858] sm:$0xff]  }
  0xdc   :  { %6660 = vmatpush3.bf16.msra.mxu0 %v7309_v13  ;;  %v7348_v13 = vld [vmem:[%s9309_s1 + $0x840] sm:$0xff]  }
  0xdd   :  { %6661 = vmatprep.subr.bf16.mxu0 %v7311_v15  ;;  %6682 = vmatpush3.bf16.msra.mxu1 %v7310_v14  ;;  %v7346_v14 = vld [vmem:[%s9309_s1 + $0x7b8] sm:$0xff]   ;;  %v7349_v15 = vld [vmem:[%s9309_s1 + $0x8c0] sm:$0xff]  }
  0xde   :  { %6683 = vmatprep.subr.bf16.mxu1 %v7312_v16  ;;  %v7350_v16 = vld [vmem:[%s9309_s1 + $0x800] sm:$0xff]  }
  0xe0   :  { %6662 = vmatpush3.bf16.msra.mxu0 %v7313_v17  ;;  %v1251_v17 = vcombine.high %v1235_v12, %v1235_v12 }
  0xe1   :  { %6691 = vmatprep.subr.bf16.mxu0 %v7315_v20  ;;  %6684 = vmatpush3.bf16.msra.mxu1 %v7314_v22  ;;  %v7353_v20 = vld [vmem:[%s9309_s1 + $0x8c8] sm:$0xff]   ;;  %v7356_v22 = vld [vmem:[%s9309_s1 + $0x850] sm:$0xff]  }
  0xe2   :  { %6713 = vmatprep.subr.bf16.mxu1 %v7316_v25  ;;  %v7358_v25 = vld [vmem:[%s9309_s1 + $0x810] sm:$0xff]  }
  0xe3   :  { %5099 = vmatmul.mubr.bf16.vlgmr.msra.gmra.mrb[24].mxu0 %v1228_v24  ;;  %v7357_v24 = vld [vmem:[%s9309_s1 + $0x8d0] sm:$0xff]  }
  0xe4   :  { %6692 = vmatpush3.bf16.msra.mxu0 %v7317_v28  ;;  %5139 = vmatmul.mubr.bf16.vlgmr.msra.gmra.mrb[24].mxu1 %v1250_v30  ;;  %v7361_v28 = vld [vmem:[%s9309_s1 + $0x8d8] sm:$0xff]   ;;  %v7364_v30 = vld [vmem:[%s9309_s1 + $0x860] sm:$0xff]  }
  0xe5   :  { %6693 = vmatprep.subr.bf16.mxu0 %v7319_v31  ;;  %6714 = vmatpush3.bf16.msra.mxu1 %v7318_v33  ;;  %v7363_v31 = vld [vmem:[%s9309_s1 + $0x898] sm:$0xff]   ;;  %v7366_v33 = vld [vmem:[%s9309_s1 + $0x820] sm:$0xff]  }
  0xe6   :  { %5178 = vmatprep.mubr.bf16.mxu0 %v1249_v34  ;;  %6715 = vmatprep.subr.bf16.mxu1 %v7320_v36  ;;  %v7368_v34 = vld [vmem:[%s9309_s1 + $0x868] sm:$0xff]   ;;  %v7367_v36 = vld [vmem:[%s9309_s1 + $0x8a0] sm:$0xff]  }
  0xe7   :  { %5218 = vmatprep.mubr.bf16.mxu1 %v1253_v38  ;;  %v7370_v38 = vld [vmem:[%s9309_s1 + $0x828] sm:$0xff]  }
  0xe8   :  { %6694 = vmatpush3.bf16.msra.mxu0 %v7321_v37  ;;  %v7369_v37 = vld [vmem:[%s9309_s1 + $0x8e8] sm:$0xff]  }
  0xe9   :  { %6695 = vmatprep.subr.bf16.mxu0 %v7323_v39  ;;  %6716 = vmatpush3.bf16.msra.mxu1 %v7322_v40  ;;  %v7372_v40 = vld [vmem:[%s9309_s1 + $0x870] sm:$0xff]  }
  0xea   :  { %6717 = vmatprep.subr.bf16.mxu1 %v7324_v41 }
  0xec   :  { %6696 = vmatpush3.bf16.msra.mxu0 %v7325_v42  ;;  %v7371_v42 = vld [vmem:[%s9309_s1 + $0x8a8] sm:$0xff]  }
  0xed   :  { %6697 = vmatprep.subr.bf16.mxu0 %v7327_v43  ;;  %6718 = vmatpush3.bf16.msra.mxu1 %v7326_v44 }
  0xee   :  { %6719 = vmatprep.subr.bf16.mxu1 %v7328_v45 }
  0xf0   :  { %6698 = vmatpush3.bf16.msra.mxu0 %v7329_v46  ;;  %v7373_v46 = vld [vmem:[%s9309_s1 + $0x8f0] sm:$0xff]  }
  0xf1   :  { %6699 = vmatprep.subr.bf16.mxu0 %v7331_v47  ;;  %6720 = vmatpush3.bf16.msra.mxu1 %v7330_v48  ;;  %v7374_v47 = vld [vmem:[%s9309_s1 + $0x830] sm:$0xff]  }
  0xf2   :  { %6721 = vmatprep.subr.bf16.mxu1 %v7332_v49 }
  0xf4   :  { %6700 = vmatpush3.bf16.msra.mxu0 %v7333_v50  ;;  %v7375_v50 = vld [vmem:[%s9309_s1 + $0x8b0] sm:$0xff]  }
  0xf5   :  { %6701 = vmatprep.subr.bf16.mxu0 %v7335_v51  ;;  %6722 = vmatpush3.bf16.msra.mxu1 %v7334_v52 }
  0xf6   :  { %v6399_v55 = vpop.f32.mrb[0].mxu0  ;;  %6723 = vmatprep.subr.bf16.mxu1 %v7336_v53 }
  0xf7   :  { %v6400_v58 = vpop.f32.mrb[1].mxu0  ;;  %v6421_v60 = vpop.f32.mrb[0].mxu1 }
  0xf8   :  { %v6401_v61 = vadd.f32 %v6400_v58, %v6399_v55  ;;  %v6402_v62 = vpop.f32.mrb[2].mxu0  ;;  %v6422_v1 = vpop.f32.mrb[1].mxu1  ;;  %6702 = vmatpush3.bf16.msra.mxu0 %v7337_v54  ;;  %v7376_v54 = vld [vmem:[%s9309_s1 + $0x878] sm:$0xff]  }
  0xf9   :  { %v6403_v2 = vpop.f32.mrb[3].mxu0  ;;  %v6423_v4 = vadd.f32 %v6422_v1, %v6421_v60  ;;  %v6424_v5 = vpop.f32.mrb[2].mxu1  ;;  %6703 = vmatprep.subr.bf16.mxu0 %v7339_v56  ;;  %6724 = vmatpush3.bf16.msra.mxu1 %v7338_v59  ;;  %v7377_v56 = vld [vmem:[%s9309_s1 + $0x8f8] sm:$0xff]   ;;  %v20_v59 = vld [vmem:[%s9310_s0 + $0x20] sm:$0xff] }
  0xfa   :  { %v4621_v3 = vadd.f32 %v6401_v61, %v1049_v57  ;;  %v6425_v7 = vpop.f32.mrb[3].mxu1  ;;  %6725 = vmatprep.subr.bf16.mxu1 %v7340_v63  ;;  %v7378_v58 = vld [vmem:[%s9309_s1 + $0x838] sm:$0xff]   ;;  %v1261_v60 = vrot.slane %v20_v59, %v7719_v35  ;;  %v7380_v61 = vld [vmem:[%s9309_s1 + $0x940] sm:$0xff]   ;;  %v1254_v62 = vcombine.high %v20_v59, %v20_v59  ;;  %v7417_v59 = vld [vmem:[%s9309_s1 + $0xa48] sm:$0xff]  }
  0xfb   :  { %v7379_v63 = vld [vmem:[%s9309_s1 + $0x8b8] sm:$0xff]   ;;  %v7381_v2 = vld [vmem:[%s9309_s1 + $0x9c0] sm:$0xff]  }
  0xfc   :  { %v8447_v9 = vadd.f32 %v6423_v4, %v4621_v3  ;;  %6704 = vmatpush3.bf16.msra.mxu0 %v7341_v0  ;;  %v1269_v0 = vcombine.high %v1261_v60, %v1261_v60  ;;  %v1277_v1 = vrot.slane %v1261_v60, %v7719_v35  ;;  %v8571_v3 = vrot.slane %v1254_v62, %v7719_v35  ;;  %v7382_v4 = vld [vmem:[%s9309_s1 + $0x900] sm:$0xff]   ;;  %v7418_v60 = vld [vmem:[%s9309_s1 + $0xac8] sm:$0xff]  }
  0xfd   :  { %6705 = vmatprep.subr.bf16.mxu0 %v7343_v6  ;;  %6726 = vmatpush3.bf16.msra.mxu1 %v7342_v8  ;;  %v7383_v6 = vld [vmem:[%s9309_s1 + $0x980] sm:$0xff]   ;;  %v7420_v62 = vld [vmem:[%s9309_s1 + $0xa88] sm:$0xff]  }
  0xfe   :  { %6727 = vmatprep.subr.bf16.mxu1 %v7344_v10  ;;  %v1291_v5 = vrot.slane %v1269_v0, %v7719_v35  ;;  %v1270_v7 = vcombine.high %v8571_v3, %v8571_v3  ;;  %v1299_v8 = vcombine.high %v1277_v1, %v1277_v1  ;;  %v7422_v0 = vld [vmem:[%s9309_s1 + $0xad0] sm:$0xff]  }
 0x100   :  { %6706 = vmatpush3.bf16.msra.mxu0 %v7345_v11  ;;  %v1301_v10 = vcombine.high %v1291_v5, %v1291_v5  ;;  %v7385_v11 = vld [vmem:[%s9309_s1 + $0x9c8] sm:$0xff]  }
 0x101   :  { %6735 = vmatprep.subr.bf16.mxu0 %v7348_v13  ;;  %6728 = vmatpush3.bf16.msra.mxu1 %v7346_v14  ;;  %v7386_v13 = vld [vmem:[%s9309_s1 + $0x908] sm:$0xff]  }
 0x102   :  { %6757 = vmatprep.subr.bf16.mxu1 %v7349_v15  ;;  %v7387_v14 = vld [vmem:[%s9309_s1 + $0x988] sm:$0xff]  }
 0x103   :  { %5179 = vmatmul.mubr.bf16.vlgmr.msra.gmra.mrb[28].mxu0 %v1235_v12  ;;  %v1298_v12 = vrot.slane %v1270_v7, %v7719_v35  ;;  %v7429_v7 = vld [vmem:[%s9309_s1 + $0xa60] sm:$0xff]  }
 0x104   :  { %6736 = vmatpush3.bf16.msra.mxu0 %v7350_v16  ;;  %5219 = vmatmul.mubr.bf16.vlgmr.msra.gmra.mrb[28].mxu1 %v1251_v17  ;;  %v7388_v16 = vld [vmem:[%s9309_s1 + $0x950] sm:$0xff]  }
 0x105   :  { %6737 = vmatprep.subr.bf16.mxu0 %v7352_v18  ;;  %6758 = vmatpush3.bf16.msra.mxu1 %v7351_v19  ;;  %v1302_v15 = vcombine.high %v1298_v12, %v1298_v12  ;;  %v7389_v17 = vld [vmem:[%s9309_s1 + $0x9d0] sm:$0xff]  }
 0x106   :  { %6759 = vmatprep.subr.bf16.mxu1 %v7353_v20  ;;  %5258 = vmatprep.mubr.bf16.mxu0 %v1291_v5  ;;  %v7390_v18 = vld [vmem:[%s9309_s1 + $0x910] sm:$0xff]   ;;  %v7392_v20 = vld [vmem:[%s9309_s1 + $0x958] sm:$0xff]  }
 0x107   :  { %5298 = vmatprep.mubr.bf16.mxu1 %v1301_v10  ;;  %v7391_v19 = vld [vmem:[%s9309_s1 + $0x990] sm:$0xff]   ;;  %v7427_v5 = vld [vmem:[%s9309_s1 + $0xa18] sm:$0xff]   ;;  %v7432_v10 = vld [vmem:[%s9309_s1 + $0xaa0] sm:$0xff]  }
 0x108   :  { %6738 = vmatpush3.bf16.msra.mxu0 %v7354_v21  ;;  %v7393_v21 = vld [vmem:[%s9309_s1 + $0x9d8] sm:$0xff]  }
 0x109   :  { %6739 = vmatprep.subr.bf16.mxu0 %v7356_v22  ;;  %6760 = vmatpush3.bf16.msra.mxu1 %v7355_v23  ;;  %v7394_v22 = vld [vmem:[%s9309_s1 + $0x918] sm:$0xff]  }
 0x10a   :  { %6761 = vmatprep.subr.bf16.mxu1 %v7357_v24  ;;  %v7395_v23 = vld [vmem:[%s9309_s1 + $0x998] sm:$0xff]   ;;  %v7396_v24 = vld [vmem:[%s9309_s1 + $0x960] sm:$0xff]  }
 0x10c   :  { %6740 = vmatpush3.bf16.msra.mxu0 %v7358_v25  ;;  %v7397_v25 = vld [vmem:[%s9309_s1 + $0x9e0] sm:$0xff]  }
 0x10d   :  { %6741 = vmatprep.subr.bf16.mxu0 %v7360_v26  ;;  %6762 = vmatpush3.bf16.msra.mxu1 %v7359_v27  ;;  %v7398_v26 = vld [vmem:[%s9309_s1 + $0x920] sm:$0xff]  }
 0x10e   :  { %6763 = vmatprep.subr.bf16.mxu1 %v7361_v28  ;;  %v7399_v27 = vld [vmem:[%s9309_s1 + $0x9a0] sm:$0xff]   ;;  %v7400_v28 = vld [vmem:[%s9309_s1 + $0x968] sm:$0xff]  }
 0x110   :  { %6742 = vmatpush3.bf16.msra.mxu0 %v7362_v29  ;;  %v7401_v29 = vld [vmem:[%s9309_s1 + $0x9e8] sm:$0xff]  }
 0x111   :  { %6743 = vmatprep.subr.bf16.mxu0 %v7364_v30  ;;  %6764 = vmatpush3.bf16.msra.mxu1 %v7363_v31  ;;  %v7402_v30 = vld [vmem:[%s9309_s1 + $0x928] sm:$0xff]  }
 0x112   :  { %6765 = vmatprep.subr.bf16.mxu1 %v7365_v32  ;;  %v7403_v32 = vld [vmem:[%s9309_s1 + $0x9a8] sm:$0xff]  }
 0x114   :  { %6744 = vmatpush3.bf16.msra.mxu0 %v7366_v33 }
 0x115   :  { %6745 = vmatprep.subr.bf16.mxu0 %v7368_v34  ;;  %6766 = vmatpush3.bf16.msra.mxu1 %v7367_v36  ;;  %v7404_v34 = vld [vmem:[%s9309_s1 + $0x970] sm:$0xff]  }
 0x116   :  { %v6443_v39 = vpop.f32.mrb[4].mxu0  ;;  %6767 = vmatprep.subr.bf16.mxu1 %v7369_v37 }
 0x117   :  { %v6444_v41 = vpop.f32.mrb[5].mxu0  ;;  %v6465_v43 = vpop.f32.mrb[4].mxu1 }
 0x118   :  { %v6445_v44 = vadd.f32 %v6444_v41, %v6443_v39  ;;  %v6446_v45 = vpop.f32.mrb[6].mxu0  ;;  %v6466_v48 = vpop.f32.mrb[5].mxu1  ;;  %6746 = vmatpush3.bf16.msra.mxu0 %v7370_v38  ;;  %v7405_v39 = vld [vmem:[%s9309_s1 + $0x9f0] sm:$0xff]  }
 0x119   :  { %v6447_v49 = vpop.f32.mrb[7].mxu0  ;;  %v6467_v52 = vadd.f32 %v6466_v48, %v6465_v43  ;;  %v6468_v53 = vpop.f32.mrb[6].mxu1  ;;  %6747 = vmatprep.subr.bf16.mxu0 %v7372_v40  ;;  %6768 = vmatpush3.bf16.msra.mxu1 %v7371_v42  ;;  %v7406_v40 = vld [vmem:[%s9309_s1 + $0x930] sm:$0xff]   ;;  %v7408_v48 = vld [vmem:[%s9309_s1 + $0x978] sm:$0xff]  }
 0x11a   :  { %v4701_v51 = vadd.f32 %v6445_v44, %v8447_v9  ;;  %v6469_v55 = vpop.f32.mrb[7].mxu1  ;;  %6769 = vmatprep.subr.bf16.mxu1 %v7373_v46  ;;  %v7384_v9 = vld [vmem:[%s9309_s1 + $0x948] sm:$0xff]   ;;  %v7407_v46 = vld [vmem:[%s9309_s1 + $0x9b0] sm:$0xff]   ;;  %v1284_v53 = vrot.slane %v8571_v3, %v7719_v35  ;;  %v7425_v3 = vld [vmem:[%s9309_s1 + $0xa58] sm:$0xff]  }
 0x11b   :  { %v7414_v55 = vld [vmem:[%s9309_s1 + $0xac0] sm:$0xff]  }
 0x11c   :  { %v8551_v57 = vadd.f32 %v6467_v52, %v4701_v51  ;;  %6748 = vmatpush3.bf16.msra.mxu0 %v7374_v47  ;;  %v7410_v51 = vld [vmem:[%s9309_s1 + $0x938] sm:$0xff]  }
 0x11d   :  { %6749 = vmatprep.subr.bf16.mxu0 %v7376_v54  ;;  %6770 = vmatpush3.bf16.msra.mxu1 %v7375_v50  ;;  %v7409_v50 = vld [vmem:[%s9309_s1 + $0x9f8] sm:$0xff]   ;;  %v7413_v54 = vld [vmem:[%s9309_s1 + $0xa40] sm:$0xff]  }
 0x11e   :  { %6771 = vmatprep.subr.bf16.mxu1 %v7377_v56  ;;  %v7411_v52 = vld [vmem:[%s9309_s1 + $0x9b8] sm:$0xff]   ;;  %v7415_v56 = vld [vmem:[%s9309_s1 + $0xa00] sm:$0xff]  }
 0x120   :  { %6750 = vmatpush3.bf16.msra.mxu0 %v7378_v58  ;;  %v1300_v58 = vcombine.high %v1284_v53, %v1284_v53 }
 0x121   :  { %6779 = vmatprep.subr.bf16.mxu0 %v7380_v61  ;;  %6772 = vmatpush3.bf16.msra.mxu1 %v7379_v63  ;;  %v7419_v61 = vld [vmem:[%s9309_s1 + $0xa08] sm:$0xff]   ;;  %v7421_v63 = vld [vmem:[%s9309_s1 + $0xa50] sm:$0xff]  }
 0x122   :  { %6801 = vmatprep.subr.bf16.mxu1 %v7381_v2  ;;  %v7424_v2 = vld [vmem:[%s9309_s1 + $0xa90] sm:$0xff]  }
 0x123   :  { %5259 = vmatmul.mubr.bf16.vlgmr.msra.gmra.mrb[32].mxu0 %v1277_v1  ;;  %v7423_v1 = vld [vmem:[%s9309_s1 + $0xa10] sm:$0xff]  }
 0x124   :  { %6780 = vmatpush3.bf16.msra.mxu0 %v7382_v4  ;;  %5299 = vmatmul.mubr.bf16.vlgmr.msra.gmra.mrb[32].mxu1 %v1299_v8  ;;  %v7426_v4 = vld [vmem:[%s9309_s1 + $0xad8] sm:$0xff]   ;;  %v7430_v8 = vld [vmem:[%s9309_s1 + $0xae0] sm:$0xff]  }
 0x125   :  { %6781 = vmatprep.subr.bf16.mxu0 %v7384_v9  ;;  %6802 = vmatpush3.bf16.msra.mxu1 %v7383_v6  ;;  %v7428_v6 = vld [vmem:[%s9309_s1 + $0xa98] sm:$0xff]   ;;  %v7431_v9 = vld [vmem:[%s9309_s1 + $0xa20] sm:$0xff]  }
 0x126   :  { %5338 = vmatprep.mubr.bf16.mxu0 %v1298_v12  ;;  %6803 = vmatprep.subr.bf16.mxu1 %v7385_v11  ;;  %v7433_v11 = vld [vmem:[%s9309_s1 + $0xa68] sm:$0xff]  }
 0x127   :  { %5378 = vmatprep.mubr.bf16.mxu1 %v1302_v15  ;;  %v7434_v12 = vld [vmem:[%s9309_s1 + $0xae8] sm:$0xff]  }
 0x128   :  { %6782 = vmatpush3.bf16.msra.mxu0 %v7386_v13  ;;  %v7435_v13 = vld [vmem:[%s9309_s1 + $0xa28] sm:$0xff]  }
 0x129   :  { %6783 = vmatprep.subr.bf16.mxu0 %v7388_v16  ;;  %6804 = vmatpush3.bf16.msra.mxu1 %v7387_v14  ;;  %v7436_v15 = vld [vmem:[%s9309_s1 + $0xaa8] sm:$0xff]  }
 0x12a   :  { %6805 = vmatprep.subr.bf16.mxu1 %v7389_v17  ;;  %v7437_v17 = vld [vmem:[%s9309_s1 + $0xa70] sm:$0xff]  }
 0x12c   :  { %6784 = vmatpush3.bf16.msra.mxu0 %v7390_v18 }
 0x12d   :  { %6785 = vmatprep.subr.bf16.mxu0 %v7392_v20  ;;  %6806 = vmatpush3.bf16.msra.mxu1 %v7391_v19 }
 0x12e   :  { %6807 = vmatprep.subr.bf16.mxu1 %v7393_v21  ;;  %v7438_v21 = vld [vmem:[%s9309_s1 + $0xaf0] sm:$0xff]  }
 0x130   :  { %6786 = vmatpush3.bf16.msra.mxu0 %v7394_v22  ;;  %v7439_v22 = vld [vmem:[%s9309_s1 + $0xa30] sm:$0xff]  }
 0x131   :  { %6787 = vmatprep.subr.bf16.mxu0 %v7396_v24  ;;  %6808 = vmatpush3.bf16.msra.mxu1 %v7395_v23 }
 0x132   :  { %6809 = vmatprep.subr.bf16.mxu1 %v7397_v25 }
 0x134   :  { %6788 = vmatpush3.bf16.msra.mxu0 %v7398_v26 }
 0x135   :  { %6789 = vmatprep.subr.bf16.mxu0 %v7400_v28  ;;  %6810 = vmatpush3.bf16.msra.mxu1 %v7399_v27  ;;  %v7440_v28 = vld [vmem:[%s9309_s1 + $0xab0] sm:$0xff]  }
 0x136   :  { %v6487_v31 = vpop.f32.mrb[8].mxu0  ;;  %6811 = vmatprep.subr.bf16.mxu1 %v7401_v29 }
 0x137   :  { %v6488_v33 = vpop.f32.mrb[9].mxu0  ;;  %v6509_v36 = vpop.f32.mrb[8].mxu1 }
 0x138   :  { %v6489_v37 = vadd.f32 %v6488_v33, %v6487_v31  ;;  %v6490_v38 = vpop.f32.mrb[10].mxu0  ;;  %v6510_v41 = vpop.f32.mrb[9].mxu1  ;;  %6790 = vmatpush3.bf16.msra.mxu0 %v7402_v30  ;;  %v7441_v30 = vld [vmem:[%s9309_s1 + $0xa78] sm:$0xff]  }
 0x139   :  { %v6491_v42 = vpop.f32.mrb[11].mxu0  ;;  %v6511_v44 = vadd.f32 %v6510_v41, %v6509_v36  ;;  %v6512_v45 = vpop.f32.mrb[10].mxu1  ;;  %6791 = vmatprep.subr.bf16.mxu0 %v7404_v34  ;;  %6812 = vmatpush3.bf16.msra.mxu1 %v7403_v32  ;;  %v7442_v32 = vld [vmem:[%s9309_s1 + $0xaf8] sm:$0xff]   ;;  %v21_v34 = vld [vmem:[%s9310_s0 + $0x28] sm:$0xff] }
 0x13a   :  { %v4781_v43 = vadd.f32 %v6489_v37, %v8551_v57  ;;  %v6513_v47 = vpop.f32.mrb[11].mxu1  ;;  %6813 = vmatprep.subr.bf16.mxu1 %v7405_v39  ;;  %v7416_v57 = vld [vmem:[%s9309_s1 + $0xa80] sm:$0xff]   ;;  %v7443_v33 = vld [vmem:[%s9309_s1 + $0xa38] sm:$0xff]   ;;  %v1310_v36 = vrot.slane %v21_v34, %v7719_v35  ;;  %v1303_v38 = vcombine.high %v21_v34, %v21_v34  ;;  %v7482_v34 = vld [vmem:[%s9309_s1 + $0xc48] sm:$0xff]  }
 0x13b   :  { %v7445_v37 = vld [vmem:[%s9309_s1 + $0xb40] sm:$0xff]   ;;  %v7444_v39 = vld [vmem:[%s9309_s1 + $0xab8] sm:$0xff]  }
 0x13c   :  { %v8659_v49 = vadd.f32 %v6511_v44, %v4781_v43  ;;  %6792 = vmatpush3.bf16.msra.mxu0 %v7406_v40  ;;  %v1318_v40 = vcombine.high %v1310_v36, %v1310_v36  ;;  %v1326_v41 = vrot.slane %v1310_v36, %v7719_v35  ;;  %v7446_v42 = vld [vmem:[%s9309_s1 + $0xbc0] sm:$0xff]   ;;  %v8783_v43 = vrot.slane %v1303_v38, %v7719_v35  ;;  %v7483_v36 = vld [vmem:[%s9309_s1 + $0xcc8] sm:$0xff]  }
 0x13d   :  { %6793 = vmatprep.subr.bf16.mxu0 %v7408_v48  ;;  %6814 = vmatpush3.bf16.msra.mxu1 %v7407_v46  ;;  %v7447_v44 = vld [vmem:[%s9309_s1 + $0xb00] sm:$0xff]   ;;  %v7485_v38 = vld [vmem:[%s9309_s1 + $0xc88] sm:$0xff]  }
 0x13e   :  { %6815 = vmatprep.subr.bf16.mxu1 %v7409_v50  ;;  %v1340_v45 = vrot.slane %v1318_v40, %v7719_v35  ;;  %v7448_v46 = vld [vmem:[%s9309_s1 + $0xb80] sm:$0xff]   ;;  %v1319_v47 = vcombine.high %v8783_v43, %v8783_v43  ;;  %v1348_v48 = vcombine.high %v1326_v41, %v1326_v41  ;;  %v7487_v40 = vld [vmem:[%s9309_s1 + $0xcd0] sm:$0xff]  }
 0x140   :  { %6794 = vmatpush3.bf16.msra.mxu0 %v7410_v51  ;;  %v1350_v50 = vcombine.high %v1340_v45, %v1340_v45  ;;  %v7450_v51 = vld [vmem:[%s9309_s1 + $0xbc8] sm:$0xff]  }
 0x141   :  { %6823 = vmatprep.subr.bf16.mxu0 %v7413_v54  ;;  %6816 = vmatpush3.bf16.msra.mxu1 %v7411_v52  ;;  %v1347_v52 = vrot.slane %v1319_v47, %v7719_v35  ;;  %v7452_v54 = vld [vmem:[%s9309_s1 + $0xb88] sm:$0xff]   ;;  %v7494_v47 = vld [vmem:[%s9309_s1 + $0xc60] sm:$0xff]  }
 0x142   :  { %6845 = vmatprep.subr.bf16.mxu1 %v7414_v55 }
 0x143   :  { %5339 = vmatmul.mubr.bf16.vlgmr.msra.gmra.mrb[36].mxu0 %v1284_v53  ;;  %v7451_v53 = vld [vmem:[%s9309_s1 + $0xb08] sm:$0xff]   ;;  %v1351_v55 = vcombine.high %v1347_v52, %v1347_v52 }
 0x144   :  { %6824 = vmatpush3.bf16.msra.mxu0 %v7415_v56  ;;  %5379 = vmatmul.mubr.bf16.vlgmr.msra.gmra.mrb[36].mxu1 %v1300_v58  ;;  %v7453_v56 = vld [vmem:[%s9309_s1 + $0xb50] sm:$0xff]  }
 0x145   :  { %6825 = vmatprep.subr.bf16.mxu0 %v7417_v59  ;;  %6846 = vmatpush3.bf16.msra.mxu1 %v7416_v57  ;;  %v7454_v57 = vld [vmem:[%s9309_s1 + $0xbd0] sm:$0xff]  }
 0x146   :  { %6847 = vmatprep.subr.bf16.mxu1 %v7418_v60  ;;  %5418 = vmatprep.mubr.bf16.mxu0 %v1340_v45  ;;  %v7455_v58 = vld [vmem:[%s9309_s1 + $0xb10] sm:$0xff]   ;;  %v7457_v60 = vld [vmem:[%s9309_s1 + $0xb58] sm:$0xff]  }
 0x147   :  { %5458 = vmatprep.mubr.bf16.mxu1 %v1350_v50  ;;  %v7456_v59 = vld [vmem:[%s9309_s1 + $0xb90] sm:$0xff]   ;;  %v7492_v45 = vld [vmem:[%s9309_s1 + $0xc18] sm:$0xff]   ;;  %v7497_v50 = vld [vmem:[%s9309_s1 + $0xca0] sm:$0xff]  }
 0x148   :  { %6826 = vmatpush3.bf16.msra.mxu0 %v7419_v61  ;;  %v7458_v61 = vld [vmem:[%s9309_s1 + $0xbd8] sm:$0xff]  }
 0x149   :  { %6827 = vmatprep.subr.bf16.mxu0 %v7421_v63  ;;  %6848 = vmatpush3.bf16.msra.mxu1 %v7420_v62  ;;  %v7459_v62 = vld [vmem:[%s9309_s1 + $0xb18] sm:$0xff]  }
 0x14a   :  { %6849 = vmatprep.subr.bf16.mxu1 %v7422_v0  ;;  %v7460_v63 = vld [vmem:[%s9309_s1 + $0xb98] sm:$0xff]   ;;  %v7461_v0 = vld [vmem:[%s9309_s1 + $0xb60] sm:$0xff]  }
 0x14c   :  { %6828 = vmatpush3.bf16.msra.mxu0 %v7423_v1  ;;  %v7462_v1 = vld [vmem:[%s9309_s1 + $0xbe0] sm:$0xff]  }
 0x14d   :  { %6829 = vmatprep.subr.bf16.mxu0 %v7425_v3  ;;  %6850 = vmatpush3.bf16.msra.mxu1 %v7424_v2  ;;  %v7463_v2 = vld [vmem:[%s9309_s1 + $0xb20] sm:$0xff]  }
 0x14e   :  { %6851 = vmatprep.subr.bf16.mxu1 %v7426_v4  ;;  %v7464_v3 = vld [vmem:[%s9309_s1 + $0xba0] sm:$0xff]   ;;  %v7465_v4 = vld [vmem:[%s9309_s1 + $0xb68] sm:$0xff]  }
 0x150   :  { %6830 = vmatpush3.bf16.msra.mxu0 %v7427_v5  ;;  %v7466_v5 = vld [vmem:[%s9309_s1 + $0xbe8] sm:$0xff]  }
 0x151   :  { %6831 = vmatprep.subr.bf16.mxu0 %v7429_v7  ;;  %6852 = vmatpush3.bf16.msra.mxu1 %v7428_v6  ;;  %v7467_v7 = vld [vmem:[%s9309_s1 + $0xb28] sm:$0xff]  }
 0x152   :  { %6853 = vmatprep.subr.bf16.mxu1 %v7430_v8 }
 0x154   :  { %6832 = vmatpush3.bf16.msra.mxu0 %v7431_v9  ;;  %v7468_v9 = vld [vmem:[%s9309_s1 + $0xba8] sm:$0xff]  }
 0x155   :  { %6833 = vmatprep.subr.bf16.mxu0 %v7433_v11  ;;  %6854 = vmatpush3.bf16.msra.mxu1 %v7432_v10 }
 0x156   :  { %v6531_v14 = vpop.f32.mrb[12].mxu0  ;;  %6855 = vmatprep.subr.bf16.mxu1 %v7434_v12 }
 0x157   :  { %v6532_v16 = vpop.f32.mrb[13].mxu0  ;;  %v6553_v18 = vpop.f32.mrb[12].mxu1 }
 0x158   :  { %v6533_v19 = vadd.f32 %v6532_v16, %v6531_v14  ;;  %v6534_v20 = vpop.f32.mrb[14].mxu0  ;;  %v6554_v23 = vpop.f32.mrb[13].mxu1  ;;  %6834 = vmatpush3.bf16.msra.mxu0 %v7435_v13  ;;  %v7469_v13 = vld [vmem:[%s9309_s1 + $0xb70] sm:$0xff]  }
 0x159   :  { %v6535_v24 = vpop.f32.mrb[15].mxu0  ;;  %v6555_v26 = vadd.f32 %v6554_v23, %v6553_v18  ;;  %v6556_v27 = vpop.f32.mrb[14].mxu1  ;;  %6835 = vmatprep.subr.bf16.mxu0 %v7437_v17  ;;  %6856 = vmatpush3.bf16.msra.mxu1 %v7436_v15  ;;  %v7470_v14 = vld [vmem:[%s9309_s1 + $0xbf0] sm:$0xff]  }
 0x15a   :  { %v4861_v25 = vadd.f32 %v6533_v19, %v8659_v49  ;;  %v6557_v29 = vpop.f32.mrb[15].mxu1  ;;  %6857 = vmatprep.subr.bf16.mxu1 %v7438_v21  ;;  %v7449_v49 = vld [vmem:[%s9309_s1 + $0xb48] sm:$0xff]   ;;  %v7471_v20 = vld [vmem:[%s9309_s1 + $0xb30] sm:$0xff]   ;;  %v7473_v24 = vld [vmem:[%s9309_s1 + $0xb78] sm:$0xff]  }
 0x15b   :  { %v7476_v27 = vld [vmem:[%s9309_s1 + $0xbb8] sm:$0xff]   ;;  %v7478_v29 = vld [vmem:[%s9309_s1 + $0xc40] sm:$0xff]  }
 0x15c   :  { %v8760_v31 = vadd.f32 %v6555_v26, %v4861_v25  ;;  %6836 = vmatpush3.bf16.msra.mxu0 %v7439_v22  ;;  %v7472_v22 = vld [vmem:[%s9309_s1 + $0xbb0] sm:$0xff]   ;;  %v7474_v25 = vld [vmem:[%s9309_s1 + $0xbf8] sm:$0xff]  }
 0x15d   :  { %6837 = vmatprep.subr.bf16.mxu0 %v7441_v30  ;;  %6858 = vmatpush3.bf16.msra.mxu1 %v7440_v28  ;;  %v7475_v26 = vld [vmem:[%s9309_s1 + $0xb38] sm:$0xff]   ;;  %v1333_v28 = vrot.slane %v8783_v43, %v7719_v35  ;;  %v7479_v30 = vld [vmem:[%s9309_s1 + $0xcc0] sm:$0xff]  }
 0x15e   :  { %6859 = vmatprep.subr.bf16.mxu1 %v7442_v32  ;;  %v7481_v32 = vld [vmem:[%s9309_s1 + $0xc80] sm:$0xff]   ;;  %v7490_v43 = vld [vmem:[%s9309_s1 + $0xc58] sm:$0xff]  }
 0x160   :  { %6838 = vmatpush3.bf16.msra.mxu0 %v7443_v33  ;;  %v1349_v33 = vcombine.high %v1333_v28, %v1333_v28 }
 0x161   :  { %6867 = vmatprep.subr.bf16.mxu0 %v7445_v37  ;;  %6860 = vmatpush3.bf16.msra.mxu1 %v7444_v39  ;;  %v7484_v37 = vld [vmem:[%s9309_s1 + $0xc08] sm:$0xff]   ;;  %v7486_v39 = vld [vmem:[%s9309_s1 + $0xc50] sm:$0xff]  }
 0x162   :  { %6889 = vmatprep.subr.bf16.mxu1 %v7446_v42  ;;  %v7489_v42 = vld [vmem:[%s9309_s1 + $0xc90] sm:$0xff]  }
 0x163   :  { %5419 = vmatmul.mubr.bf16.vlgmr.msra.gmra.mrb[40].mxu0 %v1326_v41  ;;  %v7488_v41 = vld [vmem:[%s9309_s1 + $0xc10] sm:$0xff]  }
 0x164   :  { %6868 = vmatpush3.bf16.msra.mxu0 %v7447_v44  ;;  %5459 = vmatmul.mubr.bf16.vlgmr.msra.gmra.mrb[40].mxu1 %v1348_v48  ;;  %v7491_v44 = vld [vmem:[%s9309_s1 + $0xcd8] sm:$0xff]   ;;  %v7495_v48 = vld [vmem:[%s9309_s1 + $0xce0] sm:$0xff]  }
 0x165   :  { %6869 = vmatprep.subr.bf16.mxu0 %v7449_v49  ;;  %6890 = vmatpush3.bf16.msra.mxu1 %v7448_v46  ;;  %v7493_v46 = vld [vmem:[%s9309_s1 + $0xc98] sm:$0xff]   ;;  %v7496_v49 = vld [vmem:[%s9309_s1 + $0xc20] sm:$0xff]  }
 0x166   :  { %5498 = vmatprep.mubr.bf16.mxu0 %v1347_v52  ;;  %6891 = vmatprep.subr.bf16.mxu1 %v7450_v51  ;;  %v7498_v51 = vld [vmem:[%s9309_s1 + $0xc68] sm:$0xff]  }
 0x167   :  { %5538 = vmatprep.mubr.bf16.mxu1 %v1351_v55  ;;  %v7499_v52 = vld [vmem:[%s9309_s1 + $0xce8] sm:$0xff]  }
 0x168   :  { %6870 = vmatpush3.bf16.msra.mxu0 %v7451_v53 }
 0x169   :  { %6871 = vmatprep.subr.bf16.mxu0 %v7453_v56  ;;  %6892 = vmatpush3.bf16.msra.mxu1 %v7452_v54  ;;  %v7500_v54 = vld [vmem:[%s9309_s1 + $0xc28] sm:$0xff]  }
 0x16a   :  { %6893 = vmatprep.subr.bf16.mxu1 %v7454_v57  ;;  %v7501_v56 = vld [vmem:[%s9309_s1 + $0xca8] sm:$0xff]  }
 0x16c   :  { %6872 = vmatpush3.bf16.msra.mxu0 %v7455_v58 }
 0x16d   :  { %6873 = vmatprep.subr.bf16.mxu0 %v7457_v60  ;;  %6894 = vmatpush3.bf16.msra.mxu1 %v7456_v59  ;;  %v7502_v60 = vld [vmem:[%s9309_s1 + $0xc70] sm:$0xff]  }
 0x16e   :  { %6895 = vmatprep.subr.bf16.mxu1 %v7458_v61  ;;  %v7503_v61 = vld [vmem:[%s9309_s1 + $0xcf0] sm:$0xff]  }
 0x170   :  { %6874 = vmatpush3.bf16.msra.mxu0 %v7459_v62 }
 0x171   :  { %6875 = vmatprep.subr.bf16.mxu0 %v7461_v0  ;;  %6896 = vmatpush3.bf16.msra.mxu1 %v7460_v63 }
 0x172   :  { %6897 = vmatprep.subr.bf16.mxu1 %v7462_v1 }
 0x174   :  { %6876 = vmatpush3.bf16.msra.mxu0 %v7463_v2 }
 0x175   :  { %6877 = vmatprep.subr.bf16.mxu0 %v7465_v4  ;;  %6898 = vmatpush3.bf16.msra.mxu1 %v7464_v3  ;;  %v7504_v3 = vld [vmem:[%s9309_s1 + $0xc30] sm:$0xff]  }
 0x176   :  { %v6575_v6 = vpop.f32.mrb[16].mxu0  ;;  %6899 = vmatprep.subr.bf16.mxu1 %v7466_v5  ;;  %v7505_v5 = vld [vmem:[%s9309_s1 + $0xcb0] sm:$0xff]  }
 0x177   :  { %v6576_v8 = vpop.f32.mrb[17].mxu0  ;;  %v6597_v10 = vpop.f32.mrb[16].mxu1 }
 0x178   :  { %v6577_v11 = vadd.f32 %v6576_v8, %v6575_v6  ;;  %v6578_v12 = vpop.f32.mrb[18].mxu0  ;;  %v6598_v15 = vpop.f32.mrb[17].mxu1  ;;  %6878 = vmatpush3.bf16.msra.mxu0 %v7467_v7  ;;  %v7506_v7 = vld [vmem:[%s9309_s1 + $0xc78] sm:$0xff]  }
 0x179   :  { %v6579_v16 = vpop.f32.mrb[19].mxu0  ;;  %v6599_v18 = vadd.f32 %v6598_v15, %v6597_v10  ;;  %v6600_v19 = vpop.f32.mrb[18].mxu1  ;;  %6879 = vmatprep.subr.bf16.mxu0 %v7469_v13  ;;  %6900 = vmatpush3.bf16.msra.mxu1 %v7468_v9  ;;  %v7507_v8 = vld [vmem:[%s9309_s1 + $0xcf8] sm:$0xff]   ;;  %v22_v10 = vld [vmem:[%s9310_s0 + $0x30] sm:$0xff]  ;;  %v7510_v12 = vld [vmem:[%s9309_s1 + $0xd40] sm:$0xff]  }
 0x17a   :  { %v4941_v17 = vadd.f32 %v6577_v11, %v8760_v31  ;;  %v6601_v21 = vpop.f32.mrb[19].mxu1  ;;  %6901 = vmatprep.subr.bf16.mxu1 %v7470_v14  ;;  %v7480_v31 = vld [vmem:[%s9309_s1 + $0xc00] sm:$0xff]   ;;  %v7508_v9 = vld [vmem:[%s9309_s1 + $0xc38] sm:$0xff]   ;;  %v1359_v11 = vrot.slane %v22_v10, %v7719_v35  ;;  %v1352_v13 = vcombine.high %v22_v10, %v22_v10  ;;  %v7547_v10 = vld [vmem:[%s9309_s1 + $0xe48] sm:$0xff]  }
 0x17b   :  { %v7509_v14 = vld [vmem:[%s9309_s1 + $0xcb8] sm:$0xff]   ;;  %v7512_v19 = vld [vmem:[%s9309_s1 + $0xd00] sm:$0xff]  }
 0x17c   :  { %v8868_v23 = vadd.f32 %v6599_v18, %v4941_v17  ;;  %6880 = vmatpush3.bf16.msra.mxu0 %v7471_v20  ;;  %v1367_v15 = vcombine.high %v1359_v11, %v1359_v11  ;;  %v1375_v16 = vrot.slane %v1359_v11, %v7719_v35  ;;  %v7511_v17 = vld [vmem:[%s9309_s1 + $0xdc0] sm:$0xff]   ;;  %v8995_v18 = vrot.slane %v1352_v13, %v7719_v35  ;;  %v7548_v11 = vld [vmem:[%s9309_s1 + $0xec8] sm:$0xff]  }
 0x17d   :  { %6881 = vmatprep.subr.bf16.mxu0 %v7473_v24  ;;  %6902 = vmatpush3.bf16.msra.mxu1 %v7472_v22  ;;  %v7513_v21 = vld [vmem:[%s9309_s1 + $0xd80] sm:$0xff]   ;;  %v7514_v24 = vld [vmem:[%s9309_s1 + $0xd48] sm:$0xff]  }
 0x17e   :  { %6903 = vmatprep.subr.bf16.mxu1 %v7474_v25  ;;  %v1389_v20 = vrot.slane %v1367_v15, %v7719_v35  ;;  %v1368_v22 = vcombine.high %v8995_v18, %v8995_v18  ;;  %v7550_v13 = vld [vmem:[%s9309_s1 + $0xe88] sm:$0xff]   ;;  %v7552_v15 = vld [vmem:[%s9309_s1 + $0xed0] sm:$0xff]  }
 0x180   :  { %6882 = vmatpush3.bf16.msra.mxu0 %v7475_v26  ;;  %v1399_v25 = vcombine.high %v1389_v20, %v1389_v20  ;;  %v7515_v26 = vld [vmem:[%s9309_s1 + $0xdc8] sm:$0xff]  }
 0x181   :  { %6911 = vmatprep.subr.bf16.mxu0 %v7478_v29  ;;  %6904 = vmatpush3.bf16.msra.mxu1 %v7476_v27  ;;  %v1396_v27 = vrot.slane %v1368_v22, %v7719_v35  ;;  %v7517_v29 = vld [vmem:[%s9309_s1 + $0xd88] sm:$0xff]   ;;  %v7559_v22 = vld [vmem:[%s9309_s1 + $0xe60] sm:$0xff]  }
 0x182   :  { %6933 = vmatprep.subr.bf16.mxu1 %v7479_v30 }
 0x183   :  { %5499 = vmatmul.mubr.bf16.vlgmr.msra.gmra.mrb[44].mxu0 %v1333_v28  ;;  %v7516_v28 = vld [vmem:[%s9309_s1 + $0xd08] sm:$0xff]   ;;  %v1400_v30 = vcombine.high %v1396_v27, %v1396_v27 }
 0x184   :  { %6912 = vmatpush3.bf16.msra.mxu0 %v7480_v31  ;;  %5539 = vmatmul.mubr.bf16.vlgmr.msra.gmra.mrb[44].mxu1 %v1349_v33  ;;  %v7518_v31 = vld [vmem:[%s9309_s1 + $0xd50] sm:$0xff]  }
 0x185   :  { %6913 = vmatprep.subr.bf16.mxu0 %v7482_v34  ;;  %6934 = vmatpush3.bf16.msra.mxu1 %v7481_v32  ;;  %v7519_v32 = vld [vmem:[%s9309_s1 + $0xdd0] sm:$0xff]  }
 0x186   :  { %6935 = vmatprep.subr.bf16.mxu1 %v7483_v36  ;;  %5578 = vmatprep.mubr.bf16.mxu0 %v1389_v20  ;;  %v7520_v33 = vld [vmem:[%s9309_s1 + $0xd10] sm:$0xff]   ;;  %v7522_v36 = vld [vmem:[%s9309_s1 + $0xd58] sm:$0xff]  }
 0x187   :  { %5618 = vmatprep.mubr.bf16.mxu1 %v1399_v25  ;;  %v7521_v34 = vld [vmem:[%s9309_s1 + $0xd90] sm:$0xff]   ;;  %v7557_v20 = vld [vmem:[%s9309_s1 + $0xe18] sm:$0xff]   ;;  %v7562_v25 = vld [vmem:[%s9309_s1 + $0xea0] sm:$0xff]  }
 0x188   :  { %6914 = vmatpush3.bf16.msra.mxu0 %v7484_v37  ;;  %v7523_v37 = vld [vmem:[%s9309_s1 + $0xdd8] sm:$0xff]  }
 0x189   :  { %6915 = vmatprep.subr.bf16.mxu0 %v7486_v39  ;;  %6936 = vmatpush3.bf16.msra.mxu1 %v7485_v38  ;;  %v7524_v38 = vld [vmem:[%s9309_s1 + $0xd18] sm:$0xff]  }
 0x18a   :  { %6937 = vmatprep.subr.bf16.mxu1 %v7487_v40  ;;  %v7525_v39 = vld [vmem:[%s9309_s1 + $0xd98] sm:$0xff]   ;;  %v7526_v40 = vld [vmem:[%s9309_s1 + $0xd60] sm:$0xff]  }
 0x18c   :  { %6916 = vmatpush3.bf16.msra.mxu0 %v7488_v41  ;;  %v7527_v41 = vld [vmem:[%s9309_s1 + $0xde0] sm:$0xff]  }
 0x18d   :  { %6917 = vmatprep.subr.bf16.mxu0 %v7490_v43  ;;  %6938 = vmatpush3.bf16.msra.mxu1 %v7489_v42  ;;  %v7528_v42 = vld [vmem:[%s9309_s1 + $0xd20] sm:$0xff]  }
 0x18e   :  { %6939 = vmatprep.subr.bf16.mxu1 %v7491_v44  ;;  %v7529_v43 = vld [vmem:[%s9309_s1 + $0xda0] sm:$0xff]   ;;  %v7530_v44 = vld [vmem:[%s9309_s1 + $0xd68] sm:$0xff]  }
 0x190   :  { %6918 = vmatpush3.bf16.msra.mxu0 %v7492_v45  ;;  %v7531_v45 = vld [vmem:[%s9309_s1 + $0xde8] sm:$0xff]  }
 0x191   :  { %6919 = vmatprep.subr.bf16.mxu0 %v7494_v47  ;;  %6940 = vmatpush3.bf16.msra.mxu1 %v7493_v46  ;;  %v7532_v47 = vld [vmem:[%s9309_s1 + $0xd28] sm:$0xff]  }
 0x192   :  { %6941 = vmatprep.subr.bf16.mxu1 %v7495_v48 }
 0x194   :  { %6920 = vmatpush3.bf16.msra.mxu0 %v7496_v49  ;;  %v7533_v49 = vld [vmem:[%s9309_s1 + $0xda8] sm:$0xff]  }
 0x195   :  { %6921 = vmatprep.subr.bf16.mxu0 %v7498_v51  ;;  %6942 = vmatpush3.bf16.msra.mxu1 %v7497_v50 }
 0x196   :  { %v6619_v53 = vpop.f32.mrb[20].mxu0  ;;  %6943 = vmatprep.subr.bf16.mxu1 %v7499_v52 }
 0x197   :  { %v6620_v55 = vpop.f32.mrb[21].mxu0  ;;  %v6641_v57 = vpop.f32.mrb[20].mxu1 }
 0x198   :  { %v6621_v58 = vadd.f32 %v6620_v55, %v6619_v53  ;;  %v6622_v59 = vpop.f32.mrb[22].mxu0  ;;  %v6642_v62 = vpop.f32.mrb[21].mxu1  ;;  %6922 = vmatpush3.bf16.msra.mxu0 %v7500_v54  ;;  %v7534_v53 = vld [vmem:[%s9309_s1 + $0xd70] sm:$0xff]  }
 0x199   :  { %v6623_v63 = vpop.f32.mrb[23].mxu0  ;;  %v6643_v1 = vadd.f32 %v6642_v62, %v6641_v57  ;;  %v6644_v2 = vpop.f32.mrb[22].mxu1  ;;  %6923 = vmatprep.subr.bf16.mxu0 %v7502_v60  ;;  %6944 = vmatpush3.bf16.msra.mxu1 %v7501_v56  ;;  %v7535_v54 = vld [vmem:[%s9309_s1 + $0xdf0] sm:$0xff]  }
 0x19a   :  { %v5021_v0 = vadd.f32 %v6621_v58, %v8868_v23  ;;  %v6645_v4 = vpop.f32.mrb[23].mxu1  ;;  %6945 = vmatprep.subr.bf16.mxu1 %v7503_v61  ;;  %v1397_v23 = vcombine.high %v1375_v16, %v1375_v16  ;;  %v7536_v60 = vld [vmem:[%s9309_s1 + $0xd30] sm:$0xff]   ;;  %v7540_v2 = vld [vmem:[%s9309_s1 + $0xd38] sm:$0xff]  }
 0x19b   :  { %v7537_v62 = vld [vmem:[%s9309_s1 + $0xdb0] sm:$0xff]   ;;  %v1382_v4 = vrot.slane %v8995_v18, %v7719_v35  ;;  %v7555_v18 = vld [vmem:[%s9309_s1 + $0xe58] sm:$0xff]  }
 0x19c   :  { %v8969_v6 = vadd.f32 %v6643_v1, %v5021_v0  ;;  %6924 = vmatpush3.bf16.msra.mxu0 %v7504_v3  ;;  %v7538_v0 = vld [vmem:[%s9309_s1 + $0xd78] sm:$0xff]  }
 0x19d   :  { %6925 = vmatprep.subr.bf16.mxu0 %v7506_v7  ;;  %6946 = vmatpush3.bf16.msra.mxu1 %v7505_v5  ;;  %v7539_v1 = vld [vmem:[%s9309_s1 + $0xdf8] sm:$0xff]   ;;  %v7543_v5 = vld [vmem:[%s9309_s1 + $0xe40] sm:$0xff]  }
 0x19e   :  { %6947 = vmatprep.subr.bf16.mxu1 %v7507_v8  ;;  %v7541_v3 = vld [vmem:[%s9309_s1 + $0xdb8] sm:$0xff]   ;;  %v7545_v7 = vld [vmem:[%s9309_s1 + $0xe00] sm:$0xff]  }
 0x19f   :  { %v7546_v8 = vld [vmem:[%s9309_s1 + $0xe80] sm:$0xff]  }
 0x1a0   :  { %6926 = vmatpush3.bf16.msra.mxu0 %v7508_v9  ;;  %v1398_v9 = vcombine.high %v1382_v4, %v1382_v4 }
 0x1a1   :  { %6955 = vmatprep.subr.bf16.mxu0 %v7510_v12  ;;  %6948 = vmatpush3.bf16.msra.mxu1 %v7509_v14  ;;  %v7549_v12 = vld [vmem:[%s9309_s1 + $0xe08] sm:$0xff]   ;;  %v7551_v14 = vld [vmem:[%s9309_s1 + $0xe50] sm:$0xff]  }
 0x1a2   :  { %6977 = vmatprep.subr.bf16.mxu1 %v7511_v17  ;;  %v7554_v17 = vld [vmem:[%s9309_s1 + $0xe90] sm:$0xff]  }
 0x1a3   :  { %5579 = vmatmul.mubr.bf16.vlgmr.msra.gmra.mrb[48].mxu0 %v1375_v16  ;;  %v7553_v16 = vld [vmem:[%s9309_s1 + $0xe10] sm:$0xff]  }
 0x1a4   :  { %6956 = vmatpush3.bf16.msra.mxu0 %v7512_v19  ;;  %5619 = vmatmul.mubr.bf16.vlgmr.msra.gmra.mrb[48].mxu1 %v1397_v23  ;;  %v7556_v19 = vld [vmem:[%s9309_s1 + $0xed8] sm:$0xff]   ;;  %v7560_v23 = vld [vmem:[%s9309_s1 + $0xee0] sm:$0xff]  }
 0x1a5   :  { %6957 = vmatprep.subr.bf16.mxu0 %v7514_v24  ;;  %6978 = vmatpush3.bf16.msra.mxu1 %v7513_v21  ;;  %v7558_v21 = vld [vmem:[%s9309_s1 + $0xe98] sm:$0xff]   ;;  %v7561_v24 = vld [vmem:[%s9309_s1 + $0xe20] sm:$0xff]  }
 0x1a6   :  { %5658 = vmatprep.mubr.bf16.mxu0 %v1396_v27  ;;  %6979 = vmatprep.subr.bf16.mxu1 %v7515_v26  ;;  %v7563_v26 = vld [vmem:[%s9309_s1 + $0xe68] sm:$0xff]  }
 0x1a7   :  { %5698 = vmatprep.mubr.bf16.mxu1 %v1400_v30  ;;  %v7564_v27 = vld [vmem:[%s9309_s1 + $0xee8] sm:$0xff]  }
 0x1a8   :  { %6958 = vmatpush3.bf16.msra.mxu0 %v7516_v28 }
 0x1a9   :  { %6959 = vmatprep.subr.bf16.mxu0 %v7518_v31  ;;  %6980 = vmatpush3.bf16.msra.mxu1 %v7517_v29  ;;  %v7565_v29 = vld [vmem:[%s9309_s1 + $0xe28] sm:$0xff]  }
 0x1aa   :  { %6981 = vmatprep.subr.bf16.mxu1 %v7519_v32  ;;  %v7566_v31 = vld [vmem:[%s9309_s1 + $0xea8] sm:$0xff]  }
 0x1ac   :  { %6960 = vmatpush3.bf16.msra.mxu0 %v7520_v33 }
 0x1ad   :  { %6961 = vmatprep.subr.bf16.mxu0 %v7522_v36  ;;  %6982 = vmatpush3.bf16.msra.mxu1 %v7521_v34  ;;  %v7567_v36 = vld [vmem:[%s9309_s1 + $0xe70] sm:$0xff]  }
 0x1ae   :  { %6983 = vmatprep.subr.bf16.mxu1 %v7523_v37  ;;  %v7568_v37 = vld [vmem:[%s9309_s1 + $0xef0] sm:$0xff]  }
 0x1b0   :  { %6962 = vmatpush3.bf16.msra.mxu0 %v7524_v38 }
 0x1b1   :  { %6963 = vmatprep.subr.bf16.mxu0 %v7526_v40  ;;  %6984 = vmatpush3.bf16.msra.mxu1 %v7525_v39 }
 0x1b2   :  { %6985 = vmatprep.subr.bf16.mxu1 %v7527_v41 }
 0x1b4   :  { %6964 = vmatpush3.bf16.msra.mxu0 %v7528_v42 }
 0x1b5   :  { %6965 = vmatprep.subr.bf16.mxu0 %v7530_v44  ;;  %6986 = vmatpush3.bf16.msra.mxu1 %v7529_v43  ;;  %v7569_v43 = vld [vmem:[%s9309_s1 + $0xe30] sm:$0xff]  }
 0x1b6   :  { %v6663_v46 = vpop.f32.mrb[24].mxu0  ;;  %6987 = vmatprep.subr.bf16.mxu1 %v7531_v45  ;;  %v7570_v45 = vld [vmem:[%s9309_s1 + $0xeb0] sm:$0xff]  }
 0x1b7   :  { %v6664_v48 = vpop.f32.mrb[25].mxu0  ;;  %v6685_v50 = vpop.f32.mrb[24].mxu1 }
 0x1b8   :  { %v6665_v51 = vadd.f32 %v6664_v48, %v6663_v46  ;;  %v6666_v52 = vpop.f32.mrb[26].mxu0  ;;  %v6686_v55 = vpop.f32.mrb[25].mxu1  ;;  %6966 = vmatpush3.bf16.msra.mxu0 %v7532_v47  ;;  %v7571_v47 = vld [vmem:[%s9309_s1 + $0xe78] sm:$0xff]  }
 0x1b9   :  { %v6667_v56 = vpop.f32.mrb[27].mxu0  ;;  %v6687_v58 = vadd.f32 %v6686_v55, %v6685_v50  ;;  %v6688_v59 = vpop.f32.mrb[26].mxu1  ;;  %6967 = vmatprep.subr.bf16.mxu0 %v7534_v53  ;;  %6988 = vmatpush3.bf16.msra.mxu1 %v7533_v49  ;;  %v7572_v48 = vld [vmem:[%s9309_s1 + $0xef8] sm:$0xff]   ;;  %v7575_v52 = vld [vmem:[%s9309_s1 + $0xf40] sm:$0xff]  }
 0x1ba   :  { %v5101_v57 = vadd.f32 %v6665_v51, %v8969_v6  ;;  %v6689_v61 = vpop.f32.mrb[27].mxu1  ;;  %6989 = vmatprep.subr.bf16.mxu1 %v7535_v54  ;;  %v7544_v6 = vld [vmem:[%s9309_s1 + $0xec0] sm:$0xff]   ;;  %v7573_v49 = vld [vmem:[%s9309_s1 + $0xe38] sm:$0xff]  }
 0x1bb   :  { %v23_v50 = vld [vmem:[%s9310_s0 + $0x38] sm:$0xff] }
 0x1bc   :  { %v9080_v63 = vadd.f32 %v6687_v58, %v5101_v57  ;;  %6968 = vmatpush3.bf16.msra.mxu0 %v7536_v60  ;;  %v1408_v51 = vrot.slane %v23_v50, %v7719_v35  ;;  %v1401_v53 = vcombine.high %v23_v50, %v23_v50  ;;  %v7574_v54 = vld [vmem:[%s9309_s1 + $0xeb8] sm:$0xff]   ;;  %v7576_v57 = vld [vmem:[%s9309_s1 + $0xfc0] sm:$0xff]  }
 0x1bd   :  { %6969 = vmatprep.subr.bf16.mxu0 %v7538_v0  ;;  %6990 = vmatpush3.bf16.msra.mxu1 %v7537_v62  ;;  %v7577_v60 = vld [vmem:[%s9309_s1 + $0xf00] sm:$0xff]  }
 0x1be   :  { %6991 = vmatprep.subr.bf16.mxu1 %v7539_v1  ;;  %v1416_v55 = vcombine.high %v1408_v51, %v1408_v51  ;;  %v1424_v56 = vrot.slane %v1408_v51, %v7719_v35  ;;  %v9207_v58 = vrot.slane %v1401_v53, %v7719_v35  ;;  %v7578_v1 = vld [vmem:[%s9309_s1 + $0xf80] sm:$0xff]  }
 0x1c0   :  { %6970 = vmatpush3.bf16.msra.mxu0 %v7540_v2  ;;  %v1438_v59 = vrot.slane %v1416_v55, %v7719_v35  ;;  %v1417_v61 = vcombine.high %v9207_v58, %v9207_v58  ;;  %v1446_v62 = vcombine.high %v1424_v56, %v1424_v56 }
 0x1c1   :  { %6999 = vmatprep.subr.bf16.mxu0 %v7543_v5  ;;  %6992 = vmatpush3.bf16.msra.mxu1 %v7541_v3  ;;  %v7580_v3 = vld [vmem:[%s9309_s1 + $0xfc8] sm:$0xff]  }
 0x1c2   :  { %7021 = vmatprep.subr.bf16.mxu1 %v7544_v6  ;;  %v1448_v0 = vcombine.high %v1438_v59, %v1438_v59  ;;  %v1445_v2 = vrot.slane %v1417_v61, %v7719_v35  ;;  %v7583_v6 = vld [vmem:[%s9309_s1 + $0xf50] sm:$0xff]  }
 0x1c3   :  { %5659 = vmatmul.mubr.bf16.vlgmr.msra.gmra.mrb[52].mxu0 %v1382_v4  ;;  %v7581_v4 = vld [vmem:[%s9309_s1 + $0xf08] sm:$0xff]  }
 0x1c4   :  { %7000 = vmatpush3.bf16.msra.mxu0 %v7545_v7  ;;  %5699 = vmatmul.mubr.bf16.vlgmr.msra.gmra.mrb[52].mxu1 %v1398_v9  ;;  %v1449_v5 = vcombine.high %v1445_v2, %v1445_v2  ;;  %v7582_v7 = vld [vmem:[%s9309_s1 + $0xf88] sm:$0xff]   ;;  %v7585_v9 = vld [vmem:[%s9309_s1 + $0xf10] sm:$0xff]  }
 0x1c5   :  { %7001 = vmatprep.subr.bf16.mxu0 %v7547_v10  ;;  %7022 = vmatpush3.bf16.msra.mxu1 %v7546_v8  ;;  %v7584_v8 = vld [vmem:[%s9309_s1 + $0xfd0] sm:$0xff]   ;;  %v7587_v10 = vld [vmem:[%s9309_s1 + $0xf58] sm:$0xff]  }
 0x1c6   :  { %7023 = vmatprep.subr.bf16.mxu1 %v7548_v11  ;;  %5738 = vmatprep.mubr.bf16.mxu0 %v1438_v59  ;;  %v7586_v11 = vld [vmem:[%s9309_s1 + $0xf90] sm:$0xff]  }
 0x1c7   :  { %5778 = vmatprep.mubr.bf16.mxu1 %v1448_v0 }
 0x1c8   :  { %7002 = vmatpush3.bf16.msra.mxu0 %v7549_v12  ;;  %v7588_v12 = vld [vmem:[%s9309_s1 + $0xfd8] sm:$0xff]  }
 0x1c9   :  { %7003 = vmatprep.subr.bf16.mxu0 %v7551_v14  ;;  %7024 = vmatpush3.bf16.msra.mxu1 %v7550_v13  ;;  %v7589_v13 = vld [vmem:[%s9309_s1 + $0xf18] sm:$0xff]   ;;  %v7591_v14 = vld [vmem:[%s9309_s1 + $0xf60] sm:$0xff]  }
 0x1ca   :  { %7025 = vmatprep.subr.bf16.mxu1 %v7552_v15  ;;  %v7590_v15 = vld [vmem:[%s9309_s1 + $0xf98] sm:$0xff]  }
 0x1cc   :  { %7004 = vmatpush3.bf16.msra.mxu0 %v7553_v16  ;;  %v7592_v16 = vld [vmem:[%s9309_s1 + $0xfe0] sm:$0xff]  }
 0x1cd   :  { %7005 = vmatprep.subr.bf16.mxu0 %v7555_v18  ;;  %7026 = vmatpush3.bf16.msra.mxu1 %v7554_v17  ;;  %v7593_v17 = vld [vmem:[%s9309_s1 + $0xf20] sm:$0xff]   ;;  %v7595_v18 = vld [vmem:[%s9309_s1 + $0xf68] sm:$0xff]  }
 0x1ce   :  { %7027 = vmatprep.subr.bf16.mxu1 %v7556_v19  ;;  %v7594_v19 = vld [vmem:[%s9309_s1 + $0xfa0] sm:$0xff]  }
 0x1d0   :  { %7006 = vmatpush3.bf16.msra.mxu0 %v7557_v20 }
 0x1d1   :  { %7007 = vmatprep.subr.bf16.mxu0 %v7559_v22  ;;  %7028 = vmatpush3.bf16.msra.mxu1 %v7558_v21  ;;  %v7596_v21 = vld [vmem:[%s9309_s1 + $0xfe8] sm:$0xff]  }
 0x1d2   :  { %7029 = vmatprep.subr.bf16.mxu1 %v7560_v23  ;;  %v7597_v23 = vld [vmem:[%s9309_s1 + $0xf28] sm:$0xff]  }
 0x1d4   :  { %7008 = vmatpush3.bf16.msra.mxu0 %v7561_v24 }
 0x1d5   :  { %7009 = vmatprep.subr.bf16.mxu0 %v7563_v26  ;;  %7030 = vmatpush3.bf16.msra.mxu1 %v7562_v25 }
 0x1d6   :  { %v6707_v28 = vpop.f32.mrb[28].mxu0  ;;  %7031 = vmatprep.subr.bf16.mxu1 %v7564_v27  ;;  %v7598_v27 = vld [vmem:[%s9309_s1 + $0xfa8] sm:$0xff]  }
 0x1d7   :  { %v6708_v30 = vpop.f32.mrb[29].mxu0  ;;  %v6729_v32 = vpop.f32.mrb[28].mxu1 }
 0x1d8   :  { %v6709_v33 = vadd.f32 %v6708_v30, %v6707_v28  ;;  %v6710_v34 = vpop.f32.mrb[30].mxu0  ;;  %v6730_v38 = vpop.f32.mrb[29].mxu1  ;;  %7010 = vmatpush3.bf16.msra.mxu0 %v7565_v29  ;;  %v7599_v28 = vld [vmem:[%s9309_s1 + $0xf70] sm:$0xff]  }
 0x1d9   :  { %v6711_v39 = vpop.f32.mrb[31].mxu0  ;;  %v6731_v41 = vadd.f32 %v6730_v38, %v6729_v32  ;;  %v6732_v42 = vpop.f32.mrb[30].mxu1  ;;  %7011 = vmatprep.subr.bf16.mxu0 %v7567_v36  ;;  %7032 = vmatpush3.bf16.msra.mxu1 %v7566_v31  ;;  %v7600_v34 = vld [vmem:[%s9309_s1 + $0xff0] sm:$0xff]  }
 0x1da   :  { %v5181_v40 = vadd.f32 %v6709_v33, %v9080_v63  ;;  %v6733_v44 = vpop.f32.mrb[31].mxu1  ;;  %7033 = vmatprep.subr.bf16.mxu1 %v7568_v37  ;;  %v7579_v63 = vld [vmem:[%s9309_s1 + $0xf48] sm:$0xff]   ;;  %v7601_v37 = vld [vmem:[%s9309_s1 + $0xf30] sm:$0xff]   ;;  %v7603_v39 = vld [vmem:[%s9309_s1 + $0xf78] sm:$0xff]  }
 0x1db   :  { %v7605_v42 = vld [vmem:[%s9309_s1 + $0xf38] sm:$0xff]  }
 0x1dc   :  { %v9181_v46 = vadd.f32 %v6731_v41, %v5181_v40  ;;  %7012 = vmatpush3.bf16.msra.mxu0 %v7569_v43  ;;  %v7602_v40 = vld [vmem:[%s9309_s1 + $0xfb0] sm:$0xff]   ;;  %v7604_v41 = vld [vmem:[%s9309_s1 + $0xff8] sm:$0xff]   ;;  %v1431_v43 = vrot.slane %v9207_v58, %v7719_v35 }
 0x1dd   :  { %7013 = vmatprep.subr.bf16.mxu0 %v7571_v47  ;;  %7034 = vmatpush3.bf16.msra.mxu1 %v7570_v45  ;;  %v7606_v44 = vld [vmem:[%s9309_s1 + $0xfb8] sm:$0xff]  }
 0x1de   :  { %7035 = vmatprep.subr.bf16.mxu1 %v7572_v48  ;;  %v1447_v45 = vcombine.high %v1431_v43, %v1431_v43 }
 0x1e0   :  { %7014 = vmatpush3.bf16.msra.mxu0 %v7573_v49 }
 0x1e1   :  { %7043 = vmatprep.subr.bf16.mxu0 %v7575_v52  ;;  %7036 = vmatpush3.bf16.msra.mxu1 %v7574_v54 }
 0x1e2   :  { %7065 = vmatprep.subr.bf16.mxu1 %v7576_v57 }
 0x1e3   :  { %5739 = vmatmul.mubr.bf16.vlgmr.msra.gmra.mrb[56].mxu0 %v1424_v56 }
 0x1e4   :  { %7044 = vmatpush3.bf16.msra.mxu0 %v7577_v60  ;;  %5779 = vmatmul.mubr.bf16.vlgmr.msra.gmra.mrb[56].mxu1 %v1446_v62 }
 0x1e5   :  { %7045 = vmatprep.subr.bf16.mxu0 %v7579_v63  ;;  %7066 = vmatpush3.bf16.msra.mxu1 %v7578_v1 }
 0x1e6   :  { %5818 = vmatprep.mubr.bf16.mxu0 %v1445_v2  ;;  %7067 = vmatprep.subr.bf16.mxu1 %v7580_v3 }
 0x1e7   :  { %5858 = vmatprep.mubr.bf16.mxu1 %v1449_v5 }
 0x1e8   :  { %7046 = vmatpush3.bf16.msra.mxu0 %v7581_v4 }
 0x1e9   :  { %7047 = vmatprep.subr.bf16.mxu0 %v7583_v6  ;;  %7068 = vmatpush3.bf16.msra.mxu1 %v7582_v7 }
 0x1ea   :  { %7069 = vmatprep.subr.bf16.mxu1 %v7584_v8 }
 0x1ec   :  { %7048 = vmatpush3.bf16.msra.mxu0 %v7585_v9 }
 0x1ed   :  { %7049 = vmatprep.subr.bf16.mxu0 %v7587_v10  ;;  %7070 = vmatpush3.bf16.msra.mxu1 %v7586_v11 }
 0x1ee   :  { %7071 = vmatprep.subr.bf16.mxu1 %v7588_v12 }
 0x1f0   :  { %7050 = vmatpush3.bf16.msra.mxu0 %v7589_v13 }
 0x1f1   :  { %7051 = vmatprep.subr.bf16.mxu0 %v7591_v14  ;;  %7072 = vmatpush3.bf16.msra.mxu1 %v7590_v15 }
 0x1f2   :  { %7073 = vmatprep.subr.bf16.mxu1 %v7592_v16 }
 0x1f4   :  { %7052 = vmatpush3.bf16.msra.mxu0 %v7593_v17 }
 0x1f5   :  { %7053 = vmatprep.subr.bf16.mxu0 %v7595_v18  ;;  %7074 = vmatpush3.bf16.msra.mxu1 %v7594_v19 }
 0x1f6   :  { %v6751_v20 = vpop.f32.mrb[32].mxu0  ;;  %7075 = vmatprep.subr.bf16.mxu1 %v7596_v21 }
 0x1f7   :  { %v6752_v22 = vpop.f32.mrb[33].mxu0  ;;  %v6773_v24 = vpop.f32.mrb[32].mxu1 }
 0x1f8   :  { %v6753_v25 = vadd.f32 %v6752_v22, %v6751_v20  ;;  %v6754_v26 = vpop.f32.mrb[34].mxu0  ;;  %v6774_v29 = vpop.f32.mrb[33].mxu1  ;;  %7054 = vmatpush3.bf16.msra.mxu0 %v7597_v23 }
 0x1f9   :  { %v6755_v30 = vpop.f32.mrb[35].mxu0  ;;  %v6775_v32 = vadd.f32 %v6774_v29, %v6773_v24  ;;  %v6776_v33 = vpop.f32.mrb[34].mxu1  ;;  %7055 = vmatprep.subr.bf16.mxu0 %v7599_v28  ;;  %7076 = vmatpush3.bf16.msra.mxu1 %v7598_v27 }
 0x1fa   :  { %v5261_v31 = vadd.f32 %v6753_v25, %v9181_v46  ;;  %v6777_v36 = vpop.f32.mrb[35].mxu1  ;;  %7077 = vmatprep.subr.bf16.mxu1 %v7600_v34 }
 0x1fc   :  { %v5301_v38 = vadd.f32 %v6775_v32, %v5261_v31  ;;  %7056 = vmatpush3.bf16.msra.mxu0 %v7601_v37 }
 0x1fd   :  { %7057 = vmatprep.subr.bf16.mxu0 %v7603_v39  ;;  %7078 = vmatpush3.bf16.msra.mxu1 %v7602_v40 }
 0x1fe   :  { %7079 = vmatprep.subr.bf16.mxu1 %v7604_v41 }
 0x200   :  { %7058 = vmatpush3.bf16.msra.mxu0 %v7605_v42 }
 0x201   :  { %7080 = vmatpush3.bf16.msra.mxu1 %v7606_v44 }
 0x203   :  { %5819 = vmatmul.mubr.bf16.vlgmr.msra.gmra.mrb[60].mxu0 %v1431_v43 }
 0x204   :  { %5859 = vmatmul.mubr.bf16.vlgmr.msra.gmra.mrb[60].mxu1 %v1447_v45 }
 0x216   :  { %v6795_v46 = vpop.f32.mrb[36].mxu0 }
 0x217   :  { %v6796_v47 = vpop.f32.mrb[37].mxu0  ;;  %v6817_v48 = vpop.f32.mrb[36].mxu1 }
 0x218   :  { %v6797_v49 = vadd.f32 %v6796_v47, %v6795_v46  ;;  %v6798_v50 = vpop.f32.mrb[38].mxu0  ;;  %v6818_v51 = vpop.f32.mrb[37].mxu1 }
 0x219   :  { %v6799_v52 = vpop.f32.mrb[39].mxu0  ;;  %v6819_v35 = vadd.f32 %v6818_v51, %v6817_v48  ;;  %v6820_v54 = vpop.f32.mrb[38].mxu1 }
 0x21a   :  { %v5341_v53 = vadd.f32 %v6797_v49, %v5301_v38  ;;  %v6821_v55 = vpop.f32.mrb[39].mxu1 }
 0x21c   :  { %v5381_v56 = vadd.f32 %v6819_v35, %v5341_v53 }
 0x236   :  { %v6839_v57 = vpop.f32.mrb[40].mxu0 }
 0x237   :  { %v6840_v58 = vpop.f32.mrb[41].mxu0  ;;  %v6861_v59 = vpop.f32.mrb[40].mxu1 }
 0x238   :  { %v6841_v60 = vadd.f32 %v6840_v58, %v6839_v57  ;;  %v6842_v61 = vpop.f32.mrb[42].mxu0  ;;  %v6862_v62 = vpop.f32.mrb[41].mxu1 }
 0x239   :  { %v6843_v63 = vpop.f32.mrb[43].mxu0  ;;  %v6863_v1 = vadd.f32 %v6862_v62, %v6861_v59  ;;  %v6864_v2 = vpop.f32.mrb[42].mxu1 }
 0x23a   :  { %v5421_v0 = vadd.f32 %v6841_v60, %v5381_v56  ;;  %v6865_v3 = vpop.f32.mrb[43].mxu1 }
 0x23c   :  { %v5461_v4 = vadd.f32 %v6863_v1, %v5421_v0 }
 0x256   :  { %v6883_v5 = vpop.f32.mrb[44].mxu0 }
 0x257   :  { %v6884_v6 = vpop.f32.mrb[45].mxu0  ;;  %v6905_v7 = vpop.f32.mrb[44].mxu1 }
 0x258   :  { %v6885_v8 = vadd.f32 %v6884_v6, %v6883_v5  ;;  %v6886_v9 = vpop.f32.mrb[46].mxu0  ;;  %v6906_v10 = vpop.f32.mrb[45].mxu1 }
 0x259   :  { %v6887_v11 = vpop.f32.mrb[47].mxu0  ;;  %v6907_v13 = vadd.f32 %v6906_v10, %v6905_v7  ;;  %v6908_v14 = vpop.f32.mrb[46].mxu1 }
 0x25a   :  { %v5501_v12 = vadd.f32 %v6885_v8, %v5461_v4  ;;  %v6909_v15 = vpop.f32.mrb[47].mxu1 }
 0x25c   :  { %v5541_v16 = vadd.f32 %v6907_v13, %v5501_v12 }
 0x276   :  { %v6927_v17 = vpop.f32.mrb[48].mxu0 }
 0x277   :  { %v6928_v18 = vpop.f32.mrb[49].mxu0  ;;  %v6949_v19 = vpop.f32.mrb[48].mxu1 }
 0x278   :  { %v6929_v20 = vadd.f32 %v6928_v18, %v6927_v17  ;;  %v6930_v21 = vpop.f32.mrb[50].mxu0  ;;  %v6950_v22 = vpop.f32.mrb[49].mxu1 }
 0x279   :  { %v6931_v23 = vpop.f32.mrb[51].mxu0  ;;  %v6951_v25 = vadd.f32 %v6950_v22, %v6949_v19  ;;  %v6952_v26 = vpop.f32.mrb[50].mxu1 }
 0x27a   :  { %v5581_v24 = vadd.f32 %v6929_v20, %v5541_v16  ;;  %v6953_v27 = vpop.f32.mrb[51].mxu1 }
 0x27c   :  { %v5621_v28 = vadd.f32 %v6951_v25, %v5581_v24 }
 0x296   :  { %v6971_v29 = vpop.f32.mrb[52].mxu0 }
 0x297   :  { %v6972_v30 = vpop.f32.mrb[53].mxu0  ;;  %v6993_v31 = vpop.f32.mrb[52].mxu1 }
 0x298   :  { %v6973_v32 = vadd.f32 %v6972_v30, %v6971_v29  ;;  %v6974_v33 = vpop.f32.mrb[54].mxu0  ;;  %v6994_v34 = vpop.f32.mrb[53].mxu1 }
 0x299   :  { %v6975_v36 = vpop.f32.mrb[55].mxu0  ;;  %v6995_v38 = vadd.f32 %v6994_v34, %v6993_v31  ;;  %v6996_v39 = vpop.f32.mrb[54].mxu1 }
 0x29a   :  { %v5661_v37 = vadd.f32 %v6973_v32, %v5621_v28  ;;  %v6997_v40 = vpop.f32.mrb[55].mxu1 }
 0x29c   :  { %v5701_v41 = vadd.f32 %v6995_v38, %v5661_v37 }
 0x2b6   :  { %v7015_v42 = vpop.f32.mrb[56].mxu0 }
 0x2b7   :  { %v7016_v43 = vpop.f32.mrb[57].mxu0  ;;  %v7037_v44 = vpop.f32.mrb[56].mxu1 }
 0x2b8   :  { %v7017_v45 = vadd.f32 %v7016_v43, %v7015_v42  ;;  %v7018_v46 = vpop.f32.mrb[58].mxu0  ;;  %v7038_v47 = vpop.f32.mrb[57].mxu1 }
 0x2b9   :  { %v7019_v48 = vpop.f32.mrb[59].mxu0  ;;  %v7039_v50 = vadd.f32 %v7038_v47, %v7037_v44  ;;  %v7040_v51 = vpop.f32.mrb[58].mxu1 }
 0x2ba   :  { %v5741_v49 = vadd.f32 %v7017_v45, %v5701_v41  ;;  %v7041_v52 = vpop.f32.mrb[59].mxu1 }
 0x2bc   :  { %v5781_v53 = vadd.f32 %v7039_v50, %v5741_v49 }
 0x2d6   :  { %v7059_v35 = vpop.f32.mrb[60].mxu0 }
 0x2d7   :  { %v7060_v54 = vpop.f32.mrb[61].mxu0  ;;  %v7081_v55 = vpop.f32.mrb[60].mxu1 }
 0x2d8   :  { %v7061_v56 = vadd.f32 %v7060_v54, %v7059_v35  ;;  %v7062_v57 = vpop.f32.mrb[62].mxu0  ;;  %v7082_v58 = vpop.f32.mrb[61].mxu1 }
 0x2d9   :  { %v7063_v59 = vpop.f32.mrb[63].mxu0  ;;  %v7083_v61 = vadd.f32 %v7082_v58, %v7081_v55  ;;  %v7084_v62 = vpop.f32.mrb[62].mxu1 }
 0x2da   :  { %v5821_v60 = vadd.f32 %v7061_v56, %v5781_v53  ;;  %v7085_v63 = vpop.f32.mrb[63].mxu1 }
 0x2dc   :  { %v5861_v0 = vadd.f32 %v7083_v61, %v5821_v60 }
 0x2de   :  { %5866 = vst [vmem:[%s9312_s3] sm:$0x3] %v5861_v0 }

</bundles_post_ra>
